<compile_context>
chip_gen: v7x
topology: tpu7x:2x2x1
jax: 0.10.0
libtpu: 0.0.40
codegen_flags: <defaults>
</compile_context>

<pallas_src>
import functools
import math

import jax
import jax.numpy as jnp
from jax.experimental import pallas as pl
from jax.experimental.pallas import tpu as pltpu


# ---------------------------------------------------------------------------
# Patch projection: tiled matmul + bias  (== Conv2d with stride == kernel)
# ---------------------------------------------------------------------------

def _matmul_bias_kernel(x_ref, w_ref, b_ref, o_ref):
    o_ref[...] = (jnp.dot(x_ref[...], w_ref[...],
                          preferred_element_type=jnp.float32)
                  + b_ref[...]).astype(o_ref.dtype)


def _pick_tile(dim, candidates):
    for c in candidates:
        if dim % c == 0:
            return c
    return dim   # fall back to the full (untiled) dimension


def matmul_bias(x_bf16, w_bf16, b_row):
    """x: (M, K) bf16, w: (K, Np) bf16, b: (1, Np) f32 -> (M, Np) f32.
    Np is already padded to a multiple of 128 (lane-dense stores)."""
    M, K = x_bf16.shape
    _, Np = w_bf16.shape
    tm = _pick_tile(M, (512, 256, 128, 64, 32, 16, 8))
    tn = _pick_tile(Np, (512, 256, 128))
    grid = (M // tm, Np // tn)
    return pl.pallas_call(
        _matmul_bias_kernel,
        out_shape=jax.ShapeDtypeStruct((M, Np), jnp.float32),
        grid=grid,
        in_specs=[pl.BlockSpec((tm, K), lambda i, j: (i, 0)),
                  pl.BlockSpec((K, tn), lambda i, j: (0, j)),
                  pl.BlockSpec((1, tn), lambda i, j: (0, j))],
        out_specs=pl.BlockSpec((tm, tn), lambda i, j: (i, j)),
        compiler_params=pltpu.CompilerParams(
            dimension_semantics=("parallel", "parallel"),
            vmem_limit_bytes=32 * 1024 * 1024),
    )(x_bf16, w_bf16, b_row)


# ---------------------------------------------------------------------------
# Encoder stack + classifier head: one pallas_call, grid over layers,
# tokens VMEM-resident; only CLS-row logits/probas are written to HBM.
# ---------------------------------------------------------------------------

def _encoder_head_kernel(x_ref,
                         ln1w_ref, ln1b_ref, wqkv_ref, bqkv_ref,
                         wo_ref, bo_ref, ln2w_ref, ln2b_ref,
                         w1_ref, b1_ref, w2_ref, b2_ref,
                         fcw_ref, fcb_ref,
                         logits_ref, probas_ref,
                         tok_ref, *, num_heads, b_real):
    layer = pl.program_id(0)
    n_layers = pl.num_programs(0)

    @pl.when(layer == 0)
    def _():
        tok_ref[...] = x_ref[...]

    x3 = tok_ref[...]                                 # (S, Bp, E) f32
    S, Bp, E = x3.shape
    H = num_heads
    hd = E // H
    eps = 1e-5
    bf16 = jnp.bfloat16

    def layernorm(t, w, b):
        mu = jnp.mean(t, axis=-1, keepdims=True)
        d = t - mu
        var = jnp.mean(d * d, axis=-1, keepdims=True)
        return d * jax.lax.rsqrt(var + eps) * w + b

    x2 = x3.reshape(S * Bp, E)                        # Bp % 8 == 0 -> clean view

    # ---- attention sub-block --------------------------------------------
    # Per-(token s, head h) attention over the image-batch axis Bp (mirrors
    # nn.MultiheadAttention's batch_first=False applied to a (B, S, E)
    # tensor).  The 1/sqrt(hd) scale is folded into wqkv at prepare time.
    residual = x2
    xn = layernorm(x2, ln1w_ref[0], ln1b_ref[0])
    qkv = (jnp.dot(xn.astype(bf16), wqkv_ref[0],
                   preferred_element_type=jnp.float32)
           + bqkv_ref[0])                             # (S*Bp, 3E) f32

    if Bp > b_real:   # padded image-batch rows must not be attended to
        key_bias = jnp.where(
            jax.lax.broadcasted_iota(jnp.int32, (1, 1, Bp), 2) >= b_real,
            -1e30, 0.0).astype(jnp.float32)
    else:
        key_bias = None

    attn = jnp.zeros((S * Bp, E), jnp.float32)
    for h in range(H):                                # small static unroll
        qh = qkv[:, h * hd:(h + 1) * hd].astype(bf16).reshape(S, Bp, hd)
        kh = qkv[:, E + h * hd:E + (h + 1) * hd].astype(bf16).reshape(S, Bp, hd)
        vh = qkv[:, 2 * E + h * hd:2 * E + (h + 1) * hd].astype(bf16).reshape(S, Bp, hd)
        # Batched MXU matmuls; batch axis = S, attended axis = Bp.
        s = jnp.einsum("sid,sjd->sij", qh, kh,
                       preferred_element_type=jnp.float32)        # (S,Bp,Bp)
        if key_bias is not None:
            s = s + key_bias
        m = jnp.max(s, axis=-1, keepdims=True)
        e = jnp.exp(s - m)
        inv = pl.reciprocal(jnp.sum(e, axis=-1, keepdims=True), approx=True)
        p = (e * inv).astype(bf16)
        ctx = jnp.einsum("sij,sjd->sid", p, vh,
                         preferred_element_type=jnp.float32)      # (S,Bp,hd)
        # Accumulate this head's contribution through its (hd, E) slice of
        # the output projection (replaces the former concat over heads).
        attn = attn + jnp.dot(ctx.reshape(S * Bp, hd).astype(bf16),
                              wo_ref[0, h],
                              preferred_element_type=jnp.float32)
    x2 = attn + bo_ref[0] + residual                  # dropout1 == identity

    # ---- MLP sub-block ----------------------------------------------------
    residual = x2
    xn = layernorm(x2, ln2w_ref[0], ln2b_ref[0])
    hmid = (jnp.dot(xn.astype(bf16), w1_ref[0],
                    preferred_element_type=jnp.float32) + b1_ref[0])
    hmid = jnp.maximum(hmid, 0.0)                     # ReLU; dropout2 == identity
    y = (jnp.dot(hmid.astype(bf16), w2_ref[0],
                 preferred_element_type=jnp.float32) + b2_ref[0])
    x2 = y + residual

    tok_ref[...] = x2.reshape(S, Bp, E)               # carry to next layer (VMEM)

    # ---- fused classifier head on the CLS token (rows 0..Bp-1 are s == 0) --
    @pl.when(layer == n_layers - 1)
    def _():
        cls = x2[:Bp]                                 # (Bp, E)
        logits = (jnp.dot(cls.astype(bf16), fcw_ref[...],
                          preferred_element_type=jnp.float32) + fcb_ref[...])
        logits_ref[...] = logits
        m = jnp.max(logits, axis=-1, keepdims=True)
        e = jnp.exp(logits - m)                       # padded cols: -1e30 -> 0
        probas_ref[...] = e / jnp.sum(e, axis=-1, keepdims=True)


def encoder_with_head(tokens_sbe, prep, *, num_heads, b_real):
    S, Bp, E = tokens_sbe.shape
    stack = prep["stack"]
    L = stack["wqkv"].shape[0]
    Hm = stack["w1"].shape[-1]
    H = num_heads
    hd = E // H
    Cp = prep["fc_w_pad"].shape[-1]

    const2 = lambda l: (0, 0)
    const3 = lambda l: (0, 0, 0)
    per3 = lambda l: (l, 0, 0)
    per4 = lambda l: (l, 0, 0, 0)

    in_specs = [
        pl.BlockSpec((S, Bp, E), const3),             # initial tokens
        pl.BlockSpec((1, 1, E), per3),                # ln1_w
        pl.BlockSpec((1, 1, E), per3),                # ln1_b
        pl.BlockSpec((1, E, 3 * E), per3),            # wqkv (scale folded in)
        pl.BlockSpec((1, 1, 3 * E), per3),            # bqkv
        pl.BlockSpec((1, H, hd, E), per4),            # wo (pre-split per head)
        pl.BlockSpec((1, 1, E), per3),                # bo
        pl.BlockSpec((1, 1, E), per3),                # ln2_w
        pl.BlockSpec((1, 1, E), per3),                # ln2_b
        pl.BlockSpec((1, E, Hm), per3),               # w1
        pl.BlockSpec((1, 1, Hm), per3),               # b1
        pl.BlockSpec((1, Hm, E), per3),               # w2
        pl.BlockSpec((1, 1, E), per3),                # b2
        pl.BlockSpec((E, Cp), const2),                # fc_w (resident)
        pl.BlockSpec((1, Cp), const2),                # fc_b
    ]
    out_specs = (pl.BlockSpec((Bp, Cp), const2),      # logits (lane-dense)
                 pl.BlockSpec((Bp, Cp), const2))      # probas
    out_shape = (jax.ShapeDtypeStruct((Bp, Cp), jnp.float32),
                 jax.ShapeDtypeStruct((Bp, Cp), jnp.float32))

    # Explicit VMEM budget (review items 3/5): double-buffered per-layer
    # weights + token state + head, with headroom; clamped so it is valid on
    # v5e/v6e (128 MiB) and v7x (64 MiB physical).
    per_layer_bytes = sum(
        int(stack[k].size // L) * stack[k].dtype.itemsize
        for k in ("ln1_w", "ln1_b", "wqkv", "bqkv", "wo", "bo",
                  "ln2_w", "ln2_b", "w1", "b1", "w2", "b2"))
    tok_bytes = S * Bp * E * 4
    head_bytes = prep["fc_w_pad"].size * 2 + Cp * 4 + 2 * Bp * Cp * 4
    est = 2 * per_layer_bytes + 2 * tok_bytes + head_bytes
    vmem_limit = int(min(48 * 2 ** 20, max(16 * 2 ** 20, 4 * est)))

    kern = functools.partial(_encoder_head_kernel,
                             num_heads=num_heads, b_real=b_real)
    return pl.pallas_call(
        kern,
        out_shape=out_shape,
        grid=(L,),
        in_specs=in_specs,
        out_specs=out_specs,
        scratch_shapes=[pltpu.VMEM((S, Bp, E), jnp.float32)],
        compiler_params=pltpu.CompilerParams(
            dimension_semantics=("arbitrary",),       # sequential layer loop
            vmem_limit_bytes=vmem_limit),
    )(tokens_sbe,
      stack["ln1_w"], stack["ln1_b"], stack["wqkv"], stack["bqkv"],
      stack["wo"], stack["bo"], stack["ln2_w"], stack["ln2_b"],
      stack["w1"], stack["b1"], stack["w2"], stack["b2"],
      prep["fc_w_pad"], prep["fc_b_pad"])


# ---------------------------------------------------------------------------
# JAX glue: patch extraction, parameter init (torch layout) and one-time prep
# ---------------------------------------------------------------------------

def extract_patches(x, ps):
    # x: (B, C, H, W) -> (B*num_patches, C*ps*ps); patch order row-major (h, w)
    B, C, Hh, Ww = x.shape
    gh, gw = Hh // ps, Ww // ps
    x = x.reshape(B, C, gh, ps, gw, ps)
    x = x.transpose(0, 2, 4, 1, 3, 5)                 # (B, gh, gw, C, ps, ps)
    return x.reshape(B * gh * gw, C * ps * ps)


def init_params(key, *, image_size, patch_size, in_channels, num_classes,
                embed_dim, num_heads, num_layers, hidden_dim):
    keys = iter(jax.random.split(key, 128))

    def r(shape, scale=0.02):
        return scale * jax.random.normal(next(keys), shape, jnp.float32)

    E, Hm, ps, C = embed_dim, hidden_dim, patch_size, in_channels
    num_patches = (image_size // patch_size) ** 2
    params = {
        "conv_w": r((E, C, ps, ps)),                  # nn.Conv2d weight
        "conv_b": r((E,)),
        # torch init is zeros; random here so the test exercises the path
        "cls_token": r((1, 1, E)),
        "pos_embed": r((1, num_patches + 1, E)),
        "fc_w": r((num_classes, E)),
        "fc_b": r((num_classes,)),
        "layers": [],
    }
    for _ in range(num_layers):
        params["layers"].append({
            "in_proj_w": r((3 * E, E)),
            "in_proj_b": r((3 * E,)),
            "out_w": r((E, E)),
            "out_b": r((E,)),
            "ln1_w": jnp.ones((E,), jnp.float32),
            "ln1_b": jnp.zeros((E,), jnp.float32),
            "ln2_w": jnp.ones((E,), jnp.float32),
            "ln2_b": jnp.zeros((E,), jnp.float32),
            "fc1_w": r((Hm, E)),
            "fc1_b": r((Hm,)),
            "fc2_w": r((E, Hm)),
            "fc2_b": r((E,)),
        })
    return params


def prepare_params(params, *, num_heads):
    """One-time layout prep (off the hot path): transposes, per-layer stacking,
    bf16 weight casts, attention scale folded into Wq/bq, per-head split of the
    output projection, lane-dense (128) padding of the head and patch proj."""
    E = params["cls_token"].shape[-1]
    H = num_heads
    hd = E // H
    scale = 1.0 / math.sqrt(hd)
    conv_w = params["conv_w"]
    K = conv_w.shape[1] * conv_w.shape[2] * conv_w.shape[3]
    layers = params["layers"]
    bf16 = jnp.bfloat16

    def stk(fn):
        return jnp.stack([fn(lp) for lp in layers], axis=0)

    def qkv_w(lp):
        w = lp["in_proj_w"].T                                    # (E, 3E)
        return jnp.concatenate([w[:, :E] * scale, w[:, E:]], axis=-1)

    def qkv_b(lp):
        b = lp["in_proj_b"]
        return jnp.concatenate([b[:E] * scale, b[E:]]).reshape(1, 3 * E)

    stack = {
        "ln1_w": stk(lambda lp: lp["ln1_w"].reshape(1, E)),
        "ln1_b": stk(lambda lp: lp["ln1_b"].reshape(1, E)),
        "wqkv": stk(qkv_w).astype(bf16),                          # (L, E, 3E)
        "bqkv": stk(qkv_b),                                       # (L, 1, 3E)
        "wo": stk(lambda lp: lp["out_w"].T.reshape(H, hd, E)).astype(bf16),
        "bo": stk(lambda lp: lp["out_b"].reshape(1, E)),
        "ln2_w": stk(lambda lp: lp["ln2_w"].reshape(1, E)),
        "ln2_b": stk(lambda lp: lp["ln2_b"].reshape(1, E)),
        "w1": stk(lambda lp: lp["fc1_w"].T).astype(bf16),         # (L, E, Hm)
        "b1": stk(lambda lp: lp["fc1_b"].reshape(1, -1)),
        "w2": stk(lambda lp: lp["fc2_w"].T).astype(bf16),         # (L, Hm, E)
        "b2": stk(lambda lp: lp["fc2_b"].reshape(1, E)),
    }

    # Classifier head, padded to a 128-wide lane-dense output.
    C = params["fc_w"].shape[0]
    c_pad = max(128, ((C + 127) // 128) * 128)
    fc_w_pad = jnp.zeros((E, c_pad), jnp.float32).at[:, :C].set(params["fc_w"].T)
    fc_b_pad = jnp.full((1, c_pad), -1e30, jnp.float32).at[0, :C].set(params["fc_b"])

    # Patch projection weight, output padded to a multiple of 128 lanes.
    e_pad = ((E + 127) // 128) * 128
    patch_w = conv_w.reshape(E, K).T                              # (K, E)
    patch_w_pad = jnp.zeros((K, e_pad), jnp.float32).at[:, :E].set(patch_w)
    patch_b_pad = jnp.zeros((1, e_pad), jnp.float32).at[0, :E].set(params["conv_b"])

    return {
        "patch_w": patch_w_pad.astype(bf16),
        "patch_b": patch_b_pad,
        "cls_token": params["cls_token"],
        "pos_embed": params["pos_embed"],
        "fc_w_pad": fc_w_pad.astype(bf16),
        "fc_b_pad": fc_b_pad,
        "stack": stack,
    }


def vit_forward(x, prep, *, patch_size, num_heads, num_classes):
    B = x.shape[0]
    E = prep["cls_token"].shape[-1]

    # Patch projection (bf16 input halves the DMA bytes; N is 128-padded).
    patches = extract_patches(x, patch_size).astype(jnp.bfloat16)   # (B*P, K)
    emb = matmul_bias(patches, prep["patch_w"], prep["patch_b"])[:, :E]
    P = emb.shape[0] // B
    emb = emb.reshape(B, P, E)

    cls = jnp.broadcast_to(prep["cls_token"], (B, 1, E))
    tokens = jnp.concatenate([cls, emb], axis=1) + prep["pos_embed"]  # (B, S, E)

    # (S, B, E): the attention-batch axis (S) leads inside the encoder kernel.
    tokens_sbe = jnp.transpose(tokens, (1, 0, 2))
    Bp = ((B + 7) // 8) * 8                           # sublane-multiple batch
    if Bp != B:
        tokens_sbe = jnp.pad(tokens_sbe, ((0, 0), (0, Bp - B), (0, 0)))

    logits_p, probas_p = encoder_with_head(tokens_sbe, prep,
                                           num_heads=num_heads, b_real=B)
    return logits_p[:B, :num_classes], probas_p[:B, :num_classes]


if __name__ == "__main__":
    image_size, patch_size, in_channels = 16, 4, 4
    num_classes, embed_dim, num_heads = 10, 32, 4
    num_layers, hidden_dim, dropout = 2, 64, 0.1

    key = jax.random.PRNGKey(0)
    kp, kx = jax.random.split(key)
    params = init_params(kp, image_size=image_size, patch_size=patch_size,
                         in_channels=in_channels, num_classes=num_classes,
                         embed_dim=embed_dim, num_heads=num_heads,
                         num_layers=num_layers, hidden_dim=hidden_dim)
    prep = prepare_params(params, num_heads=num_heads)   # one-time layout prep
    x = jax.random.normal(kx, (2, in_channels, image_size, image_size),
                          jnp.float32)

    fwd = jax.jit(functools.partial(vit_forward, patch_size=patch_size,
                                    num_heads=num_heads,
                                    num_classes=num_classes))
    logits, probas = fwd(x, prep)
    jax.block_until_ready((logits, probas))
    assert logits.shape == (2, num_classes) and probas.shape == (2, num_classes)
    assert bool(jnp.all(jnp.isfinite(logits))) and bool(jnp.all(jnp.isfinite(probas)))
    print("KERNEL_OK")
</pallas_src>

<mosaic_0001>
module attributes {stable_mosaic.version = 11 : i64} {
  func.func @_matmul_bias_kernel(%arg0: i32, %arg1: i32, %arg2: memref<32x64xbf16, #tpu.memory_space<vmem>>, %arg3: memref<64x128xbf16, #tpu.memory_space<vmem>>, %arg4: memref<1x128xf32, #tpu.memory_space<vmem>>, %arg5: memref<32x128xf32, #tpu.memory_space<vmem>>) attributes {dimension_semantics = [#tpu.dimension_semantics<parallel>, #tpu.dimension_semantics<parallel>], iteration_bounds = array<i64: 1, 1>, scalar_prefetch = 0 : i64, scratch_operands = 0 : i64, tpu.core_type = #tpu.core_type<tc>, window_params = [{transform_indices = @transform_0, window_bounds = array<i64: 32, 64>}, {transform_indices = @transform_1, window_bounds = array<i64: 64, 128>}, {transform_indices = @transform_2, window_bounds = array<i64: 1, 128>}, {transform_indices = @transform_3, window_bounds = array<i64: 32, 128>}]} {
    %c0 = arith.constant 0 : index
    %c0_0 = arith.constant 0 : index
    %0 = vector.load %arg2[%c0, %c0_0] : memref<32x64xbf16, #tpu.memory_space<vmem>>, vector<32x64xbf16>
    %c0_1 = arith.constant 0 : index
    %c0_2 = arith.constant 0 : index
    %1 = vector.load %arg3[%c0_1, %c0_2] : memref<64x128xbf16, #tpu.memory_space<vmem>>, vector<64x128xbf16>
    %cst = arith.constant dense<0.000000e+00> : vector<32x128xf32>
    %2 = tpu.matmul %0, %1, %cst {dimension_numbers = #tpu.dot_dimension_numbers<[1], [0], [0], [1], [0, 0, 1, 1], [], []>} : vector<32x64xbf16>, vector<64x128xbf16>, vector<32x128xf32> -> vector<32x128xf32>
    %c0_3 = arith.constant 0 : index
    %c0_4 = arith.constant 0 : index
    %3 = vector.load %arg4[%c0_3, %c0_4] : memref<1x128xf32, #tpu.memory_space<vmem>>, vector<1x128xf32>
    %4 = vector.broadcast %3 : vector<1x128xf32> to vector<32x128xf32>
    %5 = arith.addf %2, %4 : vector<32x128xf32>
    %c0_5 = arith.constant 0 : index
    %c0_6 = arith.constant 0 : index
    %6 = vector.load %arg5[%c0_5, %c0_6] : memref<32x128xf32, #tpu.memory_space<vmem>>, vector<32x128xf32>
    tpu.vector_store %arg5[%c0_5, %c0_6], %5 {strides = array<i32>} : memref<32x128xf32, #tpu.memory_space<vmem>>, vector<32x128xf32>,
    return
  }
  func.func @transform_0(%arg0: i32, %arg1: i32) -> (i32, i32) {
    %c0_i32 = arith.constant 0 : i32
    %c0_i32_0 = arith.constant 0 : i32
    return %arg0, %c0_i32 : i32, i32
  }
  func.func @transform_1(%arg0: i32, %arg1: i32) -> (i32, i32) {
    %c0_i32 = arith.constant 0 : i32
    %c0_i32_0 = arith.constant 0 : i32
    return %c0_i32, %arg1 : i32, i32
  }
  func.func @transform_2(%arg0: i32, %arg1: i32) -> (i32, i32) {
    %c0_i32 = arith.constant 0 : i32
    %c0_i32_0 = arith.constant 0 : i32
    return %c0_i32, %arg1 : i32, i32
  }
  func.func @transform_3(%arg0: i32, %arg1: i32) -> (i32, i32) {
    %c0_i32 = arith.constant 0 : i32
    return %arg0, %arg1 : i32, i32
  }
}

module attributes {stable_mosaic.version = 11 : i64} {
  func.func @_encoder_head_kernel(%arg0: i32, %arg1: memref<17x8x32xf32, #tpu.memory_space<vmem>>, %arg2: memref<1x1x32xf32, #tpu.memory_space<vmem>>, %arg3: memref<1x1x32xf32, #tpu.memory_space<vmem>>, %arg4: memref<1x32x96xbf16, #tpu.memory_space<vmem>>, %arg5: memref<1x1x96xf32, #tpu.memory_space<vmem>>, %arg6: memref<1x4x8x32xbf16, #tpu.memory_space<vmem>>, %arg7: memref<1x1x32xf32, #tpu.memory_space<vmem>>, %arg8: memref<1x1x32xf32, #tpu.memory_space<vmem>>, %arg9: memref<1x1x32xf32, #tpu.memory_space<vmem>>, %arg10: memref<1x32x64xbf16, #tpu.memory_space<vmem>>, %arg11: memref<1x1x64xf32, #tpu.memory_space<vmem>>, %arg12: memref<1x64x32xbf16, #tpu.memory_space<vmem>>, %arg13: memref<1x1x32xf32, #tpu.memory_space<vmem>>, %arg14: memref<32x128xbf16, #tpu.memory_space<vmem>>, %arg15: memref<1x128xf32, #tpu.memory_space<vmem>>, %arg16: memref<8x128xf32, #tpu.memory_space<vmem>>, %arg17: memref<8x128xf32, #tpu.memory_space<vmem>>, %arg18: memref<17x8x32xf32, #tpu.memory_space<vmem>>) attributes {dimension_semantics = [#tpu.dimension_semantics<arbitrary>], iteration_bounds = array<i64: 2>, scalar_prefetch = 0 : i64, scratch_operands = 1 : i64, tpu.core_type = #tpu.core_type<tc>, window_params = [{pipeline_mode = #tpu.pipeline_mode<synchronous>, transform_indices = @transform_0, window_bounds = array<i64: 17, 8, 32>}, {transform_indices = @transform_1, window_bounds = array<i64: 1, 1, 32>}, {transform_indices = @transform_2, window_bounds = array<i64: 1, 1, 32>}, {transform_indices = @transform_3, window_bounds = array<i64: 1, 32, 96>}, {transform_indices = @transform_4, window_bounds = array<i64: 1, 1, 96>}, {transform_indices = @transform_5, window_bounds = array<i64: 1, 4, 8, 32>}, {transform_indices = @transform_6, window_bounds = array<i64: 1, 1, 32>}, {transform_indices = @transform_7, window_bounds = array<i64: 1, 1, 32>}, {transform_indices = @transform_8, window_bounds = array<i64: 1, 1, 32>}, {transform_indices = @transform_9, window_bounds = array<i64: 1, 32, 64>}, {transform_indices = @transform_10, window_bounds = array<i64: 1, 1, 64>}, {transform_indices = @transform_11, window_bounds = array<i64: 1, 64, 32>}, {transform_indices = @transform_12, window_bounds = array<i64: 1, 1, 32>}, {pipeline_mode = #tpu.pipeline_mode<synchronous>, transform_indices = @transform_13, window_bounds = array<i64: 32, 128>}, {pipeline_mode = #tpu.pipeline_mode<synchronous>, transform_indices = @transform_14, window_bounds = array<i64: 1, 128>}, {pipeline_mode = #tpu.pipeline_mode<synchronous>, transform_indices = @transform_15, window_bounds = array<i64: 8, 128>}, {pipeline_mode = #tpu.pipeline_mode<synchronous>, transform_indices = @transform_16, window_bounds = array<i64: 8, 128>}]} {
    %c0_i32 = arith.constant 0 : i32
    %0 = arith.cmpi eq, %arg0, %c0_i32 : i32
    %1 = arith.extui %0 : i1 to i32
    %c0_i32_0 = arith.constant 0 : i32
    %2 = arith.cmpi ne, %1, %c0_i32_0 : i32
    scf.if %2 {
      %c0_89 = arith.constant 0 : index
      %c0_90 = arith.constant 0 : index
      %c0_91 = arith.constant 0 : index
      %217 = vector.load %arg1[%c0_89, %c0_90, %c0_91] : memref<17x8x32xf32, #tpu.memory_space<vmem>>, vector<17x8x32xf32>
      %c0_92 = arith.constant 0 : index
      %c0_93 = arith.constant 0 : index
      %c0_94 = arith.constant 0 : index
      %218 = vector.load %arg18[%c0_92, %c0_93, %c0_94] : memref<17x8x32xf32, #tpu.memory_space<vmem>>, vector<17x8x32xf32>
      tpu.vector_store %arg18[%c0_92, %c0_93, %c0_94], %217 {strides = array<i32>} : memref<17x8x32xf32, #tpu.memory_space<vmem>>, vector<17x8x32xf32>,
    } else {
    }
    %c0 = arith.constant 0 : index
    %c0_1 = arith.constant 0 : index
    %c0_2 = arith.constant 0 : index
    %3 = vector.load %arg18[%c0, %c0_1, %c0_2] : memref<17x8x32xf32, #tpu.memory_space<vmem>>, vector<17x8x32xf32>
    %4 = vector.shape_cast %3 : vector<17x8x32xf32> to vector<136x32xf32>
    %c0_3 = arith.constant 0 : index
    %c0_4 = arith.constant 0 : index
    %c0_5 = arith.constant 0 : index
    %5 = vector.load %arg2[%c0_3, %c0_4, %c0_5] : memref<1x1x32xf32, #tpu.memory_space<vmem>>, vector<1x1x32xf32>
    %6 = vector.shape_cast %5 : vector<1x1x32xf32> to vector<1x32xf32>
    %c0_6 = arith.constant 0 : index
    %c0_7 = arith.constant 0 : index
    %c0_8 = arith.constant 0 : index
    %7 = vector.load %arg3[%c0_6, %c0_7, %c0_8] : memref<1x1x32xf32, #tpu.memory_space<vmem>>, vector<1x1x32xf32>
    %8 = vector.shape_cast %7 : vector<1x1x32xf32> to vector<1x32xf32>
    %cst = arith.constant dense<0.000000e+00> : vector<136xf32>
    %9 = vector.multi_reduction <add>, %4, %cst [1] : vector<136x32xf32> to vector<136xf32>
    %10 = vector.shape_cast %9 : vector<136xf32> to vector<136x1xf32>
    %cst_9 = arith.constant 3.200000e+01 : f32
    %11 = vector.broadcast %cst_9 : f32 to vector<136x1xf32>
    %12 = arith.divf %10, %11 : vector<136x1xf32>
    %13 = vector.broadcast %12 : vector<136x1xf32> to vector<136x32xf32>
    %14 = arith.subf %4, %13 : vector<136x32xf32>
    %15 = arith.mulf %14, %14 : vector<136x32xf32>
    %cst_10 = arith.constant dense<0.000000e+00> : vector<136xf32>
    %16 = vector.multi_reduction <add>, %15, %cst_10 [1] : vector<136x32xf32> to vector<136xf32>
    %17 = vector.shape_cast %16 : vector<136xf32> to vector<136x1xf32>
    %cst_11 = arith.constant 3.200000e+01 : f32
    %18 = vector.broadcast %cst_11 : f32 to vector<136x1xf32>
    %19 = arith.divf %17, %18 : vector<136x1xf32>
    %cst_12 = arith.constant 9.99999974E-6 : f32
    %20 = vector.broadcast %cst_12 : f32 to vector<136x1xf32>
    %21 = arith.addf %19, %20 : vector<136x1xf32>
    %22 = math.rsqrt %21 : vector<136x1xf32>
    %23 = vector.broadcast %22 : vector<136x1xf32> to vector<136x32xf32>
    %24 = arith.mulf %14, %23 : vector<136x32xf32>
    %25 = vector.broadcast %6 : vector<1x32xf32> to vector<136x32xf32>
    %26 = arith.mulf %24, %25 : vector<136x32xf32>
    %27 = vector.broadcast %8 : vector<1x32xf32> to vector<136x32xf32>
    %28 = arith.addf %26, %27 : vector<136x32xf32>
    %29 = arith.truncf %28 : vector<136x32xf32> to vector<136x32xbf16>
    %c0_13 = arith.constant 0 : index
    %c0_14 = arith.constant 0 : index
    %c0_15 = arith.constant 0 : index
    %30 = vector.load %arg4[%c0_13, %c0_14, %c0_15] : memref<1x32x96xbf16, #tpu.memory_space<vmem>>, vector<1x32x96xbf16>
    %31 = vector.shape_cast %30 : vector<1x32x96xbf16> to vector<32x96xbf16>
    %cst_16 = arith.constant dense<0.000000e+00> : vector<136x96xf32>
    %32 = tpu.matmul %29, %31, %cst_16 {dimension_numbers = #tpu.dot_dimension_numbers<[1], [0], [0], [1], [0, 0, 1, 1], [], []>} : vector<136x32xbf16>, vector<32x96xbf16>, vector<136x96xf32> -> vector<136x96xf32>
    %c0_17 = arith.constant 0 : index
    %c0_18 = arith.constant 0 : index
    %c0_19 = arith.constant 0 : index
    %33 = vector.load %arg5[%c0_17, %c0_18, %c0_19] : memref<1x1x96xf32, #tpu.memory_space<vmem>>, vector<1x1x96xf32>
    %34 = vector.shape_cast %33 : vector<1x1x96xf32> to vector<1x96xf32>
    %35 = vector.broadcast %34 : vector<1x96xf32> to vector<136x96xf32>
    %36 = arith.addf %32, %35 : vector<136x96xf32>
    %37 = tpu.iota {dimensions = array<i32: 2>} : vector<1x1x8xi32>
    %c2_i32 = arith.constant 2 : i32
    %38 = vector.broadcast %c2_i32 : i32 to vector<1x1x8xi32>
    %39 = arith.cmpi sge, %37, %38 : vector<1x1x8xi32>
    %cst_20 = arith.constant -1.000000e+30 : f32
    %cst_21 = arith.constant 0.000000e+00 : f32
    %40 = vector.broadcast %cst_20 : f32 to vector<1x1x8xf32>
    %41 = vector.broadcast %cst_21 : f32 to vector<1x1x8xf32>
    %42 = arith.select %39, %40, %41 : vector<1x1x8xi1>, vector<1x1x8xf32>
    %cst_22 = arith.constant 0.000000e+00 : f32
    %43 = vector.broadcast %cst_22 : f32 to vector<136x32xf32>
    %44 = vector.extract_strided_slice %36 {offsets = [0, 0], sizes = [136, 8], strides = [1, 1]} : vector<136x96xf32> to vector<136x8xf32>
    %45 = arith.truncf %44 : vector<136x8xf32> to vector<136x8xbf16>
    %46 = vector.shape_cast %45 : vector<136x8xbf16> to vector<17x8x8xbf16>
    %47 = vector.extract_strided_slice %36 {offsets = [0, 32], sizes = [136, 8], strides = [1, 1]} : vector<136x96xf32> to vector<136x8xf32>
    %48 = arith.truncf %47 : vector<136x8xf32> to vector<136x8xbf16>
    %49 = vector.shape_cast %48 : vector<136x8xbf16> to vector<17x8x8xbf16>
    %50 = vector.extract_strided_slice %36 {offsets = [0, 64], sizes = [136, 8], strides = [1, 1]} : vector<136x96xf32> to vector<136x8xf32>
    %51 = arith.truncf %50 : vector<136x8xf32> to vector<136x8xbf16>
    %52 = vector.shape_cast %51 : vector<136x8xbf16> to vector<17x8x8xbf16>
    "tpu.trace_start"() <{level = 10 : i32, message = "sid,sjd->sij"}> : () -> ()
    %cst_23 = arith.constant dense<0.000000e+00> : vector<17x8x8xf32>
    %53 = tpu.matmul %46, %49, %cst_23 {dimension_numbers = #tpu.dot_dimension_numbers<[2], [2], [1], [1], [0, 0, 0, 1, 1, 1], [0], [0]>} : vector<17x8x8xbf16>, vector<17x8x8xbf16>, vector<17x8x8xf32> -> vector<17x8x8xf32>
    "tpu.trace_stop"() : () -> ()
    %54 = vector.broadcast %42 : vector<1x1x8xf32> to vector<17x8x8xf32>
    %55 = arith.addf %53, %54 : vector<17x8x8xf32>
    %cst_24 = arith.constant dense<0xFF800000> : vector<17x8xf32>
    %56 = vector.multi_reduction <maximumf>, %55, %cst_24 [2] : vector<17x8x8xf32> to vector<17x8xf32>
    %57 = vector.shape_cast %56 : vector<17x8xf32> to vector<17x8x1xf32>
    %58 = vector.broadcast %57 : vector<17x8x1xf32> to vector<17x8x8xf32>
    %59 = arith.subf %55, %58 : vector<17x8x8xf32>
    %60 = math.exp %59 : vector<17x8x8xf32>
    %cst_25 = arith.constant dense<0.000000e+00> : vector<17x8xf32>
    %61 = vector.multi_reduction <add>, %60, %cst_25 [2] : vector<17x8x8xf32> to vector<17x8xf32>
    %62 = vector.shape_cast %61 : vector<17x8xf32> to vector<17x8x1xf32>
    %63 = tpu.reciprocal %62 {approx = true} : vector<17x8x1xf32> -> vector<17x8x1xf32>
    %64 = vector.broadcast %63 : vector<17x8x1xf32> to vector<17x8x8xf32>
    %65 = arith.mulf %60, %64 : vector<17x8x8xf32>
    %66 = arith.truncf %65 : vector<17x8x8xf32> to vector<17x8x8xbf16>
    "tpu.trace_start"() <{level = 10 : i32, message = "sij,sjd->sid"}> : () -> ()
    %cst_26 = arith.constant dense<0.000000e+00> : vector<17x8x8xf32>
    %67 = tpu.matmul %66, %52, %cst_26 {dimension_numbers = #tpu.dot_dimension_numbers<[2], [1], [1], [2], [0, 0, 0, 1, 1, 2], [0], [0]>} : vector<17x8x8xbf16>, vector<17x8x8xbf16>, vector<17x8x8xf32> -> vector<17x8x8xf32>
    "tpu.trace_stop"() : () -> ()
    %68 = vector.shape_cast %67 : vector<17x8x8xf32> to vector<136x8xf32>
    %69 = arith.truncf %68 : vector<136x8xf32> to vector<136x8xbf16>
    %c0_27 = arith.constant 0 : index
    %c0_28 = arith.constant 0 : index
    %c0_29 = arith.constant 0 : index
    %c0_30 = arith.constant 0 : index
    %70 = vector.load %arg6[%c0_27, %c0_28, %c0_29, %c0_30] : memref<1x4x8x32xbf16, #tpu.memory_space<vmem>>, vector<1x1x8x32xbf16>
    %71 = vector.shape_cast %70 : vector<1x1x8x32xbf16> to vector<8x32xbf16>
    %cst_31 = arith.constant dense<0.000000e+00> : vector<136x32xf32>
    %72 = tpu.matmul %69, %71, %cst_31 {dimension_numbers = #tpu.dot_dimension_numbers<[1], [0], [0], [1], [0, 0, 1, 1], [], []>} : vector<136x8xbf16>, vector<8x32xbf16>, vector<136x32xf32> -> vector<136x32xf32>
    %73 = arith.addf %43, %72 : vector<136x32xf32>
    %74 = vector.extract_strided_slice %36 {offsets = [0, 8], sizes = [136, 8], strides = [1, 1]} : vector<136x96xf32> to vector<136x8xf32>
    %75 = arith.truncf %74 : vector<136x8xf32> to vector<136x8xbf16>
    %76 = vector.shape_cast %75 : vector<136x8xbf16> to vector<17x8x8xbf16>
    %77 = vector.extract_strided_slice %36 {offsets = [0, 40], sizes = [136, 8], strides = [1, 1]} : vector<136x96xf32> to vector<136x8xf32>
    %78 = arith.truncf %77 : vector<136x8xf32> to vector<136x8xbf16>
    %79 = vector.shape_cast %78 : vector<136x8xbf16> to vector<17x8x8xbf16>
    %80 = vector.extract_strided_slice %36 {offsets = [0, 72], sizes = [136, 8], strides = [1, 1]} : vector<136x96xf32> to vector<136x8xf32>
    %81 = arith.truncf %80 : vector<136x8xf32> to vector<136x8xbf16>
    %82 = vector.shape_cast %81 : vector<136x8xbf16> to vector<17x8x8xbf16>
    "tpu.trace_start"() <{level = 10 : i32, message = "sid,sjd->sij"}> : () -> ()
    %cst_32 = arith.constant dense<0.000000e+00> : vector<17x8x8xf32>
    %83 = tpu.matmul %76, %79, %cst_32 {dimension_numbers = #tpu.dot_dimension_numbers<[2], [2], [1], [1], [0, 0, 0, 1, 1, 1], [0], [0]>} : vector<17x8x8xbf16>, vector<17x8x8xbf16>, vector<17x8x8xf32> -> vector<17x8x8xf32>
    "tpu.trace_stop"() : () -> ()
    %84 = vector.broadcast %42 : vector<1x1x8xf32> to vector<17x8x8xf32>
    %85 = arith.addf %83, %84 : vector<17x8x8xf32>
    %cst_33 = arith.constant dense<0xFF800000> : vector<17x8xf32>
    %86 = vector.multi_reduction <maximumf>, %85, %cst_33 [2] : vector<17x8x8xf32> to vector<17x8xf32>
    %87 = vector.shape_cast %86 : vector<17x8xf32> to vector<17x8x1xf32>
    %88 = vector.broadcast %87 : vector<17x8x1xf32> to vector<17x8x8xf32>
    %89 = arith.subf %85, %88 : vector<17x8x8xf32>
    %90 = math.exp %89 : vector<17x8x8xf32>
    %cst_34 = arith.constant dense<0.000000e+00> : vector<17x8xf32>
    %91 = vector.multi_reduction <add>, %90, %cst_34 [2] : vector<17x8x8xf32> to vector<17x8xf32>
    %92 = vector.shape_cast %91 : vector<17x8xf32> to vector<17x8x1xf32>
    %93 = tpu.reciprocal %92 {approx = true} : vector<17x8x1xf32> -> vector<17x8x1xf32>
    %94 = vector.broadcast %93 : vector<17x8x1xf32> to vector<17x8x8xf32>
    %95 = arith.mulf %90, %94 : vector<17x8x8xf32>
    %96 = arith.truncf %95 : vector<17x8x8xf32> to vector<17x8x8xbf16>
    "tpu.trace_start"() <{level = 10 : i32, message = "sij,sjd->sid"}> : () -> ()
    %cst_35 = arith.constant dense<0.000000e+00> : vector<17x8x8xf32>
    %97 = tpu.matmul %96, %82, %cst_35 {dimension_numbers = #tpu.dot_dimension_numbers<[2], [1], [1], [2], [0, 0, 0, 1, 1, 2], [0], [0]>} : vector<17x8x8xbf16>, vector<17x8x8xbf16>, vector<17x8x8xf32> -> vector<17x8x8xf32>
    "tpu.trace_stop"() : () -> ()
    %98 = vector.shape_cast %97 : vector<17x8x8xf32> to vector<136x8xf32>
    %99 = arith.truncf %98 : vector<136x8xf32> to vector<136x8xbf16>
    %c0_36 = arith.constant 0 : index
    %c1 = arith.constant 1 : index
    %c0_37 = arith.constant 0 : index
    %c0_38 = arith.constant 0 : index
    %100 = vector.load %arg6[%c0_36, %c1, %c0_37, %c0_38] : memref<1x4x8x32xbf16, #tpu.memory_space<vmem>>, vector<1x1x8x32xbf16>
    %101 = vector.shape_cast %100 : vector<1x1x8x32xbf16> to vector<8x32xbf16>
    %cst_39 = arith.constant dense<0.000000e+00> : vector<136x32xf32>
    %102 = tpu.matmul %99, %101, %cst_39 {dimension_numbers = #tpu.dot_dimension_numbers<[1], [0], [0], [1], [0, 0, 1, 1], [], []>} : vector<136x8xbf16>, vector<8x32xbf16>, vector<136x32xf32> -> vector<136x32xf32>
    %103 = arith.addf %73, %102 : vector<136x32xf32>
    %104 = vector.extract_strided_slice %36 {offsets = [0, 16], sizes = [136, 8], strides = [1, 1]} : vector<136x96xf32> to vector<136x8xf32>
    %105 = arith.truncf %104 : vector<136x8xf32> to vector<136x8xbf16>
    %106 = vector.shape_cast %105 : vector<136x8xbf16> to vector<17x8x8xbf16>
    %107 = vector.extract_strided_slice %36 {offsets = [0, 48], sizes = [136, 8], strides = [1, 1]} : vector<136x96xf32> to vector<136x8xf32>
    %108 = arith.truncf %107 : vector<136x8xf32> to vector<136x8xbf16>
    %109 = vector.shape_cast %108 : vector<136x8xbf16> to vector<17x8x8xbf16>
    %110 = vector.extract_strided_slice %36 {offsets = [0, 80], sizes = [136, 8], strides = [1, 1]} : vector<136x96xf32> to vector<136x8xf32>
    %111 = arith.truncf %110 : vector<136x8xf32> to vector<136x8xbf16>
    %112 = vector.shape_cast %111 : vector<136x8xbf16> to vector<17x8x8xbf16>
    "tpu.trace_start"() <{level = 10 : i32, message = "sid,sjd->sij"}> : () -> ()
    %cst_40 = arith.constant dense<0.000000e+00> : vector<17x8x8xf32>
    %113 = tpu.matmul %106, %109, %cst_40 {dimension_numbers = #tpu.dot_dimension_numbers<[2], [2], [1], [1], [0, 0, 0, 1, 1, 1], [0], [0]>} : vector<17x8x8xbf16>, vector<17x8x8xbf16>, vector<17x8x8xf32> -> vector<17x8x8xf32>
    "tpu.trace_stop"() : () -> ()
    %114 = vector.broadcast %42 : vector<1x1x8xf32> to vector<17x8x8xf32>
    %115 = arith.addf %113, %114 : vector<17x8x8xf32>
    %cst_41 = arith.constant dense<0xFF800000> : vector<17x8xf32>
    %116 = vector.multi_reduction <maximumf>, %115, %cst_41 [2] : vector<17x8x8xf32> to vector<17x8xf32>
    %117 = vector.shape_cast %116 : vector<17x8xf32> to vector<17x8x1xf32>
    %118 = vector.broadcast %117 : vector<17x8x1xf32> to vector<17x8x8xf32>
    %119 = arith.subf %115, %118 : vector<17x8x8xf32>
    %120 = math.exp %119 : vector<17x8x8xf32>
    %cst_42 = arith.constant dense<0.000000e+00> : vector<17x8xf32>
    %121 = vector.multi_reduction <add>, %120, %cst_42 [2] : vector<17x8x8xf32> to vector<17x8xf32>
    %122 = vector.shape_cast %121 : vector<17x8xf32> to vector<17x8x1xf32>
    %123 = tpu.reciprocal %122 {approx = true} : vector<17x8x1xf32> -> vector<17x8x1xf32>
    %124 = vector.broadcast %123 : vector<17x8x1xf32> to vector<17x8x8xf32>
    %125 = arith.mulf %120, %124 : vector<17x8x8xf32>
    %126 = arith.truncf %125 : vector<17x8x8xf32> to vector<17x8x8xbf16>
    "tpu.trace_start"() <{level = 10 : i32, message = "sij,sjd->sid"}> : () -> ()
    %cst_43 = arith.constant dense<0.000000e+00> : vector<17x8x8xf32>
    %127 = tpu.matmul %126, %112, %cst_43 {dimension_numbers = #tpu.dot_dimension_numbers<[2], [1], [1], [2], [0, 0, 0, 1, 1, 2], [0], [0]>} : vector<17x8x8xbf16>, vector<17x8x8xbf16>, vector<17x8x8xf32> -> vector<17x8x8xf32>
    "tpu.trace_stop"() : () -> ()
    %128 = vector.shape_cast %127 : vector<17x8x8xf32> to vector<136x8xf32>
    %129 = arith.truncf %128 : vector<136x8xf32> to vector<136x8xbf16>
    %c0_44 = arith.constant 0 : index
    %c2 = arith.constant 2 : index
    %c0_45 = arith.constant 0 : index
    %c0_46 = arith.constant 0 : index
    %130 = vector.load %arg6[%c0_44, %c2, %c0_45, %c0_46] : memref<1x4x8x32xbf16, #tpu.memory_space<vmem>>, vector<1x1x8x32xbf16>
    %131 = vector.shape_cast %130 : vector<1x1x8x32xbf16> to vector<8x32xbf16>
    %cst_47 = arith.constant dense<0.000000e+00> : vector<136x32xf32>
    %132 = tpu.matmul %129, %131, %cst_47 {dimension_numbers = #tpu.dot_dimension_numbers<[1], [0], [0], [1], [0, 0, 1, 1], [], []>} : vector<136x8xbf16>, vector<8x32xbf16>, vector<136x32xf32> -> vector<136x32xf32>
    %133 = arith.addf %103, %132 : vector<136x32xf32>
    %134 = vector.extract_strided_slice %36 {offsets = [0, 24], sizes = [136, 8], strides = [1, 1]} : vector<136x96xf32> to vector<136x8xf32>
    %135 = arith.truncf %134 : vector<136x8xf32> to vector<136x8xbf16>
    %136 = vector.shape_cast %135 : vector<136x8xbf16> to vector<17x8x8xbf16>
    %137 = vector.extract_strided_slice %36 {offsets = [0, 56], sizes = [136, 8], strides = [1, 1]} : vector<136x96xf32> to vector<136x8xf32>
    %138 = arith.truncf %137 : vector<136x8xf32> to vector<136x8xbf16>
    %139 = vector.shape_cast %138 : vector<136x8xbf16> to vector<17x8x8xbf16>
    %140 = vector.extract_strided_slice %36 {offsets = [0, 88], sizes = [136, 8], strides = [1, 1]} : vector<136x96xf32> to vector<136x8xf32>
    %141 = arith.truncf %140 : vector<136x8xf32> to vector<136x8xbf16>
    %142 = vector.shape_cast %141 : vector<136x8xbf16> to vector<17x8x8xbf16>
    "tpu.trace_start"() <{level = 10 : i32, message = "sid,sjd->sij"}> : () -> ()
    %cst_48 = arith.constant dense<0.000000e+00> : vector<17x8x8xf32>
    %143 = tpu.matmul %136, %139, %cst_48 {dimension_numbers = #tpu.dot_dimension_numbers<[2], [2], [1], [1], [0, 0, 0, 1, 1, 1], [0], [0]>} : vector<17x8x8xbf16>, vector<17x8x8xbf16>, vector<17x8x8xf32> -> vector<17x8x8xf32>
    "tpu.trace_stop"() : () -> ()
    %144 = vector.broadcast %42 : vector<1x1x8xf32> to vector<17x8x8xf32>
    %145 = arith.addf %143, %144 : vector<17x8x8xf32>
    %cst_49 = arith.constant dense<0xFF800000> : vector<17x8xf32>
    %146 = vector.multi_reduction <maximumf>, %145, %cst_49 [2] : vector<17x8x8xf32> to vector<17x8xf32>
    %147 = vector.shape_cast %146 : vector<17x8xf32> to vector<17x8x1xf32>
    %148 = vector.broadcast %147 : vector<17x8x1xf32> to vector<17x8x8xf32>
    %149 = arith.subf %145, %148 : vector<17x8x8xf32>
    %150 = math.exp %149 : vector<17x8x8xf32>
    %cst_50 = arith.constant dense<0.000000e+00> : vector<17x8xf32>
    %151 = vector.multi_reduction <add>, %150, %cst_50 [2] : vector<17x8x8xf32> to vector<17x8xf32>
    %152 = vector.shape_cast %151 : vector<17x8xf32> to vector<17x8x1xf32>
    %153 = tpu.reciprocal %152 {approx = true} : vector<17x8x1xf32> -> vector<17x8x1xf32>
    %154 = vector.broadcast %153 : vector<17x8x1xf32> to vector<17x8x8xf32>
    %155 = arith.mulf %150, %154 : vector<17x8x8xf32>
    %156 = arith.truncf %155 : vector<17x8x8xf32> to vector<17x8x8xbf16>
    "tpu.trace_start"() <{level = 10 : i32, message = "sij,sjd->sid"}> : () -> ()
    %cst_51 = arith.constant dense<0.000000e+00> : vector<17x8x8xf32>
    %157 = tpu.matmul %156, %142, %cst_51 {dimension_numbers = #tpu.dot_dimension_numbers<[2], [1], [1], [2], [0, 0, 0, 1, 1, 2], [0], [0]>} : vector<17x8x8xbf16>, vector<17x8x8xbf16>, vector<17x8x8xf32> -> vector<17x8x8xf32>
    "tpu.trace_stop"() : () -> ()
    %158 = vector.shape_cast %157 : vector<17x8x8xf32> to vector<136x8xf32>
    %159 = arith.truncf %158 : vector<136x8xf32> to vector<136x8xbf16>
    %c0_52 = arith.constant 0 : index
    %c3 = arith.constant 3 : index
    %c0_53 = arith.constant 0 : index
    %c0_54 = arith.constant 0 : index
    %160 = vector.load %arg6[%c0_52, %c3, %c0_53, %c0_54] : memref<1x4x8x32xbf16, #tpu.memory_space<vmem>>, vector<1x1x8x32xbf16>
    %161 = vector.shape_cast %160 : vector<1x1x8x32xbf16> to vector<8x32xbf16>
    %cst_55 = arith.constant dense<0.000000e+00> : vector<136x32xf32>
    %162 = tpu.matmul %159, %161, %cst_55 {dimension_numbers = #tpu.dot_dimension_numbers<[1], [0], [0], [1], [0, 0, 1, 1], [], []>} : vector<136x8xbf16>, vector<8x32xbf16>, vector<136x32xf32> -> vector<136x32xf32>
    %163 = arith.addf %133, %162 : vector<136x32xf32>
    %c0_56 = arith.constant 0 : index
    %c0_57 = arith.constant 0 : index
    %c0_58 = arith.constant 0 : index
    %164 = vector.load %arg7[%c0_56, %c0_57, %c0_58] : memref<1x1x32xf32, #tpu.memory_space<vmem>>, vector<1x1x32xf32>
    %165 = vector.shape_cast %164 : vector<1x1x32xf32> to vector<1x32xf32>
    %166 = vector.broadcast %165 : vector<1x32xf32> to vector<136x32xf32>
    %167 = arith.addf %163, %166 : vector<136x32xf32>
    %168 = arith.addf %167, %4 : vector<136x32xf32>
    %c0_59 = arith.constant 0 : index
    %c0_60 = arith.constant 0 : index
    %c0_61 = arith.constant 0 : index
    %169 = vector.load %arg8[%c0_59, %c0_60, %c0_61] : memref<1x1x32xf32, #tpu.memory_space<vmem>>, vector<1x1x32xf32>
    %170 = vector.shape_cast %169 : vector<1x1x32xf32> to vector<1x32xf32>
    %c0_62 = arith.constant 0 : index
    %c0_63 = arith.constant 0 : index
    %c0_64 = arith.constant 0 : index
    %171 = vector.load %arg9[%c0_62, %c0_63, %c0_64] : memref<1x1x32xf32, #tpu.memory_space<vmem>>, vector<1x1x32xf32>
    %172 = vector.shape_cast %171 : vector<1x1x32xf32> to vector<1x32xf32>
    %cst_65 = arith.constant dense<0.000000e+00> : vector<136xf32>
    %173 = vector.multi_reduction <add>, %168, %cst_65 [1] : vector<136x32xf32> to vector<136xf32>
    %174 = vector.shape_cast %173 : vector<136xf32> to vector<136x1xf32>
    %cst_66 = arith.constant 3.200000e+01 : f32
    %175 = vector.broadcast %cst_66 : f32 to vector<136x1xf32>
    %176 = arith.divf %174, %175 : vector<136x1xf32>
    %177 = vector.broadcast %176 : vector<136x1xf32> to vector<136x32xf32>
    %178 = arith.subf %168, %177 : vector<136x32xf32>
    %179 = arith.mulf %178, %178 : vector<136x32xf32>
    %cst_67 = arith.constant dense<0.000000e+00> : vector<136xf32>
    %180 = vector.multi_reduction <add>, %179, %cst_67 [1] : vector<136x32xf32> to vector<136xf32>
    %181 = vector.shape_cast %180 : vector<136xf32> to vector<136x1xf32>
    %cst_68 = arith.constant 3.200000e+01 : f32
    %182 = vector.broadcast %cst_68 : f32 to vector<136x1xf32>
    %183 = arith.divf %181, %182 : vector<136x1xf32>
    %cst_69 = arith.constant 9.99999974E-6 : f32
    %184 = vector.broadcast %cst_69 : f32 to vector<136x1xf32>
    %185 = arith.addf %183, %184 : vector<136x1xf32>
    %186 = math.rsqrt %185 : vector<136x1xf32>
    %187 = vector.broadcast %186 : vector<136x1xf32> to vector<136x32xf32>
    %188 = arith.mulf %178, %187 : vector<136x32xf32>
    %189 = vector.broadcast %170 : vector<1x32xf32> to vector<136x32xf32>
    %190 = arith.mulf %188, %189 : vector<136x32xf32>
    %191 = vector.broadcast %172 : vector<1x32xf32> to vector<136x32xf32>
    %192 = arith.addf %190, %191 : vector<136x32xf32>
    %193 = arith.truncf %192 : vector<136x32xf32> to vector<136x32xbf16>
    %c0_70 = arith.constant 0 : index
    %c0_71 = arith.constant 0 : index
    %c0_72 = arith.constant 0 : index
    %194 = vector.load %arg10[%c0_70, %c0_71, %c0_72] : memref<1x32x64xbf16, #tpu.memory_space<vmem>>, vector<1x32x64xbf16>
    %195 = vector.shape_cast %194 : vector<1x32x64xbf16> to vector<32x64xbf16>
    %cst_73 = arith.constant dense<0.000000e+00> : vector<136x64xf32>
    %196 = tpu.matmul %193, %195, %cst_73 {dimension_numbers = #tpu.dot_dimension_numbers<[1], [0], [0], [1], [0, 0, 1, 1], [], []>} : vector<136x32xbf16>, vector<32x64xbf16>, vector<136x64xf32> -> vector<136x64xf32>
    %c0_74 = arith.constant 0 : index
    %c0_75 = arith.constant 0 : index
    %c0_76 = arith.constant 0 : index
    %197 = vector.load %arg11[%c0_74, %c0_75, %c0_76] : memref<1x1x64xf32, #tpu.memory_space<vmem>>, vector<1x1x64xf32>
    %198 = vector.shape_cast %197 : vector<1x1x64xf32> to vector<1x64xf32>
    %199 = vector.broadcast %198 : vector<1x64xf32> to vector<136x64xf32>
    %200 = arith.addf %196, %199 : vector<136x64xf32>
    %cst_77 = arith.constant 0.000000e+00 : f32
    %201 = vector.broadcast %cst_77 : f32 to vector<136x64xf32>
    %202 = arith.maximumf %200, %201 : vector<136x64xf32>
    %203 = arith.truncf %202 : vector<136x64xf32> to vector<136x64xbf16>
    %c0_78 = arith.constant 0 : index
    %c0_79 = arith.constant 0 : index
    %c0_80 = arith.constant 0 : index
    %204 = vector.load %arg12[%c0_78, %c0_79, %c0_80] : memref<1x64x32xbf16, #tpu.memory_space<vmem>>, vector<1x64x32xbf16>
    %205 = vector.shape_cast %204 : vector<1x64x32xbf16> to vector<64x32xbf16>
    %cst_81 = arith.constant dense<0.000000e+00> : vector<136x32xf32>
    %206 = tpu.matmul %203, %205, %cst_81 {dimension_numbers = #tpu.dot_dimension_numbers<[1], [0], [0], [1], [0, 0, 1, 1], [], []>} : vector<136x64xbf16>, vector<64x32xbf16>, vector<136x32xf32> -> vector<136x32xf32>
    %c0_82 = arith.constant 0 : index
    %c0_83 = arith.constant 0 : index
    %c0_84 = arith.constant 0 : index
    %207 = vector.load %arg13[%c0_82, %c0_83, %c0_84] : memref<1x1x32xf32, #tpu.memory_space<vmem>>, vector<1x1x32xf32>
    %208 = vector.shape_cast %207 : vector<1x1x32xf32> to vector<1x32xf32>
    %209 = vector.broadcast %208 : vector<1x32xf32> to vector<136x32xf32>
    %210 = arith.addf %206, %209 : vector<136x32xf32>
    %211 = arith.addf %210, %168 : vector<136x32xf32>
    %212 = vector.shape_cast %211 : vector<136x32xf32> to vector<17x8x32xf32>
    %c0_85 = arith.constant 0 : index
    %c0_86 = arith.constant 0 : index
    %c0_87 = arith.constant 0 : index
    %213 = vector.load %arg18[%c0_85, %c0_86, %c0_87] : memref<17x8x32xf32, #tpu.memory_space<vmem>>, vector<17x8x32xf32>
    tpu.vector_store %arg18[%c0_85, %c0_86, %c0_87], %212 {strides = array<i32>} : memref<17x8x32xf32, #tpu.memory_space<vmem>>, vector<17x8x32xf32>,
    %c1_i32 = arith.constant 1 : i32
    %214 = arith.cmpi eq, %arg0, %c1_i32 : i32
    %215 = arith.extui %214 : i1 to i32
    %c0_i32_88 = arith.constant 0 : i32
    %216 = arith.cmpi ne, %215, %c0_i32_88 : i32
    scf.if %216 {
      %217 = vector.extract_strided_slice %211 {offsets = [0, 0], sizes = [8, 32], strides = [1, 1]} : vector<136x32xf32> to vector<8x32xf32>
      %218 = arith.truncf %217 : vector<8x32xf32> to vector<8x32xbf16>
      %c0_89 = arith.constant 0 : index
      %c0_90 = arith.constant 0 : index
      %219 = vector.load %arg14[%c0_89, %c0_90] : memref<32x128xbf16, #tpu.memory_space<vmem>>, vector<32x128xbf16>
      %cst_91 = arith.constant dense<0.000000e+00> : vector<8x128xf32>
      %220 = tpu.matmul %218, %219, %cst_91 {dimension_numbers = #tpu.dot_dimension_numbers<[1], [0], [0], [1], [0, 0, 1, 1], [], []>} : vector<8x32xbf16>, vector<32x128xbf16>, vector<8x128xf32> -> vector<8x128xf32>
      %c0_92 = arith.constant 0 : index
      %c0_93 = arith.constant 0 : index
      %221 = vector.load %arg15[%c0_92, %c0_93] : memref<1x128xf32, #tpu.memory_space<vmem>>, vector<1x128xf32>
      %222 = vector.broadcast %221 : vector<1x128xf32> to vector<8x128xf32>
      %223 = arith.addf %220, %222 : vector<8x128xf32>
      %c0_94 = arith.constant 0 : index
      %c0_95 = arith.constant 0 : index
      %224 = vector.load %arg16[%c0_94, %c0_95] : memref<8x128xf32, #tpu.memory_space<vmem>>, vector<8x128xf32>
      tpu.vector_store %arg16[%c0_94, %c0_95], %223 {strides = array<i32>} : memref<8x128xf32, #tpu.memory_space<vmem>>, vector<8x128xf32>,
      %cst_96 = arith.constant dense<0xFF800000> : vector<8xf32>
      %225 = vector.multi_reduction <maximumf>, %223, %cst_96 [1] : vector<8x128xf32> to vector<8xf32>
      %226 = vector.shape_cast %225 : vector<8xf32> to vector<8x1xf32>
      %227 = vector.broadcast %226 : vector<8x1xf32> to vector<8x128xf32>
      %228 = arith.subf %223, %227 : vector<8x128xf32>
      %229 = math.exp %228 : vector<8x128xf32>
      %cst_97 = arith.constant dense<0.000000e+00> : vector<8xf32>
      %230 = vector.multi_reduction <add>, %229, %cst_97 [1] : vector<8x128xf32> to vector<8xf32>
      %231 = vector.shape_cast %230 : vector<8xf32> to vector<8x1xf32>
      %232 = vector.broadcast %231 : vector<8x1xf32> to vector<8x128xf32>
      %233 = arith.divf %229, %232 : vector<8x128xf32>
      %c0_98 = arith.constant 0 : index
      %c0_99 = arith.constant 0 : index
      %234 = vector.load %arg17[%c0_98, %c0_99] : memref<8x128xf32, #tpu.memory_space<vmem>>, vector<8x128xf32>
      tpu.vector_store %arg17[%c0_98, %c0_99], %233 {strides = array<i32>} : memref<8x128xf32, #tpu.memory_space<vmem>>, vector<8x128xf32>,
    } else {
    }
    return
  }
  func.func @transform_0(%arg0: i32) -> (i32, i32, i32) {
    %c0_i32 = arith.constant 0 : i32
    %c0_i32_0 = arith.constant 0 : i32
    %c0_i32_1 = arith.constant 0 : i32
    %c0_i32_2 = arith.constant 0 : i32
    return %c0_i32, %c0_i32_0, %c0_i32_1 : i32, i32, i32
  }
  func.func @transform_1(%arg0: i32) -> (i32, i32, i32) {
    %c0_i32 = arith.constant 0 : i32
    %c0_i32_0 = arith.constant 0 : i32
    %c0_i32_1 = arith.constant 0 : i32
    return %arg0, %c0_i32, %c0_i32_0 : i32, i32, i32
  }
  func.func @transform_2(%arg0: i32) -> (i32, i32, i32) {
    %c0_i32 = arith.constant 0 : i32
    %c0_i32_0 = arith.constant 0 : i32
    %c0_i32_1 = arith.constant 0 : i32
    return %arg0, %c0_i32, %c0_i32_0 : i32, i32, i32
  }
  func.func @transform_3(%arg0: i32) -> (i32, i32, i32) {
    %c0_i32 = arith.constant 0 : i32
    %c0_i32_0 = arith.constant 0 : i32
    %c0_i32_1 = arith.constant 0 : i32
    return %arg0, %c0_i32, %c0_i32_0 : i32, i32, i32
  }
  func.func @transform_4(%arg0: i32) -> (i32, i32, i32) {
    %c0_i32 = arith.constant 0 : i32
    %c0_i32_0 = arith.constant 0 : i32
    %c0_i32_1 = arith.constant 0 : i32
    return %arg0, %c0_i32, %c0_i32_0 : i32, i32, i32
  }
  func.func @transform_5(%arg0: i32) -> (i32, i32, i32, i32) {
    %c0_i32 = arith.constant 0 : i32
    %c0_i32_0 = arith.constant 0 : i32
    %c0_i32_1 = arith.constant 0 : i32
    %c0_i32_2 = arith.constant 0 : i32
    return %arg0, %c0_i32, %c0_i32_0, %c0_i32_1 : i32, i32, i32, i32
  }
  func.func @transform_6(%arg0: i32) -> (i32, i32, i32) {
    %c0_i32 = arith.constant 0 : i32
    %c0_i32_0 = arith.constant 0 : i32
    %c0_i32_1 = arith.constant 0 : i32
    return %arg0, %c0_i32, %c0_i32_0 : i32, i32, i32
  }
  func.func @transform_7(%arg0: i32) -> (i32, i32, i32) {
    %c0_i32 = arith.constant 0 : i32
    %c0_i32_0 = arith.constant 0 : i32
    %c0_i32_1 = arith.constant 0 : i32
    return %arg0, %c0_i32, %c0_i32_0 : i32, i32, i32
  }
  func.func @transform_8(%arg0: i32) -> (i32, i32, i32) {
    %c0_i32 = arith.constant 0 : i32
    %c0_i32_0 = arith.constant 0 : i32
    %c0_i32_1 = arith.constant 0 : i32
    return %arg0, %c0_i32, %c0_i32_0 : i32, i32, i32
  }
  func.func @transform_9(%arg0: i32) -> (i32, i32, i32) {
    %c0_i32 = arith.constant 0 : i32
    %c0_i32_0 = arith.constant 0 : i32
    %c0_i32_1 = arith.constant 0 : i32
    return %arg0, %c0_i32, %c0_i32_0 : i32, i32, i32
  }
  func.func @transform_10(%arg0: i32) -> (i32, i32, i32) {
    %c0_i32 = arith.constant 0 : i32
    %c0_i32_0 = arith.constant 0 : i32
    %c0_i32_1 = arith.constant 0 : i32
    return %arg0, %c0_i32, %c0_i32_0 : i32, i32, i32
  }
  func.func @transform_11(%arg0: i32) -> (i32, i32, i32) {
    %c0_i32 = arith.constant 0 : i32
    %c0_i32_0 = arith.constant 0 : i32
    %c0_i32_1 = arith.constant 0 : i32
    return %arg0, %c0_i32, %c0_i32_0 : i32, i32, i32
  }
  func.func @transform_12(%arg0: i32) -> (i32, i32, i32) {
    %c0_i32 = arith.constant 0 : i32
    %c0_i32_0 = arith.constant 0 : i32
    %c0_i32_1 = arith.constant 0 : i32
    return %arg0, %c0_i32, %c0_i32_0 : i32, i32, i32
  }
  func.func @transform_13(%arg0: i32) -> (i32, i32) {
    %c0_i32 = arith.constant 0 : i32
    %c0_i32_0 = arith.constant 0 : i32
    %c0_i32_1 = arith.constant 0 : i32
    return %c0_i32, %c0_i32_0 : i32, i32
  }
  func.func @transform_14(%arg0: i32) -> (i32, i32) {
    %c0_i32 = arith.constant 0 : i32
    %c0_i32_0 = arith.constant 0 : i32
    %c0_i32_1 = arith.constant 0 : i32
    return %c0_i32, %c0_i32_0 : i32, i32
  }
  func.func @transform_15(%arg0: i32) -> (i32, i32) {
    %c0_i32 = arith.constant 0 : i32
    %c0_i32_0 = arith.constant 0 : i32
    %c0_i32_1 = arith.constant 0 : i32
    return %c0_i32, %c0_i32_0 : i32, i32
  }
  func.func @transform_16(%arg0: i32) -> (i32, i32) {
    %c0_i32 = arith.constant 0 : i32
    %c0_i32_0 = arith.constant 0 : i32
    %c0_i32_1 = arith.constant 0 : i32
    return %c0_i32, %c0_i32_0 : i32, i32
  }
}

</mosaic_0001>

<bundles_post_ra>
// kernel: vit_forward.2
= control target key start
LH: loop header
LB: loop body
LE: loop exit
PB: predicated region body
PF: predicated region fallthrough
CT: control target
= control target key end

     0   :  { %vm68_vm0 = vcmask 523264   ;;  %s218_s1 = inlined_call_operand.vmem [shape: bf16[64,128], index: 1, kind: input, shape index: {}]   ;;  %s219_s0 = inlined_call_operand.vmem [shape: bf16[32,64], index: 0, kind: input, shape index: {}]   ;;  %s220_s2 = inlined_call_operand.vmem [shape: f32[1,128], index: 2, kind: input, shape index: {}]   ;;  %s221_s3 = inlined_call_operand.vmem [shape: f32[32,128], index: 3, kind: output, shape index: {}]  }
   0x1   :  { %v159_v0 = vld [vmem:[%s218_s1] sm:$0xff]   ;;  %v160_v1 = vld [vmem:[%s218_s1 + $0x8] sm:$0xff]   ;;  %v161_v2 = vld [vmem:[%s218_s1 + $0x10] sm:$0xff]  }
   0x2   :  { %147 = vmatprep.subr.bf16.mxu0 %v159_v0  ;;  %v163_v3 = vld [vmem:[%s219_s0] sm:$0xff]   ;;  %v162_v4 = vld [vmem:[%s218_s1 + $0x18] sm:$0xff]   ;;  %v164_v5 = vld [vmem:[%s219_s0 + $0x8] sm:$0xff]  }
   0x3   :  { %148 = vmatpush3.bf16.msra.mxu0 %v159_v0  ;;  %155 = vmatprep.mubr.msk.bf16.mxu0 %vm68_vm0, %v163_v3  ;;  %v132_v6 = vld [vmem:[%s220_s2] ss:$0 sm:$0xff] }
   0x4   :  { %149 = vmatprep.subr.bf16.mxu0 %v160_v1 }
   0x7   :  { %150 = vmatpush3.bf16.msra.mxu0 %v160_v1 }
   0x8   :  { %151 = vmatprep.subr.bf16.mxu0 %v161_v2 }
   0xb   :  { %152 = vmatpush3.bf16.msra.mxu0 %v161_v2 }
   0xc   :  { %153 = vmatprep.subr.bf16.mxu0 %v162_v4 }
   0xf   :  { %154 = vmatpush3.bf16.msra.mxu0 %v162_v4 }
  0x12   :  { %156 = vmatmul.mubr.msk.bf16.vlgmr.msra.gmra.mrb[0].mxu0 %vm68_vm0, %v164_v5 }
  0xe5   :  { %v157_v7 = vpop.f32.mrb[0].mxu0 }
  0xe6   :  { %v118_v8 = vadd.f32 %v157_v7, %v132_v6  ;;  %v109_v9 = vpop.f32.mrb[1].mxu0 }
  0xe7   :  { %v110_v10 = vadd.f32 %v132_v6, %v109_v9  ;;  %v158_v11 = vpop.f32.mrb[2].mxu0 }
  0xe8   :  { %126 = vst [vmem:[%s221_s3 + $0x10] sm:$0xff] %v118_v8  ;;  %v121_v12 = vadd.f32 %v158_v11, %v132_v6  ;;  %v112_v13 = vpop.f32.mrb[3].mxu0 }
  0xe9   :  { %124 = vst [vmem:[%s221_s3] sm:$0xff] %v110_v10  ;;  %v113_v14 = vadd.f32 %v132_v6, %v112_v13 }
  0xea   :  { %127 = vst [vmem:[%s221_s3 + $0x18] sm:$0xff] %v121_v12 }
  0xeb   :  { %125 = vst [vmem:[%s221_s3 + $0x8] sm:$0xff] %v113_v14 }

// kernel: vit_forward.3
= control target key start
LH: loop header
LB: loop body
LE: loop exit
PB: predicated region body
PF: predicated region fallthrough
CT: control target
= control target key end

     0   :  { %s12445_s21 = smov 0   ;;  %s15681_s0 = inlined_call_operand.vmem [shape: f32[17,8,32], index: 0, kind: input, shape index: {}]   ;;  %s15682_s1 = inlined_call_operand.vmem [shape: f32[2,1,32], index: 1, kind: input, shape index: {}]   ;;  %s15683_s2 = inlined_call_operand.vmem [shape: f32[2,1,32], index: 2, kind: input, shape index: {}]   ;;  %s15684_s3 = inlined_call_operand.vmem [shape: bf16[2,32,96], index: 3, kind: input, shape index: {}]   ;;  %s15685_s4 = inlined_call_operand.vmem [shape: f32[2,1,96], index: 4, kind: input, shape index: {}]   ;;  %s15686_s5 = inlined_call_operand.vmem [shape: bf16[2,4,8,32], index: 5, kind: input, shape index: {}]   ;;  %s15687_s6 = inlined_call_operand.vmem [shape: f32[2,1,32], index: 6, kind: input, shape index: {}]   ;;  %s15688_s7 = inlined_call_operand.vmem [shape: f32[2,1,32], index: 7, kind: input, shape index: {}]   ;;  %s15689_s8 = inlined_call_operand.vmem [shape: f32[2,1,32], index: 8, kind: input, shape index: {}]   ;;  %s15690_s9 = inlined_call_operand.vmem [shape: bf16[2,32,64], index: 9, kind: input, shape index: {}]   ;;  %s15691_s10 = inlined_call_operand.vmem [shape: f32[2,1,64], index: 10, kind: input, shape index: {}]   ;;  %s15692_s11 = inlined_call_operand.vmem [shape: bf16[2,64,32], index: 11, kind: input, shape index: {}]   ;;  %s15693_s12 = inlined_call_operand.vmem [shape: f32[2,1,32], index: 12, kind: input, shape index: {}]   ;;  %s15694_s13 = inlined_call_operand.vmem [shape: bf16[32,128], index: 13, kind: input, shape index: {}]   ;;  %s15695_s14 = inlined_call_operand.vmem [shape: f32[1,128], index: 14, kind: input, shape index: {}]   ;;  %s15696_s15 = inlined_call_operand.vmem [shape: f32[8,128], index: 15, kind: output, shape index: {0}]   ;;  %s15697_s16 = inlined_call_operand.vmem [shape: f32[8,128], index: 16, kind: output, shape index: {1}]  }
   0x1   :  { %15707 = sst [smem:[#allocation8_spill]] %s15681_s0 }
   0x2   :  { %15708 = sst [smem:[#allocation9_spill]] %s15684_s3 }
   0x3   :  { %15709 = sst [smem:[#allocation10_spill]] %s15686_s5 }
   0x4   :  { %15710 = sst [smem:[#allocation11_spill]] %s15694_s13 }
   0x5   :  { %15711 = sst [smem:[#allocation12_spill]] %s15695_s14 }
   0x6   :  { %15712 = sst [smem:[#allocation13_spill]] %s15696_s15 }
   0x7   :  { %15713 = sst [smem:[#allocation14_spill]] %s15697_s16 }
   0x8 LB: > { %15714 = sst [smem:[#allocation3_spill]] %s12343_s21  ;;  %s12451_s22 = sadd.s32 4294967295, %s12343_s21   ;;  %s12343_s21 = sphi %s12445_s21, %s27_s21  }
   0x9   : > { %p10216_p0 = scmp.ge.s32.totalorder %s12343_s21, 1  ;;  %p549_p1 = scmp.lt.s32.totalorder %s12343_s21, 3 }
   0xb   : > { %p550_p2 = pnand %p10216_p0, %p549_p1 }
   0xd   : > { %553 = sbr.rel (%p550_p2) target bundleno = 5654 (0x1616), region = 80 }
  0x14   : > { %p633_p3 = scmp.lt.s32.totalorder %s12451_s22, 1  ;;  %s15715_s3 = sld [smem:[#allocation9_spill]] }
  0x15   : > { %s15716_s5 = sld [smem:[#allocation10_spill]]  ;;  %p10225_p4 = scmp.ne.s32.totalorder %s12451_s22, 0 }
  0x16   : > { %s12457_s23 = scalar_select %p633_p3, %s12451_s22, 1 }
  0x17   : > { %681 = sbr.rel (%p10225_p4) target bundleno = 39 (0x27), region = 84  ;;  %s15717_s19 = sld [smem:[#allocation8_spill]] (!%p10225_p4)  ;;  %vm699_vm0 = vcmask (!%p10225_p4), 261120  }
  0x18   : > { %s10468_s30 = sshll.u32 %s12457_s23, 4  ;;  %s657_s14 = scalar_lea.vmem %s15688_s7, %s12457_s23 }
  0x19   : > { %s660_s18 = scalar_lea.vmem %s15689_s8, %s12457_s23  ;;  %s10471_s13 = sshll.u32 %s12457_s23, 5 }
  0x1a   : > { %s12475_s24 = scalar_lea.vmem %s15715_s3, %s10468_s30  ;;  %s12497_s3 = scalar_lea.vmem %s15690_s9, %s10468_s30 }
  0x1b   : > { %s12480_s16 = scalar_lea.vmem %s15716_s5, %s10468_s30  ;;  %s668_s5 = scalar_lea.vmem %s15691_s10, %s12457_s23 }
  0x1c   : > { %s12507_s27 = scalar_lea.vmem %s15692_s11, %s10471_s13  ;;  %s676_s0 = scalar_lea.vmem %s15693_s12, %s12457_s23 }
  0x1d   : > { %v682_v0 = vld [vmem:[%s15717_s19] sm:$0xff] (!%p10225_p4)  ;;  %v683_v1 = vld [vmem:[%s15717_s19 + $0x8] sm:$0xff] (!%p10225_p4)  ;;  %v684_v2 = vld [vmem:[%s15717_s19 + $0x10] sm:$0xff] (!%p10225_p4) }
  0x1e   : > { %700 = vst.msk [vmem:[#allocation2] sm:$0xff] %vm699_vm0, %v682_v0  ;;  %701 = vst.msk [vmem:[#allocation2 + $0x8] sm:$0xff] %vm699_vm0, %v683_v1  ;;  %v685_v3 = vld [vmem:[%s15717_s19 + $0x18] sm:$0xff]  ;;  %v686_v4 = vld [vmem:[%s15717_s19 + $0x20] sm:$0xff] }
  0x1f   : > { %702 = vst.msk [vmem:[#allocation2 + $0x10] sm:$0xff] %vm699_vm0, %v684_v2  ;;  %v687_v5 = vld [vmem:[%s15717_s19 + $0x28] sm:$0xff]  ;;  %703 = vst.msk [vmem:[#allocation2 + $0x18] sm:$0xff] %vm699_vm0, %v685_v3  ;;  %v688_v6 = vld [vmem:[%s15717_s19 + $0x30] sm:$0xff] }
  0x20   : > { %704 = vst.msk [vmem:[#allocation2 + $0x20] sm:$0xff] %vm699_vm0, %v686_v4  ;;  %705 = vst.msk [vmem:[#allocation2 + $0x28] sm:$0xff] %vm699_vm0, %v687_v5  ;;  %v689_v7 = vld [vmem:[%s15717_s19 + $0x38] sm:$0xff]  ;;  %v690_v8 = vld [vmem:[%s15717_s19 + $0x40] sm:$0xff] }
  0x21   : > { %706 = vst.msk [vmem:[#allocation2 + $0x30] sm:$0xff] %vm699_vm0, %v688_v6  ;;  %707 = vst.msk [vmem:[#allocation2 + $0x38] sm:$0xff] %vm699_vm0, %v689_v7  ;;  %v691_v9 = vld [vmem:[%s15717_s19 + $0x48] sm:$0xff]  ;;  %v692_v10 = vld [vmem:[%s15717_s19 + $0x50] sm:$0xff] }
  0x22   : > { %708 = vst.msk [vmem:[#allocation2 + $0x40] sm:$0xff] %vm699_vm0, %v690_v8  ;;  %v693_v11 = vld [vmem:[%s15717_s19 + $0x58] sm:$0xff]  ;;  %709 = vst.msk [vmem:[#allocation2 + $0x48] sm:$0xff] %vm699_vm0, %v691_v9  ;;  %v694_v12 = vld [vmem:[%s15717_s19 + $0x60] sm:$0xff] }
  0x23   : > { %710 = vst.msk [vmem:[#allocation2 + $0x50] sm:$0xff] %vm699_vm0, %v692_v10  ;;  %711 = vst.msk [vmem:[#allocation2 + $0x58] sm:$0xff] %vm699_vm0, %v693_v11  ;;  %v695_v13 = vld [vmem:[%s15717_s19 + $0x68] sm:$0xff]  ;;  %v696_v14 = vld [vmem:[%s15717_s19 + $0x70] sm:$0xff] }
  0x24   : > { %712 = vst.msk [vmem:[#allocation2 + $0x60] sm:$0xff] %vm699_vm0, %v694_v12  ;;  %713 = vst.msk [vmem:[#allocation2 + $0x68] sm:$0xff] %vm699_vm0, %v695_v13  ;;  %v697_v15 = vld [vmem:[%s15717_s19 + $0x78] sm:$0xff]  ;;  %v698_v16 = vld [vmem:[%s15717_s19 + $0x80] sm:$0xff] }
  0x25   : > { %714 = vst.msk [vmem:[#allocation2 + $0x70] sm:$0xff] %vm699_vm0, %v696_v14  ;;  %715 = vst.msk [vmem:[#allocation2 + $0x78] sm:$0xff] %vm699_vm0, %v697_v15 }
  0x26   : > { %716 = vst.msk [vmem:[#allocation2 + $0x80] sm:$0xff] %vm699_vm0, %v698_v16 }
  0x27 PF: > { %vm736_vm1 = vcmask 261120   ;;  %v719_v19 = vld [vmem:[#allocation2 + $0x10] sm:$0xff]  ;;  %v720_v22 = vld [vmem:[#allocation2 + $0x18] sm:$0xff]  ;;  %v12584_v23 = vld [vmem:[#allocation2 + $0x28] sm:$0xff]  ;;  %vm12346_vm2 = vmmov 0   ;;  %s15718_s15 = scalar_lea.vmem %s15682_s1, %s12457_s23  ;;  %s15719_s29 = scalar_lea.vmem %s15683_s2, %s12457_s23  ;;  %vm1226_vm3 = vcmask 64512  }
  0x28   : > { %v743_v21 = vsel %vm736_vm1, %v719_v19, 0.0  ;;  %v12586_v24 = vld [vmem:[#allocation2 + $0x20] sm:$0xff]  ;;  %v746_v26 = vsel %vm736_vm1, %v720_v22, 0.0  ;;  %v752_v27 = vsel %vm736_vm1, %v12584_v23, 0.0  ;;  %v12594_v29 = vld [vmem:[#allocation2 + $0x38] sm:$0xff]  ;;  %v12596_v30 = vld [vmem:[#allocation2 + $0x30] sm:$0xff]  ;;  %s15720_s30 = scalar_lea.vmem %s15685_s4, %s12457_s23 }
  0x29   : > { %744 = vadd.xlane.f32.xlu1 %v743_v21  ;;  %v749_v28 = vsel %vm736_vm1, %v12586_v24, 0.0  ;;  %v758_v31 = vsel %vm736_vm1, %v12594_v29, 0.0  ;;  %v755_v32 = vsel %vm736_vm1, %v12596_v30, 0.0  ;;  %v12602_v33 = vld [vmem:[#allocation2 + $0x48] sm:$0xff]  ;;  %v12604_v34 = vld [vmem:[#allocation2 + $0x40] sm:$0xff]  ;;  %s12347_s20 = smov 96  }
  0x2a   : > { %v764_v35 = vsel %vm736_vm1, %v12602_v33, 0.0  ;;  %v761_v36 = vsel %vm736_vm1, %v12604_v34, 0.0  ;;  %v12610_v37 = vld [vmem:[#allocation2 + $0x58] sm:$0xff]  ;;  %v12612_v38 = vld [vmem:[#allocation2 + $0x50] sm:$0xff]  ;;  %s12348_s21 = smov 64   ;;  %vm2250_vm4 = vcmask 1043456  }
  0x2b   : > { %v770_v39 = vsel %vm736_vm1, %v12610_v37, 0.0  ;;  %v767_v40 = vsel %vm736_vm1, %v12612_v38, 0.0  ;;  %v12622_v50 = vld [vmem:[#allocation2 + $0x60] sm:$0xff]  ;;  %v12635_v60 = vld [vmem:[#allocation2 + $0x68] sm:$0xff]  ;;  %s12350_s25 = smov 120   ;;  %s12352_s13 = smov 80  }
  0x2c   : > { %v773_v56 = vsel %vm736_vm1, %v12622_v50, 0.0  ;;  %v12633_v59 = vld [vmem:[#allocation2 + $0x70] sm:$0xff]  ;;  %v776_v4 = vsel %vm736_vm1, %v12635_v60, 0.0  ;;  %v12646_v6 = vld [vmem:[#allocation2 + $0x78] sm:$0xff]  ;;  %s12353_s26 = smov 112   ;;  %s12355_s28 = smov 72  }
  0x2d   : > { %747 = vadd.xlane.f32.xlu1 %v746_v26  ;;  %v779_v3 = vsel %vm736_vm1, %v12633_v59, 0.0  ;;  %v782_v14 = vsel %vm736_vm1, %v12646_v6, 0.0  ;;  %v12659_v16 = vld [vmem:[#allocation2 + $0x80] sm:$0xff]  ;;  %s12356_s17 = smov 104   ;;  %vm9823_vm6 = vcmask 523264   ;;  %p10461_p5 = scmp.ne.s32.totalorder %s12451_s22, 1 }
  0x2e   : > { %v717_v17 = vld [vmem:[#allocation2] sm:$0xff]  ;;  %v718_v18 = vld [vmem:[#allocation2 + $0x8] sm:$0xff]  ;;  %v785_v21 = vsel %vm736_vm1, %v12659_v16, 0.0  ;;  %vm12359_vm7 = vmmov (!%p10461_p5), 0  }
  0x2f   : > { %v737_v20 = vsel %vm736_vm1, %v717_v17, 0.0  ;;  %v740_v25 = vsel %vm736_vm1, %v718_v18, 0.0 }
  0x30   : > { %738 = vadd.xlane.f32.xlu0 %v737_v20 }
  0x31   : > { %753 = vadd.xlane.f32.xlu1 %v752_v27 }
  0x34   : > { %741 = vadd.xlane.f32.xlu0 %v740_v25 }
  0x35   : > { %759 = vadd.xlane.f32.xlu1 %v758_v31 }
  0x38   : > { %750 = vadd.xlane.f32.xlu0 %v749_v28 }
  0x39   : > { %765 = vadd.xlane.f32.xlu1 %v764_v35 }
  0x3c   : > { %756 = vadd.xlane.f32.xlu0 %v755_v32 }
  0x3d   : > { %771 = vadd.xlane.f32.xlu1 %v770_v39 }
  0x40   : > { %762 = vadd.xlane.f32.xlu0 %v761_v36 }
  0x44   : > { %768 = vadd.xlane.f32.xlu0 %v767_v40 }
  0xb6   : > { %v745_v42 = vpop.xlane.xlu1 %744 }
  0xb7   : > { %v791_v49 = vmul.f32 0.03125, %v745_v42 }
  0xb9   : > { %v12627_v55 = vsub.f32 %v719_v19, %v791_v49  ;;  %v11966_v49 = vld [vmem:[%s12475_s24] sm:$0xff]  }
  0xba   : > { %v748_v46 = vpop.xlane.xlu1 %747 }
  0xbb   : > { %v792_v58 = vmul.f32 0.03125, %v748_v46  ;;  %v825_v5 = vmul.f32 %v12627_v55, %v12627_v55 }
  0xbd   : > { %v739_v41 = vpop.xlane.xlu0 %738  ;;  %v12638_v2 = vsub.f32 %v720_v22, %v792_v58  ;;  %v846_v13 = vsel %vm736_vm1, %v825_v5, 0.0 }
  0xbe   : > { %v789_v43 = vmul.f32 0.03125, %v739_v41  ;;  %v754_v53 = vpop.xlane.xlu1 %753 }
  0xbf   : > { %v794_v62 = vmul.f32 0.03125, %v754_v53  ;;  %v826_v15 = vmul.f32 %v12638_v2, %v12638_v2 }
  0xc0   : > { %v12618_v44 = vsub.f32 %v717_v17, %v789_v43 }
  0xc1   : > { %v742_v45 = vpop.xlane.xlu0 %741  ;;  %v12649_v7 = vsub.f32 %v12584_v23, %v794_v62  ;;  %v849_v22 = vsel %vm736_vm1, %v826_v15, 0.0 }
  0xc2   : > { %v790_v47 = vmul.f32 0.03125, %v742_v45  ;;  %v823_v48 = vmul.f32 %v12618_v44, %v12618_v44  ;;  %v760_v0 = vpop.xlane.xlu1 %759 }
  0xc3   : > { %v796_v9 = vmul.f32 0.03125, %v760_v0  ;;  %v828_v17 = vmul.f32 %v12649_v7, %v12649_v7 }
  0xc4   : > { %v12624_v51 = vsub.f32 %v718_v18, %v790_v47  ;;  %v840_v52 = vsel %vm736_vm1, %v823_v48, 0.0  ;;  %v15701_v48 = vmov 0.0  }
  0xc5   : > { %841 = vadd.xlane.f32.xlu0 %v840_v52  ;;  %v751_v54 = vpop.xlane.xlu0 %750  ;;  %v12664_v18 = vsub.f32 %v12594_v29, %v796_v9  ;;  %v855_v27 = vsel %vm736_vm1, %v828_v17, 0.0  ;;  %10839 = vmatprep.subr.bf16.mxu0 %v15701_v48  ;;  %v11967_v52 = vld [vmem:[%s12475_s24 + $0x8] sm:$0xff]   ;;  %s12349_s24 = smov 88  }
  0xc6   : > { %v824_v57 = vmul.f32 %v12624_v51, %v12624_v51  ;;  %v793_v63 = vmul.f32 0.03125, %v751_v54  ;;  %v766_v11 = vpop.xlane.xlu1 %765  ;;  %11939 = vmatprep.subr.bf16.mxu1 %v15701_v48  ;;  %10840 = vmatpush3.bf16.msra.mxu0 %v11966_v49 }
  0xc7   : > { %v798_v23 = vmul.f32 0.03125, %v766_v11  ;;  %v830_v29 = vmul.f32 %v12664_v18, %v12664_v18  ;;  %11941 = vmatpush3.bf16.msra.mxu1 %v11966_v49  ;;  %10841 = vmatprep.subr.bf16.mxu0 %v15701_v48 }
  0xc8   : > { %v843_v61 = vsel %vm736_vm1, %v824_v57, 0.0  ;;  %v12652_v8 = vsub.f32 %v12586_v24, %v793_v63  ;;  %11940 = vmatprep.subr.bf16.mxu1 %v15701_v48  ;;  %10843 = vmatprep.mubr.msk.bf16.mxu0 %vm12346_vm2, %v15701_v48 }
  0xc9   : > { %774 = vadd.xlane.f32.xlu0 %v773_v56  ;;  %844 = vadd.xlane.f32.xlu1 %v843_v61  ;;  %v757_v1 = vpop.xlane.xlu0 %756  ;;  %v12681_v31 = vsub.f32 %v12602_v33, %v798_v23  ;;  %v861_v39 = vsel %vm736_vm1, %v830_v29, 0.0 }
  0xca   : > { %v795_v10 = vmul.f32 0.03125, %v757_v1  ;;  %v827_v20 = vmul.f32 %v12652_v8, %v12652_v8  ;;  %v772_v25 = vpop.xlane.xlu1 %771  ;;  %10842 = vmatpush3.bf16.msra.mxu0 %v11967_v52  ;;  %10863 = vmatprep.mubr.msk.bf16.mxu1 %vm12346_vm2, %v15701_v48 }
  0xcb   : > { %v800_v35 = vmul.f32 0.03125, %v772_v25  ;;  %v832_v33 = vmul.f32 %v12681_v31, %v12681_v31  ;;  %11942 = vmatpush3.bf16.msra.mxu1 %v11967_v52  ;;  %10933 = vmatprep.subr.bf16.mxu0 %v15701_v48 }
  0xcc   : > { %v12667_v19 = vsub.f32 %v12596_v30, %v795_v10  ;;  %v852_v28 = vsel %vm736_vm1, %v827_v20, 0.0  ;;  %10879 = vmatprep.subr.bf16.mxu1 %v15701_v48 }
  0xcd   : > { %780 = vadd.xlane.f32.xlu0 %v779_v3  ;;  %777 = vadd.xlane.f32.xlu1 %v776_v4  ;;  %v763_v12 = vpop.xlane.xlu0 %762  ;;  %v12689_v41 = vsub.f32 %v12610_v37, %v800_v35  ;;  %v867_v43 = vsel %vm736_vm1, %v832_v33, 0.0 }
  0xce   : > { %v797_v24 = vmul.f32 0.03125, %v763_v12  ;;  %v829_v30 = vmul.f32 %v12667_v19, %v12667_v19 }
  0xcf   : > { %v834_v37 = vmul.f32 %v12689_v41, %v12689_v41 }
  0xd0   : > { %v12684_v32 = vsub.f32 %v12604_v34, %v797_v24  ;;  %v858_v40 = vsel %vm736_vm1, %v829_v30, 0.0 }
  0xd1   : > { %847 = vadd.xlane.f32.xlu0 %v846_v13  ;;  %783 = vadd.xlane.f32.xlu1 %v782_v14  ;;  %v769_v26 = vpop.xlane.xlu0 %768  ;;  %v873_v46 = vsel %vm736_vm1, %v834_v37, 0.0 }
  0xd2   : > { %v799_v36 = vmul.f32 0.03125, %v769_v26  ;;  %v831_v34 = vmul.f32 %v12684_v32, %v12684_v32 }
  0xd4   : > { %v12692_v42 = vsub.f32 %v12612_v38, %v799_v36  ;;  %v864_v45 = vsel %vm736_vm1, %v831_v34, 0.0 }
  0xd5   : > { %786 = vadd.xlane.f32.xlu0 %v785_v21  ;;  %850 = vadd.xlane.f32.xlu1 %v849_v22 }
  0xd6   : > { %v833_v38 = vmul.f32 %v12692_v42, %v12692_v42 }
  0xd8   : > { %v870_v47 = vsel %vm736_vm1, %v833_v38, 0.0 }
  0xd9   : > { %856 = vadd.xlane.f32.xlu0 %v855_v27  ;;  %853 = vadd.xlane.f32.xlu1 %v852_v28 }
  0xdd   : > { %862 = vadd.xlane.f32.xlu0 %v861_v39  ;;  %859 = vadd.xlane.f32.xlu1 %v858_v40 }
  0xe1   : > { %868 = vadd.xlane.f32.xlu0 %v867_v43  ;;  %865 = vadd.xlane.f32.xlu1 %v864_v45 }
  0xe5   : > { %874 = vadd.xlane.f32.xlu0 %v873_v46  ;;  %871 = vadd.xlane.f32.xlu1 %v870_v47 }
 0x152   : > { %v842_v53 = vpop.xlane.xlu0 %841 }
 0x153   : > { %v891_v54 = vmul.f32 0.03125, %v842_v53 }
 0x155   : > { %v908_v56 = vadd.f32 1e-05, %v891_v54 }
 0x156   : > { %v845_v57 = vpop.xlane.xlu1 %844  ;;  %v775_v58 = vpop.xlane.xlu0 %774 }
 0x157   : > { %11974 = vrsqrt.f32 %v908_v56  ;;  %v892_v61 = vmul.f32 0.03125, %v845_v57  ;;  %v801_v62 = vmul.f32 0.03125, %v775_v58 }
 0x159   : > { %v909_v63 = vadd.f32 1e-05, %v892_v61  ;;  %v12719_v0 = vsub.f32 %v12622_v50, %v801_v62 }
 0x15a   : > { %v778_v1 = vpop.xlane.xlu1 %777  ;;  %v781_v3 = vpop.xlane.xlu0 %780 }
 0x15b   : > { %11976 = vrsqrt.f32 %v909_v63  ;;  %v802_v4 = vmul.f32 0.03125, %v778_v1  ;;  %v803_v5 = vmul.f32 0.03125, %v781_v3  ;;  %v835_v9 = vmul.f32 %v12719_v0, %v12719_v0 }
 0x15d   : > { %v12724_v10 = vsub.f32 %v12635_v60, %v802_v4  ;;  %v12727_v11 = vsub.f32 %v12633_v59, %v803_v5  ;;  %v876_v12 = vsel %vm736_vm1, %v835_v9, 0.0 }
 0x15e   : > { %v784_v13 = vpop.xlane.xlu1 %783  ;;  %877 = vadd.xlane.f32.xlu1 %v876_v12  ;;  %v848_v50 = vpop.xlane.xlu0 %847 }
 0x15f   : > { %v804_v14 = vmul.f32 0.03125, %v784_v13  ;;  %v893_v15 = vmul.f32 0.03125, %v848_v50  ;;  %v836_v17 = vmul.f32 %v12724_v10, %v12724_v10  ;;  %v837_v20 = vmul.f32 %v12727_v11, %v12727_v11 }
 0x161   : > { %v11975_v21 = vpop.eup %11974  ;;  %v12735_v60 = vsub.f32 %v12646_v6, %v804_v14  ;;  %v910_v59 = vadd.f32 1e-05, %v893_v15  ;;  %v879_v22 = vsel %vm736_vm1, %v836_v17, 0.0  ;;  %v882_v23 = vsel %vm736_vm1, %v837_v20, 0.0  ;;  %v12747_v6 = vld [vmem:[%s15718_s15] ss:$0 sm:$0xff] }
 0x162   : > { %880 = vadd.xlane.f32.xlu0 %v879_v22  ;;  %v851_v24 = vpop.xlane.xlu1 %850  ;;  %883 = vadd.xlane.f32.xlu1 %v882_v23  ;;  %v787_v25 = vpop.xlane.xlu0 %786  ;;  %v942_v26 = vmul.f32 %v11975_v21, %v12618_v44  ;;  %s12351_s15 = smov 56  }
 0x163   : > { %11978 = vrsqrt.f32 %v910_v59  ;;  %v894_v27 = vmul.f32 0.03125, %v851_v24  ;;  %v805_v28 = vmul.f32 0.03125, %v787_v25  ;;  %v838_v29 = vmul.f32 %v12735_v60, %v12735_v60 }
 0x164   : > { %v965_v34 = vmul.f32 %v12747_v6, %v942_v26 }
 0x165   : > { %v11977_v30 = vpop.eup %11976  ;;  %v911_v35 = vadd.f32 1e-05, %v894_v27  ;;  %v12750_v36 = vsub.f32 %v12659_v16, %v805_v28  ;;  %v885_v44 = vsel %vm736_vm1, %v838_v29, 0.0  ;;  %v12762_v16 = vld [vmem:[%s15719_s29] ss:$0 sm:$0xff]  ;;  %s12354_s29 = smov 48  }
 0x166   : > { %886 = vadd.xlane.f32.xlu0 %v885_v44  ;;  %v854_v39 = vpop.xlane.xlu1 %853  ;;  %v857_v40 = vpop.xlane.xlu0 %856  ;;  %v943_v33 = vmul.f32 %v11977_v30, %v12624_v51  ;;  %v988_v53 = vadd.f32 %v12762_v16, %v965_v34 }
 0x167   : > { %11980 = vrsqrt.f32 %v911_v35  ;;  %v895_v43 = vmul.f32 0.03125, %v854_v39  ;;  %v896_v45 = vmul.f32 0.03125, %v857_v40  ;;  %v839_v37 = vmul.f32 %v12750_v36, %v12750_v36 }
 0x168   : > { %v966_v38 = vmul.f32 %v12747_v6, %v943_v33 }
 0x169   : > { %v912_v46 = vadd.f32 1e-05, %v895_v43  ;;  %v913_v47 = vadd.f32 1e-05, %v896_v45  ;;  %v888_v51 = vsel %vm736_vm1, %v839_v37, 0.0 }
 0x16a   : > { %v860_v49 = vpop.xlane.xlu1 %859  ;;  %889 = vadd.xlane.f32.xlu1 %v888_v51  ;;  %v863_v52 = vpop.xlane.xlu0 %862  ;;  %v989_v54 = vadd.f32 %v12762_v16, %v966_v38 }
 0x16b   : > { %11982 = vrsqrt.f32 %v912_v46  ;;  %v897_v56 = vmul.f32 0.03125, %v860_v49  ;;  %v898_v57 = vmul.f32 0.03125, %v863_v52 }
 0x16c   : > { %11984 = vrsqrt.f32 %v913_v47  ;;  %v1005_v58 = vpack.c.bf16 %v989_v54, %v988_v53 }
 0x16d   : > { %v11979_v61 = vpop.eup %11978  ;;  %v914_v62 = vadd.f32 1e-05, %v897_v56  ;;  %v915_v63 = vadd.f32 1e-05, %v898_v57 }
 0x16e   : > { %v866_v1 = vpop.xlane.xlu1 %865  ;;  %10844 = vmatmul.mubr.msk.bf16.vlgmr.msra.gmra.mrb[0].mxu0 %vm736_vm1, %v1005_v58  ;;  %v869_v3 = vpop.xlane.xlu0 %868  ;;  %v944_v4 = vmul.f32 %v11979_v61, %v12627_v55 }
 0x16f   : > { %11986 = vrsqrt.f32 %v914_v62  ;;  %v899_v5 = vmul.f32 0.03125, %v866_v1  ;;  %v900_v9 = vmul.f32 0.03125, %v869_v3  ;;  %10847 = vmatprep.mubr.msk.bf16.mxu0 %vm12346_vm2, %v15701_v48 }
 0x170   : > { %11988 = vrsqrt.f32 %v915_v63  ;;  %v967_v20 = vmul.f32 %v12747_v6, %v944_v4 }
 0x171   : > { %v11981_v12 = vpop.eup %11980  ;;  %v916_v13 = vadd.f32 1e-05, %v899_v5  ;;  %v917_v50 = vadd.f32 1e-05, %v900_v9 }
 0x172   : > { %v872_v14 = vpop.xlane.xlu1 %871  ;;  %v875_v15 = vpop.xlane.xlu0 %874  ;;  %v945_v17 = vmul.f32 %v11981_v12, %v12638_v2  ;;  %v990_v26 = vadd.f32 %v12762_v16, %v967_v20 }
 0x173   : > { %v901_v21 = vmul.f32 0.03125, %v872_v14  ;;  %v902_v59 = vmul.f32 0.03125, %v875_v15  ;;  %11990 = vrsqrt.f32 %v916_v13 }
 0x174   : > { %v968_v55 = vmul.f32 %v12747_v6, %v945_v17  ;;  %11992 = vrsqrt.f32 %v917_v50 }
 0x175   : > { %v11983_v22 = vpop.eup %11982  ;;  %v918_v23 = vadd.f32 1e-05, %v901_v21  ;;  %v919_v24 = vadd.f32 1e-05, %v902_v59 }
 0x176   : > { %v11985_v25 = vpop.eup %11984  ;;  %v991_v27 = vadd.f32 %v12762_v16, %v968_v55  ;;  %v946_v28 = vmul.f32 %v11983_v22, %v12652_v8 }
 0x177   : > { %11994 = vrsqrt.f32 %v918_v23  ;;  %v947_v2 = vmul.f32 %v11985_v25, %v12649_v7 }
 0x178   : > { %11996 = vrsqrt.f32 %v919_v24  ;;  %v1006_v29 = vpack.c.bf16 %v991_v27, %v990_v26  ;;  %v969_v30 = vmul.f32 %v12747_v6, %v946_v28 }
 0x179   : > { %v11987_v35 = vpop.eup %11986  ;;  %v970_v44 = vmul.f32 %v12747_v6, %v947_v2 }
 0x17a   : > { %v11989_v39 = vpop.eup %11988  ;;  %10848 = vmatmul.mubr.msk.bf16.gmra.mrb[4].mxu0 %vm736_vm1, %v1006_v29  ;;  %v948_v40 = vmul.f32 %v11987_v35, %v12667_v19  ;;  %v992_v8 = vadd.f32 %v12762_v16, %v969_v30 }
 0x17b   : > { %10851 = vmatprep.mubr.msk.bf16.mxu0 %vm12346_vm2, %v15701_v48  ;;  %v993_v33 = vadd.f32 %v12762_v16, %v970_v44  ;;  %v949_v7 = vmul.f32 %v11989_v39, %v12664_v18 }
 0x17c   : > { %v971_v43 = vmul.f32 %v12747_v6, %v948_v40 }
 0x17d   : > { %v11991_v34 = vpop.eup %11990  ;;  %v1007_v37 = vpack.c.bf16 %v993_v33, %v992_v8  ;;  %v972_v38 = vmul.f32 %v12747_v6, %v949_v7 }
 0x17e   : > { %v11993_v45 = vpop.eup %11992  ;;  %v994_v19 = vadd.f32 %v12762_v16, %v971_v43  ;;  %v950_v53 = vmul.f32 %v11991_v34, %v12684_v32 }
 0x17f   : > { %v995_v49 = vadd.f32 %v12762_v16, %v972_v38  ;;  %v951_v54 = vmul.f32 %v11993_v45, %v12681_v31 }
 0x180   : > { %v973_v61 = vmul.f32 %v12747_v6, %v950_v53 }
 0x181   : > { %v11995_v46 = vpop.eup %11994  ;;  %v1008_v58 = vpack.c.bf16 %v995_v49, %v994_v19  ;;  %v974_v62 = vmul.f32 %v12747_v6, %v951_v54 }
 0x182   : > { %v11997_v47 = vpop.eup %11996  ;;  %10852 = vmatmul.mubr.msk.bf16.gmra.mrb[8].mxu0 %vm736_vm1, %v1007_v37  ;;  %v952_v51 = vmul.f32 %v11995_v46, %v12692_v42  ;;  %v996_v31 = vadd.f32 %v12762_v16, %v973_v61 }
 0x183   : > { %10855 = vmatprep.mubr.msk.bf16.mxu0 %vm12346_vm2, %v15701_v48  ;;  %v953_v18 = vmul.f32 %v11997_v47, %v12689_v41  ;;  %v997_v32 = vadd.f32 %v12762_v16, %v974_v62 }
 0x184   : > { %v975_v52 = vmul.f32 %v12747_v6, %v952_v51 }
 0x185   : > { %v976_v56 = vmul.f32 %v12747_v6, %v953_v18  ;;  %v1009_v63 = vpack.c.bf16 %v997_v32, %v996_v31 }
 0x186   : > { %v998_v57 = vadd.f32 %v12762_v16, %v975_v52 }
 0x187   : > { %v999_v42 = vadd.f32 %v12762_v16, %v976_v56 }
 0x189   : > { %v1010_v41 = vpack.c.bf16 %v999_v42, %v998_v57 }
 0x18a   : > { %10856 = vmatmul.mubr.msk.bf16.gmra.mrb[12].mxu0 %vm736_vm1, %v1008_v58 }
 0x18b   : > { %10864 = vmatmul.mubr.msk.bf16.vlgmr.msra.gmra.mrb[0].mxu1 %vm736_vm1, %v1010_v41  ;;  %10859 = vmatprep.mubr.msk.bf16.mxu0 %vm12346_vm2, %v15701_v48 }
 0x18c   : > { %10867 = vmatprep.mubr.msk.bf16.mxu1 %vm12346_vm2, %v15701_v48 }
 0x192   : > { %10860 = vmatmul.mubr.msk.bf16.gmra.mrb[16].mxu0 %vm736_vm1, %v1009_v63 }
 0x193   : > { %10935 = vmatprep.mubr.msk.bf16.mxu0 %vm12346_vm2, %v15701_v48 }
 0x1eb   : > { %v878_v1 = vpop.xlane.xlu1 %877 }
 0x1ec   : > { %v903_v3 = vmul.f32 0.03125, %v878_v1 }
 0x1ee   : > { %v920_v4 = vadd.f32 1e-05, %v903_v3 }
 0x1ef   : > { %v884_v5 = vpop.xlane.xlu1 %883  ;;  %v881_v9 = vpop.xlane.xlu0 %880 }
 0x1f0   : > { %11998 = vrsqrt.f32 %v920_v4  ;;  %v905_v12 = vmul.f32 0.03125, %v884_v5  ;;  %v904_v13 = vmul.f32 0.03125, %v881_v9 }
 0x1f2   : > { %v921_v50 = vadd.f32 1e-05, %v904_v13  ;;  %v922_v14 = vadd.f32 1e-05, %v905_v12 }
 0x1f3   : > { %v887_v15 = vpop.xlane.xlu0 %886 }
 0x1f4   : > { %v906_v17 = vmul.f32 0.03125, %v887_v15  ;;  %12000 = vrsqrt.f32 %v921_v50 }
 0x1f5   : > { %12002 = vrsqrt.f32 %v922_v14 }
 0x1f6   : > { %v923_v20 = vadd.f32 1e-05, %v906_v17 }
 0x1f7   : > { %v890_v21 = vpop.xlane.xlu1 %889 }
 0x1f8   : > { %12004 = vrsqrt.f32 %v923_v20  ;;  %v907_v59 = vmul.f32 0.03125, %v890_v21 }
 0x1fa   : > { %v11999_v55 = vpop.eup %11998  ;;  %v924_v22 = vadd.f32 1e-05, %v907_v59 }
 0x1fb   : > { %v954_v23 = vmul.f32 %v11999_v55, %v12719_v0 }
 0x1fc   : > { %12006 = vrsqrt.f32 %v924_v22 }
 0x1fd   : > { %v977_v26 = vmul.f32 %v12747_v6, %v954_v23 }
 0x1fe   : > { %v12001_v24 = vpop.eup %12000 }
 0x1ff   : > { %v955_v25 = vmul.f32 %v12001_v24, %v12724_v10  ;;  %v12003_v27 = vpop.eup %12002  ;;  %v1000_v30 = vadd.f32 %v12762_v16, %v977_v26 }
 0x200   : > { %v956_v44 = vmul.f32 %v12003_v27, %v12727_v11 }
 0x201   : > { %v978_v2 = vmul.f32 %v12747_v6, %v955_v25 }
 0x202   : > { %v12005_v28 = vpop.eup %12004  ;;  %v979_v10 = vmul.f32 %v12747_v6, %v956_v44 }
 0x203   : > { %v957_v29 = vmul.f32 %v12005_v28, %v12735_v60  ;;  %v1001_v35 = vadd.f32 %v12762_v16, %v978_v2 }
 0x204   : > { %v1002_v33 = vadd.f32 %v12762_v16, %v979_v10 }
 0x205   : > { %v1011_v39 = vpack.c.bf16 %v1001_v35, %v1000_v30  ;;  %v980_v0 = vmul.f32 %v12747_v6, %v957_v29 }
 0x206   : > { %v12007_v40 = vpop.eup %12006 }
 0x207   : > { %10868 = vmatmul.mubr.msk.bf16.gmra.mrb[4].mxu1 %vm736_vm1, %v1011_v39  ;;  %v1003_v60 = vadd.f32 %v12762_v16, %v980_v0  ;;  %v958_v8 = vmul.f32 %v12007_v40, %v12750_v36  ;;  %v12845_v36 = vld [vmem:[%s15720_s30] ss:$0 sm:$0xff]  ;;  %s12357_s30 = smov 40  }
 0x208   : > { %10871 = vmatprep.mubr.msk.bf16.mxu1 %vm12346_vm2, %v15701_v48 }
 0x209   : > { %v1012_v7 = vpack.c.bf16 %v1003_v60, %v1002_v33  ;;  %v981_v11 = vmul.f32 %v12747_v6, %v958_v8 }
 0x20b   : > { %v1004_v34 = vadd.f32 %v12762_v16, %v981_v11 }
 0x20d   : > { %v1013_v43 = vpack.c.bf16 %v1004_v34, %v1004_v34 }
 0x20f   : > { %10872 = vmatmul.mubr.msk.bf16.gmra.mrb[8].mxu1 %vm736_vm1, %v1012_v7 }
 0x210   : > { %10875 = vmatprep.mubr.msk.bf16.mxu1 %vm12346_vm2, %v15701_v48 }
 0x217   : > { %10876 = vmatmul.mubr.msk.bf16.gmra.mrb[12].mxu1 %vm736_vm1, %v1013_v43 }
 0x218   : > { %10881 = vmatprep.mubr.msk.bf16.mxu1 %vm12346_vm2, %v15701_v48 }
 0x241   : > { %v1098_v6 = vpop.f32.mrb[0].mxu0 }
 0x242   : > { %v1099_v45 = vadd.f32 %v12845_v36, %v1098_v6  ;;  %v10845_v37 = vpop.f32.mrb[1].mxu0 }
 0x243   : > { %v1101_v38 = vpop.f32.mrb[2].mxu0 }
 0x244   : > { %v12848_v46 = vpack.c.bf16 %v1099_v45, %v1099_v45  ;;  %v1102_v16 = vadd.f32 %v12845_v36, %v1101_v38  ;;  %v10846_v47 = vpop.f32.mrb[3].mxu0 }
 0x246   : > { %v12851_v51 = vpack.c.bf16 %v1102_v16, %v1102_v16  ;;  %1224 = vrot.lane.b32.xlu0 %v12848_v46, %s12347_s20 }
 0x248   : > { %1273 = vrot.lane.b32.xlu1 %v12851_v51, %s12347_s20 }
 0x24d   : > { %v1106_v19 = vpop.f32.mrb[4].mxu0 }
 0x24e   : > { %v1107_v18 = vadd.f32 %v12845_v36, %v1106_v19  ;;  %v10849_v49 = vpop.f32.mrb[5].mxu0 }
 0x24f   : > { %v1109_v52 = vpop.f32.mrb[6].mxu0 }
 0x250   : > { %v12858_v53 = vpack.c.bf16 %v1107_v18, %v1107_v18  ;;  %v1110_v54 = vadd.f32 %v12845_v36, %v1109_v52  ;;  %v10850_v56 = vpop.f32.mrb[7].mxu0 }
 0x252   : > { %1321 = vrot.lane.b32.xlu1 %v12858_v53, %s12347_s20  ;;  %v12863_v57 = vpack.c.bf16 %v1110_v54, %v1110_v54 }
 0x255   : > { %v1114_v42 = vpop.f32.mrb[8].mxu0 }
 0x256   : > { %v1115_v58 = vadd.f32 %v12845_v36, %v1114_v42  ;;  %1369 = vrot.lane.b32.xlu1 %v12863_v57, %s12347_s20  ;;  %v10853_v61 = vpop.f32.mrb[9].mxu0 }
 0x257   : > { %v1117_v62 = vpop.f32.mrb[10].mxu0 }
 0x258   : > { %v12868_v41 = vpack.c.bf16 %v1115_v58, %v1115_v58  ;;  %v1118_v31 = vadd.f32 %v12845_v36, %v1117_v62  ;;  %v10854_v32 = vpop.f32.mrb[11].mxu0 }
 0x25a   : > { %v12871_v63 = vpack.c.bf16 %v1118_v31, %v1118_v31  ;;  %1417 = vrot.lane.b32.xlu0 %v12868_v41, %s12347_s20 }
 0x25c   : > { %1465 = vrot.lane.b32.xlu1 %v12871_v63, %s12347_s20 }
 0x25d   : > { %v1122_v1 = vpop.f32.mrb[12].mxu0 }
 0x25e   : > { %v1123_v3 = vadd.f32 %v12845_v36, %v1122_v1  ;;  %v1138_v4 = vpop.f32.mrb[0].mxu1  ;;  %v10857_v5 = vpop.f32.mrb[13].mxu0 }
 0x25f   : > { %v10865_v9 = vpop.f32.mrb[1].mxu1  ;;  %v1125_v12 = vpop.f32.mrb[14].mxu0  ;;  %v1139_v23 = vadd.f32 %v12845_v36, %v1138_v4 }
 0x260   : > { %v12878_v13 = vpack.c.bf16 %v1123_v3, %v1123_v3  ;;  %v1126_v50 = vadd.f32 %v12845_v36, %v1125_v12  ;;  %v1141_v14 = vpop.f32.mrb[2].mxu1  ;;  %v10858_v15 = vpop.f32.mrb[15].mxu0 }
 0x261   : > { %v10866_v17 = vpop.f32.mrb[3].mxu1  ;;  %v1142_v27 = vadd.f32 %v12845_v36, %v1141_v14  ;;  %v12897_v2 = vpack.c.bf16 %v1139_v23, %v1139_v23 }
 0x262   : > { %v12881_v20 = vpack.c.bf16 %v1126_v50, %v1126_v50  ;;  %1513 = vrot.lane.b32.xlu0 %v12878_v13, %s12347_s20 }
 0x263   : > { %v12901_v29 = vpack.c.bf16 %v1142_v27, %v1142_v27 }
 0x264   : > { %1561 = vrot.lane.b32.xlu1 %v12881_v20, %s12347_s20 }
 0x265   : > { %v1130_v21 = vpop.f32.mrb[16].mxu0 }
 0x266   : > { %v1131_v59 = vadd.f32 %v12845_v36, %v1130_v21  ;;  %v10861_v55 = vpop.f32.mrb[17].mxu0 }
 0x267   : > { %v1133_v22 = vpop.f32.mrb[18].mxu0 }
 0x268   : > { %v12889_v24 = vpack.c.bf16 %v1131_v59, %v1131_v59  ;;  %v1134_v25 = vadd.f32 %v12845_v36, %v1133_v22  ;;  %v10862_v26 = vpop.f32.mrb[19].mxu0 }
 0x26a   : > { %v12893_v28 = vpack.c.bf16 %v1134_v25, %v1134_v25  ;;  %1609 = vrot.lane.b32.xlu0 %v12889_v24, %s12347_s20 }
 0x26c   : > { %1657 = vrot.lane.b32.xlu1 %v12893_v28, %s12347_s20 }
 0x26e   : > { %1705 = vrot.lane.b32.xlu0 %v12897_v2, %s12347_s20 }
 0x270   : > { %1753 = vrot.lane.b32.xlu1 %v12901_v29, %s12347_s20 }
 0x2b8   : > { %v1225_v30 = vpop.permute.xlu0 %1224 }
 0x2b9   : > { %v1231_v35 = vsel %vm1226_vm3, %v1225_v30, 0 }
 0x2ba   : > { %10880 = vmatpush3.bf16.xpose.msra.mxu1 %v1231_v35  ;;  %v1274_v44 = vpop.permute.xlu1 %1273 }
 0x2bb   : > { %10885 = vmatprep.subr.bf16.mxu1 %v15701_v48  ;;  %v1279_v39 = vsel %vm1226_vm3, %v1274_v44, 0 }
 0x2c1   : > { %10882 = vmatmul.mubr.msk.bf16.vlgmr.msra.gmra.mrb[16].mxu1 %vm1226_vm3, %v12848_v46 }
 0x2c2   : > { %10886 = vmatpush3.bf16.xpose.msra.mxu1 %v1279_v39  ;;  %10887 = vmatprep.mubr.msk.bf16.mxu1 %vm12346_vm2, %v15701_v48 }
 0x2c3   : > { %10891 = vmatprep.subr.bf16.mxu1 %v15701_v48 }
 0x2c4   : > { %v1322_v0 = vpop.permute.xlu1 %1321 }
 0x2c5   : > { %v1327_v40 = vsel %vm1226_vm3, %v1322_v0, 0 }
 0x2c8   : > { %v1370_v10 = vpop.permute.xlu1 %1369 }
 0x2c9   : > { %10888 = vmatmul.mubr.msk.bf16.vlgmr.msra.gmra.mrb[20].mxu1 %vm1226_vm3, %v12851_v51  ;;  %v1375_v60 = vsel %vm1226_vm3, %v1370_v10, 0 }
 0x2ca   : > { %10892 = vmatpush3.bf16.xpose.msra.mxu1 %v1327_v40  ;;  %10893 = vmatprep.mubr.msk.bf16.mxu1 %vm12346_vm2, %v15701_v48 }
 0x2cb   : > { %10897 = vmatprep.subr.bf16.mxu1 %v15701_v48 }
 0x2cc   : > { %v1418_v8 = vpop.permute.xlu0 %1417 }
 0x2cd   : > { %v1423_v7 = vsel %vm1226_vm3, %v1418_v8, 0 }
 0x2ce   : > { %v1466_v33 = vpop.permute.xlu1 %1465 }
 0x2cf   : > { %v1471_v49 = vsel %vm1226_vm3, %v1466_v33, 0  ;;  %v1168_v33 = vlaneseq }
 0x2d1   : > { %10894 = vmatmul.mubr.msk.bf16.vlgmr.msra.gmra.mrb[24].mxu1 %vm1226_vm3, %v12858_v53 }
 0x2d2   : > { %10898 = vmatpush3.bf16.xpose.msra.mxu1 %v1375_v60  ;;  %10899 = vmatprep.mubr.msk.bf16.mxu1 %vm12346_vm2, %v15701_v48 }
 0x2d3   : > { %10903 = vmatprep.subr.bf16.mxu1 %v15701_v48 }
 0x2d4   : > { %v1514_v61 = vpop.permute.xlu0 %1513 }
 0x2d5   : > { %v1519_v4 = vsel %vm1226_vm3, %v1514_v61, 0 }
 0x2d6   : > { %v1562_v11 = vpop.permute.xlu1 %1561 }
 0x2d9   : > { %10900 = vmatmul.mubr.msk.bf16.vlgmr.msra.gmra.mrb[28].mxu1 %vm1226_vm3, %v12863_v57 }
 0x2da   : > { %10904 = vmatpush3.bf16.xpose.msra.mxu1 %v1423_v7  ;;  %10905 = vmatprep.mubr.msk.bf16.mxu1 %vm12346_vm2, %v15701_v48  ;;  %v1146_v34 = vpop.f32.mrb[4].mxu1  ;;  %v1169_v7 = vand.u32 127, %v1168_v33 }
 0x2db   : > { %10909 = vmatprep.subr.bf16.mxu1 %v15701_v48  ;;  %v1147_v43 = vadd.f32 %v12845_v36, %v1146_v34  ;;  %v10869_v6 = vpop.f32.mrb[5].mxu1 }
 0x2dc   : > { %v1149_v45 = vpop.f32.mrb[6].mxu1  ;;  %v1610_v17 = vpop.permute.xlu0 %1609  ;;  %vm1170_vm5 = vcmp.ge.s32.totalorder %v1169_v7, 2 }
 0x2dd   : > { %v12934_v37 = vpack.c.bf16 %v1147_v43, %v1147_v43  ;;  %v1150_v38 = vadd.f32 %v12845_v36, %v1149_v45  ;;  %v10870_v16 = vpop.f32.mrb[7].mxu1  ;;  %v1615_v21 = vsel %vm1226_vm3, %v1610_v17, 0 }
 0x2de   : > { %v1658_v47 = vpop.permute.xlu1 %1657 }
 0x2df   : > { %v1663_v19 = vsel %vm1226_vm3, %v1658_v47, 0  ;;  %v12938_v18 = vpack.c.bf16 %v1150_v38, %v1150_v38  ;;  %1801 = vrot.lane.b32.xlu0 %v12934_v37, %s12347_s20 }
 0x2e0   : > { %10934 = vmatpush3.bf16.xpose.msra.mxu0 %v1663_v19  ;;  %v1706_v59 = vpop.permute.xlu0 %1705 }
 0x2e1   : > { %10906 = vmatmul.mubr.msk.bf16.vlgmr.msra.gmra.mrb[32].mxu1 %vm1226_vm3, %v12868_v41  ;;  %10945 = vmatprep.subr.bf16.mxu0 %v15701_v48  ;;  %v1711_v55 = vsel %vm1226_vm3, %v1706_v59, 0 }
 0x2e2   : > { %1849 = vrot.lane.b32.xlu1 %v12938_v18, %s12347_s20  ;;  %10910 = vmatpush3.bf16.xpose.msra.mxu1 %v1471_v49  ;;  %v1154_v52 = vpop.f32.mrb[8].mxu1  ;;  %v1754_v54 = vpop.permute.xlu1 %1753 }
 0x2e3   : > { %10911 = vmatprep.mubr.msk.bf16.mxu1 %vm12346_vm2, %v15701_v48  ;;  %10915 = vmatprep.subr.bf16.mxu1 %v15701_v48  ;;  %v1155_v56 = vadd.f32 %v12845_v36, %v1154_v52  ;;  %v10873_v42 = vpop.f32.mrb[9].mxu1  ;;  %v1759_v1 = vsel %vm1226_vm3, %v1754_v54, 0 }
 0x2e4   : > { %v1157_v58 = vpop.f32.mrb[10].mxu1 }
 0x2e5   : > { %v12952_v62 = vpack.c.bf16 %v1155_v56, %v1155_v56  ;;  %v1158_v31 = vadd.f32 %v12845_v36, %v1157_v58  ;;  %v10874_v32 = vpop.f32.mrb[11].mxu1 }
 0x2e7   : > { %10936 = vmatmul.mubr.msk.bf16.vlgmr.msra.gmra.mrb[20].mxu0 %vm1226_vm3, %v12893_v28  ;;  %v12958_v3 = vpack.c.bf16 %v1158_v31, %v1158_v31  ;;  %1897 = vrot.lane.b32.xlu0 %v12952_v62, %s12347_s20 }
 0x2e8   : > { %10946 = vmatpush3.bf16.xpose.msra.mxu0 %v1759_v1  ;;  %10947 = vmatprep.mubr.msk.bf16.mxu0 %vm12346_vm2, %v15701_v48 }
 0x2e9   : > { %10912 = vmatmul.mubr.msk.bf16.vlgmr.msra.gmra.mrb[36].mxu1 %vm1226_vm3, %v12871_v63  ;;  %1945 = vrot.lane.b32.xlu1 %v12958_v3, %s12347_s20 }
 0x2ea   : > { %10916 = vmatpush3.bf16.xpose.msra.mxu1 %v1519_v4  ;;  %v1162_v5 = vpop.f32.mrb[12].mxu1  ;;  %10917 = vmatprep.mubr.msk.bf16.mxu1 %vm12346_vm2, %v15701_v48 }
 0x2eb   : > { %10921 = vmatprep.subr.bf16.mxu1 %v15701_v48  ;;  %v1163_v9 = vadd.f32 %v12845_v36, %v1162_v5  ;;  %v10877_v12 = vpop.f32.mrb[13].mxu1  ;;  %10957 = vmatprep.subr.bf16.mxu0 %v15701_v48  ;;  %v1567_v36 = vsel %vm1226_vm3, %v1562_v11, 0  ;;  %v13059_v11 = vsel %vm1170_vm5, -1e+30, %v15701_v48 }
 0x2ec   : > { %v1165_v50 = vpop.f32.mrb[14].mxu1  ;;  %15721 = vst [vmem:[#allocation4_spill] sm:$0xff] %v13059_v11 }
 0x2ed   : > { %v12974_v14 = vpack.c.bf16 %v1163_v9, %v1163_v9  ;;  %2245 = vrot.lane.b32.xlu1 %v12848_v46, %s12348_s21  ;;  %v10878_v15 = vpop.f32.mrb[15].mxu1 }
 0x2ef   : > { %10948 = vmatmul.mubr.msk.bf16.vlgmr.msra.gmra.mrb[24].mxu0 %vm1226_vm3, %v12901_v29  ;;  %1993 = vrot.lane.b32.xlu0 %v12974_v14, %s12347_s20  ;;  %s15749_s20 = sld [smem:[#allocation13_spill]] (!%p10461_p5) }
 0x2f0   : > { %10959 = vmatprep.mubr.msk.bf16.mxu0 %vm12346_vm2, %v15701_v48 }
 0x2f1   : > { %10918 = vmatmul.mubr.msk.bf16.vlgmr.msra.gmra.mrb[40].mxu1 %vm1226_vm3, %v12878_v13  ;;  %2342 = vrot.lane.b32.xlu1 %v12858_v53, %s12348_s21 }
 0x2f2   : > { %10922 = vmatpush3.bf16.xpose.msra.mxu1 %v1567_v36  ;;  %10923 = vmatprep.mubr.msk.bf16.mxu1 %vm12346_vm2, %v15701_v48 }
 0x2f3   : > { %10927 = vmatprep.subr.bf16.mxu1 %v15701_v48  ;;  %2294 = vrot.lane.b32.xlu0 %v12851_v51, %s12348_s21 }
 0x2f5   : > { %2390 = vrot.lane.b32.xlu1 %v12863_v57, %s12348_s21 }
 0x2f7   : > { %2438 = vrot.lane.b32.xlu0 %v12868_v41, %s12348_s21 }
 0x2f9   : > { %10924 = vmatmul.mubr.msk.bf16.vlgmr.msra.gmra.mrb[44].mxu1 %vm1226_vm3, %v12881_v20  ;;  %2486 = vrot.lane.b32.xlu1 %v12871_v63, %s12348_s21 }
 0x2fa   : > { %10928 = vmatpush3.bf16.xpose.msra.mxu1 %v1615_v21  ;;  %10929 = vmatprep.mubr.msk.bf16.mxu1 %vm12346_vm2, %v15701_v48 }
 0x2fb   : > { %10939 = vmatprep.subr.bf16.mxu1 %v15701_v48  ;;  %2534 = vrot.lane.b32.xlu0 %v12878_v13, %s12348_s21 }
 0x2fd   : > { %2582 = vrot.lane.b32.xlu1 %v12881_v20, %s12348_s21 }
 0x2ff   : > { %2630 = vrot.lane.b32.xlu0 %v12889_v24, %s12348_s21 }
 0x301   : > { %10930 = vmatmul.mubr.msk.bf16.vlgmr.msra.gmra.mrb[48].mxu1 %vm1226_vm3, %v12889_v24  ;;  %2678 = vrot.lane.b32.xlu1 %v12893_v28, %s12348_s21 }
 0x302   : > { %10940 = vmatpush3.bf16.xpose.msra.mxu1 %v1711_v55  ;;  %10941 = vmatprep.mubr.msk.bf16.mxu1 %vm12346_vm2, %v15701_v48 }
 0x303   : > { %10951 = vmatprep.subr.bf16.mxu1 %v15701_v48 }
 0x309   : > { %10942 = vmatmul.mubr.msk.bf16.vlgmr.msra.gmra.mrb[52].mxu1 %vm1226_vm3, %v12897_v2 }
 0x30a   : > { %10953 = vmatprep.mubr.msk.bf16.mxu1 %vm12346_vm2, %v15701_v48 }
 0x351   : > { %v1802_v22 = vpop.permute.xlu0 %1801 }
 0x352   : > { %v1807_v23 = vsel %vm1226_vm3, %v1802_v22, 0 }
 0x353   : > { %10952 = vmatpush3.bf16.xpose.msra.mxu1 %v1807_v23 }
 0x354   : > { %v1850_v25 = vpop.permute.xlu1 %1849  ;;  %10963 = vmatprep.subr.bf16.mxu1 %v15701_v48 }
 0x355   : > { %v1855_v26 = vsel %vm1226_vm3, %v1850_v25, 0 }
 0x356   : > { %10958 = vmatpush3.bf16.xpose.msra.mxu0 %v1855_v26 }
 0x357   : > { %10969 = vmatprep.subr.bf16.mxu0 %v15701_v48 }
 0x359   : > { %v1898_v27 = vpop.permute.xlu0 %1897 }
 0x35a   : > { %v1903_v30 = vsel %vm1226_vm3, %v1898_v27, 0  ;;  %10954 = vmatmul.mubr.msk.bf16.vlgmr.msra.gmra.mrb[56].mxu1 %vm1226_vm3, %v12934_v37 }
 0x35b   : > { %v1946_v35 = vpop.permute.xlu1 %1945  ;;  %10964 = vmatpush3.bf16.xpose.msra.mxu1 %v1903_v30  ;;  %10965 = vmatprep.mubr.msk.bf16.mxu1 %vm12346_vm2, %v15701_v48 }
 0x35c   : > { %v1951_v44 = vsel %vm1226_vm3, %v1946_v35, 0  ;;  %10975 = vmatprep.subr.bf16.mxu1 %v15701_v48 }
 0x35d   : > { %10960 = vmatmul.mubr.msk.bf16.vlgmr.msra.gmra.mrb[28].mxu0 %vm1226_vm3, %v12938_v18 }
 0x35e   : > { %10970 = vmatpush3.bf16.xpose.msra.mxu0 %v1951_v44  ;;  %10971 = vmatprep.mubr.msk.bf16.mxu0 %vm12346_vm2, %v15701_v48 }
 0x35f   : > { %10981 = vmatprep.subr.bf16.mxu0 %v15701_v48  ;;  %v2246_v39 = vpop.permute.xlu1 %2245 }
 0x360   : > { %v2252_v10 = vsel %vm2250_vm4, %v2246_v39, 0 }
 0x361   : > { %v1994_v0 = vpop.permute.xlu0 %1993 }
 0x362   : > { %v1999_v40 = vsel %vm1226_vm3, %v1994_v0, 0  ;;  %10966 = vmatmul.mubr.msk.bf16.vlgmr.msra.gmra.mrb[60].mxu1 %vm1226_vm3, %v12952_v62 }
 0x363   : > { %10976 = vmatpush3.bf16.xpose.msra.mxu1 %v1999_v40  ;;  %10977 = vmatprep.mubr.msk.bf16.mxu1 %vm12346_vm2, %v15701_v48 }
 0x364   : > { %10987 = vmatprep.subr.bf16.mxu1 %v15701_v48 }
 0x365   : > { %10972 = vmatmul.mubr.msk.bf16.vlgmr.msra.gmra.mrb[32].mxu0 %vm1226_vm3, %v12958_v3  ;;  %v2295_v60 = vpop.permute.xlu0 %2294 }
 0x366   : > { %10982 = vmatpush3.bf16.msra.mxu0 %v2252_v10  ;;  %10983 = vmatprep.mubr.msk.bf16.mxu0 %vm12346_vm2, %v15701_v48  ;;  %v2300_v8 = vsel %vm2250_vm4, %v2295_v60, 0 }
 0x367   : > { %10993 = vmatprep.subr.bf16.mxu0 %v15701_v48 }
 0x36a   : > { %10978 = vmatmul.mubr.msk.bf16.vlgmr.msra.gmra.mrb[64].mxu1 %vm1226_vm3, %v12974_v14 }
 0x36b   : > { %10988 = vmatpush3.bf16.msra.mxu1 %v2300_v8  ;;  %10989 = vmatprep.mubr.msk.bf16.mxu1 %vm12346_vm2, %v15701_v48 }
 0x36c   : > { %10999 = vmatprep.subr.bf16.mxu1 %v15701_v48 }
 0x394   : > { %v1267_v34 = vpop.f32.mrb[16].mxu1 }
 0x395   : > { %v10883_v43 = vpop.f32.mrb[17].mxu1  ;;  %v13062_v6 = vadd.f32 %v1267_v34, %v13059_v11 }
 0x396   : > { %v1270_v45 = vpop.f32.mrb[18].mxu1 }
 0x397   : > { %v10884_v38 = vpop.f32.mrb[19].mxu1  ;;  %v2041_v16 = vsel %vm1226_vm3, %v13062_v6, -inf }
 0x398   : > { %2042 = vmax.xlane.f32.xlu1 %v2041_v16 }
 0x39c   : > { %v1315_v47 = vpop.f32.mrb[20].mxu1 }
 0x39d   : > { %v10889_v19 = vpop.f32.mrb[21].mxu1  ;;  %v13067_v49 = vadd.f32 %v1315_v47, %v13059_v11 }
 0x39e   : > { %v1318_v52 = vpop.f32.mrb[22].mxu1 }
 0x39f   : > { %v10890_v54 = vpop.f32.mrb[23].mxu1  ;;  %v2044_v56 = vsel %vm1226_vm3, %v13067_v49, -inf }
 0x3a0   : > { %2045 = vmax.xlane.f32.xlu0 %v2044_v56 }
 0x3a4   : > { %v1363_v42 = vpop.f32.mrb[24].mxu1 }
 0x3a5   : > { %v10895_v58 = vpop.f32.mrb[25].mxu1  ;;  %v13072_v61 = vadd.f32 %v1363_v42, %v13059_v11 }
 0x3a6   : > { %v1366_v31 = vpop.f32.mrb[26].mxu1 }
 0x3a7   : > { %v10896_v32 = vpop.f32.mrb[27].mxu1  ;;  %v2047_v1 = vsel %vm1226_vm3, %v13072_v61, -inf }
 0x3a8   : > { %2048 = vmax.xlane.f32.xlu0 %v2047_v1 }
 0x3ac   : > { %v1411_v4 = vpop.f32.mrb[28].mxu1 }
 0x3ad   : > { %v10901_v5 = vpop.f32.mrb[29].mxu1  ;;  %v13077_v9 = vadd.f32 %v1411_v4, %v13059_v11 }
 0x3ae   : > { %v1414_v12 = vpop.f32.mrb[30].mxu1 }
 0x3af   : > { %v10902_v50 = vpop.f32.mrb[31].mxu1  ;;  %v2050_v15 = vsel %vm1226_vm3, %v13077_v9, -inf }
 0x3b0   : > { %2051 = vmax.xlane.f32.xlu0 %v2050_v15 }
 0x3b4   : > { %v1459_v36 = vpop.f32.mrb[32].mxu1 }
 0x3b5   : > { %v10907_v17 = vpop.f32.mrb[33].mxu1  ;;  %v13082_v21 = vadd.f32 %v1459_v36, %v13059_v11 }
 0x3b6   : > { %v1462_v59 = vpop.f32.mrb[34].mxu1 }
 0x3b7   : > { %v10908_v55 = vpop.f32.mrb[35].mxu1  ;;  %v2053_v22 = vsel %vm1226_vm3, %v13082_v21, -inf }
 0x3b8   : > { %2054 = vmax.xlane.f32.xlu1 %v2053_v22 }
 0x3ba   : > { %v1699_v23 = vpop.f32.mrb[20].mxu0 }
 0x3bb   : > { %v10937_v25 = vpop.f32.mrb[21].mxu0  ;;  %v13087_v26 = vadd.f32 %v1699_v23, %v13059_v11 }
 0x3bc   : > { %v1507_v27 = vpop.f32.mrb[36].mxu1  ;;  %v1702_v30 = vpop.f32.mrb[22].mxu0 }
 0x3bd   : > { %v10913_v35 = vpop.f32.mrb[37].mxu1  ;;  %v10938_v44 = vpop.f32.mrb[23].mxu0  ;;  %v2068_v39 = vsel %vm1226_vm3, %v13087_v26, -inf  ;;  %v13092_v0 = vadd.f32 %v1507_v27, %v13059_v11 }
 0x3be   : > { %2069 = vmax.xlane.f32.xlu0 %v2068_v39  ;;  %v1510_v40 = vpop.f32.mrb[38].mxu1 }
 0x3bf   : > { %v10914_v10 = vpop.f32.mrb[39].mxu1  ;;  %v2056_v60 = vsel %vm1226_vm3, %v13092_v0, -inf }
 0x3c2   : > { %v1795_v8 = vpop.f32.mrb[24].mxu0  ;;  %2057 = vmax.xlane.f32.xlu0 %v2056_v60 }
 0x3c3   : > { %v10949_v33 = vpop.f32.mrb[25].mxu0  ;;  %v13097_v7 = vadd.f32 %v1795_v8, %v13059_v11 }
 0x3c4   : > { %v1555_v34 = vpop.f32.mrb[40].mxu1  ;;  %v1798_v43 = vpop.f32.mrb[26].mxu0 }
 0x3c5   : > { %v10919_v45 = vpop.f32.mrb[41].mxu1  ;;  %v10950_v38 = vpop.f32.mrb[27].mxu0  ;;  %v2074_v16 = vsel %vm1226_vm3, %v13097_v7, -inf  ;;  %v13102_v47 = vadd.f32 %v1555_v34, %v13059_v11 }
 0x3c6   : > { %2075 = vmax.xlane.f32.xlu0 %v2074_v16  ;;  %v1558_v19 = vpop.f32.mrb[42].mxu1 }
 0x3c7   : > { %v10920_v52 = vpop.f32.mrb[43].mxu1  ;;  %v2059_v54 = vsel %vm1226_vm3, %v13102_v47, -inf }
 0x3c8   : > { %2060 = vmax.xlane.f32.xlu1 %v2059_v54 }
 0x3cc   : > { %v1603_v56 = vpop.f32.mrb[44].mxu1 }
 0x3cd   : > { %v10925_v42 = vpop.f32.mrb[45].mxu1  ;;  %v13131_v34 = vadd.f32 %v1603_v56, %v13059_v11 }
 0x3ce   : > { %v1606_v58 = vpop.f32.mrb[46].mxu1 }
 0x3cf   : > { %v10926_v31 = vpop.f32.mrb[47].mxu1  ;;  %v2062_v38 = vsel %vm1226_vm3, %v13131_v34, -inf }
 0x3d0   : > { %v13135_v31 = vpop.permute.xlu1 %2342 }
 0x3d4   : > { %v1651_v32 = vpop.f32.mrb[48].mxu1 }
 0x3d5   : > { %v10931_v1 = vpop.f32.mrb[49].mxu1  ;;  %v13111_v17 = vadd.f32 %v1651_v32, %v13059_v11 }
 0x3d6   : > { %v1654_v4 = vpop.f32.mrb[50].mxu1 }
 0x3d7   : > { %v10932_v5 = vpop.f32.mrb[51].mxu1  ;;  %v2065_v59 = vsel %vm1226_vm3, %v13111_v17, -inf  ;;  %v13137_v4 = vpop.permute.xlu0 %2438 }
 0x3d9   : > { %2774 = vrot.lane.b32.xlu1 %v12901_v29, %s12348_s21 }
 0x3dc   : > { %v1747_v12 = vpop.f32.mrb[52].mxu1 }
 0x3dd   : > { %2822 = vrot.lane.b32.xlu1 %v12934_v37, %s12348_s21  ;;  %v10943_v50 = vpop.f32.mrb[53].mxu1  ;;  %v13116_v55 = vadd.f32 %v1747_v12, %v13059_v11  ;;  %v13139_v12 = vpop.permute.xlu1 %2390 }
 0x3de   : > { %v1750_v15 = vpop.f32.mrb[54].mxu1  ;;  %v13143_v50 = vpop.permute.xlu0 %2534 }
 0x3df   : > { %v10944_v36 = vpop.f32.mrb[55].mxu1  ;;  %v2071_v22 = vsel %vm1226_vm3, %v13116_v55, -inf }
 0x3e1   : > { %v13145_v15 = vpop.permute.xlu1 %2486 }
 0x3e2   : > { %v13147_v36 = vpop.permute.xlu0 %2630 }
 0x401   : > { %2066 = vmax.xlane.f32.xlu1 %v2065_v59  ;;  %v13149_v59 = vpop.permute.xlu1 %2582 }
 0x405   : > { %2072 = vmax.xlane.f32.xlu1 %v2071_v22 }
 0x42d   : > { %v1843_v23 = vpop.f32.mrb[56].mxu1  ;;  %v2046_v22 = vpop.xlane.xlu0 %2045 }
 0x42e   : > { %v10955_v25 = vpop.f32.mrb[57].mxu1  ;;  %v13121_v27 = vadd.f32 %v1843_v23, %v13059_v11  ;;  %v13153_v23 = vpop.permute.xlu1 %2678 }
 0x42f   : > { %v1846_v30 = vpop.f32.mrb[58].mxu1 }
 0x430   : > { %v1891_v35 = vpop.f32.mrb[28].mxu0  ;;  %v10956_v44 = vpop.f32.mrb[59].mxu1  ;;  %v2077_v40 = vsel %vm1226_vm3, %v13121_v27, -inf }
 0x431   : > { %v10961_v39 = vpop.f32.mrb[29].mxu0  ;;  %v13126_v10 = vadd.f32 %v1891_v35, %v13059_v11  ;;  %2078 = vmax.xlane.f32.xlu1 %v2077_v40  ;;  %v2093_v44 = vsub.f32 %v13067_v49, %v2046_v22 }
 0x432   : > { %v1894_v60 = vpop.f32.mrb[30].mxu0  ;;  %v2043_v30 = vpop.xlane.xlu1 %2042 }
 0x433   : > { %v10962_v8 = vpop.f32.mrb[31].mxu0  ;;  %v2080_v33 = vsel %vm1226_vm3, %v13126_v10, -inf  ;;  %v2092_v39 = vsub.f32 %v13062_v6, %v2043_v30  ;;  %v2111_v60 = vmul.f32 1.442695, %v2093_v44 }
 0x434   : > { %2081 = vmax.xlane.f32.xlu0 %v2080_v33 }
 0x435   : > { %v1939_v43 = vpop.f32.mrb[60].mxu1  ;;  %v2049_v25 = vpop.xlane.xlu0 %2048  ;;  %v2109_v33 = vmul.f32 1.442695, %v2092_v39  ;;  %12008 = vpow2.f32 %v2111_v60 }
 0x436   : > { %v10967_v45 = vpop.f32.mrb[61].mxu1 }
 0x437   : > { %v1942_v19 = vpop.f32.mrb[62].mxu1  ;;  %v2094_v45 = vsub.f32 %v13072_v61, %v2049_v25  ;;  %12010 = vpow2.f32 %v2109_v33 }
 0x438   : > { %v1987_v16 = vpop.f32.mrb[32].mxu0  ;;  %2063 = vmax.xlane.f32.xlu0 %v2062_v38  ;;  %v10968_v52 = vpop.f32.mrb[63].mxu1 }
 0x439   : > { %v10973_v54 = vpop.f32.mrb[33].mxu0  ;;  %v2113_v49 = vmul.f32 1.442695, %v2094_v45 }
 0x43a   : > { %v1990_v42 = vpop.f32.mrb[34].mxu0 }
 0x43b   : > { %v10974_v58 = vpop.f32.mrb[35].mxu0  ;;  %v13161_v42 = vadd.f32 %v1939_v43, %v13059_v11 }
 0x43d   : > { %v2035_v32 = vpop.f32.mrb[64].mxu1  ;;  %v2052_v35 = vpop.xlane.xlu0 %2051  ;;  %v2083_v61 = vsel %vm1226_vm3, %v13161_v42, -inf }
 0x43e   : > { %v10979_v1 = vpop.f32.mrb[65].mxu1  ;;  %v2095_v8 = vsub.f32 %v13077_v9, %v2052_v35 }
 0x43f   : > { %v2038_v56 = vpop.f32.mrb[66].mxu1 }
 0x440   : > { %v10980_v5 = vpop.f32.mrb[67].mxu1  ;;  %v2115_v19 = vmul.f32 1.442695, %v2095_v8  ;;  %v13168_v56 = vadd.f32 %v2035_v32, %v13059_v11 }
 0x441   : > { %v13172_v5 = vadd.f32 %v1987_v16, %v13059_v11 }
 0x442   : > { %2870 = vrot.lane.b32.xlu1 %v12938_v18, %s12348_s21  ;;  %12012 = vpow2.f32 %v2115_v19  ;;  %v2089_v22 = vsel %vm1226_vm3, %v13168_v56, -inf }
 0x443   : > { %12014 = vpow2.f32 %v2113_v49  ;;  %v2086_v32 = vsel %vm1226_vm3, %v13172_v5, -inf }
 0x445   : > { %v2055_v38 = vpop.xlane.xlu1 %2054 }
 0x446   : > { %v2096_v6 = vsub.f32 %v13082_v21, %v2055_v38 }
 0x44b   : > { %v2070_v40 = vpop.xlane.xlu0 %2069 }
 0x44c   : > { %v2101_v52 = vsub.f32 %v13087_v26, %v2070_v40  ;;  %v2117_v26 = vmul.f32 1.442695, %v2096_v6 }
 0x44e   : > { %2726 = vrot.lane.b32.xlu0 %v12897_v2, %s12348_s21  ;;  %v2127_v1 = vmul.f32 1.442695, %v2101_v52 }
 0x44f   : > { %v2058_v54 = vpop.xlane.xlu0 %2057 }
 0x450   : > { %v2097_v9 = vsub.f32 %v13092_v0, %v2058_v54  ;;  %12016 = vpow2.f32 %v2127_v1  ;;  %v13176_v0 = vpop.eup %12008 }
 0x451   : > { %12018 = vpow2.f32 %v2117_v26  ;;  %v13180_v30 = vpop.eup %12010 }
 0x452   : > { %v2119_v21 = vmul.f32 1.442695, %v2097_v9  ;;  %v13184_v16 = vpop.eup %12012  ;;  %v2143_v35 = vsel %vm1226_vm3, %v13180_v30, 0.0 }
 0x453   : > { %v13188_v44 = vpop.eup %12014  ;;  %v2152_v39 = vsel %vm1226_vm3, %v13184_v16, 0.0  ;;  %v2076_v49 = vpop.xlane.xlu0 %2075 }
 0x454   : > { %12020 = vpow2.f32 %v2119_v21  ;;  %v2149_v60 = vsel %vm1226_vm3, %v13188_v44, 0.0  ;;  %v2103_v6 = vsub.f32 %v13097_v7, %v2076_v49 }
 0x455   : > { %v2061_v58 = vpop.xlane.xlu1 %2060 }
 0x456   : > { %v2098_v43 = vsub.f32 %v13102_v47, %v2061_v58  ;;  %v2146_v47 = vsel %vm1226_vm3, %v13176_v0, 0.0  ;;  %v2131_v58 = vmul.f32 1.442695, %v2103_v6 }
 0x458   : > { %v2121_v25 = vmul.f32 1.442695, %v2098_v43 }
 0x45a   : > { %12022 = vpow2.f32 %v2121_v25  ;;  %v13192_v40 = vpop.eup %12016 }
 0x45b   : > { %v13196_v8 = vpop.eup %12018  ;;  %v2170_v33 = vsel %vm1226_vm3, %v13192_v40, 0.0  ;;  %12024 = vpow2.f32 %v2131_v58 }
 0x45c   : > { %v2155_v38 = vsel %vm1226_vm3, %v13196_v8, 0.0 }
 0x45e   : > { %v13200_v45 = vpop.eup %12020 }
 0x45f   : > { %v2158_v52 = vsel %vm1226_vm3, %v13200_v45, 0.0 }
 0x464   : > { %v13204_v19 = vpop.eup %12022 }
 0x465   : > { %v2161_v54 = vsel %vm1226_vm3, %v13204_v19, 0.0  ;;  %v13213_v1 = vpop.eup %12024 }
 0x466   : > { %2084 = vmax.xlane.f32.xlu1 %v2083_v61  ;;  %v2176_v9 = vsel %vm1226_vm3, %v13213_v1, 0.0  ;;  %v13217_v61 = vpop.permute.xlu1 %2774 }
 0x46a   : > { %2090 = vmax.xlane.f32.xlu1 %v2089_v22  ;;  %v13219_v26 = vpop.permute.xlu1 %2822 }
 0x46d   : > { %2087 = vmax.xlane.f32.xlu0 %v2086_v32 }
 0x46e   : > { %2147 = vadd.xlane.f32.xlu1 %v2146_v47 }
 0x471   : > { %2144 = vadd.xlane.f32.xlu0 %v2143_v35 }
 0x472   : > { %2153 = vadd.xlane.f32.xlu1 %v2152_v39 }
 0x475   : > { %2150 = vadd.xlane.f32.xlu0 %v2149_v60 }
 0x476   : > { %2171 = vadd.xlane.f32.xlu1 %v2170_v33 }
 0x479   : > { %2156 = vadd.xlane.f32.xlu0 %v2155_v38 }
 0x47a   : > { %2159 = vadd.xlane.f32.xlu1 %v2158_v52 }
 0x47d   : > { %2162 = vadd.xlane.f32.xlu0 %v2161_v54 }
 0x48b   : > { %2918 = vrot.lane.b32.xlu1 %v12952_v62, %s12348_s21 }
 0x48e   : > { %v2067_v43 = vpop.xlane.xlu1 %2066 }
 0x48f   : > { %v2100_v25 = vsub.f32 %v13111_v17, %v2067_v43 }
 0x491   : > { %v2125_v39 = vmul.f32 1.442695, %v2100_v25 }
 0x492   : > { %v2073_v7 = vpop.xlane.xlu1 %2072 }
 0x493   : > { %v2102_v60 = vsub.f32 %v13116_v55, %v2073_v7 }
 0x495   : > { %v2129_v52 = vmul.f32 1.442695, %v2102_v60 }
 0x4af   : > { %2177 = vadd.xlane.f32.xlu1 %v2176_v9 }
 0x4be   : > { %v2079_v38 = vpop.xlane.xlu1 %2078 }
 0x4bf   : > { %v2104_v54 = vsub.f32 %v13121_v27, %v2079_v38 }
 0x4c1   : > { %v2082_v21 = vpop.xlane.xlu0 %2081  ;;  %v2133_v17 = vmul.f32 1.442695, %v2104_v54 }
 0x4c2   : > { %v2105_v22 = vsub.f32 %v13126_v10, %v2082_v21 }
 0x4c4   : > { %v2135_v32 = vmul.f32 1.442695, %v2105_v22  ;;  %v13246_v22 = vpop.permute.xlu1 %2870 }
 0x4c5   : > { %v2064_v47 = vpop.xlane.xlu0 %2063 }
 0x4c6   : > { %12026 = vpow2.f32 %v2135_v32  ;;  %v2099_v35 = vsub.f32 %v13131_v34, %v2064_v47 }
 0x4c8   : > { %v2123_v33 = vmul.f32 1.442695, %v2099_v35 }
 0x4c9   : > { %v13249_v7 = vpop.permute.xlu0 %2726 }
 0x4ca   : > { %12028 = vpow2.f32 %v2123_v33 }
 0x4cb   : > { %12030 = vpow2.f32 %v2125_v39 }
 0x4cc   : > { %12032 = vpow2.f32 %v2129_v52 }
 0x4cd   : > { %12034 = vpow2.f32 %v2133_v17 }
 0x4d0   : > { %v13226_v49 = vpop.eup %12026 }
 0x4d1   : > { %v2182_v10 = vsel %vm1226_vm3, %v13226_v49, 0.0 }
 0x4d2   : > { %2183 = vadd.xlane.f32.xlu1 %v2182_v10 }
 0x4d4   : > { %v13230_v6 = vpop.eup %12028 }
 0x4d5   : > { %v2164_v55 = vsel %vm1226_vm3, %v13230_v6, 0.0  ;;  %v13234_v34 = vpop.eup %12030 }
 0x4d6   : > { %2165 = vadd.xlane.f32.xlu0 %v2164_v55  ;;  %v2167_v27 = vsel %vm1226_vm3, %v13234_v34, 0.0  ;;  %v13238_v58 = vpop.eup %12032 }
 0x4d7   : > { %v2173_v9 = vsel %vm1226_vm3, %v13238_v58, 0.0  ;;  %v13242_v43 = vpop.eup %12034 }
 0x4d8   : > { %v2179_v21 = vsel %vm1226_vm3, %v13242_v43, 0.0 }
 0x4da   : > { %2168 = vadd.xlane.f32.xlu0 %v2167_v27 }
 0x4de   : > { %2174 = vadd.xlane.f32.xlu0 %v2173_v9 }
 0x4e2   : > { %2180 = vadd.xlane.f32.xlu0 %v2179_v21 }
 0x4f3   : > { %v2085_v25 = vpop.xlane.xlu1 %2084 }
 0x4f4   : > { %v2106_v32 = vsub.f32 %v13161_v42, %v2085_v25 }
 0x4f6   : > { %v2137_v47 = vmul.f32 1.442695, %v2106_v32 }
 0x4f7   : > { %v13251_v35 = vpop.xlane.xlu1 %2090 }
 0x4f8   : > { %12036 = vpow2.f32 %v2137_v47 }
 0x4fa   : > { %v2088_v39 = vpop.xlane.xlu0 %2087 }
 0x4fb   : > { %v2107_v60 = vsub.f32 %v13172_v5, %v2088_v39  ;;  %v2148_v33 = vpop.xlane.xlu1 %2147 }
 0x4fc   : > { %12038 = vrcp.f32 %v2148_v33 }
 0x4fd   : > { %v2139_v38 = vmul.f32 1.442695, %v2107_v60 }
 0x4fe   : > { %v2145_v52 = vpop.xlane.xlu0 %2144 }
 0x4ff   : > { %12040 = vpow2.f32 %v2139_v38  ;;  %v2154_v54 = vpop.xlane.xlu1 %2153  ;;  %v2396_v38 = vsel %vm2250_vm4, %v13139_v12, 0 }
 0x500   : > { %12042 = vrcp.f32 %v2145_v52 }
 0x501   : > { %12044 = vrcp.f32 %v2154_v54 }
 0x502   : > { %v2151_v17 = vpop.xlane.xlu0 %2150  ;;  %v13254_v10 = vpop.eup %12036 }
 0x503   : > { %12046 = vrcp.f32 %v2151_v17  ;;  %v13256_v42 = vpop.xlane.xlu1 %2171  ;;  %v2185_v55 = vsel %vm1226_vm3, %v13254_v10, 0.0 }
 0x504   : > { %2186 = vadd.xlane.f32.xlu0 %v2185_v55 }
 0x506   : > { %v12039_v27 = vpop.eup %12038  ;;  %v2157_v21 = vpop.xlane.xlu0 %2156 }
 0x507   : > { %v2160_v5 = vpop.xlane.xlu1 %2159  ;;  %v2212_v25 = vmul.f32 %v12039_v27, %v13176_v0  ;;  %v2348_v0 = vsel %vm2250_vm4, %v13135_v31, 0  ;;  %v2492_v31 = vsel %vm2250_vm4, %v13145_v15, 0 }
 0x508   : > { %12048 = vrcp.f32 %v2160_v5 }
 0x509   : > { %v13260_v9 = vpop.eup %12040  ;;  %v2229_v39 = vpack.c.bf16 %v2212_v25, %v2212_v25  ;;  %12050 = vrcp.f32 %v2157_v21 }
 0x50a   : > { %v12043_v32 = vpop.eup %12042  ;;  %v2188_v47 = vsel %vm1226_vm3, %v13260_v9, 0.0  ;;  %v2163_v12 = vpop.xlane.xlu0 %2162 }
 0x50b   : > { %2189 = vadd.xlane.f32.xlu1 %v2188_v47  ;;  %v2211_v60 = vmul.f32 %v12043_v32, %v13180_v30  ;;  %v12045_v33 = vpop.eup %12044  ;;  %10990 = vmatmul.mubr.msk.bf16.vlgmr.msra.gmra.mrb[68].mxu1 %vm1226_vm3, %v2229_v39  ;;  %12052 = vrcp.f32 %v2163_v12  ;;  %v2108_v47 = vsub.f32 %v13168_v56, %v13251_v35  ;;  %v2636_v39 = vsel %vm2250_vm4, %v13147_v36, 0 }
 0x50c   : > { %11000 = vmatpush3.bf16.msra.mxu1 %v2396_v38  ;;  %11001 = vmatprep.mubr.msk.bf16.mxu1 %vm12346_vm2, %v15701_v48  ;;  %v2214_v30 = vmul.f32 %v12045_v33, %v13184_v16  ;;  %v2444_v16 = vsel %vm2250_vm4, %v13137_v4, 0  ;;  %v2588_v4 = vsel %vm2250_vm4, %v13149_v59, 0  ;;  %v2919_v33 = vpop.permute.xlu1 %2918 }
 0x50d   : > { %v2228_v52 = vpack.c.bf16 %v2211_v60, %v2211_v60  ;;  %v12047_v54 = vpop.eup %12046  ;;  %11011 = vmatprep.subr.bf16.mxu1 %v15701_v48  ;;  %v2141_v60 = vmul.f32 1.442695, %v2108_v47 }
 0x50e   : > { %v2213_v17 = vmul.f32 %v12047_v54, %v13188_v44  ;;  %v2231_v55 = vpack.c.bf16 %v2214_v30, %v2214_v30 }
 0x50f   : > { %10984 = vmatmul.mubr.msk.bf16.vlgmr.msra.gmra.mrb[36].mxu0 %vm1226_vm3, %v2228_v52  ;;  %12054 = vpow2.f32 %v2141_v60 }
 0x510   : > { %10994 = vmatpush3.bf16.msra.mxu0 %v2348_v0  ;;  %10995 = vmatprep.mubr.msk.bf16.mxu0 %vm12346_vm2, %v15701_v48  ;;  %v2230_v5 = vpack.c.bf16 %v2213_v17, %v2213_v17 }
 0x511   : > { %11005 = vmatprep.subr.bf16.mxu0 %v15701_v48 }
 0x512   : > { %v12049_v27 = vpop.eup %12048 }
 0x513   : > { %11002 = vmatmul.mubr.msk.bf16.vlgmr.msra.gmra.mrb[72].mxu1 %vm1226_vm3, %v2231_v55  ;;  %v12051_v21 = vpop.eup %12050  ;;  %v2216_v44 = vmul.f32 %v12049_v27, %v13200_v45  ;;  %v2684_v55 = vsel %vm2250_vm4, %v13153_v23, 0  ;;  %v2732_v23 = vsel %vm2250_vm4, %v13249_v7, 0 }
 0x514   : > { %11012 = vmatpush3.bf16.msra.mxu1 %v2492_v31  ;;  %11013 = vmatprep.mubr.msk.bf16.mxu1 %vm12346_vm2, %v15701_v48  ;;  %v2215_v15 = vmul.f32 %v12051_v21, %v13196_v8  ;;  %v2540_v8 = vsel %vm2250_vm4, %v13143_v50, 0 }
 0x515   : > { %11023 = vmatprep.subr.bf16.mxu1 %v15701_v48  ;;  %v2233_v25 = vpack.c.bf16 %v2216_v44, %v2216_v44  ;;  %v12053_v32 = vpop.eup %12052  ;;  %v2780_v44 = vsel %vm2250_vm4, %v13217_v61, 0 }
 0x516   : > { %v2232_v45 = vpack.c.bf16 %v2215_v15, %v2215_v15  ;;  %v2217_v59 = vmul.f32 %v12053_v32, %v13204_v19 }
 0x517   : > { %10996 = vmatmul.mubr.msk.bf16.vlgmr.msra.gmra.mrb[40].mxu0 %vm1226_vm3, %v2230_v5 }
 0x518   : > { %11006 = vmatpush3.bf16.msra.mxu0 %v2444_v16  ;;  %11007 = vmatprep.mubr.msk.bf16.mxu0 %vm12346_vm2, %v15701_v48  ;;  %v2234_v50 = vpack.c.bf16 %v2217_v59, %v2217_v59 }
 0x519   : > { %11017 = vmatprep.subr.bf16.mxu0 %v15701_v48  ;;  %v13331_v36 = vpop.eup %12054 }
 0x51a   : > { %2966 = vrot.lane.b32.xlu0 %v12958_v3, %s12348_s21  ;;  %v2191_v56 = vsel %vm1226_vm3, %v13331_v36, 0.0 }
 0x51b   : > { %11014 = vmatmul.mubr.msk.bf16.vlgmr.msra.gmra.mrb[76].mxu1 %vm1226_vm3, %v2233_v25 }
 0x51c   : > { %3014 = vrot.lane.b32.xlu1 %v12974_v14, %s12348_s21  ;;  %11024 = vmatpush3.bf16.msra.mxu1 %v2588_v4  ;;  %s15746_s21 = scalar_lea.vmem %s15687_s6, %s12457_s23 }
 0x51d   : > { %11025 = vmatprep.mubr.msk.bf16.mxu1 %vm12346_vm2, %v15701_v48  ;;  %11035 = vmatprep.subr.bf16.mxu1 %v15701_v48 }
 0x51f   : > { %11008 = vmatmul.mubr.msk.bf16.vlgmr.msra.gmra.mrb[44].mxu0 %vm1226_vm3, %v2232_v45 }
 0x520   : > { %11018 = vmatpush3.bf16.msra.mxu0 %v2540_v8  ;;  %3124 = vrot.lane.b32.xlu1 %v12851_v51, %s12349_s24 }
 0x521   : > { %11019 = vmatprep.mubr.msk.bf16.mxu0 %vm12346_vm2, %v15701_v48  ;;  %11029 = vmatprep.subr.bf16.mxu0 %v15701_v48 }
 0x524   : > { %3122 = vrot.lane.b32.xlu1 %v12851_v51, %s12350_s25 }
 0x527   : > { %11020 = vmatmul.mubr.msk.bf16.vlgmr.msra.gmra.mrb[48].mxu0 %vm1226_vm3, %v2234_v50 }
 0x528   : > { %11030 = vmatpush3.bf16.msra.mxu0 %v2636_v39  ;;  %3224 = vrot.lane.b32.xlu1 %v12863_v57, %s12349_s24 }
 0x529   : > { %11031 = vmatprep.mubr.msk.bf16.mxu0 %vm12346_vm2, %v15701_v48  ;;  %11041 = vmatprep.subr.bf16.mxu0 %v15701_v48 }
 0x52c   : > { %3222 = vrot.lane.b32.xlu1 %v12863_v57, %s12350_s25 }
 0x530   : > { %3324 = vrot.lane.b32.xlu1 %v12871_v63, %s12349_s24 }
 0x534   : > { %3322 = vrot.lane.b32.xlu1 %v12871_v63, %s12350_s25 }
 0x538   : > { %3424 = vrot.lane.b32.xlu1 %v12881_v20, %s12349_s24 }
 0x539   : > { %2192 = vadd.xlane.f32.xlu0 %v2191_v56 }
 0x53c   : > { %3422 = vrot.lane.b32.xlu1 %v12881_v20, %s12350_s25  ;;  %v2178_v52 = vpop.xlane.xlu1 %2177 }
 0x540   : > { %3524 = vrot.lane.b32.xlu1 %v12893_v28, %s12349_s24 }
 0x544   : > { %3522 = vrot.lane.b32.xlu1 %v12893_v28, %s12350_s25 }
 0x548   : > { %3624 = vrot.lane.b32.xlu1 %v12901_v29, %s12349_s24 }
 0x54c   : > { %3622 = vrot.lane.b32.xlu1 %v12901_v29, %s12350_s25 }
 0x54f   : > { %3074 = vrot.lane.b32.xlu0 %v12848_v46, %s12349_s24 }
 0x550   : > { %3724 = vrot.lane.b32.xlu1 %v12938_v18, %s12349_s24 }
 0x553   : > { %3072 = vrot.lane.b32.xlu0 %v12848_v46, %s12350_s25 }
 0x554   : > { %3722 = vrot.lane.b32.xlu1 %v12938_v18, %s12350_s25 }
 0x557   : > { %3174 = vrot.lane.b32.xlu0 %v12858_v53, %s12349_s24 }
 0x558   : > { %3824 = vrot.lane.b32.xlu1 %v12958_v3, %s12349_s24 }
 0x55b   : > { %3172 = vrot.lane.b32.xlu0 %v12858_v53, %s12350_s25 }
 0x55c   : > { %3822 = vrot.lane.b32.xlu1 %v12958_v3, %s12350_s25 }
 0x55f   : > { %3274 = vrot.lane.b32.xlu0 %v12868_v41, %s12349_s24 }
 0x560   : > { %3872 = vrot.lane.b32.xlu1 %v12974_v14, %s12350_s25 }
 0x563   : > { %v2166_v19 = vpop.xlane.xlu0 %2165  ;;  %3272 = vrot.lane.b32.xlu0 %v12868_v41, %s12350_s25 }
 0x564   : > { %12056 = vrcp.f32 %v2166_v19  ;;  %4126 = vrot.lane.b32.xlu1 %v12848_v46, %s12351_s15 }
 0x565   : > { %12058 = vrcp.f32 %v13256_v42 }
 0x567   : > { %v2169_v35 = vpop.xlane.xlu0 %2168  ;;  %3374 = vrot.lane.b32.xlu0 %v12878_v13, %s12349_s24 }
 0x568   : > { %12060 = vrcp.f32 %v2169_v35  ;;  %4222 = vrot.lane.b32.xlu1 %v12858_v53, %s12351_s15 }
 0x56b   : > { %v2175_v38 = vpop.xlane.xlu0 %2174  ;;  %3372 = vrot.lane.b32.xlu0 %v12878_v13, %s12350_s25 }
 0x56c   : > { %12062 = vrcp.f32 %v2175_v38  ;;  %4318 = vrot.lane.b32.xlu1 %v12868_v41, %s12351_s15 }
 0x56d   : > { %12064 = vrcp.f32 %v2178_v52 }
 0x56e   : > { %v12057_v54 = vpop.eup %12056 }
 0x56f   : > { %v2218_v42 = vmul.f32 %v12057_v54, %v13230_v6  ;;  %3474 = vrot.lane.b32.xlu0 %v12889_v24, %s12349_s24  ;;  %v12059_v0 = vpop.eup %12058  ;;  %v2181_v30 = vpop.xlane.xlu0 %2180 }
 0x570   : > { %12066 = vrcp.f32 %v2181_v30  ;;  %v2184_v6 = vpop.xlane.xlu1 %2183  ;;  %v2220_v5 = vmul.f32 %v12059_v0, %v13192_v40 }
 0x571   : > { %v2235_v12 = vpack.c.bf16 %v2218_v42, %v2218_v42  ;;  %12068 = vrcp.f32 %v2184_v6 }
 0x572   : > { %v12061_v17 = vpop.eup %12060 }
 0x573   : > { %11026 = vmatmul.mubr.msk.bf16.vlgmr.msra.gmra.mrb[80].mxu1 %vm1226_vm3, %v2235_v12  ;;  %v2219_v27 = vmul.f32 %v12061_v17, %v13234_v34  ;;  %3472 = vrot.lane.b32.xlu0 %v12889_v24, %s12350_s25  ;;  %v2237_v34 = vpack.c.bf16 %v2220_v5, %v2220_v5 }
 0x574   : > { %11036 = vmatpush3.bf16.msra.mxu1 %v2684_v55  ;;  %11037 = vmatprep.mubr.msk.bf16.mxu1 %vm12346_vm2, %v15701_v48 }
 0x575   : > { %v2236_v31 = vpack.c.bf16 %v2219_v27, %v2219_v27  ;;  %11047 = vmatprep.subr.bf16.mxu1 %v15701_v48 }
 0x576   : > { %v12063_v21 = vpop.eup %12062 }
 0x577   : > { %11032 = vmatmul.mubr.msk.bf16.vlgmr.msra.gmra.mrb[52].mxu0 %vm1226_vm3, %v2236_v31  ;;  %3574 = vrot.lane.b32.xlu0 %v12897_v2, %s12349_s24  ;;  %v2221_v16 = vmul.f32 %v12063_v21, %v13238_v58  ;;  %v12065_v40 = vpop.eup %12064  ;;  %v2828_v58 = vsel %vm2250_vm4, %v13219_v26, 0 }
 0x578   : > { %11042 = vmatpush3.bf16.msra.mxu0 %v2732_v23  ;;  %11043 = vmatprep.mubr.msk.bf16.mxu0 %vm12346_vm2, %v15701_v48  ;;  %v2222_v15 = vmul.f32 %v12065_v40, %v13213_v1  ;;  %v2876_v1 = vsel %vm2250_vm4, %v13246_v22, 0 }
 0x579   : > { %11053 = vmatprep.subr.bf16.mxu0 %v15701_v48  ;;  %v2238_v7 = vpack.c.bf16 %v2221_v16, %v2221_v16 }
 0x57a   : > { %v12067_v25 = vpop.eup %12066  ;;  %v2239_v61 = vpack.c.bf16 %v2222_v15, %v2222_v15 }
 0x57b   : > { %11038 = vmatmul.mubr.msk.bf16.vlgmr.msra.gmra.mrb[84].mxu1 %vm1226_vm3, %v2237_v34  ;;  %3572 = vrot.lane.b32.xlu0 %v12897_v2, %s12350_s25  ;;  %v2223_v4 = vmul.f32 %v12067_v25, %v13242_v43  ;;  %v12069_v45 = vpop.eup %12068  ;;  %v2924_v43 = vsel %vm2250_vm4, %v2919_v33, 0 }
 0x57c   : > { %11048 = vmatpush3.bf16.msra.mxu1 %v2780_v44  ;;  %11049 = vmatprep.mubr.msk.bf16.mxu1 %vm12346_vm2, %v15701_v48  ;;  %v2224_v32 = vmul.f32 %v12069_v45, %v13226_v49 }
 0x57d   : > { %11059 = vmatprep.subr.bf16.mxu1 %v15701_v48  ;;  %v2240_v26 = vpack.c.bf16 %v2223_v4, %v2223_v4 }
 0x57e   : > { %v2241_v22 = vpack.c.bf16 %v2224_v32, %v2224_v32 }
 0x57f   : > { %11044 = vmatmul.mubr.msk.bf16.vlgmr.msra.gmra.mrb[56].mxu0 %vm1226_vm3, %v2238_v7  ;;  %3674 = vrot.lane.b32.xlu0 %v12934_v37, %s12349_s24 }
 0x580   : > { %11054 = vmatpush3.bf16.msra.mxu0 %v2828_v58  ;;  %11055 = vmatprep.mubr.msk.bf16.mxu0 %vm12346_vm2, %v15701_v48 }
 0x581   : > { %11065 = vmatprep.subr.bf16.mxu0 %v15701_v48 }
 0x583   : > { %11050 = vmatmul.mubr.msk.bf16.vlgmr.msra.gmra.mrb[88].mxu1 %vm1226_vm3, %v2239_v61  ;;  %3672 = vrot.lane.b32.xlu0 %v12934_v37, %s12350_s25 }
 0x584   : > { %11060 = vmatpush3.bf16.msra.mxu1 %v2876_v1  ;;  %11061 = vmatprep.mubr.msk.bf16.mxu1 %vm12346_vm2, %v15701_v48 }
 0x585   : > { %11071 = vmatprep.subr.bf16.mxu1 %v15701_v48 }
 0x587   : > { %11056 = vmatmul.mubr.msk.bf16.vlgmr.msra.gmra.mrb[60].mxu0 %vm1226_vm3, %v2240_v26  ;;  %3774 = vrot.lane.b32.xlu0 %v12952_v62, %s12349_s24 }
 0x588   : > { %11066 = vmatpush3.bf16.msra.mxu0 %v2924_v43  ;;  %11067 = vmatprep.mubr.msk.bf16.mxu0 %vm12346_vm2, %v15701_v48 }
 0x589   : > { %11077 = vmatprep.subr.bf16.mxu0 %v15701_v48 }
 0x58b   : > { %11062 = vmatmul.mubr.msk.bf16.vlgmr.msra.gmra.mrb[92].mxu1 %vm1226_vm3, %v2241_v22  ;;  %3772 = vrot.lane.b32.xlu0 %v12952_v62, %s12350_s25 }
 0x58c   : > { %11073 = vmatprep.mubr.msk.bf16.mxu1 %vm12346_vm2, %v15701_v48 }
 0x58f   : > { %3874 = vrot.lane.b32.xlu0 %v12974_v14, %s12349_s24  ;;  %s15750_s24 = sld [smem:[#allocation14_spill]] (!%p10461_p5) }
 0x591   : > { %v2187_v49 = vpop.xlane.xlu0 %2186 }
 0x592   : > { %12070 = vrcp.f32 %v2187_v49 }
 0x593   : > { %4174 = vrot.lane.b32.xlu0 %v12851_v51, %s12351_s15 }
 0x595   : > { %v2967_v8 = vpop.permute.xlu0 %2966 }
 0x596   : > { %v2972_v59 = vsel %vm2250_vm4, %v2967_v8, 0 }
 0x597   : > { %4270 = vrot.lane.b32.xlu0 %v12863_v57, %s12351_s15  ;;  %11072 = vmatpush3.bf16.msra.mxu1 %v2972_v59 }
 0x598   : > { %v2190_v47 = vpop.xlane.xlu1 %2189  ;;  %11083 = vmatprep.subr.bf16.mxu1 %v15701_v48 }
 0x599   : > { %12072 = vrcp.f32 %v2190_v47 }
 0x59b   : > { %4366 = vrot.lane.b32.xlu0 %v12871_v63, %s12351_s15 }
 0x59c   : > { %v12071_v50 = vpop.eup %12070  ;;  %v3015_v60 = vpop.permute.xlu1 %3014 }
 0x59d   : > { %v2225_v39 = vmul.f32 %v12071_v50, %v13254_v10  ;;  %v3020_v19 = vsel %vm2250_vm4, %v3015_v60, 0 }
 0x59f   : > { %v2242_v56 = vpack.c.bf16 %v2225_v39, %v2225_v39 }
 0x5a0   : > { %v3125_v10 = vpop.permute.xlu1 %3124 }
 0x5a1   : > { %11068 = vmatmul.mubr.msk.bf16.vlgmr.msra.gmra.mrb[64].mxu0 %vm1226_vm3, %v2242_v56  ;;  %v3130_v16 = vsel %vm1226_vm3, %v3125_v10, 0 }
 0x5a2   : > { %11078 = vmatpush3.bf16.msra.mxu0 %v3020_v19  ;;  %11079 = vmatprep.mubr.msk.bf16.mxu0 %vm12346_vm2, %v15701_v48 }
 0x5a3   : > { %v12073_v35 = vpop.eup %12072  ;;  %11089 = vmatprep.subr.bf16.mxu0 %v15701_v48 }
 0x5a4   : > { %v2226_v33 = vmul.f32 %v12073_v35, %v13260_v9  ;;  %v3123_v52 = vpop.permute.xlu1 %3122 }
 0x5a6   : > { %v2243_v38 = vpack.c.bf16 %v2226_v33, %v2226_v33 }
 0x5a8   : > { %11074 = vmatmul.mubr.msk.bf16.vlgmr.msra.gmra.mrb[96].mxu1 %vm1226_vm3, %v2243_v38  ;;  %v3225_v54 = vpop.permute.xlu1 %3224 }
 0x5a9   : > { %11085 = vmatprep.mubr.msk.bf16.mxu1 %vm12346_vm2, %v15701_v48  ;;  %v3230_v15 = vsel %vm1226_vm3, %v3225_v54, 0 }
 0x5ac   : > { %v3223_v42 = vpop.permute.xlu1 %3222 }
 0x5b0   : > { %v3325_v0 = vpop.permute.xlu1 %3324 }
 0x5b1   : > { %v3330_v47 = vsel %vm1226_vm3, %v3325_v0, 0 }
 0x5b4   : > { %v13461_v12 = vpop.permute.xlu1 %3322 }
 0x5b8   : > { %v13465_v55 = vpop.permute.xlu1 %3424 }
 0x5bc   : > { %v13470_v23 = vpop.permute.xlu1 %3422 }
 0x5c6   : > { %v2193_v30 = vpop.xlane.xlu0 %2192 }
 0x5c7   : > { %12074 = vrcp.f32 %v2193_v30  ;;  %v3430_v30 = vsel %vm1226_vm3, %v13465_v55, 0 }
 0x5ca   : > { %v3075_v17 = vpop.permute.xlu0 %3074 }
 0x5cb   : > { %v3080_v9 = vsel %vm1226_vm3, %v3075_v17, 0 }
 0x5cc   : > { %11084 = vmatpush3.bf16.xpose.msra.mxu1 %v3080_v9 }
 0x5cd   : > { %11095 = vmatprep.subr.bf16.mxu1 %v15701_v48 }
 0x5ce   : > { %v3073_v27 = vpop.permute.xlu0 %3072 }
 0x5d1   : > { %v12075_v6 = vpop.eup %12074 }
 0x5d2   : > { %v3175_v31 = vpop.permute.xlu0 %3174  ;;  %v2227_v5 = vmul.f32 %v12075_v6, %v13331_v36  ;;  %v13480_v36 = vpop.permute.xlu1 %3524 }
 0x5d3   : > { %v3180_v21 = vsel %vm1226_vm3, %v3175_v31, 0  ;;  %11086 = vmatmul.mubr.msk.bf16.vlgmr.msra.gmra.mrb[100].mxu1 %vm1226_vm3, %v3073_v27 }
 0x5d4   : > { %11096 = vmatpush3.bf16.xpose.msra.mxu1 %v3180_v21  ;;  %v2244_v34 = vpack.c.bf16 %v2227_v5, %v2227_v5  ;;  %11097 = vmatprep.mubr.msk.bf16.mxu1 %vm12346_vm2, %v15701_v48 }
 0x5d5   : > { %11107 = vmatprep.subr.bf16.mxu1 %v15701_v48 }
 0x5d6   : > { %11080 = vmatmul.mubr.msk.bf16.vlgmr.msra.gmra.mrb[68].mxu0 %vm1226_vm3, %v2244_v34  ;;  %v3173_v40 = vpop.permute.xlu0 %3172  ;;  %v13493_v61 = vpop.permute.xlu1 %3522 }
 0x5d7   : > { %11090 = vmatpush3.bf16.xpose.msra.mxu0 %v3130_v16  ;;  %11091 = vmatprep.mubr.msk.bf16.mxu0 %vm12346_vm2, %v15701_v48 }
 0x5d8   : > { %11101 = vmatprep.subr.bf16.mxu0 %v15701_v48 }
 0x5da   : > { %v3275_v44 = vpop.permute.xlu0 %3274  ;;  %v3625_v60 = vpop.permute.xlu1 %3624 }
 0x5db   : > { %v3280_v7 = vsel %vm1226_vm3, %v3275_v44, 0  ;;  %11098 = vmatmul.mubr.msk.bf16.vlgmr.msra.gmra.mrb[104].mxu1 %vm1226_vm3, %v3173_v40 }
 0x5dc   : > { %11108 = vmatpush3.bf16.xpose.msra.mxu1 %v3280_v7  ;;  %11109 = vmatprep.mubr.msk.bf16.mxu1 %vm12346_vm2, %v15701_v48 }
 0x5dd   : > { %11119 = vmatprep.subr.bf16.mxu1 %v15701_v48 }
 0x5de   : > { %11092 = vmatmul.mubr.msk.bf16.vlgmr.msra.gmra.mrb[72].mxu0 %vm1226_vm3, %v3123_v52  ;;  %v3273_v25 = vpop.permute.xlu0 %3272  ;;  %v13489_v58 = vpop.f32.mrb[68].mxu1 }
 0x5df   : > { %11102 = vmatpush3.bf16.xpose.msra.mxu0 %v3230_v15  ;;  %11103 = vmatprep.mubr.msk.bf16.mxu0 %vm12346_vm2, %v15701_v48  ;;  %v10991_v4 = vpop.f32.mrb[69].mxu1  ;;  %v3623_v17 = vpop.permute.xlu1 %3622  ;;  %v3530_v15 = vsel %vm1226_vm3, %v13480_v36, 0 }
 0x5e0   : > { %11113 = vmatprep.subr.bf16.mxu0 %v15701_v48  ;;  %v2339_v1 = vpop.f32.mrb[70].mxu1 }
 0x5e1   : > { %v10992_v43 = vpop.f32.mrb[71].mxu1 }
 0x5e2   : > { %v13496_v45 = vpop.f32.mrb[36].mxu0  ;;  %v3375_v49 = vpop.permute.xlu0 %3374 }
 0x5e3   : > { %v10985_v32 = vpop.f32.mrb[37].mxu0  ;;  %11110 = vmatmul.mubr.msk.bf16.vlgmr.msra.gmra.mrb[108].mxu1 %vm1226_vm3, %v3273_v25  ;;  %v3380_v8 = vsel %vm1226_vm3, %v3375_v49, 0  ;;  %v3725_v40 = vpop.permute.xlu1 %3724 }
 0x5e4   : > { %v2291_v22 = vpop.f32.mrb[38].mxu0  ;;  %11121 = vmatprep.mubr.msk.bf16.mxu1 %vm12346_vm2, %v15701_v48  ;;  %11120 = vmatpush3.bf16.xpose.msra.mxu1 %v3380_v8 }
 0x5e5   : > { %v10986_v59 = vpop.f32.mrb[39].mxu0  ;;  %11131 = vmatprep.subr.bf16.mxu1 %v15701_v48 }
 0x5e6   : > { %11104 = vmatmul.mubr.msk.bf16.vlgmr.msra.gmra.mrb[76].mxu0 %vm1226_vm3, %v3223_v42  ;;  %v13507_v50 = vpop.f32.mrb[72].mxu1  ;;  %v3373_v39 = vpop.permute.xlu0 %3372 }
 0x5e7   : > { %11114 = vmatpush3.bf16.xpose.msra.mxu0 %v3330_v47  ;;  %11115 = vmatprep.mubr.msk.bf16.mxu0 %vm12346_vm2, %v15701_v48  ;;  %v11003_v56 = vpop.f32.mrb[73].mxu1  ;;  %v3723_v1 = vpop.permute.xlu1 %3722 }
 0x5e8   : > { %11125 = vmatprep.subr.bf16.mxu0 %v15701_v48  ;;  %v2435_v35 = vpop.f32.mrb[74].mxu1 }
 0x5e9   : > { %v11004_v10 = vpop.f32.mrb[75].mxu1 }
 0x5ea   : > { %v13512_v19 = vpop.f32.mrb[40].mxu0  ;;  %v3475_v54 = vpop.permute.xlu0 %3474 }
 0x5eb   : > { %v10997_v38 = vpop.f32.mrb[41].mxu0  ;;  %v3480_v42 = vsel %vm1226_vm3, %v3475_v54, 0  ;;  %11122 = vmatmul.mubr.msk.bf16.vlgmr.msra.gmra.mrb[112].mxu1 %vm1226_vm3, %v3373_v39  ;;  %v3825_v59 = vpop.permute.xlu1 %3824 }
 0x5ec   : > { %v2387_v52 = vpop.f32.mrb[42].mxu0  ;;  %11132 = vmatpush3.bf16.xpose.msra.mxu1 %v3480_v42  ;;  %11133 = vmatprep.mubr.msk.bf16.mxu1 %vm12346_vm2, %v15701_v48 }
 0x5ed   : > { %v10998_v0 = vpop.f32.mrb[43].mxu0  ;;  %11143 = vmatprep.subr.bf16.mxu1 %v15701_v48  ;;  %v3830_v52 = vsel %vm1226_vm3, %v3825_v59, 0 }
 0x5ee   : > { %11116 = vmatmul.mubr.msk.bf16.vlgmr.msra.gmra.mrb[80].mxu0 %vm1226_vm3, %v13461_v12  ;;  %v13525_v9 = vpop.f32.mrb[76].mxu1  ;;  %v3473_v27 = vpop.permute.xlu0 %3472 }
 0x5ef   : > { %11126 = vmatpush3.bf16.xpose.msra.mxu0 %v3430_v30  ;;  %11127 = vmatprep.mubr.msk.bf16.mxu0 %vm12346_vm2, %v15701_v48  ;;  %v11015_v6 = vpop.f32.mrb[77].mxu1 }
 0x5f0   : > { %11137 = vmatprep.subr.bf16.mxu0 %v15701_v48  ;;  %v2531_v5 = vpop.f32.mrb[78].mxu1 }
 0x5f1   : > { %v11016_v12 = vpop.f32.mrb[79].mxu1 }
 0x5f2   : > { %v13530_v31 = vpop.f32.mrb[44].mxu0  ;;  %v3575_v16 = vpop.permute.xlu0 %3574 }
 0x5f3   : > { %v11009_v21 = vpop.f32.mrb[45].mxu0  ;;  %v3580_v44 = vsel %vm1226_vm3, %v3575_v16, 0  ;;  %11134 = vmatmul.mubr.msk.bf16.vlgmr.msra.gmra.mrb[116].mxu1 %vm1226_vm3, %v3473_v27 }
 0x5f4   : > { %v2483_v34 = vpop.f32.mrb[46].mxu0  ;;  %11144 = vmatpush3.bf16.xpose.msra.mxu1 %v3580_v44  ;;  %11145 = vmatprep.mubr.msk.bf16.mxu1 %vm12346_vm2, %v15701_v48 }
 0x5f5   : > { %v11010_v7 = vpop.f32.mrb[47].mxu0  ;;  %11155 = vmatprep.subr.bf16.mxu1 %v15701_v48 }
 0x5f6   : > { %11128 = vmatmul.mubr.msk.bf16.vlgmr.msra.gmra.mrb[84].mxu0 %vm1226_vm3, %v13470_v23  ;;  %v3573_v25 = vpop.permute.xlu0 %3572  ;;  %v3630_v23 = vsel %vm1226_vm3, %v3625_v60, 0  ;;  %v3823_v60 = vpop.permute.xlu1 %3822 }
 0x5f7   : > { %11138 = vmatpush3.bf16.xpose.msra.mxu0 %v3530_v15  ;;  %11139 = vmatprep.mubr.msk.bf16.mxu0 %vm12346_vm2, %v15701_v48 }
 0x5f8   : > { %11149 = vmatprep.subr.bf16.mxu0 %v15701_v48 }
 0x5fa   : > { %v13546_v4 = vpop.f32.mrb[48].mxu0  ;;  %v3675_v22 = vpop.permute.xlu0 %3674 }
 0x5fb   : > { %v11021_v32 = vpop.f32.mrb[49].mxu0  ;;  %v3680_v36 = vsel %vm1226_vm3, %v3675_v22, 0  ;;  %11146 = vmatmul.mubr.msk.bf16.vlgmr.msra.gmra.mrb[120].mxu1 %vm1226_vm3, %v3573_v25  ;;  %v3873_v10 = vpop.permute.xlu1 %3872 }
 0x5fc   : > { %v2579_v43 = vpop.f32.mrb[50].mxu0  ;;  %11156 = vmatpush3.bf16.xpose.msra.mxu1 %v3680_v36  ;;  %11157 = vmatprep.mubr.msk.bf16.mxu1 %vm12346_vm2, %v15701_v48 }
 0x5fd   : > { %v11022_v49 = vpop.f32.mrb[51].mxu0  ;;  %11167 = vmatprep.subr.bf16.mxu1 %v15701_v48 }
 0x5fe   : > { %11140 = vmatmul.mubr.msk.bf16.vlgmr.msra.gmra.mrb[88].mxu0 %vm1226_vm3, %v13493_v61  ;;  %v3673_v8 = vpop.permute.xlu0 %3672  ;;  %v3730_v61 = vsel %vm1226_vm3, %v3725_v40, 0 }
 0x5ff   : > { %11150 = vmatpush3.bf16.xpose.msra.mxu0 %v3630_v23  ;;  %11151 = vmatprep.mubr.msk.bf16.mxu0 %vm12346_vm2, %v15701_v48  ;;  %v4127_v42 = vpop.permute.xlu1 %4126 }
 0x600   : > { %11161 = vmatprep.subr.bf16.mxu0 %v15701_v48  ;;  %v4132_v30 = vsel %vm2250_vm4, %v4127_v42, 0 }
 0x602   : > { %v3775_v47 = vpop.permute.xlu0 %3774 }
 0x603   : > { %v3780_v39 = vsel %vm1226_vm3, %v3775_v47, 0  ;;  %11158 = vmatmul.mubr.msk.bf16.vlgmr.msra.gmra.mrb[124].mxu1 %vm1226_vm3, %v3673_v8 }
 0x604   : > { %11168 = vmatpush3.bf16.xpose.msra.mxu1 %v3780_v39  ;;  %11169 = vmatprep.mubr.msk.bf16.mxu1 %vm12346_vm2, %v15701_v48 }
 0x605   : > { %11179 = vmatprep.subr.bf16.mxu1 %v15701_v48 }
 0x606   : > { %11152 = vmatmul.mubr.msk.bf16.vlgmr.msra.gmra.mrb[92].mxu0 %vm1226_vm3, %v3623_v17  ;;  %v3773_v56 = vpop.permute.xlu0 %3772 }
 0x607   : > { %11162 = vmatpush3.bf16.xpose.msra.mxu0 %v3730_v61  ;;  %11163 = vmatprep.mubr.msk.bf16.mxu0 %vm12346_vm2, %v15701_v48 }
 0x608   : > { %11173 = vmatprep.subr.bf16.mxu0 %v15701_v48 }
 0x60a   : > { %v3875_v35 = vpop.permute.xlu0 %3874 }
 0x60b   : > { %v3880_v38 = vsel %vm1226_vm3, %v3875_v35, 0  ;;  %11170 = vmatmul.mubr.msk.bf16.vlgmr.msra.gmra.mrb[128].mxu1 %vm1226_vm3, %v3773_v56 }
 0x60c   : > { %11180 = vmatpush3.bf16.xpose.msra.mxu1 %v3880_v38  ;;  %11181 = vmatprep.mubr.msk.bf16.mxu1 %vm12346_vm2, %v15701_v48 }
 0x60d   : > { %11191 = vmatprep.subr.bf16.mxu1 %v15701_v48 }
 0x60e   : > { %11164 = vmatmul.mubr.msk.bf16.vlgmr.msra.gmra.mrb[96].mxu0 %vm1226_vm3, %v3723_v1  ;;  %v4175_v54 = vpop.permute.xlu0 %4174 }
 0x60f   : > { %11174 = vmatpush3.bf16.xpose.msra.mxu0 %v3830_v52  ;;  %11175 = vmatprep.mubr.msk.bf16.mxu0 %vm12346_vm2, %v15701_v48  ;;  %v4180_v0 = vsel %vm2250_vm4, %v4175_v54, 0 }
 0x610   : > { %11185 = vmatprep.subr.bf16.mxu0 %v15701_v48 }
 0x613   : > { %11182 = vmatmul.mubr.msk.bf16.vlgmr.msra.gmra.mrb[132].mxu1 %vm1226_vm3, %v3873_v10 }
 0x614   : > { %11192 = vmatpush3.bf16.msra.mxu1 %v4180_v0  ;;  %11193 = vmatprep.mubr.msk.bf16.mxu1 %vm12346_vm2, %v15701_v48 }
 0x615   : > { %11203 = vmatprep.subr.bf16.mxu1 %v15701_v48 }
 0x616   : > { %11176 = vmatmul.mubr.msk.bf16.vlgmr.msra.gmra.mrb[100].mxu0 %vm1226_vm3, %v3823_v60 }
 0x617   : > { %11186 = vmatpush3.bf16.msra.mxu0 %v4132_v30  ;;  %11187 = vmatprep.mubr.msk.bf16.mxu0 %vm12346_vm2, %v15701_v48 }
 0x618   : > { %11197 = vmatprep.subr.bf16.mxu0 %v15701_v48 }
 0x646   : > { %v13589_v17 = vpop.f32.mrb[80].mxu1 }
 0x647   : > { %v11027_v6 = vpop.f32.mrb[81].mxu1 }
 0x648   : > { %v2627_v5 = vpop.f32.mrb[82].mxu1 }
 0x649   : > { %v11028_v21 = vpop.f32.mrb[83].mxu1 }
 0x64a   : > { %v13593_v12 = vpop.f32.mrb[52].mxu0 }
 0x64b   : > { %v11033_v34 = vpop.f32.mrb[53].mxu0 }
 0x64c   : > { %v2675_v16 = vpop.f32.mrb[54].mxu0 }
 0x64d   : > { %v11034_v40 = vpop.f32.mrb[55].mxu0 }
 0x64e   : > { %v13595_v44 = vpop.f32.mrb[84].mxu1 }
 0x64f   : > { %v11039_v15 = vpop.f32.mrb[85].mxu1 }
 0x650   : > { %v2723_v25 = vpop.f32.mrb[86].mxu1 }
 0x651   : > { %v11040_v1 = vpop.f32.mrb[87].mxu1 }
 0x652   : > { %v13599_v32 = vpop.f32.mrb[56].mxu0 }
 0x653   : > { %v11045_v43 = vpop.f32.mrb[57].mxu0 }
 0x654   : > { %v2771_v22 = vpop.f32.mrb[58].mxu0 }
 0x655   : > { %v11046_v36 = vpop.f32.mrb[59].mxu0 }
 0x656   : > { %v13601_v49 = vpop.f32.mrb[88].mxu1 }
 0x657   : > { %v11051_v8 = vpop.f32.mrb[89].mxu1 }
 0x658   : > { %v2819_v59 = vpop.f32.mrb[90].mxu1 }
 0x659   : > { %v11052_v47 = vpop.f32.mrb[91].mxu1 }
 0x65a   : > { %v13605_v39 = vpop.f32.mrb[60].mxu0 }
 0x65b   : > { %v11057_v61 = vpop.f32.mrb[61].mxu0 }
 0x65c   : > { %v2867_v60 = vpop.f32.mrb[62].mxu0 }
 0x65d   : > { %v11058_v56 = vpop.f32.mrb[63].mxu0 }
 0x65e   : > { %v13607_v35 = vpop.f32.mrb[92].mxu1 }
 0x65f   : > { %v11063_v10 = vpop.f32.mrb[93].mxu1 }
 0x660   : > { %v2915_v52 = vpop.f32.mrb[94].mxu1 }
 0x661   : > { %v11064_v54 = vpop.f32.mrb[95].mxu1 }
 0x674   : > { %v13611_v42 = vpop.f32.mrb[64].mxu0 }
 0x675   : > { %15722 = vst [vmem:[#allocation5_spill] sm:$0xff] %v13611_v42  ;;  %v11069_v0 = vpop.f32.mrb[65].mxu0 }
 0x676   : > { %v2963_v30 = vpop.f32.mrb[66].mxu0 }
 0x677   : > { %v11070_v6 = vpop.f32.mrb[67].mxu0 }
 0x67b   : > { %v13613_v5 = vpop.f32.mrb[96].mxu1 }
 0x67c   : > { %15723 = vst [vmem:[#allocation6_spill] sm:$0xff] %v13613_v5  ;;  %v11075_v34 = vpop.f32.mrb[97].mxu1 }
 0x67d   : > { %v3011_v16 = vpop.f32.mrb[98].mxu1 }
 0x67e   : > { %v11076_v40 = vpop.f32.mrb[99].mxu1 }
 0x6a6   : > { %v3116_v15 = vpop.f32.mrb[100].mxu1 }
 0x6a7   : > { %v13618_v25 = vadd.f32 %v3116_v15, %v13059_v11  ;;  %v11087_v1 = vpop.f32.mrb[101].mxu1 }
 0x6a8   : > { %v3119_v43 = vpop.f32.mrb[102].mxu1 }
 0x6a9   : > { %v13620_v22 = vpop.f32.mrb[68].mxu0  ;;  %v11088_v36 = vpop.f32.mrb[103].mxu1  ;;  %v3922_v8 = vsel %vm1226_vm3, %v13618_v25, -inf }
 0x6aa   : > { %15724 = vst [vmem:[#allocation7_spill] sm:$0xff] %v13620_v22  ;;  %v11081_v59 = vpop.f32.mrb[69].mxu0  ;;  %3923 = vmax.xlane.f32.xlu0 %v3922_v8 }
 0x6ab   : > { %v3059_v47 = vpop.f32.mrb[70].mxu0 }
 0x6ac   : > { %v11082_v61 = vpop.f32.mrb[71].mxu0 }
 0x6ae   : > { %v3216_v60 = vpop.f32.mrb[104].mxu1 }
 0x6af   : > { %v13625_v56 = vadd.f32 %v3216_v60, %v13059_v11  ;;  %v11099_v10 = vpop.f32.mrb[105].mxu1 }
 0x6b0   : > { %v3219_v52 = vpop.f32.mrb[106].mxu1 }
 0x6b1   : > { %v3166_v54 = vpop.f32.mrb[72].mxu0  ;;  %v11100_v0 = vpop.f32.mrb[107].mxu1  ;;  %v3928_v30 = vsel %vm1226_vm3, %v13625_v56, -inf }
 0x6b2   : > { %v13630_v6 = vadd.f32 %v3166_v54, %v13059_v11  ;;  %v11093_v34 = vpop.f32.mrb[73].mxu0  ;;  %3929 = vmax.xlane.f32.xlu0 %v3928_v30 }
 0x6b3   : > { %v3169_v16 = vpop.f32.mrb[74].mxu0 }
 0x6b4   : > { %v11094_v40 = vpop.f32.mrb[75].mxu0  ;;  %v3925_v15 = vsel %vm1226_vm3, %v13630_v6, -inf }
 0x6b5   : > { %3926 = vmax.xlane.f32.xlu1 %v3925_v15 }
 0x6b6   : > { %v3316_v1 = vpop.f32.mrb[108].mxu1 }
 0x6b7   : > { %v11111_v43 = vpop.f32.mrb[109].mxu1  ;;  %v13638_v10 = vadd.f32 %v3316_v1, %v13059_v11 }
 0x6b8   : > { %v3319_v36 = vpop.f32.mrb[110].mxu1 }
 0x6b9   : > { %v3266_v8 = vpop.f32.mrb[76].mxu0  ;;  %v11112_v59 = vpop.f32.mrb[111].mxu1  ;;  %v3934_v16 = vsel %vm1226_vm3, %v13638_v10, -inf }
 0x6ba   : > { %v13635_v47 = vadd.f32 %v3266_v8, %v13059_v11  ;;  %v11105_v61 = vpop.f32.mrb[77].mxu0 }
 0x6bb   : > { %v3269_v60 = vpop.f32.mrb[78].mxu0 }
 0x6bc   : > { %v11106_v52 = vpop.f32.mrb[79].mxu0  ;;  %v3931_v54 = vsel %vm1226_vm3, %v13635_v47, -inf }
 0x6bd   : > { %3932 = vmax.xlane.f32.xlu0 %v3931_v54 }
 0x6be   : > { %v3416_v0 = vpop.f32.mrb[112].mxu1 }
 0x6bf   : > { %v13643_v30 = vadd.f32 %v3416_v0, %v13059_v11  ;;  %v11123_v34 = vpop.f32.mrb[113].mxu1 }
 0x6c0   : > { %v3419_v40 = vpop.f32.mrb[114].mxu1 }
 0x6c1   : > { %v3366_v15 = vpop.f32.mrb[80].mxu0  ;;  %3935 = vmax.xlane.f32.xlu0 %v3934_v16  ;;  %v11124_v1 = vpop.f32.mrb[115].mxu1  ;;  %v3940_v60 = vsel %vm1226_vm3, %v13643_v30, -inf }
 0x6c2   : > { %v13648_v43 = vadd.f32 %v3366_v15, %v13059_v11  ;;  %v11117_v36 = vpop.f32.mrb[81].mxu0 }
 0x6c3   : > { %v3369_v8 = vpop.f32.mrb[82].mxu0 }
 0x6c4   : > { %v11118_v59 = vpop.f32.mrb[83].mxu0  ;;  %v3937_v61 = vsel %vm1226_vm3, %v13648_v43, -inf }
 0x6c5   : > { %3938 = vmax.xlane.f32.xlu1 %v3937_v61  ;;  %3941 = vmax.xlane.f32.xlu0 %v3940_v60 }
 0x6c6   : > { %v3516_v52 = vpop.f32.mrb[116].mxu1 }
 0x6c7   : > { %v13655_v54 = vadd.f32 %v3516_v52, %v13059_v11  ;;  %v11135_v0 = vpop.f32.mrb[117].mxu1 }
 0x6c8   : > { %v3519_v34 = vpop.f32.mrb[118].mxu1 }
 0x6c9   : > { %v3466_v16 = vpop.f32.mrb[84].mxu0  ;;  %v11136_v15 = vpop.f32.mrb[119].mxu1  ;;  %v3946_v36 = vsel %vm1226_vm3, %v13655_v54, -inf }
 0x6ca   : > { %v13658_v40 = vadd.f32 %v3466_v16, %v13059_v11  ;;  %v11129_v1 = vpop.f32.mrb[85].mxu0  ;;  %3947 = vmax.xlane.f32.xlu0 %v3946_v36 }
 0x6cb   : > { %v3469_v8 = vpop.f32.mrb[86].mxu0 }
 0x6cc   : > { %v11130_v59 = vpop.f32.mrb[87].mxu0  ;;  %v3943_v61 = vsel %vm1226_vm3, %v13658_v40, -inf }
 0x6cd   : > { %3944 = vmax.xlane.f32.xlu1 %v3943_v61 }
 0x6ce   : > { %v3616_v60 = vpop.f32.mrb[120].mxu1 }
 0x6cf   : > { %v13665_v52 = vadd.f32 %v3616_v60, %v13059_v11  ;;  %v11147_v0 = vpop.f32.mrb[121].mxu1 }
 0x6d0   : > { %v3619_v34 = vpop.f32.mrb[122].mxu1 }
 0x6d1   : > { %v3566_v16 = vpop.f32.mrb[88].mxu0  ;;  %v11148_v1 = vpop.f32.mrb[123].mxu1  ;;  %v3952_v36 = vsel %vm1226_vm3, %v13665_v52, -inf }
 0x6d2   : > { %v13668_v15 = vadd.f32 %v3566_v16, %v13059_v11  ;;  %v11141_v21 = vpop.f32.mrb[89].mxu0  ;;  %3953 = vmax.xlane.f32.xlu0 %v3952_v36 }
 0x6d3   : > { %v3569_v8 = vpop.f32.mrb[90].mxu0 }
 0x6d4   : > { %v11142_v59 = vpop.f32.mrb[91].mxu0  ;;  %v3949_v61 = vsel %vm1226_vm3, %v13668_v15, -inf }
 0x6d5   : > { %3950 = vmax.xlane.f32.xlu1 %v3949_v61 }
 0x6d6   : > { %v3716_v60 = vpop.f32.mrb[124].mxu1 }
 0x6d7   : > { %v13675_v0 = vadd.f32 %v3716_v60, %v13059_v11  ;;  %v11159_v34 = vpop.f32.mrb[125].mxu1 }
 0x6d8   : > { %v3719_v38 = vpop.f32.mrb[126].mxu1 }
 0x6d9   : > { %v3666_v16 = vpop.f32.mrb[92].mxu0  ;;  %v11160_v21 = vpop.f32.mrb[127].mxu1  ;;  %v3958_v36 = vsel %vm1226_vm3, %v13675_v0, -inf }
 0x6da   : > { %v13678_v1 = vadd.f32 %v3666_v16, %v13059_v11  ;;  %v11153_v23 = vpop.f32.mrb[93].mxu0  ;;  %3959 = vmax.xlane.f32.xlu0 %v3958_v36 }
 0x6db   : > { %v3669_v8 = vpop.f32.mrb[94].mxu0 }
 0x6dc   : > { %v11154_v59 = vpop.f32.mrb[95].mxu0  ;;  %v3955_v61 = vsel %vm1226_vm3, %v13678_v1, -inf }
 0x6dd   : > { %3956 = vmax.xlane.f32.xlu1 %v3955_v61 }
 0x6de   : > { %v3816_v60 = vpop.f32.mrb[128].mxu1 }
 0x6df   : > { %v13685_v34 = vadd.f32 %v3816_v60, %v13059_v11  ;;  %v11171_v38 = vpop.f32.mrb[129].mxu1 }
 0x6e0   : > { %v3819_v7 = vpop.f32.mrb[130].mxu1 }
 0x6e1   : > { %v3766_v16 = vpop.f32.mrb[96].mxu0  ;;  %v11172_v23 = vpop.f32.mrb[131].mxu1  ;;  %v3964_v36 = vsel %vm1226_vm3, %v13685_v34, -inf }
 0x6e2   : > { %v13688_v21 = vadd.f32 %v3766_v16, %v13059_v11  ;;  %v11165_v27 = vpop.f32.mrb[97].mxu0  ;;  %3965 = vmax.xlane.f32.xlu0 %v3964_v36 }
 0x6e3   : > { %v3769_v8 = vpop.f32.mrb[98].mxu0 }
 0x6e4   : > { %v11166_v59 = vpop.f32.mrb[99].mxu0  ;;  %v3961_v61 = vsel %vm1226_vm3, %v13688_v21, -inf }
 0x6e5   : > { %3962 = vmax.xlane.f32.xlu1 %v3961_v61  ;;  %v13708_v59 = vpop.permute.xlu0 %4270 }
 0x6e6   : > { %v3916_v60 = vpop.f32.mrb[132].mxu1 }
 0x6e7   : > { %v11183_v55 = vpop.f32.mrb[133].mxu1 }
 0x6e8   : > { %v3919_v38 = vpop.f32.mrb[134].mxu1  ;;  %v13704_v55 = vadd.f32 %v3916_v60, %v13059_v11 }
 0x6e9   : > { %v3866_v7 = vpop.f32.mrb[100].mxu0  ;;  %v11184_v16 = vpop.f32.mrb[135].mxu1 }
 0x6ea   : > { %v13695_v33 = vadd.f32 %v3866_v7, %v13059_v11  ;;  %v11177_v23 = vpop.f32.mrb[101].mxu0  ;;  %v3970_v8 = vsel %vm1226_vm3, %v13704_v55, -inf  ;;  %v13712_v38 = vpop.permute.xlu1 %4222 }
 0x6eb   : > { %v3869_v27 = vpop.f32.mrb[102].mxu0 }
 0x6ec   : > { %v11178_v26 = vpop.f32.mrb[103].mxu0  ;;  %v3967_v36 = vsel %vm1226_vm3, %v13695_v33, -inf }
 0x6ed   : > { %3968 = vmax.xlane.f32.xlu1 %v3967_v36  ;;  %v13710_v26 = vpop.permute.xlu0 %4366 }
 0x6ee   : > { %v13715_v23 = vpop.permute.xlu1 %4318 }
 0x6f8   : > { %4462 = vrot.lane.b32.xlu0 %v12881_v20, %s12351_s15 }
 0x6fe   : > { %4414 = vrot.lane.b32.xlu1 %v12878_v13, %s12351_s15 }
 0x717   : > { %3971 = vmax.xlane.f32.xlu0 %v3970_v8 }
 0x737   : > { %v3924_v61 = vpop.xlane.xlu0 %3923 }
 0x738   : > { %v3973_v7 = vsub.f32 %v13618_v25, %v3924_v61 }
 0x73a   : > { %v3990_v16 = vmul.f32 1.442695, %v3973_v7 }
 0x73c   : > { %12076 = vpow2.f32 %v3990_v16 }
 0x73f   : > { %v3930_v27 = vpop.xlane.xlu0 %3929 }
 0x740   : > { %v3975_v60 = vsub.f32 %v13625_v56, %v3930_v27 }
 0x742   : > { %v3994_v36 = vmul.f32 1.442695, %v3975_v60  ;;  %v3927_v48 = vpop.xlane.xlu1 %3926 }
 0x743   : > { %v3974_v8 = vsub.f32 %v13630_v6, %v3927_v48 }
 0x744   : > { %12078 = vpow2.f32 %v3994_v36 }
 0x745   : > { %v3992_v11 = vmul.f32 1.442695, %v3974_v8 }
 0x746   : > { %v13719_v22 = vpop.eup %12076 }
 0x747   : > { %12080 = vpow2.f32 %v3992_v11  ;;  %v4024_v42 = vsel %vm1226_vm3, %v13719_v22, 0.0 }
 0x748   : > { %4025 = vadd.xlane.f32.xlu1 %v4024_v42 }
 0x74a   : > { %v3933_v25 = vpop.xlane.xlu0 %3932 }
 0x74b   : > { %v3976_v61 = vsub.f32 %v13635_v47, %v3933_v25 }
 0x74d   : > { %v3996_v7 = vmul.f32 1.442695, %v3976_v61 }
 0x74e   : > { %v13724_v16 = vpop.eup %12078  ;;  %v3936_v56 = vpop.xlane.xlu0 %3935 }
 0x74f   : > { %12082 = vpow2.f32 %v3996_v7  ;;  %v3977_v27 = vsub.f32 %v13638_v10, %v3936_v56  ;;  %v4030_v48 = vsel %vm1226_vm3, %v13724_v16, 0.0 }
 0x750   : > { %4031 = vadd.xlane.f32.xlu1 %v4030_v48 }
 0x751   : > { %v13729_v6 = vpop.eup %12080  ;;  %v3998_v11 = vmul.f32 1.442695, %v3977_v27 }
 0x752   : > { %v3939_v60 = vpop.xlane.xlu1 %3938  ;;  %v3942_v36 = vpop.xlane.xlu0 %3941  ;;  %v4027_v42 = vsel %vm1226_vm3, %v13729_v6, 0.0 }
 0x753   : > { %12084 = vpow2.f32 %v3998_v11  ;;  %v3978_v47 = vsub.f32 %v13648_v43, %v3939_v60  ;;  %v3979_v8 = vsub.f32 %v13643_v30, %v3942_v36  ;;  %4028 = vadd.xlane.f32.xlu0 %v4027_v42 }
 0x755   : > { %v4000_v25 = vmul.f32 1.442695, %v3978_v47  ;;  %v4002_v10 = vmul.f32 1.442695, %v3979_v8 }
 0x757   : > { %12086 = vpow2.f32 %v4000_v25  ;;  %v3948_v61 = vpop.xlane.xlu0 %3947 }
 0x758   : > { %12088 = vpow2.f32 %v4002_v10  ;;  %v3981_v56 = vsub.f32 %v13655_v54, %v3948_v61 }
 0x759   : > { %v13735_v7 = vpop.eup %12082 }
 0x75a   : > { %v3945_v27 = vpop.xlane.xlu1 %3944  ;;  %v4033_v48 = vsel %vm1226_vm3, %v13735_v7, 0.0  ;;  %v4006_v5 = vmul.f32 1.442695, %v3981_v56 }
 0x75b   : > { %v3980_v11 = vsub.f32 %v13658_v40, %v3945_v27  ;;  %4034 = vadd.xlane.f32.xlu0 %v4033_v48 }
 0x75c   : > { %12090 = vpow2.f32 %v4006_v5 }
 0x75d   : > { %v13741_v43 = vpop.eup %12084  ;;  %v4004_v30 = vmul.f32 1.442695, %v3980_v11 }
 0x75e   : > { %v4036_v60 = vsel %vm1226_vm3, %v13741_v43, 0.0 }
 0x75f   : > { %12092 = vpow2.f32 %v4004_v30  ;;  %4037 = vadd.xlane.f32.xlu1 %v4036_v60  ;;  %v3954_v36 = vpop.xlane.xlu0 %3953 }
 0x760   : > { %v3983_v54 = vsub.f32 %v13665_v52, %v3954_v36 }
 0x761   : > { %v13745_v42 = vpop.eup %12086 }
 0x762   : > { %v13748_v47 = vpop.eup %12088  ;;  %v3951_v8 = vpop.xlane.xlu1 %3950  ;;  %v4039_v40 = vsel %vm1226_vm3, %v13745_v42, 0.0  ;;  %v4010_v25 = vmul.f32 1.442695, %v3983_v54 }
 0x763   : > { %v3982_v5 = vsub.f32 %v13668_v15, %v3951_v8  ;;  %4040 = vadd.xlane.f32.xlu0 %v4039_v40  ;;  %v4042_v10 = vsel %vm1226_vm3, %v13748_v47, 0.0 }
 0x764   : > { %4043 = vadd.xlane.f32.xlu1 %v4042_v10  ;;  %12094 = vpow2.f32 %v4010_v25 }
 0x765   : > { %v4008_v61 = vmul.f32 1.442695, %v3982_v5 }
 0x766   : > { %v13755_v56 = vpop.eup %12090 }
 0x767   : > { %12096 = vpow2.f32 %v4008_v61  ;;  %v3960_v52 = vpop.xlane.xlu0 %3959  ;;  %v4048_v27 = vsel %vm1226_vm3, %v13755_v56, 0.0 }
 0x768   : > { %v3985_v11 = vsub.f32 %v13675_v0, %v3960_v52  ;;  %4049 = vadd.xlane.f32.xlu1 %v4048_v27 }
 0x769   : > { %v13759_v48 = vpop.eup %12092 }
 0x76a   : > { %v3957_v15 = vpop.xlane.xlu1 %3956  ;;  %v4045_v30 = vsel %vm1226_vm3, %v13759_v48, 0.0  ;;  %v4014_v60 = vmul.f32 1.442695, %v3985_v11 }
 0x76b   : > { %v3984_v36 = vsub.f32 %v13678_v1, %v3957_v15  ;;  %4046 = vadd.xlane.f32.xlu0 %v4045_v30 }
 0x76c   : > { %12098 = vpow2.f32 %v4014_v60 }
 0x76d   : > { %v4012_v54 = vmul.f32 1.442695, %v3984_v36 }
 0x76e   : > { %v13765_v8 = vpop.eup %12094 }
 0x76f   : > { %12100 = vpow2.f32 %v4012_v54  ;;  %v3966_v40 = vpop.xlane.xlu0 %3965  ;;  %v4054_v25 = vsel %vm1226_vm3, %v13765_v8, 0.0 }
 0x770   : > { %v3987_v0 = vsub.f32 %v13685_v34, %v3966_v40  ;;  %4055 = vadd.xlane.f32.xlu1 %v4054_v25 }
 0x771   : > { %v13769_v5 = vpop.eup %12096 }
 0x772   : > { %v3963_v10 = vpop.xlane.xlu1 %3962  ;;  %v4051_v61 = vsel %vm1226_vm3, %v13769_v5, 0.0  ;;  %v4018_v1 = vmul.f32 1.442695, %v3987_v0 }
 0x773   : > { %v3986_v52 = vsub.f32 %v13688_v21, %v3963_v10  ;;  %4052 = vadd.xlane.f32.xlu0 %v4051_v61  ;;  %v13795_v25 = vpop.permute.xlu0 %4462 }
 0x774   : > { %12102 = vpow2.f32 %v4018_v1 }
 0x775   : > { %v4016_v27 = vmul.f32 1.442695, %v3986_v52 }
 0x776   : > { %v13775_v11 = vpop.eup %12098 }
 0x777   : > { %12104 = vpow2.f32 %v4016_v27  ;;  %v4060_v15 = vsel %vm1226_vm3, %v13775_v11, 0.0 }
 0x778   : > { %4061 = vadd.xlane.f32.xlu1 %v4060_v15 }
 0x779   : > { %v13779_v30 = vpop.eup %12100 }
 0x77a   : > { %v4057_v34 = vsel %vm1226_vm3, %v13779_v30, 0.0  ;;  %v3969_v40 = vpop.xlane.xlu1 %3968 }
 0x77b   : > { %4058 = vadd.xlane.f32.xlu0 %v4057_v34  ;;  %v3988_v0 = vsub.f32 %v13695_v33, %v3969_v40 }
 0x77d   : > { %v4020_v10 = vmul.f32 1.442695, %v3988_v0 }
 0x77e   : > { %v13783_v60 = vpop.eup %12102  ;;  %v13815_v33 = vpop.permute.xlu1 %4414 }
 0x77f   : > { %v4066_v21 = vsel %vm1226_vm3, %v13783_v60, 0.0  ;;  %12106 = vpow2.f32 %v4020_v10 }
 0x780   : > { %4067 = vadd.xlane.f32.xlu1 %v4066_v21 }
 0x781   : > { %v13787_v36 = vpop.eup %12104 }
 0x782   : > { %v4063_v54 = vsel %vm1226_vm3, %v13787_v36, 0.0 }
 0x783   : > { %4064 = vadd.xlane.f32.xlu0 %v4063_v54 }
 0x789   : > { %v13799_v27 = vpop.eup %12106 }
 0x78a   : > { %v4069_v21 = vsel %vm1226_vm3, %v13799_v27, 0.0 }
 0x791   : > { %4510 = vrot.lane.b32.xlu1 %v12889_v24, %s12351_s15 }
 0x799   : > { %4558 = vrot.lane.b32.xlu0 %v12893_v28, %s12351_s15 }
 0x7a4   : > { %v3972_v61 = vpop.xlane.xlu0 %3971 }
 0x7a5   : > { %v3989_v1 = vsub.f32 %v13704_v55, %v3972_v61 }
 0x7a7   : > { %v4022_v52 = vmul.f32 1.442695, %v3989_v1  ;;  %v4228_v1 = vsel %vm2250_vm4, %v13712_v38, 0 }
 0x7a9   : > { %12108 = vpow2.f32 %v4022_v52 }
 0x7b3   : > { %v13801_v15 = vpop.eup %12108 }
 0x7b4   : > { %v4072_v34 = vsel %vm1226_vm3, %v13801_v15, 0.0 }
 0x7b5   : > { %4073 = vadd.xlane.f32.xlu1 %v4072_v34 }
 0x7b8   : > { %4070 = vadd.xlane.f32.xlu0 %v4069_v21 }
 0x7c6   : > { %5223 = vrot.lane.b32.xlu1 %v12848_v46, %s12352_s13 }
 0x7ca   : > { %5321 = vrot.lane.b32.xlu1 %v12858_v53, %s12353_s26 }
 0x7ce   : > { %4606 = vrot.lane.b32.xlu0 %v12897_v2, %s12351_s15  ;;  %5423 = vrot.lane.b32.xlu1 %v12868_v41, %s12352_s13 }
 0x7d2   : > { %4654 = vrot.lane.b32.xlu0 %v12901_v29, %s12351_s15  ;;  %5421 = vrot.lane.b32.xlu1 %v12868_v41, %s12353_s26 }
 0x7d5   : > { %v4026_v55 = vpop.xlane.xlu1 %4025 }
 0x7d6   : > { %12110 = vrcp.f32 %v4026_v55  ;;  %4702 = vrot.lane.b32.xlu0 %v12934_v37, %s12351_s15  ;;  %5523 = vrot.lane.b32.xlu1 %v12878_v13, %s12352_s13 }
 0x7da   : > { %4750 = vrot.lane.b32.xlu0 %v12938_v18, %s12351_s15  ;;  %5521 = vrot.lane.b32.xlu1 %v12878_v13, %s12353_s26 }
 0x7dd   : > { %v4032_v54 = vpop.xlane.xlu1 %4031 }
 0x7de   : > { %12112 = vrcp.f32 %v4032_v54  ;;  %4798 = vrot.lane.b32.xlu0 %v12952_v62, %s12351_s15  ;;  %5623 = vrot.lane.b32.xlu1 %v12889_v24, %s12352_s13 }
 0x7e0   : > { %v12111_v40 = vpop.eup %12110  ;;  %v4029_v0 = vpop.xlane.xlu0 %4028 }
 0x7e1   : > { %12114 = vrcp.f32 %v4029_v0  ;;  %v4092_v10 = vmul.f32 %v12111_v40, %v13719_v22  ;;  %v15725_v22 = vmov 0.0   ;;  %v4324_v0 = vsel %vm2250_vm4, %v13715_v23, 0 }
 0x7e2   : > { %4846 = vrot.lane.b32.xlu0 %v12958_v3, %s12351_s15  ;;  %5621 = vrot.lane.b32.xlu1 %v12889_v24, %s12353_s26 }
 0x7e3   : > { %v4109_v61 = vpack.c.bf16 %v4092_v10, %v4092_v10 }
 0x7e5   : > { %11188 = vmatmul.mubr.msk.bf16.vlgmr.msra.gmra.mrb[104].mxu0 %vm1226_vm3, %v4109_v61 }
 0x7e6   : > { %11198 = vmatpush3.bf16.msra.mxu0 %v4228_v1  ;;  %4894 = vrot.lane.b32.xlu0 %v12974_v14, %s12351_s15 }
 0x7e7   : > { %5723 = vrot.lane.b32.xlu1 %v12897_v2, %s12352_s13  ;;  %11199 = vmatprep.mubr.msk.bf16.mxu0 %vm12346_vm2, %v15725_v22 }
 0x7e8   : > { %v12113_v52 = vpop.eup %12112  ;;  %v4035_v34 = vpop.xlane.xlu0 %4034  ;;  %11209 = vmatprep.subr.bf16.mxu0 %v15725_v22 }
 0x7e9   : > { %12116 = vrcp.f32 %v4035_v34  ;;  %v4094_v21 = vmul.f32 %v12113_v52, %v13724_v16  ;;  %v4372_v34 = vsel %vm2250_vm4, %v13710_v26, 0 }
 0x7ea   : > { %5273 = vrot.lane.b32.xlu0 %v12851_v51, %s12352_s13 }
 0x7eb   : > { %v12115_v38 = vpop.eup %12114  ;;  %5721 = vrot.lane.b32.xlu1 %v12897_v2, %s12353_s26  ;;  %v4111_v55 = vpack.c.bf16 %v4094_v21, %v4094_v21 }
 0x7ec   : > { %v4038_v54 = vpop.xlane.xlu1 %4037  ;;  %v4093_v40 = vmul.f32 %v12115_v38, %v13729_v6  ;;  %v4276_v6 = vsel %vm2250_vm4, %v13708_v59, 0 }
 0x7ed   : > { %12118 = vrcp.f32 %v4038_v54  ;;  %11200 = vmatmul.mubr.msk.bf16.vlgmr.msra.gmra.mrb[108].mxu0 %vm1226_vm3, %v4111_v55  ;;  %v4420_v54 = vsel %vm2250_vm4, %v13815_v33, 0  ;;  %v4468_v33 = vsel %vm2250_vm4, %v13795_v25, 0 }
 0x7ee   : > { %11210 = vmatpush3.bf16.msra.mxu0 %v4324_v0  ;;  %5221 = vrot.lane.b32.xlu0 %v12848_v46, %s12353_s26  ;;  %v4110_v16 = vpack.c.bf16 %v4093_v40, %v4093_v40 }
 0x7ef   : > { %5823 = vrot.lane.b32.xlu1 %v12934_v37, %s12352_s13  ;;  %11211 = vmatprep.mubr.msk.bf16.mxu0 %vm12346_vm2, %v15725_v22 }
 0x7f0   : > { %11194 = vmatmul.mubr.msk.bf16.vlgmr.msra.gmra.mrb[136].mxu1 %vm1226_vm3, %v4110_v16  ;;  %v4041_v23 = vpop.xlane.xlu0 %4040  ;;  %11221 = vmatprep.subr.bf16.mxu0 %v15725_v22 }
 0x7f1   : > { %v4044_v10 = vpop.xlane.xlu1 %4043  ;;  %11204 = vmatpush3.bf16.msra.mxu1 %v4276_v6  ;;  %12120 = vrcp.f32 %v4041_v23  ;;  %11205 = vmatprep.mubr.msk.bf16.mxu1 %vm12346_vm2, %v15725_v22 }
 0x7f2   : > { %12122 = vrcp.f32 %v4044_v10  ;;  %5271 = vrot.lane.b32.xlu0 %v12851_v51, %s12353_s26  ;;  %11215 = vmatprep.subr.bf16.mxu1 %v15725_v22 }
 0x7f3   : > { %v12117_v61 = vpop.eup %12116  ;;  %5821 = vrot.lane.b32.xlu1 %v12934_v37, %s12353_s26 }
 0x7f4   : > { %v4095_v59 = vmul.f32 %v12117_v61, %v13735_v7 }
 0x7f6   : > { %5323 = vrot.lane.b32.xlu0 %v12858_v53, %s12352_s13  ;;  %v4112_v1 = vpack.c.bf16 %v4095_v59, %v4095_v59 }
 0x7f7   : > { %v12119_v52 = vpop.eup %12118  ;;  %5923 = vrot.lane.b32.xlu1 %v12952_v62, %s12352_s13 }
 0x7f8   : > { %11206 = vmatmul.mubr.msk.bf16.vlgmr.msra.gmra.mrb[140].mxu1 %vm1226_vm3, %v4112_v1  ;;  %v4047_v21 = vpop.xlane.xlu0 %4046  ;;  %v4096_v38 = vmul.f32 %v12119_v52, %v13741_v43 }
 0x7f9   : > { %11216 = vmatpush3.bf16.msra.mxu1 %v4372_v34  ;;  %12124 = vrcp.f32 %v4047_v21  ;;  %11217 = vmatprep.mubr.msk.bf16.mxu1 %vm12346_vm2, %v15725_v22 }
 0x7fa   : > { %5373 = vrot.lane.b32.xlu0 %v12863_v57, %s12352_s13  ;;  %v4113_v7 = vpack.c.bf16 %v4096_v38, %v4096_v38  ;;  %11227 = vmatprep.subr.bf16.mxu1 %v15725_v22 }
 0x7fb   : > { %v12121_v55 = vpop.eup %12120  ;;  %5921 = vrot.lane.b32.xlu1 %v12952_v62, %s12353_s26 }
 0x7fc   : > { %v12123_v26 = vpop.eup %12122  ;;  %11212 = vmatmul.mubr.msk.bf16.vlgmr.msra.gmra.mrb[112].mxu0 %vm1226_vm3, %v4113_v7  ;;  %v4097_v43 = vmul.f32 %v12121_v55, %v13745_v42  ;;  %v4050_v42 = vpop.xlane.xlu1 %4049 }
 0x7fd   : > { %11222 = vmatpush3.bf16.msra.mxu0 %v4420_v54  ;;  %11223 = vmatprep.mubr.msk.bf16.mxu0 %vm12346_vm2, %v15725_v22  ;;  %v4098_v0 = vmul.f32 %v12123_v26, %v13748_v47  ;;  %12126 = vrcp.f32 %v4050_v42 }
 0x7fe   : > { %5371 = vrot.lane.b32.xlu0 %v12863_v57, %s12353_s26  ;;  %v4114_v40 = vpack.c.bf16 %v4097_v43, %v4097_v43  ;;  %11233 = vmatprep.subr.bf16.mxu0 %v15725_v22 }
 0x7ff   : > { %6023 = vrot.lane.b32.xlu1 %v12974_v14, %s12352_s13  ;;  %v4115_v16 = vpack.c.bf16 %v4098_v0, %v4098_v0 }
 0x800   : > { %11218 = vmatmul.mubr.msk.bf16.vlgmr.msra.gmra.mrb[144].mxu1 %vm1226_vm3, %v4114_v40  ;;  %v4053_v6 = vpop.xlane.xlu0 %4052  ;;  %v4056_v23 = vpop.xlane.xlu1 %4055 }
 0x801   : > { %11228 = vmatpush3.bf16.msra.mxu1 %v4468_v33  ;;  %11229 = vmatprep.mubr.msk.bf16.mxu1 %vm12346_vm2, %v15725_v22  ;;  %12128 = vrcp.f32 %v4053_v6 }
 0x802   : > { %5473 = vrot.lane.b32.xlu0 %v12871_v63, %s12352_s13  ;;  %11239 = vmatprep.subr.bf16.mxu1 %v15725_v22  ;;  %12130 = vrcp.f32 %v4056_v23 }
 0x803   : > { %v12125_v47 = vpop.eup %12124 }
 0x804   : > { %11224 = vmatmul.mubr.msk.bf16.vlgmr.msra.gmra.mrb[116].mxu0 %vm1226_vm3, %v4115_v16  ;;  %v4099_v25 = vmul.f32 %v12125_v47, %v13759_v48 }
 0x805   : > { %11235 = vmatprep.mubr.msk.bf16.mxu0 %vm12346_vm2, %v15725_v22  ;;  %v4062_v61 = vpop.xlane.xlu1 %4061 }
 0x806   : > { %5471 = vrot.lane.b32.xlu0 %v12871_v63, %s12353_s26  ;;  %v4116_v10 = vpack.c.bf16 %v4099_v25, %v4099_v25 }
 0x807   : > { %v12127_v48 = vpop.eup %12126 }
 0x808   : > { %11230 = vmatmul.mubr.msk.bf16.vlgmr.msra.gmra.mrb[148].mxu1 %vm1226_vm3, %v4116_v10  ;;  %v4059_v59 = vpop.xlane.xlu0 %4058  ;;  %v4100_v21 = vmul.f32 %v12127_v48, %v13755_v56 }
 0x809   : > { %11241 = vmatprep.mubr.msk.bf16.mxu1 %vm12346_vm2, %v15725_v22  ;;  %12132 = vrcp.f32 %v4059_v59 }
 0x80a   : > { %5573 = vrot.lane.b32.xlu0 %v12881_v20, %s12352_s13  ;;  %v4117_v43 = vpack.c.bf16 %v4100_v21, %v4100_v21  ;;  %12134 = vrcp.f32 %v4062_v61 }
 0x80b   : > { %v12129_v52 = vpop.eup %12128 }
 0x80c   : > { %v4101_v55 = vmul.f32 %v12129_v52, %v13769_v5  ;;  %v12131_v5 = vpop.eup %12130 }
 0x80d   : > { %v4068_v1 = vpop.xlane.xlu1 %4067  ;;  %v4102_v0 = vmul.f32 %v12131_v5, %v13765_v8 }
 0x80e   : > { %5571 = vrot.lane.b32.xlu0 %v12881_v20, %s12353_s26  ;;  %v4118_v56 = vpack.c.bf16 %v4101_v55, %v4101_v55 }
 0x80f   : > { %v4119_v47 = vpack.c.bf16 %v4102_v0, %v4102_v0 }
 0x810   : > { %v4065_v34 = vpop.xlane.xlu0 %4064 }
 0x811   : > { %v4511_v38 = vpop.permute.xlu1 %4510  ;;  %12136 = vrcp.f32 %v4065_v34 }
 0x812   : > { %5673 = vrot.lane.b32.xlu0 %v12893_v28, %s12352_s13  ;;  %v4516_v7 = vsel %vm2250_vm4, %v4511_v38, 0  ;;  %12138 = vrcp.f32 %v4068_v1 }
 0x813   : > { %11234 = vmatpush3.bf16.msra.mxu0 %v4516_v7  ;;  %v12133_v33 = vpop.eup %12132 }
 0x814   : > { %v4559_v26 = vpop.permute.xlu0 %4558  ;;  %11245 = vmatprep.subr.bf16.mxu0 %v15725_v22  ;;  %v4103_v6 = vmul.f32 %v12133_v33, %v13779_v30  ;;  %v12135_v25 = vpop.eup %12134 }
 0x815   : > { %v4564_v54 = vsel %vm2250_vm4, %v4559_v26, 0  ;;  %v4104_v59 = vmul.f32 %v12135_v25, %v13775_v11 }
 0x816   : > { %5671 = vrot.lane.b32.xlu0 %v12893_v28, %s12353_s26  ;;  %11240 = vmatpush3.bf16.msra.mxu1 %v4564_v54  ;;  %v4120_v61 = vpack.c.bf16 %v4103_v6, %v4103_v6 }
 0x817   : > { %11236 = vmatmul.mubr.msk.bf16.vlgmr.msra.gmra.mrb[120].mxu0 %vm1226_vm3, %v4117_v43  ;;  %11251 = vmatprep.subr.bf16.mxu1 %v15725_v22  ;;  %v4121_v52 = vpack.c.bf16 %v4104_v59, %v4104_v59  ;;  %v15733_v59 = vld [vmem:[#allocation6_spill] sm:$0xff] }
 0x818   : > { %11247 = vmatprep.mubr.msk.bf16.mxu0 %vm12346_vm2, %v15725_v22 }
 0x819   : > { %11242 = vmatmul.mubr.msk.bf16.vlgmr.msra.gmra.mrb[152].mxu1 %vm1226_vm3, %v4118_v56 }
 0x81a   : > { %5773 = vrot.lane.b32.xlu0 %v12901_v29, %s12352_s13  ;;  %11253 = vmatprep.mubr.msk.bf16.mxu1 %vm12346_vm2, %v15725_v22 }
 0x81b   : > { %v12137_v30 = vpop.eup %12136 }
 0x81c   : > { %v4105_v34 = vmul.f32 %v12137_v30, %v13787_v36  ;;  %v12139_v21 = vpop.eup %12138  ;;  %v15734_v30 = vld [vmem:[#allocation5_spill] sm:$0xff] }
 0x81d   : > { %v4106_v55 = vmul.f32 %v12139_v21, %v13783_v60 }
 0x81e   : > { %5771 = vrot.lane.b32.xlu0 %v12901_v29, %s12353_s26  ;;  %v4122_v7 = vpack.c.bf16 %v4105_v34, %v4105_v34 }
 0x81f   : > { %v4123_v43 = vpack.c.bf16 %v4106_v55, %v4106_v55 }
 0x822   : > { %5873 = vrot.lane.b32.xlu0 %v12938_v18, %s12352_s13 }
 0x826   : > { %5871 = vrot.lane.b32.xlu0 %v12938_v18, %s12353_s26 }
 0x82a   : > { %5973 = vrot.lane.b32.xlu0 %v12958_v3, %s12352_s13  ;;  %s15747_s13 = sld [smem:[#allocation11_spill]] (!%p10461_p5) }
 0x82e   : > { %5971 = vrot.lane.b32.xlu0 %v12958_v3, %s12353_s26 }
 0x832   : > { %6021 = vrot.lane.b32.xlu0 %v12974_v14, %s12353_s26 }
 0x842   : > { %v4074_v8 = vpop.xlane.xlu1 %4073 }
 0x845   : > { %v4071_v40 = vpop.xlane.xlu0 %4070 }
 0x846   : > { %12140 = vrcp.f32 %v4071_v40  ;;  %v10325_v40 = vld [vmem:[%s12480_s16 + $0x4] sm:$0xf] }
 0x847   : > { %12142 = vrcp.f32 %v4074_v8 }
 0x849   : > { %v4607_v42 = vpop.permute.xlu0 %4606 }
 0x84a   : > { %v4612_v16 = vsel %vm2250_vm4, %v4607_v42, 0 }
 0x84b   : > { %11246 = vmatpush3.bf16.msra.mxu0 %v4612_v16 }
 0x84c   : > { %11257 = vmatprep.subr.bf16.mxu0 %v15725_v22 }
 0x84d   : > { %v4655_v23 = vpop.permute.xlu0 %4654 }
 0x84e   : > { %v4660_v10 = vsel %vm2250_vm4, %v4655_v23, 0  ;;  %11248 = vmatmul.mubr.msk.bf16.vlgmr.msra.gmra.mrb[124].mxu0 %vm1226_vm3, %v4119_v47  ;;  %v3071_v47 = vld [vmem:[%s12480_s16] sm:$0xf] }
 0x84f   : > { %11252 = vmatpush3.bf16.msra.mxu1 %v4660_v10  ;;  %11259 = vmatprep.mubr.msk.bf16.mxu0 %vm12346_vm2, %v15725_v22  ;;  %v5115_v23 = vsel %vm2250_vm4, %v3071_v47, 0  ;;  %v15726_v10 = vpack.c.bf16 %v13489_v58, %v13496_v45  ;;  %v15728_v58 = vpack.c.bf16 %v13525_v9, %v13530_v31  ;;  %v15729_v45 = vpack.c.bf16 %v13589_v17, %v13546_v4 }
 0x850   : > { %11263 = vmatprep.subr.bf16.mxu1 %v15725_v22  ;;  %v12141_v26 = vpop.eup %12140  ;;  %v15731_v4 = vpack.c.bf16 %v13601_v49, %v13599_v32  ;;  %v15736_v49 = vld [vmem:[#allocation7_spill] sm:$0xff] }
 0x851   : > { %v4703_v48 = vpop.permute.xlu0 %4702  ;;  %v4107_v56 = vmul.f32 %v12141_v26, %v13799_v27  ;;  %v12143_v5 = vpop.eup %12142  ;;  %v4981_v27 = vsel %vm2250_vm4, %v10325_v40, 0 }
 0x852   : > { %v4708_v1 = vsel %vm2250_vm4, %v4703_v48, 0  ;;  %11254 = vmatmul.mubr.msk.bf16.vlgmr.msra.gmra.mrb[156].mxu1 %vm1226_vm3, %v4120_v61  ;;  %v4108_v42 = vmul.f32 %v12143_v5, %v13801_v15  ;;  %v15727_v61 = vpack.c.bf16 %v13507_v50, %v13512_v19  ;;  %v15730_v19 = vpack.c.bf16 %v13595_v44, %v13593_v12 }
 0x853   : > { %11258 = vmatpush3.bf16.msra.mxu0 %v4708_v1  ;;  %11265 = vmatprep.mubr.msk.bf16.mxu1 %vm12346_vm2, %v15725_v22  ;;  %v4124_v33 = vpack.c.bf16 %v4107_v56, %v4107_v56  ;;  %v15732_v12 = vpack.c.bf16 %v13607_v35, %v13605_v39  ;;  %v15735_v48 = vpack.c.bf16 %v15733_v59, %v15734_v30 }
 0x854   : > { %11269 = vmatprep.subr.bf16.mxu0 %v15725_v22  ;;  %v4125_v25 = vpack.c.bf16 %v4108_v42, %v4108_v42  ;;  %v3070_v1 = vpack.c.bf16 %v15736_v49, %v15736_v49 }
 0x855   : > { %v4751_v11 = vpop.permute.xlu0 %4750 }
 0x856   : > { %v4756_v38 = vsel %vm2250_vm4, %v4751_v11, 0  ;;  %11260 = vmatmul.mubr.msk.bf16.vlgmr.msra.gmra.mrb[128].mxu0 %vm1226_vm3, %v4121_v52 }
 0x857   : > { %11264 = vmatpush3.bf16.msra.mxu1 %v4756_v38  ;;  %11271 = vmatprep.mubr.msk.bf16.mxu0 %vm12346_vm2, %v15725_v22 }
 0x858   : > { %11275 = vmatprep.subr.bf16.mxu1 %v15725_v22 }
 0x859   : > { %v4799_v36 = vpop.permute.xlu0 %4798 }
 0x85a   : > { %v4804_v54 = vsel %vm2250_vm4, %v4799_v36, 0  ;;  %11266 = vmatmul.mubr.msk.bf16.vlgmr.msra.gmra.mrb[160].mxu1 %vm1226_vm3, %v4122_v7 }
 0x85b   : > { %11270 = vmatpush3.bf16.msra.mxu0 %v4804_v54  ;;  %11277 = vmatprep.mubr.msk.bf16.mxu1 %vm12346_vm2, %v15725_v22 }
 0x85c   : > { %11281 = vmatprep.subr.bf16.mxu0 %v15725_v22 }
 0x85d   : > { %v4847_v60 = vpop.permute.xlu0 %4846 }
 0x85e   : > { %v4852_v0 = vsel %vm2250_vm4, %v4847_v60, 0  ;;  %11272 = vmatmul.mubr.msk.bf16.vlgmr.msra.gmra.mrb[132].mxu0 %vm1226_vm3, %v4123_v43  ;;  %v5224_v43 = vpop.permute.xlu1 %5223 }
 0x85f   : > { %11276 = vmatpush3.bf16.msra.mxu1 %v4852_v0  ;;  %11283 = vmatprep.mubr.msk.bf16.mxu0 %vm12346_vm2, %v15725_v22 }
 0x860   : > { %11287 = vmatprep.subr.bf16.mxu1 %v15725_v22 }
 0x861   : > { %v4895_v16 = vpop.permute.xlu0 %4894 }
 0x862   : > { %v4900_v6 = vsel %vm2250_vm4, %v4895_v16, 0  ;;  %11278 = vmatmul.mubr.msk.bf16.vlgmr.msra.gmra.mrb[164].mxu1 %vm1226_vm3, %v4124_v33 }
 0x863   : > { %11282 = vmatpush3.bf16.msra.mxu0 %v4900_v6  ;;  %11288 = vmatpush3.bf16.msra.mxu1 %v4981_v27  ;;  %v5229_v27 = vsel %vm1226_vm3, %v5224_v43, 0 }
 0x864   : > { %11325 = vmatprep.subr.bf16.mxu0 %v15725_v22  ;;  %11289 = vmatprep.mubr.msk.bf16.mxu1 %vm12346_vm2, %v15725_v22 }
 0x865   : > { %11363 = vmatprep.subr.bf16.mxu1 %v15725_v22  ;;  %v5274_v15 = vpop.permute.xlu0 %5273 }
 0x866   : > { %11284 = vmatmul.mubr.msk.bf16.vlgmr.msra.gmra.mrb[136].mxu0 %vm1226_vm3, %v4125_v25  ;;  %v5279_v8 = vsel %vm1226_vm3, %v5274_v15, 0 }
 0x867   : > { %11326 = vmatpush3.bf16.msra.mxu0 %v5115_v23  ;;  %11327 = vmatprep.mubr.msk.bf16.mxu0 %vm12346_vm2, %v15725_v22 }
 0x868   : > { %11369 = vmatprep.subr.bf16.mxu0 %v15725_v22 }
 0x869   : > { %v14027_v50 = vpop.permute.xlu0 %5221 }
 0x86d   : > { %v5272_v9 = vpop.permute.xlu0 %5271 }
 0x86e   : > { %11328 = vmatmul.mubr.msk.bf16.vlgmr.msra.gmra.mrb[140].mxu0 %vm1226_vm3, %v15726_v10 }
 0x86f   : > { %11331 = vmatprep.mubr.msk.bf16.mxu0 %vm12346_vm2, %v15725_v22 }
 0x870   : > { %11370 = vmatpush3.bf16.xpose.msra.mxu0 %v5279_v8 }
 0x871   : > { %11381 = vmatprep.subr.bf16.mxu0 %v15725_v22  ;;  %v14035_v31 = vpop.permute.xlu0 %5323 }
 0x875   : > { %v5374_v17 = vpop.permute.xlu0 %5373 }
 0x876   : > { %11332 = vmatmul.mubr.msk.bf16.gmra.mrb[144].mxu0 %vm1226_vm3, %v15727_v61  ;;  %v5379_v35 = vsel %vm1226_vm3, %v5374_v17, 0 }
 0x877   : > { %11335 = vmatprep.mubr.msk.bf16.mxu0 %vm12346_vm2, %v15725_v22 }
 0x879   : > { %v5372_v44 = vpop.permute.xlu0 %5371 }
 0x87d   : > { %v5474_v32 = vpop.permute.xlu0 %5473 }
 0x87e   : > { %11336 = vmatmul.mubr.msk.bf16.gmra.mrb[148].mxu0 %vm1226_vm3, %v15728_v58  ;;  %v5479_v55 = vsel %vm1226_vm3, %v5474_v32, 0 }
 0x87f   : > { %11339 = vmatprep.mubr.msk.bf16.mxu0 %vm12346_vm2, %v15725_v22 }
 0x881   : > { %v5472_v52 = vpop.permute.xlu0 %5471 }
 0x885   : > { %v5574_v39 = vpop.permute.xlu0 %5573 }
 0x886   : > { %11340 = vmatmul.mubr.msk.bf16.gmra.mrb[152].mxu0 %vm1226_vm3, %v15729_v45  ;;  %v5579_v16 = vsel %vm1226_vm3, %v5574_v39, 0 }
 0x887   : > { %11343 = vmatprep.mubr.msk.bf16.mxu0 %vm12346_vm2, %v15725_v22 }
 0x889   : > { %v5572_v21 = vpop.permute.xlu0 %5571 }
 0x88d   : > { %v5674_v26 = vpop.permute.xlu0 %5673 }
 0x88e   : > { %11344 = vmatmul.mubr.msk.bf16.gmra.mrb[156].mxu0 %vm1226_vm3, %v15730_v19  ;;  %v5679_v8 = vsel %vm1226_vm3, %v5674_v26, 0 }
 0x88f   : > { %11347 = vmatprep.mubr.msk.bf16.mxu0 %vm12346_vm2, %v15725_v22 }
 0x891   : > { %v5672_v33 = vpop.permute.xlu0 %5671 }
 0x895   : > { %v5774_v6 = vpop.permute.xlu0 %5773 }
 0x896   : > { %11348 = vmatmul.mubr.msk.bf16.gmra.mrb[160].mxu0 %vm1226_vm3, %v15731_v4  ;;  %v5779_v30 = vsel %vm1226_vm3, %v5774_v6, 0 }
 0x897   : > { %11351 = vmatprep.mubr.msk.bf16.mxu0 %vm12346_vm2, %v15725_v22 }
 0x899   : > { %v5772_v19 = vpop.permute.xlu0 %5771 }
 0x89d   : > { %v5874_v32 = vpop.permute.xlu0 %5873 }
 0x89e   : > { %11352 = vmatmul.mubr.msk.bf16.gmra.mrb[164].mxu0 %vm1226_vm3, %v15732_v12 }
 0x89f   : > { %11355 = vmatprep.mubr.msk.bf16.mxu0 %vm12346_vm2, %v15725_v22 }
 0x8a6   : > { %11356 = vmatmul.mubr.msk.bf16.gmra.mrb[168].mxu0 %vm1226_vm3, %v15735_v48 }
 0x8a7   : > { %11359 = vmatprep.mubr.msk.bf16.mxu0 %vm12346_vm2, %v15725_v22 }
 0x8ae   : > { %11360 = vmatmul.mubr.msk.bf16.gmra.mrb[172].mxu0 %vm1226_vm3, %v3070_v1 }
 0x8af   : > { %11371 = vmatprep.mubr.msk.bf16.mxu0 %vm12346_vm2, %v15725_v22 }
 0x8b6   : > { %11372 = vmatmul.mubr.msk.bf16.vlgmr.msra.gmra.mrb[176].mxu0 %vm1226_vm3, %v5272_v9 }
 0x8b7   : > { %11382 = vmatpush3.bf16.xpose.msra.mxu0 %v5379_v35  ;;  %11383 = vmatprep.mubr.msk.bf16.mxu0 %vm12346_vm2, %v15725_v22 }
 0x8b8   : > { %v4168_v34 = vpop.f32.mrb[104].mxu0  ;;  %11393 = vmatprep.subr.bf16.mxu0 %v15725_v22 }
 0x8b9   : > { %v11189_v11 = vpop.f32.mrb[105].mxu0 }
 0x8ba   : > { %v4171_v38 = vpop.f32.mrb[106].mxu0  ;;  %v5872_v11 = vpop.permute.xlu0 %5871 }
 0x8bb   : > { %v11190_v7 = vpop.f32.mrb[107].mxu0 }
 0x8bc   : > { %v5879_v7 = vsel %vm1226_vm3, %v5874_v32, 0 }
 0x8be   : > { %11384 = vmatmul.mubr.msk.bf16.vlgmr.msra.gmra.mrb[180].mxu0 %vm1226_vm3, %v5372_v44  ;;  %v5974_v26 = vpop.permute.xlu0 %5973 }
 0x8bf   : > { %11394 = vmatpush3.bf16.xpose.msra.mxu0 %v5479_v55  ;;  %11395 = vmatprep.mubr.msk.bf16.mxu0 %vm12346_vm2, %v15725_v22 }
 0x8c0   : > { %v4264_v36 = vpop.f32.mrb[108].mxu0  ;;  %11405 = vmatprep.subr.bf16.mxu0 %v15725_v22 }
 0x8c1   : > { %v11201_v54 = vpop.f32.mrb[109].mxu0 }
 0x8c2   : > { %v4267_v56 = vpop.f32.mrb[110].mxu0  ;;  %v5972_v43 = vpop.permute.xlu0 %5971 }
 0x8c3   : > { %v4216_v5 = vpop.f32.mrb[136].mxu1  ;;  %v11202_v60 = vpop.f32.mrb[111].mxu0 }
 0x8c4   : > { %v4942_v40 = vpack.c.bf16 %v4216_v5, %v4168_v34  ;;  %v11195_v0 = vpop.f32.mrb[137].mxu1 }
 0x8c5   : > { %v4219_v42 = vpop.f32.mrb[138].mxu1 }
 0x8c6   : > { %v11196_v47 = vpop.f32.mrb[139].mxu1  ;;  %11290 = vmatmul.mubr.msk.bf16.vlgmr.msra.gmra.mrb[168].mxu1 %vm1226_vm3, %v4942_v40  ;;  %11396 = vmatmul.mubr.msk.bf16.vlgmr.msra.gmra.mrb[184].mxu0 %vm1226_vm3, %v5472_v52 }
 0x8c7   : > { %11364 = vmatpush3.bf16.xpose.msra.mxu1 %v5229_v27  ;;  %11406 = vmatpush3.bf16.xpose.msra.mxu0 %v5579_v16 }
 0x8c8   : > { %11293 = vmatprep.mubr.msk.bf16.mxu1 %vm12346_vm2, %v15725_v22  ;;  %11407 = vmatprep.mubr.msk.bf16.mxu0 %vm12346_vm2, %v15725_v22 }
 0x8c9   : > { %11417 = vmatprep.subr.bf16.mxu0 %v15725_v22  ;;  %11375 = vmatprep.subr.bf16.mxu1 %v15725_v22 }
 0x8cb   : > { %v4312_v25 = vpop.f32.mrb[140].mxu1 }
 0x8cc   : > { %v4943_v23 = vpack.c.bf16 %v4312_v25, %v4264_v36  ;;  %v11207_v15 = vpop.f32.mrb[141].mxu1  ;;  %v5979_v36 = vsel %vm1226_vm3, %v5974_v26, 0 }
 0x8cd   : > { %v4315_v10 = vpop.f32.mrb[142].mxu1 }
 0x8ce   : > { %v11208_v61 = vpop.f32.mrb[143].mxu1  ;;  %11294 = vmatmul.mubr.msk.bf16.gmra.mrb[172].mxu1 %vm1226_vm3, %v4943_v23  ;;  %11408 = vmatmul.mubr.msk.bf16.vlgmr.msra.gmra.mrb[188].mxu0 %vm1226_vm3, %v5572_v21 }
 0x8cf   : > { %11418 = vmatpush3.bf16.xpose.msra.mxu0 %v5679_v8  ;;  %v4360_v58 = vpop.f32.mrb[112].mxu0  ;;  %11297 = vmatprep.mubr.msk.bf16.mxu1 %vm12346_vm2, %v15725_v22 }
 0x8d0   : > { %v11213_v45 = vpop.f32.mrb[113].mxu0  ;;  %11419 = vmatprep.mubr.msk.bf16.mxu0 %vm12346_vm2, %v15725_v22  ;;  %11429 = vmatprep.subr.bf16.mxu0 %v15725_v22 }
 0x8d1   : > { %v4363_v9 = vpop.f32.mrb[114].mxu0 }
 0x8d2   : > { %v11214_v4 = vpop.f32.mrb[115].mxu0 }
 0x8d3   : > { %v4408_v17 = vpop.f32.mrb[144].mxu1 }
 0x8d4   : > { %v4944_v12 = vpack.c.bf16 %v4408_v17, %v4360_v58  ;;  %v11219_v44 = vpop.f32.mrb[145].mxu1 }
 0x8d5   : > { %v4411_v59 = vpop.f32.mrb[146].mxu1  ;;  %v5322_v44 = vpop.permute.xlu1 %5321 }
 0x8d6   : > { %v11220_v48 = vpop.f32.mrb[147].mxu1  ;;  %11298 = vmatmul.mubr.msk.bf16.gmra.mrb[176].mxu1 %vm1226_vm3, %v4944_v12  ;;  %11420 = vmatmul.mubr.msk.bf16.vlgmr.msra.gmra.mrb[192].mxu0 %vm1226_vm3, %v5672_v33 }
 0x8d7   : > { %11430 = vmatpush3.bf16.xpose.msra.mxu0 %v5779_v30  ;;  %v4456_v49 = vpop.f32.mrb[116].mxu0  ;;  %11301 = vmatprep.mubr.msk.bf16.mxu1 %vm12346_vm2, %v15725_v22 }
 0x8d8   : > { %v11225_v1 = vpop.f32.mrb[117].mxu0  ;;  %11431 = vmatprep.mubr.msk.bf16.mxu0 %vm12346_vm2, %v15725_v22  ;;  %11441 = vmatprep.subr.bf16.mxu0 %v15725_v22 }
 0x8d9   : > { %v4459_v52 = vpop.f32.mrb[118].mxu0 }
 0x8da   : > { %v11226_v39 = vpop.f32.mrb[119].mxu0  ;;  %v5424_v52 = vpop.permute.xlu1 %5423 }
 0x8db   : > { %v4504_v35 = vpop.f32.mrb[148].mxu1 }
 0x8dc   : > { %v4945_v34 = vpack.c.bf16 %v4504_v35, %v4456_v49  ;;  %v11231_v21 = vpop.f32.mrb[149].mxu1 }
 0x8dd   : > { %v4507_v38 = vpop.f32.mrb[150].mxu1 }
 0x8de   : > { %v11232_v55 = vpop.f32.mrb[151].mxu1  ;;  %11302 = vmatmul.mubr.msk.bf16.gmra.mrb[180].mxu1 %vm1226_vm3, %v4945_v34  ;;  %11432 = vmatmul.mubr.msk.bf16.vlgmr.msra.gmra.mrb[196].mxu0 %vm1226_vm3, %v5772_v19 }
 0x8df   : > { %11442 = vmatpush3.bf16.xpose.msra.mxu0 %v5879_v7  ;;  %11443 = vmatprep.mubr.msk.bf16.mxu0 %vm12346_vm2, %v15725_v22  ;;  %v5422_v55 = vpop.permute.xlu1 %5421 }
 0x8e0   : > { %11453 = vmatprep.subr.bf16.mxu0 %v15725_v22  ;;  %11305 = vmatprep.mubr.msk.bf16.mxu1 %vm12346_vm2, %v15725_v22 }
 0x8e6   : > { %11444 = vmatmul.mubr.msk.bf16.vlgmr.msra.gmra.mrb[200].mxu0 %vm1226_vm3, %v5872_v11 }
 0x8e7   : > { %11454 = vmatpush3.bf16.xpose.msra.mxu0 %v5979_v36  ;;  %11455 = vmatprep.mubr.msk.bf16.mxu0 %vm12346_vm2, %v15725_v22 }
 0x8e8   : > { %11465 = vmatprep.subr.bf16.mxu0 %v15725_v22 }
 0x8ea   : > { %v4552_v54 = vpop.f32.mrb[120].mxu0 }
 0x8eb   : > { %v11237_v56 = vpop.f32.mrb[121].mxu0 }
 0x8ec   : > { %v4555_v5 = vpop.f32.mrb[122].mxu0  ;;  %v4600_v60 = vpop.f32.mrb[152].mxu1 }
 0x8ed   : > { %v11238_v40 = vpop.f32.mrb[123].mxu0  ;;  %v4946_v0 = vpack.c.bf16 %v4600_v60, %v4552_v54  ;;  %v11243_v33 = vpop.f32.mrb[153].mxu1 }
 0x8ee   : > { %v4603_v42 = vpop.f32.mrb[154].mxu1  ;;  %11456 = vmatmul.mubr.msk.bf16.vlgmr.msra.gmra.mrb[204].mxu0 %vm1226_vm3, %v5972_v43  ;;  %v5524_v43 = vpop.permute.xlu1 %5523  ;;  %v5329_v33 = vsel %vm1226_vm3, %v14035_v31, 0 }
 0x8ef   : > { %v11244_v27 = vpop.f32.mrb[155].mxu1  ;;  %11306 = vmatmul.mubr.msk.bf16.gmra.mrb[184].mxu1 %vm1226_vm3, %v4946_v0  ;;  %11467 = vmatprep.mubr.msk.bf16.mxu0 %vm12346_vm2, %v15725_v22 }
 0x8f0   : > { %11309 = vmatprep.mubr.msk.bf16.mxu1 %vm12346_vm2, %v15725_v22 }
 0x8f2   : > { %v5522_v0 = vpop.permute.xlu1 %5521 }
 0x921   : > { %v4648_v16 = vpop.f32.mrb[124].mxu0 }
 0x922   : > { %v11249_v47 = vpop.f32.mrb[125].mxu0 }
 0x923   : > { %v4651_v6 = vpop.f32.mrb[126].mxu0 }
 0x924   : > { %v11250_v25 = vpop.f32.mrb[127].mxu0  ;;  %v5624_v6 = vpop.permute.xlu1 %5623 }
 0x925   : > { %v4696_v23 = vpop.f32.mrb[156].mxu1  ;;  %v5429_v25 = vsel %vm1226_vm3, %v5424_v52, 0 }
 0x926   : > { %v4947_v15 = vpack.c.bf16 %v4696_v23, %v4648_v16  ;;  %v11255_v10 = vpop.f32.mrb[157].mxu1 }
 0x927   : > { %v4699_v8 = vpop.f32.mrb[158].mxu1 }
 0x928   : > { %v11256_v61 = vpop.f32.mrb[159].mxu1  ;;  %11310 = vmatmul.mubr.msk.bf16.gmra.mrb[188].mxu1 %vm1226_vm3, %v4947_v15  ;;  %v5622_v23 = vpop.permute.xlu1 %5621  ;;  %v5529_v8 = vsel %vm1226_vm3, %v5524_v43, 0 }
 0x929   : > { %v4744_v58 = vpop.f32.mrb[128].mxu0  ;;  %11313 = vmatprep.mubr.msk.bf16.mxu1 %vm12346_vm2, %v15725_v22 }
 0x92a   : > { %v11261_v45 = vpop.f32.mrb[129].mxu0 }
 0x92b   : > { %v4747_v19 = vpop.f32.mrb[130].mxu0 }
 0x92c   : > { %v11262_v9 = vpop.f32.mrb[131].mxu0  ;;  %v5724_v61 = vpop.permute.xlu1 %5723 }
 0x92d   : > { %v4792_v4 = vpop.f32.mrb[160].mxu1 }
 0x92e   : > { %v4948_v17 = vpack.c.bf16 %v4792_v4, %v4744_v58  ;;  %v11267_v12 = vpop.f32.mrb[161].mxu1 }
 0x92f   : > { %v4795_v59 = vpop.f32.mrb[162].mxu1 }
 0x930   : > { %v11268_v30 = vpop.f32.mrb[163].mxu1  ;;  %11314 = vmatmul.mubr.msk.bf16.gmra.mrb[192].mxu1 %vm1226_vm3, %v4948_v17  ;;  %v5722_v4 = vpop.permute.xlu1 %5721  ;;  %v5629_v17 = vsel %vm1226_vm3, %v5624_v6, 0 }
 0x931   : > { %v4840_v48 = vpop.f32.mrb[132].mxu0  ;;  %11317 = vmatprep.mubr.msk.bf16.mxu1 %vm12346_vm2, %v15725_v22 }
 0x932   : > { %v11273_v32 = vpop.f32.mrb[133].mxu0 }
 0x933   : > { %v4843_v49 = vpop.f32.mrb[134].mxu0  ;;  %v5729_v32 = vsel %vm1226_vm3, %v5724_v61, 0 }
 0x934   : > { %v11274_v1 = vpop.f32.mrb[135].mxu0 }
 0x935   : > { %v4888_v39 = vpop.f32.mrb[164].mxu1 }
 0x936   : > { %v4949_v35 = vpack.c.bf16 %v4888_v39, %v4840_v48  ;;  %v11279_v34 = vpop.f32.mrb[165].mxu1  ;;  %v5824_v48 = vpop.permute.xlu1 %5823 }
 0x937   : > { %v4891_v21 = vpop.f32.mrb[166].mxu1  ;;  %v5829_v34 = vsel %vm1226_vm3, %v5824_v48, 0 }
 0x938   : > { %v11280_v11 = vpop.f32.mrb[167].mxu1  ;;  %11318 = vmatmul.mubr.msk.bf16.gmra.mrb[196].mxu1 %vm1226_vm3, %v4949_v35 }
 0x939   : > { %v4936_v38 = vpop.f32.mrb[136].mxu0  ;;  %11321 = vmatprep.mubr.msk.bf16.mxu1 %vm12346_vm2, %v15725_v22 }
 0x93a   : > { %v11285_v7 = vpop.f32.mrb[137].mxu0  ;;  %v4950_v54 = vpack.c.bf16 %v4936_v38, %v4936_v38  ;;  %v5822_v52 = vpop.permute.xlu1 %5821 }
 0x93b   : > { %v4939_v26 = vpop.f32.mrb[138].mxu0 }
 0x93c   : > { %v11286_v36 = vpop.f32.mrb[139].mxu0 }
 0x93e   : > { %v5924_v21 = vpop.permute.xlu1 %5923 }
 0x93f   : > { %v5929_v36 = vsel %vm1226_vm3, %v5924_v21, 0 }
 0x940   : > { %11322 = vmatmul.mubr.msk.bf16.gmra.mrb[200].mxu1 %vm1226_vm3, %v4950_v54 }
 0x941   : > { %v14125_v56 = vpop.f32.mrb[140].mxu0  ;;  %11365 = vmatprep.mubr.msk.bf16.mxu1 %vm12346_vm2, %v15725_v22 }
 0x942   : > { %v11329_v5 = vpop.f32.mrb[141].mxu0  ;;  %v5922_v26 = vpop.permute.xlu1 %5921 }
 0x943   : > { %v14129_v60 = vpop.f32.mrb[142].mxu0 }
 0x944   : > { %v11330_v40 = vpop.f32.mrb[143].mxu0 }
 0x948   : > { %11366 = vmatmul.mubr.msk.bf16.vlgmr.msra.gmra.mrb[204].mxu1 %vm1226_vm3, %v14027_v50 }
 0x949   : > { %11376 = vmatpush3.bf16.xpose.msra.mxu1 %v5329_v33  ;;  %v14135_v42 = vpop.f32.mrb[144].mxu0  ;;  %11377 = vmatprep.mubr.msk.bf16.mxu1 %vm12346_vm2, %v15725_v22 }
 0x94a   : > { %v11333_v27 = vpop.f32.mrb[145].mxu0  ;;  %11387 = vmatprep.subr.bf16.mxu1 %v15725_v22 }
 0x94b   : > { %v14140_v16 = vpop.f32.mrb[146].mxu0 }
 0x94c   : > { %v11334_v47 = vpop.f32.mrb[147].mxu0 }
 0x950   : > { %11378 = vmatmul.mubr.msk.bf16.vlgmr.msra.gmra.mrb[208].mxu1 %vm1226_vm3, %v5322_v44 }
 0x951   : > { %11388 = vmatpush3.bf16.xpose.msra.mxu1 %v5429_v25  ;;  %v14144_v31 = vpop.f32.mrb[148].mxu0  ;;  %11389 = vmatprep.mubr.msk.bf16.mxu1 %vm12346_vm2, %v15725_v22 }
 0x952   : > { %v11337_v50 = vpop.f32.mrb[149].mxu0  ;;  %11399 = vmatprep.subr.bf16.mxu1 %v15725_v22 }
 0x953   : > { %v14149_v15 = vpop.f32.mrb[150].mxu0  ;;  %v6022_v50 = vpop.permute.xlu0 %6021 }
 0x954   : > { %v11338_v10 = vpop.f32.mrb[151].mxu0 }
 0x955   : > { %v15737_v10 = vld [vmem:[#allocation4_spill] sm:$0xff] }
 0x958   : > { %11390 = vmatmul.mubr.msk.bf16.vlgmr.msra.gmra.mrb[212].mxu1 %vm1226_vm3, %v5422_v55 }
 0x959   : > { %11400 = vmatpush3.bf16.xpose.msra.mxu1 %v5529_v8  ;;  %v14153_v58 = vpop.f32.mrb[152].mxu0  ;;  %11401 = vmatprep.mubr.msk.bf16.mxu1 %vm12346_vm2, %v15725_v22 }
 0x95a   : > { %v11341_v45 = vpop.f32.mrb[153].mxu0  ;;  %11411 = vmatprep.subr.bf16.mxu1 %v15725_v22 }
 0x95b   : > { %v14158_v19 = vpop.f32.mrb[154].mxu0 }
 0x95c   : > { %v11342_v9 = vpop.f32.mrb[155].mxu0 }
 0x960   : > { %11402 = vmatmul.mubr.msk.bf16.vlgmr.msra.gmra.mrb[216].mxu1 %vm1226_vm3, %v5522_v0  ;;  %v6024_v0 = vpop.permute.xlu1 %6023 }
 0x961   : > { %11412 = vmatpush3.bf16.xpose.msra.mxu1 %v5629_v17  ;;  %v14162_v12 = vpop.f32.mrb[156].mxu0  ;;  %11413 = vmatprep.mubr.msk.bf16.mxu1 %vm12346_vm2, %v15725_v22  ;;  %v6029_v33 = vsel %vm1226_vm3, %v6024_v0, 0 }
 0x962   : > { %v11345_v44 = vpop.f32.mrb[157].mxu0  ;;  %11423 = vmatprep.subr.bf16.mxu1 %v15725_v22 }
 0x963   : > { %v14167_v59 = vpop.f32.mrb[158].mxu0 }
 0x964   : > { %v11346_v30 = vpop.f32.mrb[159].mxu0 }
 0x968   : > { %11414 = vmatmul.mubr.msk.bf16.vlgmr.msra.gmra.mrb[220].mxu1 %vm1226_vm3, %v5622_v23 }
 0x969   : > { %11424 = vmatpush3.bf16.xpose.msra.mxu1 %v5729_v32  ;;  %v14171_v49 = vpop.f32.mrb[160].mxu0  ;;  %11425 = vmatprep.mubr.msk.bf16.mxu1 %vm12346_vm2, %v15725_v22 }
 0x96a   : > { %v11349_v1 = vpop.f32.mrb[161].mxu0  ;;  %11435 = vmatprep.subr.bf16.mxu1 %v15725_v22 }
 0x96b   : > { %v14176_v39 = vpop.f32.mrb[162].mxu0 }
 0x96c   : > { %v11350_v35 = vpop.f32.mrb[163].mxu0 }
 0x970   : > { %11426 = vmatmul.mubr.msk.bf16.vlgmr.msra.gmra.mrb[224].mxu1 %vm1226_vm3, %v5722_v4 }
 0x971   : > { %11436 = vmatpush3.bf16.xpose.msra.mxu1 %v5829_v34  ;;  %v14180_v11 = vpop.f32.mrb[164].mxu0  ;;  %11437 = vmatprep.mubr.msk.bf16.mxu1 %vm12346_vm2, %v15725_v22 }
 0x972   : > { %v11353_v38 = vpop.f32.mrb[165].mxu0  ;;  %11447 = vmatprep.subr.bf16.mxu1 %v15725_v22 }
 0x973   : > { %v14185_v7 = vpop.f32.mrb[166].mxu0 }
 0x974   : > { %v11354_v55 = vpop.f32.mrb[167].mxu0 }
 0x978   : > { %11438 = vmatmul.mubr.msk.bf16.vlgmr.msra.gmra.mrb[228].mxu1 %vm1226_vm3, %v5822_v52 }
 0x979   : > { %11448 = vmatpush3.bf16.xpose.msra.mxu1 %v5929_v36  ;;  %v14189_v54 = vpop.f32.mrb[168].mxu0  ;;  %11449 = vmatprep.mubr.msk.bf16.mxu1 %vm12346_vm2, %v15725_v22 }
 0x97a   : > { %v11357_v43 = vpop.f32.mrb[169].mxu0  ;;  %11459 = vmatprep.subr.bf16.mxu1 %v15725_v22 }
 0x97b   : > { %v14194_v5 = vpop.f32.mrb[170].mxu0 }
 0x97c   : > { %v11358_v40 = vpop.f32.mrb[171].mxu0 }
 0x980   : > { %11450 = vmatmul.mubr.msk.bf16.vlgmr.msra.gmra.mrb[232].mxu1 %vm1226_vm3, %v5922_v26 }
 0x981   : > { %11460 = vmatpush3.bf16.xpose.msra.mxu1 %v6029_v33  ;;  %v14198_v27 = vpop.f32.mrb[172].mxu0  ;;  %11461 = vmatprep.mubr.msk.bf16.mxu1 %vm12346_vm2, %v15725_v22 }
 0x982   : > { %v11361_v47 = vpop.f32.mrb[173].mxu0  ;;  %11471 = vmatprep.subr.bf16.mxu1 %v15725_v22 }
 0x983   : > { %v5218_v6 = vpop.f32.mrb[174].mxu0 }
 0x984   : > { %v11362_v25 = vpop.f32.mrb[175].mxu0 }
 0x988   : > { %11462 = vmatmul.mubr.msk.bf16.vlgmr.msra.gmra.mrb[236].mxu1 %vm1226_vm3, %v6022_v50 }
 0x989   : > { %v5315_v23 = vpop.f32.mrb[176].mxu0  ;;  %11473 = vmatprep.mubr.msk.bf16.mxu1 %vm12346_vm2, %v15725_v22 }
 0x98a   : > { %v14207_v8 = vadd.f32 %v5315_v23, %v15737_v10  ;;  %v11373_v61 = vpop.f32.mrb[177].mxu0 }
 0x98b   : > { %v5318_v45 = vpop.f32.mrb[178].mxu0 }
 0x98c   : > { %v11374_v9 = vpop.f32.mrb[179].mxu0  ;;  %v6074_v4 = vsel %vm1226_vm3, %v14207_v8, -inf }
 0x98d   : > { %6075 = vmax.xlane.f32.xlu0 %v6074_v4 }
 0x991   : > { %v5415_v17 = vpop.f32.mrb[180].mxu0 }
 0x992   : > { %v14212_v44 = vadd.f32 %v5415_v17, %v15737_v10  ;;  %v11385_v30 = vpop.f32.mrb[181].mxu0 }
 0x993   : > { %v5418_v48 = vpop.f32.mrb[182].mxu0 }
 0x994   : > { %v11386_v32 = vpop.f32.mrb[183].mxu0  ;;  %v6080_v1 = vsel %vm1226_vm3, %v14212_v44, -inf }
 0x995   : > { %6081 = vmax.xlane.f32.xlu1 %v6080_v1 }
 0x999   : > { %v5017_v52 = vpop.f32.mrb[168].mxu1  ;;  %v5515_v35 = vpop.f32.mrb[184].mxu0 }
 0x99a   : > { %v14217_v34 = vadd.f32 %v14125_v56, %v5017_v52  ;;  %v14220_v21 = vadd.f32 %v5515_v35, %v15737_v10  ;;  %v11291_v38 = vpop.f32.mrb[169].mxu1  ;;  %v11397_v55 = vpop.f32.mrb[185].mxu0 }
 0x99b   : > { %v5020_v26 = vpop.f32.mrb[170].mxu1  ;;  %v5518_v36 = vpop.f32.mrb[186].mxu0 }
 0x99c   : > { %v14223_v43 = vadd.f32 %v14129_v60, %v5020_v26  ;;  %v11292_v40 = vpop.f32.mrb[171].mxu1  ;;  %v11398_v0 = vpop.f32.mrb[187].mxu0  ;;  %v6086_v33 = vsel %vm1226_vm3, %v14220_v21, -inf }
 0x99d   : > { %6087 = vmax.xlane.f32.xlu1 %v6086_v33 }
 0x9a1   : > { %v5025_v47 = vpop.f32.mrb[172].mxu1  ;;  %v5615_v6 = vpop.f32.mrb[188].mxu0 }
 0x9a2   : > { %v14228_v56 = vadd.f32 %v14135_v42, %v5025_v47  ;;  %v14231_v25 = vadd.f32 %v5615_v6, %v15737_v10  ;;  %v11295_v50 = vpop.f32.mrb[173].mxu1  ;;  %v11409_v23 = vpop.f32.mrb[189].mxu0 }
 0x9a3   : > { %v5028_v61 = vpop.f32.mrb[174].mxu1  ;;  %6323 = vrot.lane.b32.xlu0 %v12851_v51, %s12354_s29  ;;  %v5618_v60 = vpop.f32.mrb[190].mxu0 }
 0x9a4   : > { %v14236_v45 = vadd.f32 %v14140_v16, %v5028_v61  ;;  %v11296_v9 = vpop.f32.mrb[175].mxu1  ;;  %v11410_v4 = vpop.f32.mrb[191].mxu0  ;;  %v6092_v42 = vsel %vm1226_vm3, %v14231_v25, -inf }
 0x9a5   : > { %6093 = vmax.xlane.f32.xlu1 %v6092_v42 }
 0x9a7   : > { %6419 = vrot.lane.b32.xlu0 %v12863_v57, %s12354_s29 }
 0x9a9   : > { %v5033_v17 = vpop.f32.mrb[176].mxu1  ;;  %v5715_v30 = vpop.f32.mrb[192].mxu0 }
 0x9aa   : > { %v14243_v48 = vadd.f32 %v14144_v31, %v5033_v17  ;;  %v14246_v32 = vadd.f32 %v5715_v30, %v15737_v10  ;;  %v11299_v1 = vpop.f32.mrb[177].mxu1  ;;  %v11421_v16 = vpop.f32.mrb[193].mxu0 }
 0x9ab   : > { %v5036_v52 = vpop.f32.mrb[178].mxu1  ;;  %6515 = vrot.lane.b32.xlu0 %v12871_v63, %s12354_s29  ;;  %v5718_v35 = vpop.f32.mrb[194].mxu0 }
 0x9ac   : > { %v14251_v38 = vadd.f32 %v14149_v15, %v5036_v52  ;;  %v11300_v55 = vpop.f32.mrb[179].mxu1  ;;  %v11422_v26 = vpop.f32.mrb[195].mxu0  ;;  %v6098_v36 = vsel %vm1226_vm3, %v14246_v32, -inf }
 0x9ad   : > { %6099 = vmax.xlane.f32.xlu1 %v6098_v36 }
 0x9b1   : > { %v5041_v31 = vpop.f32.mrb[180].mxu1  ;;  %v5815_v40 = vpop.f32.mrb[196].mxu0 }
 0x9b2   : > { %v14256_v0 = vadd.f32 %v14153_v58, %v5041_v31  ;;  %v14259_v33 = vadd.f32 %v5815_v40, %v15737_v10  ;;  %v11303_v47 = vpop.f32.mrb[181].mxu1  ;;  %v11433_v6 = vpop.f32.mrb[197].mxu0 }
 0x9b3   : > { %v5044_v50 = vpop.f32.mrb[182].mxu1  ;;  %v5818_v23 = vpop.f32.mrb[198].mxu0 }
 0x9b4   : > { %v14262_v15 = vadd.f32 %v14158_v19, %v5044_v50  ;;  %v11304_v61 = vpop.f32.mrb[183].mxu1  ;;  %v11434_v60 = vpop.f32.mrb[199].mxu0  ;;  %v6104_v9 = vsel %vm1226_vm3, %v14259_v33, -inf }
 0x9b5   : > { %6105 = vmax.xlane.f32.xlu1 %v6104_v9 }
 0x9b9   : > { %v5915_v4 = vpop.f32.mrb[200].mxu0 }
 0x9ba   : > { %v11445_v42 = vpop.f32.mrb[201].mxu0 }
 0x9bb   : > { %v5918_v58 = vpop.f32.mrb[202].mxu0 }
 0x9bc   : > { %v11446_v17 = vpop.f32.mrb[203].mxu0 }
 0x9c1   : > { %v6015_v30 = vpop.f32.mrb[204].mxu0 }
 0x9c2   : > { %v5049_v1 = vpop.f32.mrb[184].mxu1  ;;  %v11457_v16 = vpop.f32.mrb[205].mxu0 }
 0x9c3   : > { %v14267_v52 = vadd.f32 %v14162_v12, %v5049_v1  ;;  %v11307_v35 = vpop.f32.mrb[185].mxu1  ;;  %v6018_v55 = vpop.f32.mrb[206].mxu0 }
 0x9c4   : > { %v5052_v19 = vpop.f32.mrb[186].mxu1  ;;  %v11458_v26 = vpop.f32.mrb[207].mxu0 }
 0x9c5   : > { %v14270_v36 = vadd.f32 %v14167_v59, %v5052_v19  ;;  %v11308_v31 = vpop.f32.mrb[187].mxu1 }
 0x9fb   : > { %v5057_v40 = vpop.f32.mrb[188].mxu1 }
 0x9fc   : > { %v14273_v47 = vadd.f32 %v14171_v49, %v5057_v40  ;;  %v11311_v6 = vpop.f32.mrb[189].mxu1 }
 0x9fd   : > { %v5060_v50 = vpop.f32.mrb[190].mxu1 }
 0x9fe   : > { %v14276_v23 = vadd.f32 %v14176_v39, %v5060_v50  ;;  %v11312_v61 = vpop.f32.mrb[191].mxu1 }
 0xa03   : > { %v5065_v12 = vpop.f32.mrb[192].mxu1 }
 0xa04   : > { %v14279_v60 = vadd.f32 %v14180_v11, %v5065_v12  ;;  %v11315_v9 = vpop.f32.mrb[193].mxu1 }
 0xa05   : > { %v5068_v42 = vpop.f32.mrb[194].mxu1 }
 0xa06   : > { %v14282_v59 = vadd.f32 %v14185_v7, %v5068_v42  ;;  %v11316_v58 = vpop.f32.mrb[195].mxu1 }
 0xa08   : > { %15738 = vst [vmem:[#allocation6_spill] sm:$0xff] %v14282_v59 }
 0xa0b   : > { %v5073_v17 = vpop.f32.mrb[196].mxu1 }
 0xa0c   : > { %v14285_v49 = vadd.f32 %v14189_v54, %v5073_v17  ;;  %v11319_v1 = vpop.f32.mrb[197].mxu1 }
 0xa0d   : > { %v5076_v16 = vpop.f32.mrb[198].mxu1 }
 0xa0e   : > { %15739 = vst [vmem:[#allocation5_spill] sm:$0xff] %v14285_v49  ;;  %v14288_v39 = vadd.f32 %v14194_v5, %v5076_v16  ;;  %v11320_v35 = vpop.f32.mrb[199].mxu1  ;;  %v14298_v5 = vadd.f32 %v5915_v4, %v15737_v10 }
 0xa10   : > { %15740 = vst [vmem:[#allocation7_spill] sm:$0xff] %v14288_v39  ;;  %v6110_v4 = vsel %vm1226_vm3, %v14298_v5, -inf }
 0xa13   : > { %v5081_v55 = vpop.f32.mrb[200].mxu1 }
 0xa14   : > { %v14291_v11 = vadd.f32 %v14198_v27, %v5081_v55  ;;  %v11323_v19 = vpop.f32.mrb[201].mxu1 }
 0xa15   : > { %v5084_v26 = vpop.f32.mrb[202].mxu1 }
 0xa16   : > { %15741 = vst [vmem:[#allocation4_spill] sm:$0xff] %v14291_v11  ;;  %v11324_v31 = vpop.f32.mrb[203].mxu1 }
 0xa1a   : > { %v6076_v7 = vpop.xlane.xlu0 %6075 }
 0xa1b   : > { %v6123_v40 = vsub.f32 %v14207_v8, %v6076_v7  ;;  %v5265_v6 = vpop.f32.mrb[204].mxu1  ;;  %v14305_v8 = vadd.f32 %v6015_v30, %v15737_v10 }
 0xa1c   : > { %v14295_v54 = vadd.f32 %v5265_v6, %v15737_v10  ;;  %v11367_v50 = vpop.f32.mrb[205].mxu1 }
 0xa1d   : > { %v6141_v61 = vmul.f32 1.442695, %v6123_v40  ;;  %v5268_v12 = vpop.f32.mrb[206].mxu1  ;;  %v6116_v30 = vsel %vm1226_vm3, %v14305_v8, -inf }
 0xa1e   : > { %v11368_v9 = vpop.f32.mrb[207].mxu1  ;;  %v6324_v42 = vpop.permute.xlu0 %6323  ;;  %v6071_v27 = vsel %vm1226_vm3, %v14295_v54, -inf }
 0xa1f   : > { %12144 = vpow2.f32 %v6141_v61  ;;  %v6329_v58 = vsel %vm2250_vm4, %v6324_v42, 0  ;;  %6072 = vmax.xlane.f32.xlu1 %v6071_v27 }
 0xa20   : > { %11472 = vmatpush3.bf16.msra.mxu1 %v6329_v58 }
 0xa21   : > { %11483 = vmatprep.subr.bf16.mxu1 %v15725_v22 }
 0xa22   : > { %v6082_v17 = vpop.xlane.xlu1 %6081 }
 0xa23   : > { %v6125_v1 = vsub.f32 %v14212_v44, %v6082_v17  ;;  %v5365_v16 = vpop.f32.mrb[208].mxu1  ;;  %6111 = vmax.xlane.f32.xlu1 %v6110_v4 }
 0xa24   : > { %v14311_v35 = vadd.f32 %v5365_v16, %v15737_v10  ;;  %v11379_v55 = vpop.f32.mrb[209].mxu1 }
 0xa25   : > { %v6145_v19 = vmul.f32 1.442695, %v6125_v1  ;;  %v5368_v26 = vpop.f32.mrb[210].mxu1 }
 0xa26   : > { %v11380_v31 = vpop.f32.mrb[211].mxu1  ;;  %v6077_v7 = vsel %vm1226_vm3, %v14311_v35, -inf }
 0xa27   : > { %12146 = vpow2.f32 %v6145_v19  ;;  %6078 = vmax.xlane.f32.xlu0 %v6077_v7  ;;  %6117 = vmax.xlane.f32.xlu1 %v6116_v30 }
 0xa29   : > { %v14317_v40 = vpop.eup %12144 }
 0xa2a   : > { %v6088_v44 = vpop.xlane.xlu1 %6087  ;;  %v6176_v6 = vsel %vm1226_vm3, %v14317_v40, 0.0 }
 0xa2b   : > { %v6127_v50 = vsub.f32 %v14220_v21, %v6088_v44  ;;  %v5465_v61 = vpop.f32.mrb[212].mxu1  ;;  %6177 = vadd.xlane.f32.xlu0 %v6176_v6 }
 0xa2c   : > { %v14323_v12 = vadd.f32 %v5465_v61, %v15737_v10  ;;  %v11391_v9 = vpop.f32.mrb[213].mxu1 }
 0xa2d   : > { %v6149_v42 = vmul.f32 1.442695, %v6127_v50  ;;  %v5468_v27 = vpop.f32.mrb[214].mxu1 }
 0xa2e   : > { %v11392_v58 = vpop.f32.mrb[215].mxu1  ;;  %v6083_v17 = vsel %vm1226_vm3, %v14323_v12, -inf }
 0xa2f   : > { %12148 = vpow2.f32 %v6149_v42  ;;  %6084 = vmax.xlane.f32.xlu0 %v6083_v17 }
 0xa31   : > { %v14327_v4 = vpop.eup %12146 }
 0xa32   : > { %v6094_v1 = vpop.xlane.xlu1 %6093  ;;  %v6182_v21 = vsel %vm1226_vm3, %v14327_v4, 0.0 }
 0xa33   : > { %v6129_v16 = vsub.f32 %v14231_v25, %v6094_v1  ;;  %v5565_v55 = vpop.f32.mrb[216].mxu1  ;;  %6183 = vadd.xlane.f32.xlu0 %v6182_v21 }
 0xa34   : > { %v14333_v19 = vadd.f32 %v5565_v55, %v15737_v10  ;;  %v11403_v26 = vpop.f32.mrb[217].mxu1 }
 0xa35   : > { %v6153_v31 = vmul.f32 1.442695, %v6129_v16  ;;  %v5568_v7 = vpop.f32.mrb[218].mxu1 }
 0xa36   : > { %v11404_v30 = vpop.f32.mrb[219].mxu1  ;;  %v6089_v44 = vsel %vm1226_vm3, %v14333_v19, -inf }
 0xa37   : > { %12150 = vpow2.f32 %v6153_v31  ;;  %6090 = vmax.xlane.f32.xlu0 %v6089_v44 }
 0xa38   : > { %6275 = vrot.lane.b32.xlu1 %v12848_v46, %s12354_s29 }
 0xa39   : > { %v14339_v6 = vpop.eup %12148 }
 0xa3a   : > { %v6100_v25 = vpop.xlane.xlu1 %6099  ;;  %v6188_v50 = vsel %vm1226_vm3, %v14339_v6, 0.0 }
 0xa3b   : > { %v6131_v61 = vsub.f32 %v14246_v32, %v6100_v25  ;;  %v5665_v9 = vpop.f32.mrb[220].mxu1  ;;  %6189 = vadd.xlane.f32.xlu0 %v6188_v50 }
 0xa3c   : > { %v14345_v42 = vadd.f32 %v5665_v9, %v15737_v10  ;;  %v11415_v27 = vpop.f32.mrb[221].mxu1  ;;  %6371 = vrot.lane.b32.xlu1 %v12858_v53, %s12354_s29 }
 0xa3d   : > { %v6157_v58 = vmul.f32 1.442695, %v6131_v61  ;;  %v5668_v17 = vpop.f32.mrb[222].mxu1 }
 0xa3e   : > { %v11416_v1 = vpop.f32.mrb[223].mxu1  ;;  %v6095_v21 = vsel %vm1226_vm3, %v14345_v42, -inf }
 0xa3f   : > { %12152 = vpow2.f32 %v6157_v58  ;;  %6096 = vmax.xlane.f32.xlu0 %v6095_v21 }
 0xa40   : > { %6467 = vrot.lane.b32.xlu1 %v12868_v41, %s12354_s29 }
 0xa41   : > { %v14353_v32 = vpop.eup %12150 }
 0xa42   : > { %v6106_v16 = vpop.xlane.xlu1 %6105  ;;  %v6194_v55 = vsel %vm1226_vm3, %v14353_v32, 0.0 }
 0xa43   : > { %v6133_v26 = vsub.f32 %v14259_v33, %v6106_v16  ;;  %v5765_v31 = vpop.f32.mrb[224].mxu1  ;;  %6195 = vadd.xlane.f32.xlu0 %v6194_v55 }
 0xa44   : > { %v14359_v7 = vadd.f32 %v5765_v31, %v15737_v10  ;;  %v11427_v30 = vpop.f32.mrb[225].mxu1  ;;  %6563 = vrot.lane.b32.xlu1 %v12878_v13, %s12354_s29 }
 0xa45   : > { %v6161_v44 = vmul.f32 1.442695, %v6133_v26  ;;  %v5768_v25 = vpop.f32.mrb[226].mxu1 }
 0xa46   : > { %v11428_v50 = vpop.f32.mrb[227].mxu1  ;;  %v6101_v61 = vsel %vm1226_vm3, %v14359_v7, -inf }
 0xa47   : > { %12154 = vpow2.f32 %v6161_v44  ;;  %6102 = vmax.xlane.f32.xlu0 %v6101_v61 }
 0xa49   : > { %v14365_v9 = vpop.eup %12152 }
 0xa4a   : > { %v6200_v33 = vsel %vm1226_vm3, %v14365_v9, 0.0 }
 0xa4b   : > { %v5865_v27 = vpop.f32.mrb[228].mxu1  ;;  %6201 = vadd.xlane.f32.xlu0 %v6200_v33 }
 0xa4c   : > { %v14370_v58 = vadd.f32 %v5865_v27, %v15737_v10  ;;  %v11439_v17 = vpop.f32.mrb[229].mxu1 }
 0xa4d   : > { %v5868_v1 = vpop.f32.mrb[230].mxu1 }
 0xa4e   : > { %v11440_v21 = vpop.f32.mrb[231].mxu1  ;;  %v6107_v16 = vsel %vm1226_vm3, %v14370_v58, -inf }
 0xa4f   : > { %6108 = vmax.xlane.f32.xlu0 %v6107_v16  ;;  %v6420_v21 = vpop.permute.xlu0 %6419 }
 0xa51   : > { %v14374_v55 = vpop.eup %12154 }
 0xa52   : > { %v6206_v26 = vsel %vm1226_vm3, %v14374_v55, 0.0 }
 0xa53   : > { %v5965_v31 = vpop.f32.mrb[232].mxu1  ;;  %6207 = vadd.xlane.f32.xlu0 %v6206_v26  ;;  %v6516_v26 = vpop.permute.xlu0 %6515 }
 0xa54   : > { %v14379_v30 = vadd.f32 %v5965_v31, %v15737_v10  ;;  %v11451_v44 = vpop.f32.mrb[233].mxu1 }
 0xa55   : > { %v5968_v25 = vpop.f32.mrb[234].mxu1 }
 0xa56   : > { %v11452_v50 = vpop.f32.mrb[235].mxu1  ;;  %v6113_v61 = vsel %vm1226_vm3, %v14379_v30, -inf }
 0xa57   : > { %6114 = vmax.xlane.f32.xlu0 %v6113_v61 }
 0xa5b   : > { %v6065_v33 = vpop.f32.mrb[236].mxu1 }
 0xa5c   : > { %v11463_v27 = vpop.f32.mrb[237].mxu1 }
 0xa5d   : > { %v6068_v17 = vpop.f32.mrb[238].mxu1 }
 0xa5e   : > { %v11464_v1 = vpop.f32.mrb[239].mxu1 }
 0xaac   : > { %v6073_v16 = vpop.xlane.xlu1 %6072 }
 0xaad   : > { %v6122_v11 = vsub.f32 %v14295_v54, %v6073_v16  ;;  %v14398_v16 = vadd.f32 %v6065_v33, %v15737_v10 }
 0xaaf   : > { %v6139_v39 = vmul.f32 1.442695, %v6122_v11 }
 0xab0   : > { %v6112_v49 = vpop.xlane.xlu1 %6111 }
 0xab1   : > { %12156 = vpow2.f32 %v6139_v39  ;;  %v6135_v31 = vsub.f32 %v14298_v5, %v6112_v49 }
 0xab3   : > { %v6165_v44 = vmul.f32 1.442695, %v6135_v31 }
 0xab4   : > { %v14385_v25 = vpop.xlane.xlu1 %6117  ;;  %v6079_v50 = vpop.xlane.xlu0 %6078 }
 0xab5   : > { %12158 = vpow2.f32 %v6165_v44  ;;  %v6124_v61 = vsub.f32 %v14311_v35, %v6079_v50 }
 0xab7   : > { %v6143_v27 = vmul.f32 1.442695, %v6124_v61 }
 0xab8   : > { %v6276_v17 = vpop.permute.xlu1 %6275  ;;  %v6178_v1 = vpop.xlane.xlu0 %6177 }
 0xab9   : > { %v6281_v59 = vsel %vm2250_vm4, %v6276_v17, 0  ;;  %12160 = vpow2.f32 %v6143_v27 }
 0xaba   : > { %11466 = vmatpush3.bf16.msra.mxu0 %v6281_v59  ;;  %12162 = vrcp.f32 %v6178_v1 }
 0xabb   : > { %v14389_v11 = vpop.eup %12156  ;;  %11477 = vmatprep.subr.bf16.mxu0 %v15725_v22 }
 0xabc   : > { %v6085_v49 = vpop.xlane.xlu0 %6084  ;;  %v6173_v39 = vsel %vm1226_vm3, %v14389_v11, 0.0 }
 0xabd   : > { %v6126_v54 = vsub.f32 %v14323_v12, %v6085_v49  ;;  %6174 = vadd.xlane.f32.xlu1 %v6173_v39  ;;  %v6119_v12 = vsel %vm1226_vm3, %v14398_v16, -inf }
 0xabf   : > { %v14395_v5 = vpop.eup %12158  ;;  %v6147_v35 = vmul.f32 1.442695, %v6126_v54  ;;  %v6425_v54 = vsel %vm2250_vm4, %v6420_v21, 0 }
 0xac0   : > { %v6184_v31 = vpop.xlane.xlu0 %6183  ;;  %v6212_v59 = vsel %vm1226_vm3, %v14395_v5, 0.0 }
 0xac1   : > { %12164 = vpow2.f32 %v6147_v35  ;;  %6213 = vadd.xlane.f32.xlu0 %v6212_v59 }
 0xac2   : > { %12166 = vrcp.f32 %v6184_v31 }
 0xac3   : > { %v14402_v44 = vpop.eup %12160 }
 0xac4   : > { %v6091_v50 = vpop.xlane.xlu0 %6090  ;;  %v12163_v61 = vpop.eup %12162  ;;  %v6179_v33 = vsel %vm1226_vm3, %v14402_v44, 0.0 }
 0xac5   : > { %v6128_v27 = vsub.f32 %v14333_v19, %v6091_v50  ;;  %6120 = vmax.xlane.f32.xlu0 %v6119_v12  ;;  %6180 = vadd.xlane.f32.xlu1 %v6179_v33  ;;  %v6242_v17 = vmul.f32 %v12163_v61, %v14317_v40 }
 0xac7   : > { %v6151_v1 = vmul.f32 1.442695, %v6128_v27  ;;  %v6259_v49 = vpack.c.bf16 %v6242_v17, %v6242_v17  ;;  %v6521_v27 = vsel %vm2250_vm4, %v6516_v26, 0 }
 0xac8   : > { %v6190_v39 = vpop.xlane.xlu0 %6189 }
 0xac9   : > { %12168 = vpow2.f32 %v6151_v1  ;;  %11474 = vmatmul.mubr.msk.bf16.vlgmr.msra.gmra.mrb[240].mxu1 %vm1226_vm3, %v6259_v49 }
 0xaca   : > { %12170 = vrcp.f32 %v6190_v39  ;;  %11484 = vmatpush3.bf16.msra.mxu1 %v6425_v54  ;;  %11485 = vmatprep.mubr.msk.bf16.mxu1 %vm12346_vm2, %v15725_v22 }
 0xacb   : > { %v14412_v35 = vpop.eup %12164  ;;  %11495 = vmatprep.subr.bf16.mxu1 %v15725_v22 }
 0xacc   : > { %v12167_v19 = vpop.eup %12166  ;;  %v6097_v31 = vpop.xlane.xlu0 %6096  ;;  %v6185_v40 = vsel %vm1226_vm3, %v14412_v35, 0.0 }
 0xacd   : > { %v6130_v59 = vsub.f32 %v14345_v42, %v6097_v31  ;;  %6186 = vadd.xlane.f32.xlu1 %v6185_v40  ;;  %v6244_v21 = vmul.f32 %v12167_v19, %v14327_v4 }
 0xacf   : > { %v6155_v50 = vmul.f32 1.442695, %v6130_v59  ;;  %v6261_v12 = vpack.c.bf16 %v6244_v21, %v6244_v21 }
 0xad0   : > { %v14421_v61 = vpop.xlane.xlu0 %6195 }
 0xad1   : > { %12172 = vpow2.f32 %v6155_v50  ;;  %11486 = vmatmul.mubr.msk.bf16.vlgmr.msra.gmra.mrb[244].mxu1 %vm1226_vm3, %v6261_v12  ;;  %v6137_v50 = vsub.f32 %v14305_v8, %v14385_v25 }
 0xad2   : > { %11496 = vmatpush3.bf16.msra.mxu1 %v6521_v27  ;;  %11497 = vmatprep.mubr.msk.bf16.mxu1 %vm12346_vm2, %v15725_v22 }
 0xad3   : > { %v14425_v33 = vpop.eup %12168  ;;  %11507 = vmatprep.subr.bf16.mxu1 %v15725_v22 }
 0xad4   : > { %v12171_v17 = vpop.eup %12170  ;;  %v6103_v42 = vpop.xlane.xlu0 %6102  ;;  %v6191_v4 = vsel %vm1226_vm3, %v14425_v33, 0.0 }
 0xad5   : > { %v6132_v1 = vsub.f32 %v14359_v7, %v6103_v42  ;;  %6192 = vadd.xlane.f32.xlu1 %v6191_v4  ;;  %v6246_v26 = vmul.f32 %v12171_v17, %v14339_v6  ;;  %v6169_v4 = vmul.f32 1.442695, %v6137_v50 }
 0xad7   : > { %v6159_v49 = vmul.f32 1.442695, %v6132_v1  ;;  %v6263_v39 = vpack.c.bf16 %v6246_v26, %v6246_v26 }
 0xad8   : > { %v14434_v54 = vpop.xlane.xlu0 %6201 }
 0xad9   : > { %12174 = vpow2.f32 %v6159_v49  ;;  %11498 = vmatmul.mubr.msk.bf16.vlgmr.msra.gmra.mrb[248].mxu1 %vm1226_vm3, %v6263_v39  ;;  %v6372_v49 = vpop.permute.xlu1 %6371 }
 0xada   : > { %11509 = vmatprep.mubr.msk.bf16.mxu1 %vm12346_vm2, %v15725_v22 }
 0xadb   : > { %v14437_v19 = vpop.eup %12172  ;;  %6611 = vrot.lane.b32.xlu0 %v12881_v20, %s12354_s29 }
 0xadc   : > { %v6109_v31 = vpop.xlane.xlu0 %6108  ;;  %v6197_v7 = vsel %vm1226_vm3, %v14437_v19, 0.0 }
 0xadd   : > { %v6134_v6 = vsub.f32 %v14370_v58, %v6109_v31  ;;  %6198 = vadd.xlane.f32.xlu1 %v6197_v7  ;;  %v6468_v39 = vpop.permute.xlu1 %6467 }
 0xadf   : > { %v6163_v40 = vmul.f32 1.442695, %v6134_v6 }
 0xae0   : > { %v14446_v59 = vpop.xlane.xlu0 %6207 }
 0xae1   : > { %12176 = vpow2.f32 %v6163_v40  ;;  %v6564_v31 = vpop.permute.xlu1 %6563 }
 0xae3   : > { %v14448_v21 = vpop.eup %12174 }
 0xae4   : > { %v6115_v12 = vpop.xlane.xlu0 %6114  ;;  %v6203_v27 = vsel %vm1226_vm3, %v14448_v21, 0.0 }
 0xae5   : > { %v6136_v17 = vsub.f32 %v14379_v30, %v6115_v12  ;;  %6204 = vadd.xlane.f32.xlu1 %v6203_v27 }
 0xae7   : > { %v6167_v42 = vmul.f32 1.442695, %v6136_v17 }
 0xae9   : > { %12178 = vpow2.f32 %v6167_v42 }
 0xaea   : > { %12180 = vpow2.f32 %v6169_v4 }
 0xaeb   : > { %v14455_v58 = vpop.eup %12176  ;;  %12182 = vrcp.f32 %v14421_v61 }
 0xaec   : > { %v6209_v1 = vsel %vm1226_vm3, %v14455_v58, 0.0 }
 0xaed   : > { %6210 = vadd.xlane.f32.xlu1 %v6209_v1 }
 0xaf3   : > { %v14459_v26 = vpop.eup %12178 }
 0xaf4   : > { %v6215_v8 = vsel %vm1226_vm3, %v14459_v26, 0.0  ;;  %v14463_v25 = vpop.eup %12180 }
 0xaf5   : > { %6216 = vadd.xlane.f32.xlu1 %v6215_v8  ;;  %v6218_v30 = vsel %vm1226_vm3, %v14463_v25, 0.0  ;;  %v12183_v40 = vpop.eup %12182 }
 0xaf6   : > { %v6248_v42 = vmul.f32 %v12183_v40, %v14353_v32 }
 0xafa   : > { %6219 = vadd.xlane.f32.xlu0 %v6218_v30 }
 0xb06   : > { %6659 = vrot.lane.b32.xlu1 %v12889_v24, %s12354_s29 }
 0xb10   : > { %6707 = vrot.lane.b32.xlu0 %v12893_v28, %s12354_s29 }
 0xb14   : > { %6755 = vrot.lane.b32.xlu0 %v12897_v2, %s12354_s29 }
 0xb18   : > { %6803 = vrot.lane.b32.xlu0 %v12901_v29, %s12354_s29 }
 0xb1c   : > { %6851 = vrot.lane.b32.xlu0 %v12934_v37, %s12354_s29 }
 0xb20   : > { %6899 = vrot.lane.b32.xlu0 %v12938_v18, %s12354_s29 }
 0xb24   : > { %6947 = vrot.lane.b32.xlu0 %v12952_v62, %s12354_s29 }
 0xb28   : > { %6995 = vrot.lane.b32.xlu0 %v12958_v3, %s12354_s29 }
 0xb2c   : > { %7043 = vrot.lane.b32.xlu0 %v12974_v14, %s12354_s29 }
 0xb30   : > { %7255 = vrot.lane.b32.xlu0 %v12848_v46, %s12355_s28 }
 0xb34   : > { %7305 = vrot.lane.b32.xlu0 %v12851_v51, %s12355_s28 }
 0xb38   : > { %7303 = vrot.lane.b32.xlu0 %v12851_v51, %s12356_s17 }
 0xb3c   : > { %7355 = vrot.lane.b32.xlu0 %v12858_v53, %s12355_s28 }
 0xb40   : > { %7353 = vrot.lane.b32.xlu0 %v12858_v53, %s12356_s17 }
 0xb44   : > { %7403 = vrot.lane.b32.xlu0 %v12863_v57, %s12356_s17 }
 0xb48   : > { %7453 = vrot.lane.b32.xlu0 %v12868_v41, %s12356_s17 }
 0xb4a   : > { %v6175_v7 = vpop.xlane.xlu1 %6174 }
 0xb4b   : > { %12184 = vrcp.f32 %v6175_v7  ;;  %v6377_v7 = vsel %vm2250_vm4, %v6372_v49, 0 }
 0xb4c   : > { %7503 = vrot.lane.b32.xlu0 %v12871_v63, %s12356_s17 }
 0xb4e   : > { %v14502_v6 = vpop.xlane.xlu0 %6213 }
 0xb50   : > { %7553 = vrot.lane.b32.xlu0 %v12878_v13, %s12356_s17 }
 0xb52   : > { %v6121_v50 = vpop.xlane.xlu0 %6120  ;;  %v6181_v12 = vpop.xlane.xlu1 %6180 }
 0xb53   : > { %v6138_v27 = vsub.f32 %v14398_v16, %v6121_v50  ;;  %12186 = vrcp.f32 %v6181_v12  ;;  %v6265_v16 = vpack.c.bf16 %v6248_v42, %v6248_v42  ;;  %v6569_v42 = vsel %vm2250_vm4, %v6564_v31, 0 }
 0xb54   : > { %7603 = vrot.lane.b32.xlu0 %v12881_v20, %s12356_s17 }
 0xb55   : > { %v12185_v61 = vpop.eup %12184  ;;  %v6171_v17 = vmul.f32 1.442695, %v6138_v27 }
 0xb56   : > { %v6612_v4 = vpop.permute.xlu0 %6611  ;;  %v6241_v1 = vmul.f32 %v12185_v61, %v14389_v11  ;;  %v6473_v61 = vsel %vm2250_vm4, %v6468_v39, 0 }
 0xb57   : > { %12188 = vpow2.f32 %v6171_v17  ;;  %v6617_v8 = vsel %vm2250_vm4, %v6612_v4, 0 }
 0xb58   : > { %7705 = vrot.lane.b32.xlu0 %v12893_v28, %s12355_s28  ;;  %11508 = vmatpush3.bf16.msra.mxu1 %v6617_v8  ;;  %v6258_v30 = vpack.c.bf16 %v6241_v1, %v6241_v1 }
 0xb59   : > { %11519 = vmatprep.subr.bf16.mxu1 %v15725_v22 }
 0xb5a   : > { %11468 = vmatmul.mubr.msk.bf16.vlgmr.msra.gmra.mrb[208].mxu0 %vm1226_vm3, %v6258_v30  ;;  %v6187_v50 = vpop.xlane.xlu1 %6186 }
 0xb5b   : > { %11478 = vmatpush3.bf16.msra.mxu0 %v6377_v7  ;;  %12190 = vrcp.f32 %v6187_v50  ;;  %11510 = vmatmul.mubr.msk.bf16.vlgmr.msra.gmra.mrb[252].mxu1 %vm1226_vm3, %v6265_v16 }
 0xb5c   : > { %7703 = vrot.lane.b32.xlu0 %v12893_v28, %s12356_s17  ;;  %11479 = vmatprep.mubr.msk.bf16.mxu0 %vm12346_vm2, %v15725_v22 }
 0xb5d   : > { %11489 = vmatprep.subr.bf16.mxu0 %v15725_v22  ;;  %11521 = vmatprep.mubr.msk.bf16.mxu1 %vm12346_vm2, %v15725_v22  ;;  %v12187_v32 = vpop.eup %12186 }
 0xb5e   : > { %v6243_v11 = vmul.f32 %v12187_v32, %v14402_v44 }
 0xb60   : > { %7805 = vrot.lane.b32.xlu0 %v12901_v29, %s12355_s28  ;;  %v6260_v40 = vpack.c.bf16 %v6243_v11, %v6243_v11 }
 0xb61   : > { %v14528_v49 = vpop.eup %12188 }
 0xb62   : > { %v6193_v12 = vpop.xlane.xlu1 %6192  ;;  %v6221_v27 = vsel %vm1226_vm3, %v14528_v49, 0.0  ;;  %11480 = vmatmul.mubr.msk.bf16.vlgmr.msra.gmra.mrb[212].mxu0 %vm1226_vm3, %v6260_v40 }
 0xb63   : > { %12192 = vrcp.f32 %v6193_v12  ;;  %6222 = vadd.xlane.f32.xlu1 %v6221_v27  ;;  %11490 = vmatpush3.bf16.msra.mxu0 %v6473_v61 }
 0xb64   : > { %7803 = vrot.lane.b32.xlu0 %v12901_v29, %s12356_s17  ;;  %11491 = vmatprep.mubr.msk.bf16.mxu0 %vm12346_vm2, %v15725_v22 }
 0xb65   : > { %v12191_v44 = vpop.eup %12190  ;;  %11501 = vmatprep.subr.bf16.mxu0 %v15725_v22 }
 0xb66   : > { %v6245_v17 = vmul.f32 %v12191_v44, %v14412_v35 }
 0xb68   : > { %7905 = vrot.lane.b32.xlu0 %v12938_v18, %s12355_s28  ;;  %v6262_v39 = vpack.c.bf16 %v6245_v17, %v6245_v17 }
 0xb6a   : > { %11492 = vmatmul.mubr.msk.bf16.vlgmr.msra.gmra.mrb[216].mxu0 %vm1226_vm3, %v6262_v39  ;;  %v6199_v31 = vpop.xlane.xlu1 %6198 }
 0xb6b   : > { %11502 = vmatpush3.bf16.msra.mxu0 %v6569_v42  ;;  %11503 = vmatprep.mubr.msk.bf16.mxu0 %vm12346_vm2, %v15725_v22  ;;  %12194 = vrcp.f32 %v6199_v31 }
 0xb6c   : > { %7903 = vrot.lane.b32.xlu0 %v12938_v18, %s12356_s17  ;;  %11513 = vmatprep.subr.bf16.mxu0 %v15725_v22  ;;  %12196 = vrcp.f32 %v14434_v54 }
 0xb6d   : > { %v12193_v4 = vpop.eup %12192 }
 0xb6e   : > { %v6247_v35 = vmul.f32 %v12193_v4, %v14425_v33 }
 0xb70   : > { %8005 = vrot.lane.b32.xlu0 %v12958_v3, %s12355_s28  ;;  %v6264_v1 = vpack.c.bf16 %v6247_v35, %v6247_v35 }
 0xb72   : > { %11504 = vmatmul.mubr.msk.bf16.vlgmr.msra.gmra.mrb[220].mxu0 %vm1226_vm3, %v6264_v1  ;;  %v6205_v33 = vpop.xlane.xlu1 %6204 }
 0xb73   : > { %11515 = vmatprep.mubr.msk.bf16.mxu0 %vm12346_vm2, %v15725_v22  ;;  %12198 = vrcp.f32 %v6205_v33 }
 0xb74   : > { %8003 = vrot.lane.b32.xlu0 %v12958_v3, %s12356_s17  ;;  %7253 = vrot.lane.b32.xlu1 %v12848_v46, %s12356_s17  ;;  %12200 = vrcp.f32 %v14446_v59 }
 0xb75   : > { %v12195_v30 = vpop.eup %12194 }
 0xb76   : > { %v12197_v7 = vpop.eup %12196 }
 0xb78   : > { %8053 = vrot.lane.b32.xlu0 %v12974_v14, %s12356_s17  ;;  %7405 = vrot.lane.b32.xlu1 %v12863_v57, %s12355_s28 }
 0xb7a   : > { %v6211_v8 = vpop.xlane.xlu1 %6210 }
 0xb7b   : > { %12202 = vrcp.f32 %v6211_v8 }
 0xb7c   : > { %8355 = vrot.lane.b32.xlu0 %v12851_v51, %s12357_s30  ;;  %7455 = vrot.lane.b32.xlu1 %v12868_v41, %s12355_s28  ;;  %v6249_v51 = vmul.f32 %v12195_v30, %v14437_v19  ;;  %12204 = vrcp.f32 %v14502_v6 }
 0xb7d   : > { %v12199_v11 = vpop.eup %12198 }
 0xb7e   : > { %v6266_v32 = vpack.c.bf16 %v6249_v51, %v6249_v51  ;;  %v6251_v12 = vmul.f32 %v12199_v11, %v14448_v21 }
 0xb80   : > { %8451 = vrot.lane.b32.xlu0 %v12863_v57, %s12357_s30  ;;  %7505 = vrot.lane.b32.xlu1 %v12871_v63, %s12355_s28  ;;  %v6268_v44 = vpack.c.bf16 %v6251_v12, %v6251_v12  ;;  %v10378_v12 = vld [vmem:[%s12480_s16 + $0x8] sm:$0xf] }
 0xb82   : > { %v6217_v16 = vpop.xlane.xlu1 %6216 }
 0xb83   : > { %12206 = vrcp.f32 %v6217_v16 }
 0xb84   : > { %8547 = vrot.lane.b32.xlu0 %v12871_v63, %s12357_s30  ;;  %7555 = vrot.lane.b32.xlu1 %v12878_v13, %s12355_s28  ;;  %v6250_v63 = vmul.f32 %v12197_v7, %v14365_v9  ;;  %v12201_v9 = vpop.eup %12200 }
 0xb85   : > { %v6252_v6 = vmul.f32 %v12201_v9, %v14374_v55  ;;  %v12203_v21 = vpop.eup %12202 }
 0xb86   : > { %v6660_v54 = vpop.permute.xlu1 %6659  ;;  %v6267_v40 = vpack.c.bf16 %v6250_v63, %v6250_v63  ;;  %v6253_v55 = vmul.f32 %v12203_v21, %v14455_v58  ;;  %v12205_v4 = vpop.eup %12204 }
 0xb87   : > { %v6665_v57 = vsel %vm2250_vm4, %v6660_v54, 0  ;;  %v6220_v50 = vpop.xlane.xlu0 %6219  ;;  %v6269_v42 = vpack.c.bf16 %v6252_v6, %v6252_v6  ;;  %v6254_v31 = vmul.f32 %v12205_v4, %v14395_v5 }
 0xb88   : > { %11514 = vmatpush3.bf16.msra.mxu0 %v6665_v57  ;;  %7605 = vrot.lane.b32.xlu1 %v12881_v20, %s12355_s28  ;;  %12208 = vrcp.f32 %v6220_v50  ;;  %v6270_v33 = vpack.c.bf16 %v6253_v55, %v6253_v55 }
 0xb89   : > { %11525 = vmatprep.subr.bf16.mxu0 %v15725_v22  ;;  %v6271_v51 = vpack.c.bf16 %v6254_v31, %v6254_v31 }
 0xb8b   : > { %11516 = vmatmul.mubr.msk.bf16.vlgmr.msra.gmra.mrb[224].mxu0 %vm1226_vm3, %v6266_v32  ;;  %v6708_v59 = vpop.permute.xlu0 %6707 }
 0xb8c   : > { %v6713_v19 = vsel %vm2250_vm4, %v6708_v59, 0  ;;  %7655 = vrot.lane.b32.xlu1 %v12889_v24, %s12355_s28  ;;  %11527 = vmatprep.mubr.msk.bf16.mxu0 %vm12346_vm2, %v15725_v22 }
 0xb8d   : > { %11520 = vmatpush3.bf16.msra.mxu1 %v6713_v19  ;;  %v12207_v58 = vpop.eup %12206 }
 0xb8e   : > { %11531 = vmatprep.subr.bf16.mxu1 %v15725_v22  ;;  %v6255_v54 = vmul.f32 %v12207_v58, %v14459_v26 }
 0xb8f   : > { %v6756_v27 = vpop.permute.xlu0 %6755 }
 0xb90   : > { %v6761_v61 = vsel %vm2250_vm4, %v6756_v27, 0  ;;  %7653 = vrot.lane.b32.xlu1 %v12889_v24, %s12356_s17  ;;  %11522 = vmatmul.mubr.msk.bf16.vlgmr.msra.gmra.mrb[0].mxu1 %vm1226_vm3, %v6267_v40  ;;  %v6272_v11 = vpack.c.bf16 %v6255_v54, %v6255_v54  ;;  %v7130_v27 = vsel %vm2250_vm4, %v10378_v12, 0 }
 0xb91   : > { %11526 = vmatpush3.bf16.msra.mxu0 %v6761_v61  ;;  %11533 = vmatprep.mubr.msk.bf16.mxu1 %vm12346_vm2, %v15725_v22 }
 0xb92   : > { %11537 = vmatprep.subr.bf16.mxu0 %v15725_v22  ;;  %v12209_v7 = vpop.eup %12208 }
 0xb93   : > { %v6804_v17 = vpop.permute.xlu0 %6803  ;;  %v6256_v26 = vmul.f32 %v12209_v7, %v14463_v25 }
 0xb94   : > { %v6809_v39 = vsel %vm2250_vm4, %v6804_v17, 0  ;;  %7755 = vrot.lane.b32.xlu1 %v12897_v2, %s12355_s28  ;;  %11528 = vmatmul.mubr.msk.bf16.vlgmr.msra.gmra.mrb[228].mxu0 %vm1226_vm3, %v6268_v44 }
 0xb95   : > { %11532 = vmatpush3.bf16.msra.mxu1 %v6809_v39  ;;  %11539 = vmatprep.mubr.msk.bf16.mxu0 %vm12346_vm2, %v15725_v22  ;;  %v6273_v9 = vpack.c.bf16 %v6256_v26, %v6256_v26 }
 0xb96   : > { %11543 = vmatprep.subr.bf16.mxu1 %v15725_v22 }
 0xb97   : > { %v6852_v35 = vpop.permute.xlu0 %6851 }
 0xb98   : > { %v6857_v1 = vsel %vm2250_vm4, %v6852_v35, 0  ;;  %7753 = vrot.lane.b32.xlu1 %v12897_v2, %s12356_s17  ;;  %11534 = vmatmul.mubr.msk.bf16.vlgmr.msra.gmra.mrb[4].mxu1 %vm1226_vm3, %v6269_v42 }
 0xb99   : > { %11538 = vmatpush3.bf16.msra.mxu0 %v6857_v1  ;;  %11545 = vmatprep.mubr.msk.bf16.mxu1 %vm12346_vm2, %v15725_v22 }
 0xb9a   : > { %11549 = vmatprep.subr.bf16.mxu0 %v15725_v22 }
 0xb9b   : > { %v6900_v8 = vpop.permute.xlu0 %6899 }
 0xb9c   : > { %v6905_v30 = vsel %vm2250_vm4, %v6900_v8, 0  ;;  %7855 = vrot.lane.b32.xlu1 %v12934_v37, %s12355_s28  ;;  %11540 = vmatmul.mubr.msk.bf16.vlgmr.msra.gmra.mrb[232].mxu0 %vm1226_vm3, %v6270_v33  ;;  %v14620_v16 = vpop.f32.mrb[240].mxu1 }
 0xb9d   : > { %11544 = vmatpush3.bf16.msra.mxu1 %v6905_v30  ;;  %11551 = vmatprep.mubr.msk.bf16.mxu0 %vm12346_vm2, %v15725_v22  ;;  %v11475_v5 = vpop.f32.mrb[241].mxu1 }
 0xb9e   : > { %11555 = vmatprep.subr.bf16.mxu1 %v15725_v22  ;;  %v6368_v57 = vpop.f32.mrb[242].mxu1 }
 0xb9f   : > { %v6948_v50 = vpop.permute.xlu0 %6947  ;;  %v11476_v32 = vpop.f32.mrb[243].mxu1 }
 0xba0   : > { %v6953_v63 = vsel %vm2250_vm4, %v6948_v50, 0  ;;  %7853 = vrot.lane.b32.xlu1 %v12934_v37, %s12356_s17  ;;  %11546 = vmatmul.mubr.msk.bf16.vlgmr.msra.gmra.mrb[8].mxu1 %vm1226_vm3, %v6271_v51 }
 0xba1   : > { %11550 = vmatpush3.bf16.msra.mxu0 %v6953_v63  ;;  %11557 = vmatprep.mubr.msk.bf16.mxu1 %vm12346_vm2, %v15725_v22 }
 0xba2   : > { %11561 = vmatprep.subr.bf16.mxu0 %v15725_v22 }
 0xba3   : > { %v6996_v59 = vpop.permute.xlu0 %6995 }
 0xba4   : > { %v7001_v19 = vsel %vm2250_vm4, %v6996_v59, 0  ;;  %7955 = vrot.lane.b32.xlu1 %v12952_v62, %s12355_s28  ;;  %11552 = vmatmul.mubr.msk.bf16.vlgmr.msra.gmra.mrb[236].mxu0 %vm1226_vm3, %v6272_v11  ;;  %v14638_v40 = vpop.f32.mrb[244].mxu1 }
 0xba5   : > { %11556 = vmatpush3.bf16.msra.mxu1 %v7001_v19  ;;  %11563 = vmatprep.mubr.msk.bf16.mxu0 %vm12346_vm2, %v15725_v22  ;;  %v11487_v25 = vpop.f32.mrb[245].mxu1 }
 0xba6   : > { %11567 = vmatprep.subr.bf16.mxu1 %v15725_v22  ;;  %v6464_v61 = vpop.f32.mrb[246].mxu1 }
 0xba7   : > { %v7044_v6 = vpop.permute.xlu0 %7043  ;;  %v11488_v44 = vpop.f32.mrb[247].mxu1 }
 0xba8   : > { %v7049_v21 = vsel %vm2250_vm4, %v7044_v6, 0  ;;  %7953 = vrot.lane.b32.xlu1 %v12952_v62, %s12356_s17  ;;  %11558 = vmatmul.mubr.msk.bf16.vlgmr.msra.gmra.mrb[12].mxu1 %vm1226_vm3, %v6273_v9  ;;  %s15748_s17 = sld [smem:[#allocation12_spill]] (!%p10461_p5) }
 0xba9   : > { %11562 = vmatpush3.bf16.msra.mxu0 %v7049_v21  ;;  %11568 = vmatpush3.bf16.msra.mxu1 %v7130_v27 }
 0xbaa   : > { %11605 = vmatprep.subr.bf16.mxu0 %v15725_v22  ;;  %11569 = vmatprep.mubr.msk.bf16.mxu1 %vm12346_vm2, %v15725_v22 }
 0xbab   : > { %11659 = vmatprep.subr.bf16.mxu1 %v15725_v22  ;;  %v7256_v4 = vpop.permute.xlu0 %7255 }
 0xbac   : > { %8055 = vrot.lane.b32.xlu1 %v12974_v14, %s12355_s28  ;;  %v14655_v17 = vpop.f32.mrb[248].mxu1  ;;  %v7261_v30 = vsel %vm1226_vm3, %v7256_v4, 0 }
 0xbad   : > { %v11499_v39 = vpop.f32.mrb[249].mxu1 }
 0xbae   : > { %v6560_v42 = vpop.f32.mrb[250].mxu1 }
 0xbaf   : > { %v11500_v55 = vpop.f32.mrb[251].mxu1  ;;  %v7306_v1 = vpop.permute.xlu0 %7305 }
 0xbb0   : > { %8307 = vrot.lane.b32.xlu1 %v12848_v46, %s12357_s30 }
 0xbb3   : > { %v7304_v33 = vpop.permute.xlu0 %7303 }
 0xbb4   : > { %8403 = vrot.lane.b32.xlu1 %v12858_v53, %s12357_s30 }
 0xbb7   : > { %v7356_v46 = vpop.permute.xlu0 %7355 }
 0xbb8   : > { %8499 = vrot.lane.b32.xlu1 %v12868_v41, %s12357_s30  ;;  %v7311_v41 = vsel %vm1226_vm3, %v7306_v1, 0  ;;  %v7361_v54 = vsel %vm1226_vm3, %v7356_v46, 0 }
 0xbbb   : > { %v7354_v51 = vpop.permute.xlu0 %7353 }
 0xbf0   : > { %v6223_v35 = vpop.xlane.xlu1 %6222 }
 0xbf1   : > { %12210 = vrcp.f32 %v6223_v35 }
 0xbf4   : > { %v7254_v53 = vpop.permute.xlu1 %7253 }
 0xbf8   : > { %v7406_v5 = vpop.permute.xlu1 %7405 }
 0xbf9   : > { %v7411_v50 = vsel %vm1226_vm3, %v7406_v5, 0 }
 0xbfb   : > { %v12211_v31 = vpop.eup %12210 }
 0xbfc   : > { %v6257_v58 = vmul.f32 %v12211_v31, %v14528_v49  ;;  %v7404_v49 = vpop.permute.xlu0 %7403  ;;  %v7456_v57 = vpop.permute.xlu1 %7455 }
 0xbfd   : > { %v7461_v11 = vsel %vm1226_vm3, %v7456_v57, 0 }
 0xbfe   : > { %v6274_v8 = vpack.c.bf16 %v6257_v58, %v6257_v58 }
 0xc00   : > { %11564 = vmatmul.mubr.msk.bf16.vlgmr.msra.gmra.mrb[240].mxu0 %vm1226_vm3, %v6274_v8  ;;  %v7454_v7 = vpop.permute.xlu0 %7453  ;;  %v7506_v63 = vpop.permute.xlu1 %7505 }
 0xc01   : > { %11606 = vmatpush3.bf16.xpose.msra.mxu0 %v7261_v30  ;;  %11607 = vmatprep.mubr.msk.bf16.mxu0 %vm12346_vm2, %v15725_v22  ;;  %v7511_v9 = vsel %vm1226_vm3, %v7506_v63, 0 }
 0xc02   : > { %11611 = vmatprep.subr.bf16.mxu0 %v15725_v22 }
 0xc04   : > { %v7504_v32 = vpop.permute.xlu0 %7503  ;;  %v7556_v59 = vpop.permute.xlu1 %7555 }
 0xc05   : > { %v7561_v4 = vsel %vm1226_vm3, %v7556_v59, 0 }
 0xc08   : > { %11608 = vmatmul.mubr.msk.bf16.vlgmr.msra.gmra.mrb[244].mxu0 %vm1226_vm3, %v7254_v53  ;;  %v7554_v26 = vpop.permute.xlu0 %7553  ;;  %v7606_v12 = vpop.permute.xlu1 %7605 }
 0xc09   : > { %11612 = vmatpush3.bf16.xpose.msra.mxu0 %v7311_v41  ;;  %11613 = vmatprep.mubr.msk.bf16.mxu0 %vm12346_vm2, %v15725_v22  ;;  %v7611_v46 = vsel %vm1226_vm3, %v7606_v12, 0 }
 0xc0a   : > { %11617 = vmatprep.subr.bf16.mxu0 %v15725_v22 }
 0xc0c   : > { %v7604_v19 = vpop.permute.xlu0 %7603  ;;  %v7656_v27 = vpop.permute.xlu1 %7655 }
 0xc0d   : > { %v7661_v57 = vsel %vm1226_vm3, %v7656_v27, 0 }
 0xc10   : > { %11614 = vmatmul.mubr.msk.bf16.vlgmr.msra.gmra.mrb[248].mxu0 %vm1226_vm3, %v7304_v33  ;;  %v7706_v25 = vpop.permute.xlu0 %7705 }
 0xc11   : > { %11618 = vmatpush3.bf16.xpose.msra.mxu0 %v7361_v54  ;;  %11619 = vmatprep.mubr.msk.bf16.mxu0 %vm12346_vm2, %v15725_v22  ;;  %v7711_v55 = vsel %vm1226_vm3, %v7706_v25, 0 }
 0xc12   : > { %11623 = vmatprep.subr.bf16.mxu0 %v15725_v22 }
 0xc14   : > { %v14705_v33 = vpop.permute.xlu0 %7703 }
 0xc18   : > { %11620 = vmatmul.mubr.msk.bf16.vlgmr.msra.gmra.mrb[252].mxu0 %vm1226_vm3, %v7354_v51 }
 0xc19   : > { %11624 = vmatpush3.bf16.xpose.msra.mxu0 %v7411_v50  ;;  %11625 = vmatprep.mubr.msk.bf16.mxu0 %vm12346_vm2, %v15725_v22 }
 0xc1a   : > { %11629 = vmatprep.subr.bf16.mxu0 %v15725_v22 }
 0xc20   : > { %11626 = vmatmul.mubr.msk.bf16.vlgmr.msra.gmra.mrb[0].mxu0 %vm1226_vm3, %v7404_v49  ;;  %v14715_v49 = vpop.permute.xlu0 %7805 }
 0xc21   : > { %11630 = vmatpush3.bf16.xpose.msra.mxu0 %v7461_v11  ;;  %11631 = vmatprep.mubr.msk.bf16.mxu0 %vm12346_vm2, %v15725_v22 }
 0xc22   : > { %11635 = vmatprep.subr.bf16.mxu0 %v15725_v22 }
 0xc28   : > { %11632 = vmatmul.mubr.msk.bf16.vlgmr.msra.gmra.mrb[4].mxu0 %vm1226_vm3, %v7454_v7 }
 0xc29   : > { %11636 = vmatpush3.bf16.xpose.msra.mxu0 %v7511_v9  ;;  %11637 = vmatprep.mubr.msk.bf16.mxu0 %vm12346_vm2, %v15725_v22 }
 0xc2a   : > { %11641 = vmatprep.subr.bf16.mxu0 %v15725_v22 }
 0xc2d   : > { %v6317_v61 = vpop.f32.mrb[208].mxu0 }
 0xc2e   : > { %v7091_v6 = vpack.c.bf16 %v14620_v16, %v6317_v61  ;;  %v11469_v44 = vpop.f32.mrb[209].mxu0  ;;  %v6653_v21 = vpop.f32.mrb[252].mxu1 }
 0xc2f   : > { %v6320_v39 = vpop.f32.mrb[210].mxu0  ;;  %v11511_v42 = vpop.f32.mrb[253].mxu1 }
 0xc30   : > { %v11470_v35 = vpop.f32.mrb[211].mxu0  ;;  %11570 = vmatmul.mubr.msk.bf16.vlgmr.msra.gmra.mrb[16].mxu1 %vm1226_vm3, %v7091_v6  ;;  %11638 = vmatmul.mubr.msk.bf16.vlgmr.msra.gmra.mrb[8].mxu0 %vm1226_vm3, %v7504_v32  ;;  %v6656_v1 = vpop.f32.mrb[254].mxu1 }
 0xc31   : > { %11642 = vmatpush3.bf16.xpose.msra.mxu0 %v7561_v4  ;;  %11660 = vmatpush3.bf16.xpose.msra.mxu1 %v7711_v55  ;;  %v11512_v31 = vpop.f32.mrb[255].mxu1  ;;  %v7654_v16 = vpop.permute.xlu1 %7653 }
 0xc32   : > { %11573 = vmatprep.mubr.msk.bf16.mxu1 %vm12346_vm2, %v15725_v22  ;;  %11643 = vmatprep.mubr.msk.bf16.mxu0 %vm12346_vm2, %v15725_v22  ;;  %v14721_v32 = vpop.permute.xlu0 %7803 }
 0xc33   : > { %11647 = vmatprep.subr.bf16.mxu0 %v15725_v22  ;;  %11671 = vmatprep.subr.bf16.mxu1 %v15725_v22 }
 0xc35   : > { %v6413_v58 = vpop.f32.mrb[212].mxu0  ;;  %v7756_v41 = vpop.permute.xlu1 %7755 }
 0xc36   : > { %v7092_v8 = vpack.c.bf16 %v14638_v40, %v6413_v58  ;;  %v11481_v30 = vpop.f32.mrb[213].mxu0  ;;  %v14729_v11 = vpop.permute.xlu0 %7905  ;;  %v7761_v12 = vsel %vm1226_vm3, %v7756_v41, 0 }
 0xc37   : > { %v6416_v53 = vpop.f32.mrb[214].mxu0 }
 0xc38   : > { %11644 = vmatmul.mubr.msk.bf16.vlgmr.msra.gmra.mrb[12].mxu0 %vm1226_vm3, %v7554_v26  ;;  %v11482_v51 = vpop.f32.mrb[215].mxu0  ;;  %11574 = vmatmul.mubr.msk.bf16.gmra.mrb[20].mxu1 %vm1226_vm3, %v7092_v8 }
 0xc39   : > { %11648 = vmatpush3.bf16.xpose.msra.mxu0 %v7611_v46  ;;  %11577 = vmatprep.mubr.msk.bf16.mxu1 %vm12346_vm2, %v15725_v22  ;;  %v7754_v5 = vpop.permute.xlu1 %7753 }
 0xc3a   : > { %11649 = vmatprep.mubr.msk.bf16.mxu0 %vm12346_vm2, %v15725_v22  ;;  %11653 = vmatprep.subr.bf16.mxu0 %v15725_v22  ;;  %v14739_v61 = vpop.permute.xlu0 %7903 }
 0xc3d   : > { %v6509_v40 = vpop.f32.mrb[216].mxu0 }
 0xc3e   : > { %v7093_v54 = vpack.c.bf16 %v14655_v17, %v6509_v40  ;;  %v11493_v7 = vpop.f32.mrb[217].mxu0  ;;  %v7856_v17 = vpop.permute.xlu1 %7855 }
 0xc3f   : > { %v6512_v50 = vpop.f32.mrb[218].mxu0  ;;  %v7861_v6 = vsel %vm1226_vm3, %v7856_v17, 0 }
 0xc40   : > { %11650 = vmatmul.mubr.msk.bf16.vlgmr.msra.gmra.mrb[16].mxu0 %vm1226_vm3, %v7604_v19  ;;  %v11494_v63 = vpop.f32.mrb[219].mxu0  ;;  %11578 = vmatmul.mubr.msk.bf16.gmra.mrb[24].mxu1 %vm1226_vm3, %v7093_v54 }
 0xc41   : > { %11654 = vmatpush3.bf16.xpose.msra.mxu0 %v7661_v57  ;;  %11581 = vmatprep.mubr.msk.bf16.mxu1 %vm12346_vm2, %v15725_v22 }
 0xc42   : > { %11655 = vmatprep.mubr.msk.bf16.mxu0 %vm12346_vm2, %v15725_v22  ;;  %11665 = vmatprep.subr.bf16.mxu0 %v15725_v22  ;;  %v7854_v27 = vpop.permute.xlu1 %7853 }
 0xc45   : > { %v6605_v26 = vpop.f32.mrb[220].mxu0 }
 0xc46   : > { %v7094_v59 = vpack.c.bf16 %v6653_v21, %v6605_v26  ;;  %v11505_v19 = vpop.f32.mrb[221].mxu0  ;;  %v7956_v44 = vpop.permute.xlu1 %7955 }
 0xc47   : > { %v6608_v9 = vpop.f32.mrb[222].mxu0  ;;  %v14746_v21 = vpop.permute.xlu0 %8005  ;;  %v7961_v42 = vsel %vm1226_vm3, %v7956_v44, 0 }
 0xc48   : > { %11656 = vmatmul.mubr.msk.bf16.vlgmr.msra.gmra.mrb[20].mxu0 %vm1226_vm3, %v7654_v16  ;;  %v11506_v25 = vpop.f32.mrb[223].mxu0  ;;  %11582 = vmatmul.mubr.msk.bf16.gmra.mrb[28].mxu1 %vm1226_vm3, %v7094_v59 }
 0xc49   : > { %11666 = vmatpush3.bf16.xpose.msra.mxu0 %v7761_v12  ;;  %11667 = vmatprep.mubr.msk.bf16.mxu0 %vm12346_vm2, %v15725_v22 }
 0xc4a   : > { %11677 = vmatprep.subr.bf16.mxu0 %v15725_v22  ;;  %11585 = vmatprep.mubr.msk.bf16.mxu1 %vm12346_vm2, %v15725_v22  ;;  %v7954_v39 = vpop.permute.xlu1 %7953 }
 0xc4b   : > { %v14750_v55 = vpop.permute.xlu0 %8003 }
 0xc4e   : > { %v8056_v4 = vpop.permute.xlu1 %8055 }
 0xc4f   : > { %v8054_v1 = vpop.permute.xlu0 %8053  ;;  %v8061_v16 = vsel %vm1226_vm3, %v8056_v4, 0 }
 0xc50   : > { %11668 = vmatmul.mubr.msk.bf16.vlgmr.msra.gmra.mrb[24].mxu0 %vm1226_vm3, %v7754_v5 }
 0xc51   : > { %11678 = vmatpush3.bf16.xpose.msra.mxu0 %v7861_v6  ;;  %11679 = vmatprep.mubr.msk.bf16.mxu0 %vm12346_vm2, %v15725_v22 }
 0xc52   : > { %11689 = vmatprep.subr.bf16.mxu0 %v15725_v22 }
 0xc53   : > { %v8356_v41 = vpop.permute.xlu0 %8355 }
 0xc54   : > { %v8361_v54 = vsel %vm2250_vm4, %v8356_v41, 0 }
 0xc58   : > { %11680 = vmatmul.mubr.msk.bf16.vlgmr.msra.gmra.mrb[28].mxu0 %vm1226_vm3, %v7854_v27 }
 0xc59   : > { %11690 = vmatpush3.bf16.xpose.msra.mxu0 %v7961_v42  ;;  %11691 = vmatprep.mubr.msk.bf16.mxu0 %vm12346_vm2, %v15725_v22 }
 0xc5a   : > { %11701 = vmatprep.subr.bf16.mxu0 %v15725_v22 }
 0xc5e   : > { %v6701_v35 = vpop.f32.mrb[224].mxu0 }
 0xc5f   : > { %v11517_v31 = vpop.f32.mrb[225].mxu0 }
 0xc60   : > { %v6704_v58 = vpop.f32.mrb[226].mxu0  ;;  %11692 = vmatmul.mubr.msk.bf16.vlgmr.msra.gmra.mrb[32].mxu0 %vm1226_vm3, %v7954_v39 }
 0xc61   : > { %11702 = vmatpush3.bf16.xpose.msra.mxu0 %v8061_v16  ;;  %v11518_v8 = vpop.f32.mrb[227].mxu0  ;;  %11703 = vmatprep.mubr.msk.bf16.mxu0 %vm12346_vm2, %v15725_v22 }
 0xc62   : > { %11713 = vmatprep.subr.bf16.mxu0 %v15725_v22 }
 0xc63   : > { %v6749_v30 = vpop.f32.mrb[0].mxu1 }
 0xc64   : > { %v7095_v46 = vpack.c.bf16 %v6749_v30, %v6701_v35  ;;  %v11523_v53 = vpop.f32.mrb[1].mxu1 }
 0xc65   : > { %v6752_v51 = vpop.f32.mrb[2].mxu1 }
 0xc66   : > { %v11524_v40 = vpop.f32.mrb[3].mxu1  ;;  %11586 = vmatmul.mubr.msk.bf16.gmra.mrb[32].mxu1 %vm1226_vm3, %v7095_v46 }
 0xc67   : > { %v6797_v5 = vpop.f32.mrb[228].mxu0  ;;  %11589 = vmatprep.mubr.msk.bf16.mxu1 %vm12346_vm2, %v15725_v22 }
 0xc68   : > { %v11529_v7 = vpop.f32.mrb[229].mxu0  ;;  %11704 = vmatmul.mubr.msk.bf16.vlgmr.msra.gmra.mrb[36].mxu0 %vm1226_vm3, %v8054_v1 }
 0xc69   : > { %11714 = vmatpush3.bf16.msra.mxu0 %v8361_v54  ;;  %v6800_v57 = vpop.f32.mrb[230].mxu0  ;;  %11715 = vmatprep.mubr.msk.bf16.mxu0 %vm12346_vm2, %v15725_v22 }
 0xc6a   : > { %v11530_v50 = vpop.f32.mrb[231].mxu0  ;;  %11725 = vmatprep.subr.bf16.mxu0 %v15725_v22 }
 0xc6b   : > { %v6845_v63 = vpop.f32.mrb[4].mxu1 }
 0xc6c   : > { %v7096_v17 = vpack.c.bf16 %v6845_v63, %v6797_v5  ;;  %v11535_v26 = vpop.f32.mrb[5].mxu1 }
 0xc6d   : > { %v6848_v59 = vpop.f32.mrb[6].mxu1 }
 0xc6e   : > { %v11536_v19 = vpop.f32.mrb[7].mxu1  ;;  %11590 = vmatmul.mubr.msk.bf16.gmra.mrb[36].mxu1 %vm1226_vm3, %v7096_v17  ;;  %v7811_v17 = vsel %vm1226_vm3, %v14715_v49, 0 }
 0xc6f   : > { %v6893_v12 = vpop.f32.mrb[232].mxu0  ;;  %11593 = vmatprep.mubr.msk.bf16.mxu1 %vm12346_vm2, %v15725_v22 }
 0xc70   : > { %v11541_v9 = vpop.f32.mrb[233].mxu0 }
 0xc71   : > { %v6896_v25 = vpop.f32.mrb[234].mxu0 }
 0xc72   : > { %v11542_v27 = vpop.f32.mrb[235].mxu0  ;;  %v7911_v25 = vsel %vm1226_vm3, %v14729_v11, 0 }
 0xc73   : > { %v6941_v6 = vpop.f32.mrb[8].mxu1 }
 0xc74   : > { %v7097_v44 = vpack.c.bf16 %v6941_v6, %v6893_v12  ;;  %v11547_v39 = vpop.f32.mrb[9].mxu1 }
 0xc75   : > { %v6944_v42 = vpop.f32.mrb[10].mxu1 }
 0xc76   : > { %v11548_v4 = vpop.f32.mrb[11].mxu1  ;;  %11594 = vmatmul.mubr.msk.bf16.gmra.mrb[40].mxu1 %vm1226_vm3, %v7097_v44  ;;  %v8011_v42 = vsel %vm1226_vm3, %v14746_v21, 0 }
 0xc77   : > { %v6989_v35 = vpop.f32.mrb[236].mxu0  ;;  %11597 = vmatprep.mubr.msk.bf16.mxu1 %vm12346_vm2, %v15725_v22 }
 0xc78   : > { %v11553_v1 = vpop.f32.mrb[237].mxu0 }
 0xc79   : > { %v6992_v31 = vpop.f32.mrb[238].mxu0 }
 0xc7a   : > { %v11554_v16 = vpop.f32.mrb[239].mxu0 }
 0xc7b   : > { %v7037_v58 = vpop.f32.mrb[12].mxu1 }
 0xc7c   : > { %v7098_v8 = vpack.c.bf16 %v7037_v58, %v6989_v35  ;;  %v11559_v30 = vpop.f32.mrb[13].mxu1  ;;  %v8308_v35 = vpop.permute.xlu1 %8307 }
 0xc7d   : > { %v7040_v46 = vpop.f32.mrb[14].mxu1  ;;  %v8313_v58 = vsel %vm2250_vm4, %v8308_v35, 0 }
 0xc7e   : > { %v11560_v53 = vpop.f32.mrb[15].mxu1  ;;  %11598 = vmatmul.mubr.msk.bf16.gmra.mrb[44].mxu1 %vm1226_vm3, %v7098_v8 }
 0xc7f   : > { %11601 = vmatprep.mubr.msk.bf16.mxu1 %vm12346_vm2, %v15725_v22 }
 0xcd3   : > { %v7085_v41 = vpop.f32.mrb[240].mxu0 }
 0xcd4   : > { %v7099_v51 = vpack.c.bf16 %v7085_v41, %v7085_v41  ;;  %v11565_v40 = vpop.f32.mrb[241].mxu0 }
 0xcd5   : > { %v7088_v5 = vpop.f32.mrb[242].mxu0 }
 0xcd6   : > { %v11566_v54 = vpop.f32.mrb[243].mxu0  ;;  %11602 = vmatmul.mubr.msk.bf16.gmra.mrb[48].mxu1 %vm1226_vm3, %v7099_v51 }
 0xcd7   : > { %11661 = vmatprep.mubr.msk.bf16.mxu1 %vm12346_vm2, %v15725_v22 }
 0xcdb   : > { %v7297_v7 = vpop.f32.mrb[244].mxu0 }
 0xcdc   : > { %v14781_v57 = vadd.f32 %v7297_v7, %v15737_v10  ;;  %v11609_v50 = vpop.f32.mrb[245].mxu0 }
 0xcdd   : > { %v7300_v63 = vpop.f32.mrb[246].mxu0 }
 0xcde   : > { %v11610_v26 = vpop.f32.mrb[247].mxu0  ;;  %11662 = vmatmul.mubr.msk.bf16.vlgmr.msra.gmra.mrb[52].mxu1 %vm1226_vm3, %v14705_v33  ;;  %v8103_v59 = vsel %vm1226_vm3, %v14781_v57, -inf }
 0xcdf   : > { %11672 = vmatpush3.bf16.xpose.msra.mxu1 %v7811_v17  ;;  %8104 = vmax.xlane.f32.xlu1 %v8103_v59 }
 0xce0   : > { %11673 = vmatprep.mubr.msk.bf16.mxu1 %vm12346_vm2, %v15725_v22  ;;  %11683 = vmatprep.subr.bf16.mxu1 %v15725_v22 }
 0xce3   : > { %v7347_v19 = vpop.f32.mrb[248].mxu0 }
 0xce4   : > { %v14793_v12 = vadd.f32 %v7347_v19, %v15737_v10  ;;  %v11615_v9 = vpop.f32.mrb[249].mxu0 }
 0xce5   : > { %v7350_v49 = vpop.f32.mrb[250].mxu0 }
 0xce6   : > { %v11616_v33 = vpop.f32.mrb[251].mxu0  ;;  %11674 = vmatmul.mubr.msk.bf16.vlgmr.msra.gmra.mrb[56].mxu1 %vm1226_vm3, %v14721_v32  ;;  %v8106_v27 = vsel %vm1226_vm3, %v14793_v12, -inf }
 0xce7   : > { %11684 = vmatpush3.bf16.xpose.msra.mxu1 %v7911_v25  ;;  %8107 = vmax.xlane.f32.xlu0 %v8106_v27 }
 0xce8   : > { %11685 = vmatprep.mubr.msk.bf16.mxu1 %vm12346_vm2, %v15725_v22  ;;  %11695 = vmatprep.subr.bf16.mxu1 %v15725_v22 }
 0xceb   : > { %v7397_v6 = vpop.f32.mrb[252].mxu0 }
 0xcec   : > { %v14805_v44 = vadd.f32 %v7397_v6, %v15737_v10  ;;  %v11621_v39 = vpop.f32.mrb[253].mxu0 }
 0xced   : > { %v7400_v11 = vpop.f32.mrb[254].mxu0 }
 0xcee   : > { %v11622_v32 = vpop.f32.mrb[255].mxu0  ;;  %11686 = vmatmul.mubr.msk.bf16.vlgmr.msra.gmra.mrb[60].mxu1 %vm1226_vm3, %v14739_v61  ;;  %v8109_v4 = vsel %vm1226_vm3, %v14805_v44, -inf }
 0xcef   : > { %11696 = vmatpush3.bf16.xpose.msra.mxu1 %v8011_v42  ;;  %8110 = vmax.xlane.f32.xlu0 %v8109_v4 }
 0xcf0   : > { %11697 = vmatprep.mubr.msk.bf16.mxu1 %vm12346_vm2, %v15725_v22  ;;  %11707 = vmatprep.subr.bf16.mxu1 %v15725_v22 }
 0xcf3   : > { %v7447_v1 = vpop.f32.mrb[0].mxu0 }
 0xcf4   : > { %v14817_v31 = vadd.f32 %v7447_v1, %v15737_v10  ;;  %v11627_v21 = vpop.f32.mrb[1].mxu0 }
 0xcf5   : > { %v7450_v16 = vpop.f32.mrb[2].mxu0 }
 0xcf6   : > { %v11628_v61 = vpop.f32.mrb[3].mxu0  ;;  %11698 = vmatmul.mubr.msk.bf16.vlgmr.msra.gmra.mrb[64].mxu1 %vm1226_vm3, %v14750_v55  ;;  %v8112_v8 = vsel %vm1226_vm3, %v14817_v31, -inf }
 0xcf7   : > { %11708 = vmatpush3.bf16.msra.mxu1 %v8313_v58  ;;  %8113 = vmax.xlane.f32.xlu1 %v8112_v8 }
 0xcf8   : > { %11709 = vmatprep.mubr.msk.bf16.mxu1 %vm12346_vm2, %v15725_v22  ;;  %11719 = vmatprep.subr.bf16.mxu1 %v15725_v22 }
 0xcfb   : > { %v7497_v30 = vpop.f32.mrb[4].mxu0 }
 0xcfc   : > { %v14828_v46 = vadd.f32 %v7497_v30, %v15737_v10  ;;  %v11633_v53 = vpop.f32.mrb[5].mxu0 }
 0xcfd   : > { %v7500_v41 = vpop.f32.mrb[6].mxu0 }
 0xcfe   : > { %v11634_v51 = vpop.f32.mrb[7].mxu0  ;;  %v8115_v55 = vsel %vm1226_vm3, %v14828_v46, -inf }
 0xcff   : > { %8116 = vmax.xlane.f32.xlu0 %v8115_v55 }
 0xd03   : > { %v7166_v40 = vpop.f32.mrb[16].mxu1  ;;  %v7547_v5 = vpop.f32.mrb[8].mxu0 }
 0xd04   : > { %v14833_v54 = vadd.f32 %v7166_v40, %v14217_v34  ;;  %v14836_v7 = vadd.f32 %v7547_v5, %v15737_v10  ;;  %v11571_v50 = vpop.f32.mrb[17].mxu1  ;;  %v11639_v63 = vpop.f32.mrb[9].mxu0 }
 0xd05   : > { %v7169_v17 = vpop.f32.mrb[18].mxu1  ;;  %v7550_v26 = vpop.f32.mrb[10].mxu0 }
 0xd06   : > { %v14839_v59 = vadd.f32 %v7169_v17, %v14223_v43  ;;  %v11572_v19 = vpop.f32.mrb[19].mxu1  ;;  %v11640_v9 = vpop.f32.mrb[11].mxu0  ;;  %v8118_v49 = vsel %vm1226_vm3, %v14836_v7, -inf }
 0xd07   : > { %8119 = vmax.xlane.f32.xlu1 %v8118_v49 }
 0xd0b   : > { %v7597_v25 = vpop.f32.mrb[12].mxu0  ;;  %v7174_v33 = vpop.f32.mrb[20].mxu1 }
 0xd0c   : > { %v14844_v34 = vadd.f32 %v7597_v25, %v15737_v10  ;;  %v11645_v27 = vpop.f32.mrb[13].mxu0  ;;  %v14847_v6 = vadd.f32 %v7174_v33, %v14228_v56  ;;  %v11575_v39 = vpop.f32.mrb[21].mxu1 }
 0xd0d   : > { %v7600_v11 = vpop.f32.mrb[14].mxu0  ;;  %v7177_v42 = vpop.f32.mrb[22].mxu1 }
 0xd0e   : > { %v11646_v43 = vpop.f32.mrb[15].mxu0  ;;  %v8121_v32 = vsel %vm1226_vm3, %v14844_v34, -inf  ;;  %v14852_v4 = vadd.f32 %v7177_v42, %v14236_v45  ;;  %v11576_v35 = vpop.f32.mrb[23].mxu1 }
 0xd0f   : > { %8122 = vmax.xlane.f32.xlu0 %v8121_v32 }
 0xd13   : > { %v7647_v1 = vpop.f32.mrb[16].mxu0  ;;  %v7182_v21 = vpop.f32.mrb[24].mxu1 }
 0xd14   : > { %v14855_v16 = vadd.f32 %v7647_v1, %v15737_v10  ;;  %v11651_v58 = vpop.f32.mrb[17].mxu0  ;;  %v14858_v56 = vadd.f32 %v7182_v21, %v14243_v48  ;;  %v11579_v61 = vpop.f32.mrb[25].mxu1 }
 0xd15   : > { %v7650_v8 = vpop.f32.mrb[18].mxu0  ;;  %v7185_v30 = vpop.f32.mrb[26].mxu1 }
 0xd16   : > { %v11652_v53 = vpop.f32.mrb[19].mxu0  ;;  %v8124_v41 = vsel %vm1226_vm3, %v14855_v16, -inf  ;;  %v14863_v45 = vadd.f32 %v7185_v30, %v14251_v38  ;;  %v11580_v51 = vpop.f32.mrb[27].mxu1 }
 0xd17   : > { %8125 = vmax.xlane.f32.xlu1 %v8124_v41 }
 0xd1b   : > { %v7697_v55 = vpop.f32.mrb[20].mxu0  ;;  %v7190_v40 = vpop.f32.mrb[28].mxu1 }
 0xd1c   : > { %v14866_v5 = vadd.f32 %v7697_v55, %v15737_v10  ;;  %v11657_v50 = vpop.f32.mrb[21].mxu0  ;;  %v14869_v48 = vadd.f32 %v7190_v40, %v14256_v0  ;;  %v11583_v63 = vpop.f32.mrb[29].mxu1 }
 0xd1d   : > { %v7700_v17 = vpop.f32.mrb[22].mxu0  ;;  %v7193_v26 = vpop.f32.mrb[30].mxu1 }
 0xd1e   : > { %v11658_v19 = vpop.f32.mrb[23].mxu0  ;;  %v8127_v9 = vsel %vm1226_vm3, %v14866_v5, -inf  ;;  %v14874_v38 = vadd.f32 %v7193_v26, %v14262_v15  ;;  %v11584_v49 = vpop.f32.mrb[31].mxu1 }
 0xd1f   : > { %8128 = vmax.xlane.f32.xlu0 %v8127_v9 }
 0xd23   : > { %v7797_v25 = vpop.f32.mrb[24].mxu0 }
 0xd24   : > { %v14877_v33 = vadd.f32 %v7797_v25, %v15737_v10  ;;  %v11669_v27 = vpop.f32.mrb[25].mxu0 }
 0xd25   : > { %v7800_v39 = vpop.f32.mrb[26].mxu0 }
 0xd26   : > { %v11670_v0 = vpop.f32.mrb[27].mxu0  ;;  %v8133_v11 = vsel %vm1226_vm3, %v14877_v33, -inf }
 0xd27   : > { %8134 = vmax.xlane.f32.xlu0 %v8133_v11 }
 0xd2b   : > { %v7897_v42 = vpop.f32.mrb[28].mxu0 }
 0xd2c   : > { %v14882_v43 = vadd.f32 %v7897_v42, %v15737_v10  ;;  %v11681_v32 = vpop.f32.mrb[29].mxu0 }
 0xd2d   : > { %v7900_v15 = vpop.f32.mrb[30].mxu0 }
 0xd2e   : > { %v11682_v35 = vpop.f32.mrb[31].mxu0  ;;  %v8139_v1 = vsel %vm1226_vm3, %v14882_v43, -inf }
 0xd2f   : > { %8140 = vmax.xlane.f32.xlu0 %v8139_v1  ;;  %v15742_v1 = vld [vmem:[#allocation6_spill] sm:$0xff] }
 0xd33   : > { %v7997_v21 = vpop.f32.mrb[32].mxu0 }
 0xd34   : > { %v14887_v58 = vadd.f32 %v7997_v21, %v15737_v10  ;;  %v11693_v61 = vpop.f32.mrb[33].mxu0 }
 0xd35   : > { %v8000_v8 = vpop.f32.mrb[34].mxu0 }
 0xd36   : > { %v11694_v30 = vpop.f32.mrb[35].mxu0  ;;  %v8145_v53 = vsel %vm1226_vm3, %v14887_v58, -inf }
 0xd37   : > { %8146 = vmax.xlane.f32.xlu0 %v8145_v53  ;;  %v15743_v30 = vld [vmem:[#allocation5_spill] sm:$0xff] }
 0xd39   : > { %v7198_v41 = vpop.f32.mrb[32].mxu1 }
 0xd3a   : > { %v14892_v51 = vadd.f32 %v7198_v41, %v14267_v52  ;;  %v11587_v55 = vpop.f32.mrb[33].mxu1 }
 0xd3b   : > { %v7201_v40 = vpop.f32.mrb[34].mxu1  ;;  %v8097_v50 = vpop.f32.mrb[36].mxu0  ;;  %v15744_v55 = vld [vmem:[#allocation7_spill] sm:$0xff] }
 0xd3c   : > { %v14895_v63 = vadd.f32 %v7201_v40, %v14270_v36  ;;  %v14898_v17 = vadd.f32 %v8097_v50, %v15737_v10  ;;  %v11588_v26 = vpop.f32.mrb[35].mxu1  ;;  %v11705_v19 = vpop.f32.mrb[37].mxu0 }
 0xd3d   : > { %v8100_v9 = vpop.f32.mrb[38].mxu0  ;;  %v14920_v50 = vpop.permute.xlu1 %8403 }
 0xd3e   : > { %v11706_v49 = vpop.f32.mrb[39].mxu0  ;;  %v8151_v25 = vsel %vm1226_vm3, %v14898_v17, -inf  ;;  %v14924_v26 = vpop.permute.xlu0 %8451 }
 0xd3f   : > { %8152 = vmax.xlane.f32.xlu0 %v8151_v25 }
 0xd41   : > { %v7206_v27 = vpop.f32.mrb[36].mxu1 }
 0xd42   : > { %v14903_v52 = vadd.f32 %v7206_v27, %v14273_v47  ;;  %v11591_v39 = vpop.f32.mrb[37].mxu1  ;;  %v14927_v25 = vpop.permute.xlu0 %8547 }
 0xd43   : > { %v7209_v0 = vpop.f32.mrb[38].mxu1 }
 0xd44   : > { %v14906_v36 = vadd.f32 %v7209_v0, %v14276_v23  ;;  %v11592_v11 = vpop.f32.mrb[39].mxu1 }
 0xd49   : > { %v7214_v42 = vpop.f32.mrb[40].mxu1 }
 0xd4a   : > { %v14909_v32 = vadd.f32 %v7214_v42, %v14279_v60  ;;  %v11595_v15 = vpop.f32.mrb[41].mxu1  ;;  %v14922_v60 = vpop.permute.xlu1 %8499 }
 0xd4b   : > { %v7217_v35 = vpop.f32.mrb[42].mxu1 }
 0xd4c   : > { %v14912_v21 = vadd.f32 %v7217_v35, %v15742_v1  ;;  %v11596_v61 = vpop.f32.mrb[43].mxu1 }
 0xd51   : > { %v7222_v8 = vpop.f32.mrb[44].mxu1 }
 0xd52   : > { %v14915_v47 = vadd.f32 %v7222_v8, %v15743_v30  ;;  %v11599_v53 = vpop.f32.mrb[45].mxu1 }
 0xd53   : > { %v7225_v41 = vpop.f32.mrb[46].mxu1 }
 0xd54   : > { %v14918_v23 = vadd.f32 %v7225_v41, %v15744_v55  ;;  %v11600_v40 = vpop.f32.mrb[47].mxu1 }
 0xd6c   : > { %v8105_v19 = vpop.xlane.xlu1 %8104 }
 0xd6d   : > { %v8154_v9 = vsub.f32 %v14781_v57, %v8105_v19 }
 0xd6f   : > { %v8171_v49 = vmul.f32 1.442695, %v8154_v9 }
 0xd71   : > { %12212 = vpow2.f32 %v8171_v49 }
 0xd74   : > { %v8108_v27 = vpop.xlane.xlu0 %8107 }
 0xd75   : > { %v8155_v39 = vsub.f32 %v14793_v12, %v8108_v27 }
 0xd77   : > { %v8173_v0 = vmul.f32 1.442695, %v8155_v39 }
 0xd79   : > { %12214 = vpow2.f32 %v8173_v0 }
 0xd7b   : > { %v14930_v11 = vpop.eup %12212 }
 0xd7c   : > { %v8111_v42 = vpop.xlane.xlu0 %8110  ;;  %v8205_v15 = vsel %vm1226_vm3, %v14930_v11, 0.0 }
 0xd7d   : > { %v8156_v35 = vsub.f32 %v14805_v44, %v8111_v42  ;;  %8206 = vadd.xlane.f32.xlu1 %v8205_v15 }
 0xd7f   : > { %v8175_v1 = vmul.f32 1.442695, %v8156_v35 }
 0xd81   : > { %12216 = vpow2.f32 %v8175_v1 }
 0xd83   : > { %v14935_v57 = vpop.eup %12214 }
 0xd84   : > { %v8114_v61 = vpop.xlane.xlu1 %8113  ;;  %v8208_v8 = vsel %vm1226_vm3, %v14935_v57, 0.0 }
 0xd85   : > { %v8157_v12 = vsub.f32 %v14817_v31, %v8114_v61  ;;  %8209 = vadd.xlane.f32.xlu0 %v8208_v8  ;;  %v15745_v61 = vld [vmem:[#allocation4_spill] sm:$0xff] }
 0xd87   : > { %v8177_v30 = vmul.f32 1.442695, %v8157_v12 }
 0xd89   : > { %12218 = vpow2.f32 %v8177_v30 }
 0xd8b   : > { %v14940_v53 = vpop.eup %12216 }
 0xd8c   : > { %v8117_v41 = vpop.xlane.xlu0 %8116  ;;  %v8211_v44 = vsel %vm1226_vm3, %v14940_v53, 0.0 }
 0xd8d   : > { %v8158_v55 = vsub.f32 %v14828_v46, %v8117_v41  ;;  %8212 = vadd.xlane.f32.xlu1 %v8211_v44 }
 0xd8f   : > { %v8179_v40 = vmul.f32 1.442695, %v8158_v55 }
 0xd91   : > { %12220 = vpow2.f32 %v8179_v40 }
 0xd93   : > { %v14945_v19 = vpop.eup %12218 }
 0xd94   : > { %v8120_v9 = vpop.xlane.xlu1 %8119  ;;  %v8214_v31 = vsel %vm1226_vm3, %v14945_v19, 0.0 }
 0xd95   : > { %v8159_v49 = vsub.f32 %v14836_v7, %v8120_v9  ;;  %8215 = vadd.xlane.f32.xlu0 %v8214_v31 }
 0xd97   : > { %v8181_v27 = vmul.f32 1.442695, %v8159_v49 }
 0xd99   : > { %12222 = vpow2.f32 %v8181_v27 }
 0xd9b   : > { %v14950_v39 = vpop.eup %12220 }
 0xd9c   : > { %v8123_v0 = vpop.xlane.xlu0 %8122  ;;  %v8217_v46 = vsel %vm1226_vm3, %v14950_v39, 0.0 }
 0xd9d   : > { %v8160_v42 = vsub.f32 %v14844_v34, %v8123_v0  ;;  %8218 = vadd.xlane.f32.xlu1 %v8217_v46 }
 0xd9f   : > { %v8183_v15 = vmul.f32 1.442695, %v8160_v42 }
 0xda1   : > { %12224 = vpow2.f32 %v8183_v15 }
 0xda3   : > { %v14955_v35 = vpop.eup %12222 }
 0xda4   : > { %v8220_v1 = vsel %vm1226_vm3, %v14955_v35, 0.0 }
 0xda5   : > { %8221 = vadd.xlane.f32.xlu0 %v8220_v1  ;;  %v8126_v1 = vpop.xlane.xlu1 %8125 }
 0xda9   : > { %v7230_v7 = vpop.f32.mrb[48].mxu1 }
 0xdaa   : > { %v14960_v8 = vadd.f32 %v7230_v7, %v15745_v61  ;;  %v11603_v12 = vpop.f32.mrb[49].mxu1 }
 0xdab   : > { %v14962_v30 = vpop.eup %12224  ;;  %v7233_v41 = vpop.f32.mrb[50].mxu1 }
 0xdac   : > { %v11604_v44 = vpop.f32.mrb[51].mxu1  ;;  %v8223_v34 = vsel %vm1226_vm3, %v14962_v30, 0.0  ;;  %v8161_v41 = vsub.f32 %v14855_v16, %v8126_v1 }
 0xdad   : > { %8224 = vadd.xlane.f32.xlu1 %v8223_v34 }
 0xdae   : > { %v8185_v34 = vmul.f32 1.442695, %v8161_v41 }
 0xdb0   : > { %12226 = vpow2.f32 %v8185_v34 }
 0xdb1   : > { %v7747_v55 = vpop.f32.mrb[52].mxu1 }
 0xdb2   : > { %v14967_v40 = vadd.f32 %v7747_v55, %v15737_v10  ;;  %v11663_v9 = vpop.f32.mrb[53].mxu1 }
 0xdb3   : > { %v7750_v31 = vpop.f32.mrb[54].mxu1 }
 0xdb4   : > { %v11664_v49 = vpop.f32.mrb[55].mxu1  ;;  %v8130_v27 = vsel %vm1226_vm3, %v14967_v40, -inf }
 0xdb5   : > { %8131 = vmax.xlane.f32.xlu1 %v8130_v27  ;;  %v8129_v27 = vpop.xlane.xlu0 %8128 }
 0xdb9   : > { %v7847_v0 = vpop.f32.mrb[56].mxu1 }
 0xdba   : > { %v11675_v46 = vpop.f32.mrb[57].mxu1 }
 0xdbb   : > { %v7850_v42 = vpop.f32.mrb[58].mxu1  ;;  %8643 = vrot.lane.b32.xlu0 %v12881_v20, %s12357_s30  ;;  %v14976_v46 = vpop.eup %12226  ;;  %v8162_v20 = vsub.f32 %v14866_v5, %v8129_v27 }
 0xdbc   : > { %v11676_v15 = vpop.f32.mrb[59].mxu1  ;;  %v8226_v42 = vsel %vm1226_vm3, %v14976_v46, 0.0 }
 0xdbd   : > { %v8187_v16 = vmul.f32 1.442695, %v8162_v20  ;;  %v8135_v15 = vpop.xlane.xlu0 %8134 }
 0xdbf   : > { %12228 = vpow2.f32 %v8187_v16 }
 0xdc1   : > { %v7947_v7 = vpop.f32.mrb[60].mxu1 }
 0xdc2   : > { %v11687_v61 = vpop.f32.mrb[61].mxu1  ;;  %v14990_v5 = vadd.f32 %v7947_v7, %v15737_v10 }
 0xdc3   : > { %v7950_v12 = vpop.f32.mrb[62].mxu1  ;;  %v14983_v61 = vadd.f32 %v7847_v0, %v15737_v10 }
 0xdc4   : > { %v11688_v44 = vpop.f32.mrb[63].mxu1 }
 0xdc5   : > { %v8136_v12 = vsel %vm1226_vm3, %v14983_v61, -inf }
 0xdc6   : > { %8595 = vrot.lane.b32.xlu1 %v12878_v13, %s12357_s30  ;;  %v8164_v13 = vsub.f32 %v14877_v33, %v8135_v15  ;;  %v8142_v33 = vsel %vm1226_vm3, %v14990_v5, -inf }
 0xdc8   : > { %v8191_v1 = vmul.f32 1.442695, %v8164_v13  ;;  %v8409_v13 = vsel %vm2250_vm4, %v14920_v50, 0  ;;  %v8457_v50 = vsel %vm2250_vm4, %v14924_v26, 0 }
 0xdc9   : > { %v8047_v55 = vpop.f32.mrb[64].mxu1  ;;  %v14987_v41 = vpop.eup %12228 }
 0xdca   : > { %v11699_v9 = vpop.f32.mrb[65].mxu1  ;;  %12230 = vpow2.f32 %v8191_v1  ;;  %v8229_v44 = vsel %vm1226_vm3, %v14987_v41, 0.0  ;;  %v14999_v0 = vadd.f32 %v8047_v55, %v15737_v10 }
 0xdcb   : > { %v8050_v31 = vpop.f32.mrb[66].mxu1 }
 0xdcc   : > { %v11700_v49 = vpop.f32.mrb[67].mxu1  ;;  %v8148_v7 = vsel %vm1226_vm3, %v14999_v0, -inf  ;;  %v8141_v31 = vpop.xlane.xlu0 %8140 }
 0xdcd   : > { %v8166_v15 = vsub.f32 %v14882_v43, %v8141_v31  ;;  %v8505_v31 = vsel %vm2250_vm4, %v14922_v60, 0 }
 0xdd0   : > { %v8147_v49 = vpop.xlane.xlu0 %8146 }
 0xdd4   : > { %v14996_v34 = vpop.eup %12230  ;;  %v15007_v20 = vpop.xlane.xlu0 %8152 }
 0xdd5   : > { %v8235_v9 = vsel %vm1226_vm3, %v14996_v34, 0.0 }
 0xdda   : > { %8227 = vadd.xlane.f32.xlu0 %v8226_v42 }
 0xdea   : > { %8137 = vmax.xlane.f32.xlu1 %v8136_v12  ;;  %v8195_v12 = vmul.f32 1.442695, %v8166_v15 }
 0xdee   : > { %8230 = vadd.xlane.f32.xlu1 %v8229_v44 }
 0xdf2   : > { %8143 = vmax.xlane.f32.xlu1 %v8142_v33 }
 0xdf6   : > { %8236 = vadd.xlane.f32.xlu1 %v8235_v9 }
 0xdfa   : > { %8149 = vmax.xlane.f32.xlu1 %v8148_v7 }
 0xe0a   : > { %v8207_v27 = vpop.xlane.xlu1 %8206 }
 0xe0b   : > { %12232 = vrcp.f32 %v8207_v27  ;;  %8691 = vrot.lane.b32.xlu1 %v12889_v24, %s12357_s30 }
 0xe12   : > { %v8210_v42 = vpop.xlane.xlu0 %8209 }
 0xe13   : > { %12234 = vrcp.f32 %v8210_v42 }
 0xe15   : > { %v12233_v10 = vpop.eup %12232 }
 0xe16   : > { %v8273_v55 = vmul.f32 %v12233_v10, %v14930_v11  ;;  %v8168_v11 = vsub.f32 %v14887_v58, %v8147_v49 }
 0xe18   : > { %v8290_v16 = vpack.c.bf16 %v8273_v55, %v8273_v55  ;;  %v8199_v33 = vmul.f32 1.442695, %v8168_v11  ;;  %v8553_v55 = vsel %vm2250_vm4, %v14927_v25, 0 }
 0xe1a   : > { %11710 = vmatmul.mubr.msk.bf16.vlgmr.msra.gmra.mrb[68].mxu1 %vm1226_vm3, %v8290_v16  ;;  %v8213_v1 = vpop.xlane.xlu1 %8212 }
 0xe1b   : > { %11720 = vmatpush3.bf16.msra.mxu1 %v8409_v13  ;;  %12236 = vrcp.f32 %v8213_v1  ;;  %11721 = vmatprep.mubr.msk.bf16.mxu1 %vm12346_vm2, %v15725_v22 }
 0xe1c   : > { %11731 = vmatprep.subr.bf16.mxu1 %v15725_v22  ;;  %12238 = vpow2.f32 %v8195_v12 }
 0xe1d   : > { %v12235_v24 = vpop.eup %12234 }
 0xe1e   : > { %v8274_v44 = vmul.f32 %v12235_v24, %v14935_v57 }
 0xe20   : > { %v8291_v43 = vpack.c.bf16 %v8274_v44, %v8274_v44 }
 0xe22   : > { %11716 = vmatmul.mubr.msk.bf16.vlgmr.msra.gmra.mrb[40].mxu0 %vm1226_vm3, %v8291_v43  ;;  %v8216_v9 = vpop.xlane.xlu0 %8215 }
 0xe23   : > { %11726 = vmatpush3.bf16.msra.mxu0 %v8457_v50  ;;  %12240 = vrcp.f32 %v8216_v9  ;;  %11727 = vmatprep.mubr.msk.bf16.mxu0 %vm12346_vm2, %v15725_v22 }
 0xe24   : > { %11737 = vmatprep.subr.bf16.mxu0 %v15725_v22  ;;  %12242 = vpow2.f32 %v8199_v33 }
 0xe25   : > { %v12237_v7 = vpop.eup %12236 }
 0xe26   : > { %v8275_v58 = vmul.f32 %v12237_v7, %v14940_v53  ;;  %v15029_v49 = vpop.eup %12238 }
 0xe27   : > { %v8241_v53 = vsel %vm1226_vm3, %v15029_v49, 0.0 }
 0xe28   : > { %v8292_v57 = vpack.c.bf16 %v8275_v58, %v8275_v58 }
 0xe2a   : > { %11722 = vmatmul.mubr.msk.bf16.vlgmr.msra.gmra.mrb[72].mxu1 %vm1226_vm3, %v8292_v57  ;;  %v8219_v26 = vpop.xlane.xlu1 %8218 }
 0xe2b   : > { %11732 = vmatpush3.bf16.msra.mxu1 %v8505_v31  ;;  %12244 = vrcp.f32 %v8219_v26  ;;  %11733 = vmatprep.mubr.msk.bf16.mxu1 %vm12346_vm2, %v15725_v22 }
 0xe2c   : > { %11743 = vmatprep.subr.bf16.mxu1 %v15725_v22 }
 0xe2d   : > { %v12241_v27 = vpop.eup %12240 }
 0xe2e   : > { %v8276_v42 = vmul.f32 %v12241_v27, %v14945_v19  ;;  %v15037_v10 = vpop.eup %12242 }
 0xe2f   : > { %8242 = vadd.xlane.f32.xlu1 %v8241_v53  ;;  %v8247_v15 = vsel %vm1226_vm3, %v15037_v10, 0.0 }
 0xe30   : > { %v8293_v60 = vpack.c.bf16 %v8276_v42, %v8276_v42 }
 0xe32   : > { %11728 = vmatmul.mubr.msk.bf16.vlgmr.msra.gmra.mrb[44].mxu0 %vm1226_vm3, %v8293_v60  ;;  %v8222_v16 = vpop.xlane.xlu0 %8221 }
 0xe33   : > { %11738 = vmatpush3.bf16.msra.mxu0 %v8553_v55  ;;  %12246 = vrcp.f32 %v8222_v16  ;;  %8248 = vadd.xlane.f32.xlu1 %v8247_v15 }
 0xe34   : > { %11739 = vmatprep.mubr.msk.bf16.mxu0 %vm12346_vm2, %v15725_v22  ;;  %11749 = vmatprep.subr.bf16.mxu0 %v15725_v22 }
 0xe35   : > { %v12245_v19 = vpop.eup %12244 }
 0xe36   : > { %v8277_v13 = vmul.f32 %v12245_v19, %v14950_v39  ;;  %v8644_v11 = vpop.permute.xlu0 %8643 }
 0xe37   : > { %v8649_v43 = vsel %vm2250_vm4, %v8644_v11, 0 }
 0xe38   : > { %v8294_v1 = vpack.c.bf16 %v8277_v13, %v8277_v13 }
 0xe3a   : > { %11734 = vmatmul.mubr.msk.bf16.vlgmr.msra.gmra.mrb[76].mxu1 %vm1226_vm3, %v8294_v1  ;;  %v8225_v25 = vpop.xlane.xlu1 %8224 }
 0xe3b   : > { %12248 = vrcp.f32 %v8225_v25  ;;  %11745 = vmatprep.mubr.msk.bf16.mxu1 %vm12346_vm2, %v15725_v22 }
 0xe3d   : > { %v12247_v24 = vpop.eup %12246 }
 0xe3e   : > { %v8278_v12 = vmul.f32 %v12247_v24, %v14955_v35 }
 0xe40   : > { %v8295_v44 = vpack.c.bf16 %v8278_v12, %v8278_v12  ;;  %v8170_v12 = vsub.f32 %v14898_v17, %v15007_v20 }
 0xe42   : > { %v8132_v33 = vpop.xlane.xlu1 %8131  ;;  %11740 = vmatmul.mubr.msk.bf16.vlgmr.msra.gmra.mrb[48].mxu0 %vm1226_vm3, %v8295_v44  ;;  %v8203_v11 = vmul.f32 1.442695, %v8170_v12 }
 0xe43   : > { %v8163_v39 = vsub.f32 %v14967_v40, %v8132_v33  ;;  %11750 = vmatpush3.bf16.msra.mxu0 %v8649_v43  ;;  %11751 = vmatprep.mubr.msk.bf16.mxu0 %vm12346_vm2, %v15725_v22 }
 0xe44   : > { %8787 = vrot.lane.b32.xlu1 %v12897_v2, %s12357_s30  ;;  %11761 = vmatprep.subr.bf16.mxu0 %v15725_v22 }
 0xe45   : > { %v12249_v50 = vpop.eup %12248  ;;  %v8189_v35 = vmul.f32 1.442695, %v8163_v39 }
 0xe46   : > { %v8279_v9 = vmul.f32 %v12249_v50, %v14962_v30  ;;  %v8596_v7 = vpop.permute.xlu1 %8595 }
 0xe47   : > { %12250 = vpow2.f32 %v8189_v35  ;;  %v8601_v58 = vsel %vm2250_vm4, %v8596_v7, 0 }
 0xe48   : > { %v8296_v57 = vpack.c.bf16 %v8279_v9, %v8279_v9  ;;  %11744 = vmatpush3.bf16.msra.mxu1 %v8601_v58  ;;  %8835 = vrot.lane.b32.xlu1 %v12901_v29, %s12357_s30 }
 0xe49   : > { %11755 = vmatprep.subr.bf16.mxu1 %v15725_v22 }
 0xe4b   : > { %11746 = vmatmul.mubr.msk.bf16.vlgmr.msra.gmra.mrb[80].mxu1 %vm1226_vm3, %v8296_v57 }
 0xe4c   : > { %8883 = vrot.lane.b32.xlu1 %v12934_v37, %s12357_s30  ;;  %11757 = vmatprep.mubr.msk.bf16.mxu1 %vm12346_vm2, %v15725_v22 }
 0xe50   : > { %8931 = vrot.lane.b32.xlu1 %v12938_v18, %s12357_s30 }
 0xe51   : > { %v15072_v2 = vpop.eup %12250 }
 0xe52   : > { %v8232_v30 = vsel %vm1226_vm3, %v15072_v2, 0.0 }
 0xe53   : > { %8233 = vadd.xlane.f32.xlu0 %v8232_v30 }
 0xe54   : > { %8979 = vrot.lane.b32.xlu1 %v12952_v62, %s12357_s30 }
 0xe58   : > { %9027 = vrot.lane.b32.xlu1 %v12958_v3, %s12357_s30 }
 0xe5c   : > { %9075 = vrot.lane.b32.xlu1 %v12974_v14, %s12357_s30 }
 0xe67   : > { %v8228_v29 = vpop.xlane.xlu0 %8227 }
 0xe68   : > { %12252 = vrcp.f32 %v8228_v29 }
 0xe72   : > { %v12253_v37 = vpop.eup %12252 }
 0xe73   : > { %v8280_v18 = vmul.f32 %v12253_v37, %v14976_v46 }
 0xe75   : > { %v8297_v40 = vpack.c.bf16 %v8280_v18, %v8280_v18 }
 0xe77   : > { %v8138_v31 = vpop.xlane.xlu1 %8137  ;;  %11752 = vmatmul.mubr.msk.bf16.vlgmr.msra.gmra.mrb[52].mxu0 %vm1226_vm3, %v8297_v40 }
 0xe78   : > { %v8165_v26 = vsub.f32 %v14983_v61, %v8138_v31  ;;  %11763 = vmatprep.mubr.msk.bf16.mxu0 %vm12346_vm2, %v15725_v22 }
 0xe7a   : > { %v8193_v62 = vmul.f32 1.442695, %v8165_v26 }
 0xe7b   : > { %v8231_v27 = vpop.xlane.xlu1 %8230 }
 0xe7c   : > { %12254 = vpow2.f32 %v8193_v62 }
 0xe7d   : > { %12256 = vrcp.f32 %v8231_v27 }
 0xe7f   : > { %v8144_v3 = vpop.xlane.xlu1 %8143 }
 0xe80   : > { %v8167_v14 = vsub.f32 %v14990_v5, %v8144_v3 }
 0xe82   : > { %v8197_v42 = vmul.f32 1.442695, %v8167_v14 }
 0xe83   : > { %v8237_v53 = vpop.xlane.xlu1 %8236 }
 0xe84   : > { %12258 = vpow2.f32 %v8197_v42 }
 0xe86   : > { %v15088_v46 = vpop.eup %12254 }
 0xe87   : > { %v12257_v60 = vpop.eup %12256  ;;  %v8150_v55 = vpop.xlane.xlu1 %8149  ;;  %v8238_v61 = vsel %vm1226_vm3, %v15088_v46, 0.0 }
 0xe88   : > { %v8169_v16 = vsub.f32 %v14999_v0, %v8150_v55  ;;  %8239 = vadd.xlane.f32.xlu0 %v8238_v61  ;;  %v8281_v15 = vmul.f32 %v12257_v60, %v14987_v41 }
 0xe8a   : > { %v8201_v19 = vmul.f32 1.442695, %v8169_v16  ;;  %v8298_v25 = vpack.c.bf16 %v8281_v15, %v8281_v15 }
 0xe8b   : > { %v8692_v13 = vpop.permute.xlu1 %8691 }
 0xe8c   : > { %12260 = vpow2.f32 %v8201_v19  ;;  %v8697_v5 = vsel %vm2250_vm4, %v8692_v13, 0 }
 0xe8d   : > { %11756 = vmatpush3.bf16.msra.mxu1 %v8697_v5  ;;  %12262 = vrcp.f32 %v8237_v53 }
 0xe8e   : > { %v15095_v1 = vpop.eup %12258  ;;  %11767 = vmatprep.subr.bf16.mxu1 %v15725_v22 }
 0xe8f   : > { %v8244_v24 = vsel %vm1226_vm3, %v15095_v1, 0.0 }
 0xe90   : > { %8245 = vadd.xlane.f32.xlu0 %v8244_v24  ;;  %11758 = vmatmul.mubr.msk.bf16.vlgmr.msra.gmra.mrb[84].mxu1 %vm1226_vm3, %v8298_v25 }
 0xe91   : > { %11769 = vmatprep.mubr.msk.bf16.mxu1 %vm12346_vm2, %v15725_v22 }
 0xe96   : > { %v15103_v41 = vpop.eup %12260 }
 0xe97   : > { %v8250_v0 = vsel %vm1226_vm3, %v15103_v41, 0.0  ;;  %v12263_v43 = vpop.eup %12262 }
 0xe98   : > { %8251 = vadd.xlane.f32.xlu0 %v8250_v0  ;;  %v8283_v39 = vmul.f32 %v12263_v43, %v14996_v34 }
 0xe9a   : > { %v8300_v9 = vpack.c.bf16 %v8283_v39, %v8283_v39 }
 0xeae   : > { %8739 = vrot.lane.b32.xlu0 %v12893_v28, %s12357_s30 }
 0xebc   : > { %v8243_v44 = vpop.xlane.xlu1 %8242 }
 0xebd   : > { %12264 = vrcp.f32 %v8243_v44 }
 0xebe   : > { %12266 = vpow2.f32 %v8203_v11 }
 0xec0   : > { %v8249_v33 = vpop.xlane.xlu1 %8248 }
 0xec1   : > { %12268 = vrcp.f32 %v8249_v33 }
 0xec4   : > { %v8788_v50 = vpop.permute.xlu1 %8787 }
 0xec5   : > { %v8793_v35 = vsel %vm2250_vm4, %v8788_v50, 0 }
 0xec6   : > { %11768 = vmatpush3.bf16.msra.mxu1 %v8793_v35 }
 0xec7   : > { %11779 = vmatprep.subr.bf16.mxu1 %v15725_v22  ;;  %v12265_v28 = vpop.eup %12264 }
 0xec8   : > { %v15114_v7 = vpop.permute.xlu1 %8835  ;;  %v15116_v17 = vpop.eup %12266  ;;  %v8285_v34 = vmul.f32 %v12265_v28, %v15029_v49 }
 0xec9   : > { %11770 = vmatmul.mubr.msk.bf16.vlgmr.msra.gmra.mrb[88].mxu1 %vm1226_vm3, %v8300_v9  ;;  %v8253_v58 = vsel %vm1226_vm3, %v15116_v17, 0.0 }
 0xeca   : > { %11781 = vmatprep.mubr.msk.bf16.mxu1 %vm12346_vm2, %v15725_v22  ;;  %v8302_v30 = vpack.c.bf16 %v8285_v34, %v8285_v34 }
 0xecb   : > { %v12269_v29 = vpop.eup %12268 }
 0xecc   : > { %v8884_v20 = vpop.permute.xlu1 %8883  ;;  %v8287_v49 = vmul.f32 %v12269_v29, %v15037_v10 }
 0xecd   : > { %v8889_v57 = vsel %vm2250_vm4, %v8884_v20, 0  ;;  %8254 = vadd.xlane.f32.xlu0 %v8253_v58 }
 0xece   : > { %11780 = vmatpush3.bf16.msra.mxu1 %v8889_v57  ;;  %v8304_v31 = vpack.c.bf16 %v8287_v49, %v8287_v49 }
 0xecf   : > { %11791 = vmatprep.subr.bf16.mxu1 %v15725_v22 }
 0xed0   : > { %v15126_v37 = vpop.permute.xlu1 %8931 }
 0xed1   : > { %11782 = vmatmul.mubr.msk.bf16.vlgmr.msra.gmra.mrb[92].mxu1 %vm1226_vm3, %v8302_v30 }
 0xed2   : > { %11793 = vmatprep.mubr.msk.bf16.mxu1 %vm12346_vm2, %v15725_v22 }
 0xed4   : > { %v8980_v18 = vpop.permute.xlu1 %8979 }
 0xed5   : > { %v8985_v40 = vsel %vm2250_vm4, %v8980_v18, 0 }
 0xed6   : > { %11792 = vmatpush3.bf16.msra.mxu1 %v8985_v40 }
 0xed7   : > { %11803 = vmatprep.subr.bf16.mxu1 %v15725_v22 }
 0xed8   : > { %v15134_v26 = vpop.permute.xlu1 %9027 }
 0xed9   : > { %11794 = vmatmul.mubr.msk.bf16.vlgmr.msra.gmra.mrb[96].mxu1 %vm1226_vm3, %v8304_v31 }
 0xeda   : > { %11805 = vmatprep.mubr.msk.bf16.mxu1 %vm12346_vm2, %v15725_v22 }
 0xedc   : > { %v9076_v62 = vpop.permute.xlu1 %9075 }
 0xedd   : > { %v9081_v27 = vsel %vm2250_vm4, %v9076_v62, 0 }
 0xede   : > { %11804 = vmatpush3.bf16.msra.mxu1 %v9081_v27 }
 0xedf   : > { %11847 = vmatprep.subr.bf16.mxu1 %v15725_v22 }
 0xee0   : > { %v8234_v34 = vpop.xlane.xlu0 %8233 }
 0xee1   : > { %12270 = vrcp.f32 %v8234_v34 }
 0xeeb   : > { %v12271_v40 = vpop.eup %12270 }
 0xeec   : > { %v8282_v62 = vmul.f32 %v12271_v40, %v15072_v2 }
 0xeed   : > { %v15141_v10 = vpop.f32.mrb[68].mxu1 }
 0xeee   : > { %v11711_v3 = vpop.f32.mrb[69].mxu1 }
 0xeef   : > { %v8352_v14 = vpop.f32.mrb[70].mxu1 }
 0xef0   : > { %v11712_v42 = vpop.f32.mrb[71].mxu1  ;;  %v8299_v14 = vpack.c.bf16 %v8282_v62, %v8282_v62 }
 0xef5   : > { %v15143_v53 = vpop.f32.mrb[40].mxu0 }
 0xef6   : > { %v9123_v60 = vpack.c.bf16 %v15143_v53, %v15141_v10  ;;  %v11717_v55 = vpop.f32.mrb[41].mxu0 }
 0xef7   : > { %v8400_v61 = vpop.f32.mrb[42].mxu0  ;;  %v8841_v55 = vsel %vm2250_vm4, %v15114_v7, 0 }
 0xef8   : > { %v11718_v16 = vpop.f32.mrb[43].mxu0 }
 0xefd   : > { %v15147_v15 = vpop.f32.mrb[72].mxu1 }
 0xefe   : > { %v11723_v19 = vpop.f32.mrb[73].mxu1 }
 0xeff   : > { %v8448_v13 = vpop.f32.mrb[74].mxu1  ;;  %v8937_v19 = vsel %vm2250_vm4, %v15126_v37, 0 }
 0xf00   : > { %v11724_v5 = vpop.f32.mrb[75].mxu1 }
 0xf01   : > { %v9033_v5 = vsel %vm2250_vm4, %v15134_v26, 0 }
 0xf05   : > { %v15149_v25 = vpop.f32.mrb[44].mxu0 }
 0xf06   : > { %v9124_v24 = vpack.c.bf16 %v15149_v25, %v15147_v15  ;;  %v11729_v0 = vpop.f32.mrb[45].mxu0 }
 0xf07   : > { %v8496_v12 = vpop.f32.mrb[46].mxu0  ;;  %v10422_v0 = vld [vmem:[%s12480_s16 + $0xc] sm:$0xf] }
 0xf08   : > { %v11730_v11 = vpop.f32.mrb[47].mxu0 }
 0xf0d   : > { %v15153_v44 = vpop.f32.mrb[76].mxu1 }
 0xf0e   : > { %v11735_v43 = vpop.f32.mrb[77].mxu1 }
 0xf0f   : > { %v8544_v33 = vpop.f32.mrb[78].mxu1 }
 0xf10   : > { %v11736_v39 = vpop.f32.mrb[79].mxu1 }
 0xf15   : > { %v15155_v50 = vpop.f32.mrb[48].mxu0  ;;  %v8240_v58 = vpop.xlane.xlu0 %8239 }
 0xf16   : > { %v9125_v35 = vpack.c.bf16 %v15155_v50, %v15153_v44  ;;  %v11741_v9 = vpop.f32.mrb[49].mxu0  ;;  %12272 = vrcp.f32 %v8240_v58 }
 0xf17   : > { %v8592_v28 = vpop.f32.mrb[50].mxu0 }
 0xf18   : > { %v11742_v20 = vpop.f32.mrb[51].mxu0 }
 0xf1d   : > { %v8246_v49 = vpop.xlane.xlu0 %8245 }
 0xf1e   : > { %v15159_v57 = vpop.f32.mrb[80].mxu1  ;;  %12274 = vrcp.f32 %v8246_v49 }
 0xf1f   : > { %v11747_v30 = vpop.f32.mrb[81].mxu1 }
 0xf20   : > { %v8640_v29 = vpop.f32.mrb[82].mxu1  ;;  %v12273_v42 = vpop.eup %12272 }
 0xf21   : > { %v11748_v18 = vpop.f32.mrb[83].mxu1  ;;  %v8284_v2 = vmul.f32 %v12273_v42, %v15088_v46 }
 0xf23   : > { %v8301_v61 = vpack.c.bf16 %v8284_v2, %v8284_v2 }
 0xf25   : > { %v8252_v31 = vpop.xlane.xlu0 %8251 }
 0xf26   : > { %12276 = vrcp.f32 %v8252_v31 }
 0xf28   : > { %v12275_v16 = vpop.eup %12274 }
 0xf29   : > { %v8740_v27 = vpop.permute.xlu0 %8739  ;;  %v8286_v7 = vmul.f32 %v12275_v16, %v15095_v1  ;;  %v9162_v1 = vsel %vm2250_vm4, %v10422_v0, 0 }
 0xf2a   : > { %v8745_v3 = vsel %vm2250_vm4, %v8740_v27, 0 }
 0xf2b   : > { %11762 = vmatpush3.bf16.msra.mxu0 %v8745_v3  ;;  %v8303_v46 = vpack.c.bf16 %v8286_v7, %v8286_v7 }
 0xf2c   : > { %11773 = vmatprep.subr.bf16.mxu0 %v15725_v22 }
 0xf2e   : > { %11764 = vmatmul.mubr.msk.bf16.vlgmr.msra.gmra.mrb[56].mxu0 %vm1226_vm3, %v8299_v14 }
 0xf2f   : > { %11774 = vmatpush3.bf16.msra.mxu0 %v8841_v55  ;;  %11775 = vmatprep.mubr.msk.bf16.mxu0 %vm12346_vm2, %v15725_v22 }
 0xf30   : > { %11785 = vmatprep.subr.bf16.mxu0 %v15725_v22  ;;  %v12277_v13 = vpop.eup %12276 }
 0xf31   : > { %v8288_v37 = vmul.f32 %v12277_v13, %v15103_v41 }
 0xf33   : > { %v8305_v12 = vpack.c.bf16 %v8288_v37, %v8288_v37 }
 0xf36   : > { %11776 = vmatmul.mubr.msk.bf16.vlgmr.msra.gmra.mrb[60].mxu0 %vm1226_vm3, %v8301_v61 }
 0xf37   : > { %11786 = vmatpush3.bf16.msra.mxu0 %v8937_v19  ;;  %11787 = vmatprep.mubr.msk.bf16.mxu0 %vm12346_vm2, %v15725_v22 }
 0xf38   : > { %11797 = vmatprep.subr.bf16.mxu0 %v15725_v22 }
 0xf3e   : > { %11788 = vmatmul.mubr.msk.bf16.vlgmr.msra.gmra.mrb[64].mxu0 %vm1226_vm3, %v8303_v46 }
 0xf3f   : > { %11798 = vmatpush3.bf16.msra.mxu0 %v9033_v5  ;;  %11799 = vmatprep.mubr.msk.bf16.mxu0 %vm12346_vm2, %v15725_v22 }
 0xf40   : > { %11809 = vmatprep.subr.bf16.mxu0 %v15725_v22 }
 0xf46   : > { %11800 = vmatmul.mubr.msk.bf16.vlgmr.msra.gmra.mrb[68].mxu0 %vm1226_vm3, %v8305_v12 }
 0xf47   : > { %11810 = vmatpush3.bf16.msra.mxu0 %v9162_v1  ;;  %11811 = vmatprep.mubr.msk.bf16.mxu0 %vm12346_vm2, %v15725_v22 }
 0xf48   : > { %11887 = vmatprep.subr.bf16.mxu0 %v15725_v22 }
 0xf4a   : > { %v8685_v26 = vpop.f32.mrb[52].mxu0 }
 0xf4b   : > { %v9126_v11 = vpack.c.bf16 %v8685_v26, %v15159_v57  ;;  %v11753_v43 = vpop.f32.mrb[53].mxu0  ;;  %v15234_v26 = vld [vmem:[%s15746_s21] ss:$0 sm:$0xff] }
 0xf4c   : > { %v8688_v33 = vpop.f32.mrb[54].mxu0 }
 0xf4d   : > { %v11754_v41 = vpop.f32.mrb[55].mxu0 }
 0xf4e   : > { %11812 = vmatmul.mubr.msk.bf16.vlgmr.msra.gmra.mrb[72].mxu0 %vm1226_vm3, %v9123_v60 }
 0xf4f   : > { %11815 = vmatprep.mubr.msk.bf16.mxu0 %vm12346_vm2, %v15725_v22 }
 0xf56   : > { %11816 = vmatmul.mubr.msk.bf16.gmra.mrb[76].mxu0 %vm1226_vm3, %v9124_v24 }
 0xf57   : > { %11819 = vmatprep.mubr.msk.bf16.mxu0 %vm12346_vm2, %v15725_v22 }
 0xf5a   : > { %v8255_v39 = vpop.xlane.xlu0 %8254 }
 0xf5b   : > { %12278 = vrcp.f32 %v8255_v39 }
 0xf5e   : > { %11820 = vmatmul.mubr.msk.bf16.gmra.mrb[80].mxu0 %vm1226_vm3, %v9125_v35 }
 0xf5f   : > { %11823 = vmatprep.mubr.msk.bf16.mxu0 %vm12346_vm2, %v15725_v22 }
 0xf63   : > { %v8733_v10 = vpop.f32.mrb[84].mxu1 }
 0xf64   : > { %v11759_v53 = vpop.f32.mrb[85].mxu1 }
 0xf65   : > { %v12279_v60 = vpop.eup %12278  ;;  %v8736_v9 = vpop.f32.mrb[86].mxu1  ;;  %v12314_v53 = vld [vmem:[#allocation2] sm:$0xff] }
 0xf66   : > { %v8289_v15 = vmul.f32 %v12279_v60, %v15116_v17  ;;  %v11760_v25 = vpop.f32.mrb[87].mxu1  ;;  %11824 = vmatmul.mubr.msk.bf16.gmra.mrb[84].mxu0 %vm1226_vm3, %v9126_v11 }
 0xf67   : > { %11827 = vmatprep.mubr.msk.bf16.mxu0 %vm12346_vm2, %v15725_v22 }
 0xf68   : > { %v8306_v24 = vpack.c.bf16 %v8289_v15, %v8289_v15  ;;  %v12315_v15 = vld [vmem:[#allocation2 + $0x8] sm:$0xff] }
 0xf6a   : > { %11806 = vmatmul.mubr.msk.bf16.vlgmr.msra.gmra.mrb[100].mxu1 %vm1226_vm3, %v8306_v24 }
 0xf6b   : > { %11851 = vmatprep.mubr.msk.bf16.mxu1 %vm12346_vm2, %v15725_v22 }
 0xf9c   : > { %v8829_v44 = vpop.f32.mrb[88].mxu1 }
 0xf9d   : > { %v11771_v50 = vpop.f32.mrb[89].mxu1 }
 0xf9e   : > { %v8832_v35 = vpop.f32.mrb[90].mxu1 }
 0xf9f   : > { %v11772_v28 = vpop.f32.mrb[91].mxu1 }
 0xfa4   : > { %v8925_v34 = vpop.f32.mrb[92].mxu1 }
 0xfa5   : > { %v11783_v20 = vpop.f32.mrb[93].mxu1 }
 0xfa6   : > { %v8928_v58 = vpop.f32.mrb[94].mxu1 }
 0xfa7   : > { %v11784_v17 = vpop.f32.mrb[95].mxu1  ;;  %v12316_v58 = vld [vmem:[#allocation2 + $0x10] sm:$0xff] }
 0xfac   : > { %v9021_v57 = vpop.f32.mrb[96].mxu1 }
 0xfad   : > { %v11795_v30 = vpop.f32.mrb[97].mxu1 }
 0xfae   : > { %v9024_v29 = vpop.f32.mrb[98].mxu1  ;;  %v12317_v30 = vld [vmem:[#allocation2 + $0x18] sm:$0xff] }
 0xfaf   : > { %v11796_v49 = vpop.f32.mrb[99].mxu1 }
0x1001   : > { %v8781_v18 = vpop.f32.mrb[56].mxu0 }
0x1002   : > { %v9127_v40 = vpack.c.bf16 %v8781_v18, %v8733_v10  ;;  %v11765_v31 = vpop.f32.mrb[57].mxu0 }
0x1003   : > { %v8784_v62 = vpop.f32.mrb[58].mxu0 }
0x1004   : > { %v11766_v27 = vpop.f32.mrb[59].mxu0  ;;  %11828 = vmatmul.mubr.msk.bf16.gmra.mrb[88].mxu0 %vm1226_vm3, %v9127_v40 }
0x1005   : > { %11831 = vmatprep.mubr.msk.bf16.mxu0 %vm12346_vm2, %v15725_v22 }
0x1009   : > { %v8877_v3 = vpop.f32.mrb[60].mxu0 }
0x100a   : > { %v9128_v14 = vpack.c.bf16 %v8877_v3, %v8829_v44  ;;  %v11777_v42 = vpop.f32.mrb[61].mxu0 }
0x100b   : > { %v8880_v55 = vpop.f32.mrb[62].mxu0 }
0x100c   : > { %v11778_v2 = vpop.f32.mrb[63].mxu0  ;;  %11832 = vmatmul.mubr.msk.bf16.gmra.mrb[92].mxu0 %vm1226_vm3, %v9128_v14  ;;  %v12318_v14 = vld [vmem:[#allocation2 + $0x20] sm:$0xff] }
0x100d   : > { %11835 = vmatprep.mubr.msk.bf16.mxu0 %vm12346_vm2, %v15725_v22  ;;  %v12319_v2 = vld [vmem:[#allocation2 + $0x28] sm:$0xff] }
0x1011   : > { %v8973_v61 = vpop.f32.mrb[64].mxu0 }
0x1012   : > { %v9129_v16 = vpack.c.bf16 %v8973_v61, %v8925_v34  ;;  %v11789_v19 = vpop.f32.mrb[65].mxu0 }
0x1013   : > { %v8976_v7 = vpop.f32.mrb[66].mxu0 }
0x1014   : > { %v11790_v46 = vpop.f32.mrb[67].mxu0  ;;  %11836 = vmatmul.mubr.msk.bf16.gmra.mrb[96].mxu0 %vm1226_vm3, %v9129_v16 }
0x1015   : > { %11839 = vmatprep.mubr.msk.bf16.mxu0 %vm12346_vm2, %v15725_v22 }
0x1019   : > { %v9069_v13 = vpop.f32.mrb[68].mxu0 }
0x101a   : > { %v9130_v5 = vpack.c.bf16 %v9069_v13, %v9021_v57  ;;  %v11801_v37 = vpop.f32.mrb[69].mxu0 }
0x101b   : > { %v9072_v0 = vpop.f32.mrb[70].mxu0 }
0x101c   : > { %v11802_v12 = vpop.f32.mrb[71].mxu0  ;;  %11840 = vmatmul.mubr.msk.bf16.gmra.mrb[100].mxu0 %vm1226_vm3, %v9130_v5 }
0x101d   : > { %11843 = vmatprep.mubr.msk.bf16.mxu0 %vm12346_vm2, %v15725_v22  ;;  %v12320_v12 = vld [vmem:[#allocation2 + $0x30] sm:$0xff] }
0x1021   : > { %v9198_v1 = vpop.f32.mrb[72].mxu0 }
0x1022   : > { %v9268_v11 = vadd.f32 %v9198_v1, %v14833_v54  ;;  %v11813_v43 = vpop.f32.mrb[73].mxu0 }
0x1023   : > { %v9201_v33 = vpop.f32.mrb[74].mxu0 }
0x1024   : > { %v9292_v41 = vadd.f32 %v15234_v26, %v9268_v11  ;;  %v9269_v39 = vadd.f32 %v9201_v33, %v14839_v59  ;;  %v11814_v10 = vpop.f32.mrb[75].mxu0 }
0x1026   : > { %v15239_v60 = vadd.f32 %v12314_v53, %v9292_v41  ;;  %v9293_v9 = vadd.f32 %v15234_v26, %v9269_v39  ;;  %v12321_v41 = vld [vmem:[#allocation2 + $0x38] sm:$0xff] }
0x1028   : > { %v15242_v25 = vadd.f32 %v12315_v15, %v9293_v9  ;;  %v9328_v24 = vsel %vm736_vm1, %v15239_v60, 0.0 }
0x1029   : > { %9329 = vadd.xlane.f32.xlu1 %v9328_v24  ;;  %v9206_v54 = vpop.f32.mrb[76].mxu0 }
0x102a   : > { %v9270_v44 = vadd.f32 %v9206_v54, %v14847_v6  ;;  %v11817_v50 = vpop.f32.mrb[77].mxu0  ;;  %v9331_v59 = vsel %vm736_vm1, %v15242_v25, 0.0 }
0x102b   : > { %9332 = vadd.xlane.f32.xlu0 %v9331_v59  ;;  %v9209_v35 = vpop.f32.mrb[78].mxu0 }
0x102c   : > { %v9294_v28 = vadd.f32 %v15234_v26, %v9270_v44  ;;  %v9271_v34 = vadd.f32 %v9209_v35, %v14852_v4  ;;  %v11818_v20 = vpop.f32.mrb[79].mxu0  ;;  %v12322_v35 = vld [vmem:[#allocation2 + $0x40] sm:$0xff] }
0x102e   : > { %v15251_v17 = vadd.f32 %v12316_v58, %v9294_v28  ;;  %v9295_v57 = vadd.f32 %v15234_v26, %v9271_v34  ;;  %v12323_v58 = vld [vmem:[#allocation2 + $0x48] sm:$0xff] }
0x1030   : > { %v15254_v29 = vadd.f32 %v12317_v30, %v9295_v57  ;;  %v9334_v6 = vsel %vm736_vm1, %v15251_v17, 0.0 }
0x1031   : > { %9335 = vadd.xlane.f32.xlu0 %v9334_v6  ;;  %v9214_v49 = vpop.f32.mrb[80].mxu0 }
0x1032   : > { %v9272_v18 = vadd.f32 %v9214_v49, %v14858_v56  ;;  %v11821_v40 = vpop.f32.mrb[81].mxu0  ;;  %v9337_v3 = vsel %vm736_vm1, %v15254_v29, 0.0 }
0x1033   : > { %v9217_v31 = vpop.f32.mrb[82].mxu0 }
0x1034   : > { %v9296_v4 = vadd.f32 %v15234_v26, %v9272_v18  ;;  %v9273_v62 = vadd.f32 %v9217_v31, %v14863_v45  ;;  %v11822_v27 = vpop.f32.mrb[83].mxu0 }
0x1035   : > { %9338 = vadd.xlane.f32.xlu0 %v9337_v3  ;;  %v12324_v27 = vld [vmem:[#allocation2 + $0x50] sm:$0xff] }
0x1036   : > { %v15263_v42 = vadd.f32 %v12318_v14, %v9296_v4  ;;  %v9297_v55 = vadd.f32 %v15234_v26, %v9273_v62 }
0x1038   : > { %v15266_v61 = vadd.f32 %v12319_v2, %v9297_v55  ;;  %v9340_v56 = vsel %vm736_vm1, %v15263_v42, 0.0  ;;  %v12325_v55 = vld [vmem:[#allocation2 + $0x58] sm:$0xff] }
0x1039   : > { %9341 = vadd.xlane.f32.xlu0 %v9340_v56  ;;  %v9222_v16 = vpop.f32.mrb[84].mxu0 }
0x103a   : > { %v9274_v45 = vadd.f32 %v9222_v16, %v14869_v48  ;;  %v11825_v19 = vpop.f32.mrb[85].mxu0  ;;  %v9343_v37 = vsel %vm736_vm1, %v15266_v61, 0.0 }
0x103b   : > { %v9225_v7 = vpop.f32.mrb[86].mxu0 }
0x103c   : > { %v9298_v46 = vadd.f32 %v15234_v26, %v9274_v45  ;;  %v9275_v13 = vadd.f32 %v9225_v7, %v14874_v38  ;;  %v11826_v5 = vpop.f32.mrb[87].mxu0 }
0x103d   : > { %9344 = vadd.xlane.f32.xlu0 %v9343_v37  ;;  %v9117_v0 = vpop.f32.mrb[100].mxu1  ;;  %v12326_v37 = vld [vmem:[#allocation2 + $0x60] sm:$0xff] }
0x103e   : > { %v15275_v1 = vadd.f32 %v12320_v12, %v9298_v46  ;;  %v9299_v11 = vadd.f32 %v15234_v26, %v9275_v13  ;;  %v9131_v43 = vpack.c.bf16 %v9117_v0, %v9117_v0  ;;  %v11807_v33 = vpop.f32.mrb[101].mxu1 }
0x103f   : > { %v9120_v48 = vpop.f32.mrb[102].mxu1  ;;  %v12327_v33 = vld [vmem:[#allocation2 + $0x68] sm:$0xff] }
0x1040   : > { %v15278_v39 = vadd.f32 %v12321_v41, %v9299_v11  ;;  %v11808_v10 = vpop.f32.mrb[103].mxu1  ;;  %11844 = vmatmul.mubr.msk.bf16.gmra.mrb[104].mxu0 %vm1226_vm3, %v9131_v43  ;;  %v9346_v38 = vsel %vm736_vm1, %v15275_v1, 0.0 }
0x1041   : > { %9347 = vadd.xlane.f32.xlu0 %v9346_v38  ;;  %11895 = vmatprep.mubr.msk.bf16.mxu0 %vm12346_vm2, %v15725_v22 }
0x1042   : > { %v9349_v53 = vsel %vm736_vm1, %v15278_v39, 0.0 }
0x1045   : > { %9350 = vadd.xlane.f32.xlu0 %v9349_v53 }
0x10b6   : > { %v9330_v11 = vpop.xlane.xlu1 %9329 }
0x10b7   : > { %v9379_v10 = vmul.f32 0.03125, %v9330_v11 }
0x10b8   : > { %v15293_v20 = vpop.xlane.xlu0 %9332 }
0x10be   : > { %v9336_v18 = vpop.xlane.xlu0 %9335 }
0x10c2   : > { %v15311_v56 = vpop.xlane.xlu0 %9338 }
0x10c6   : > { %v9342_v43 = vpop.xlane.xlu0 %9341 }
0x10d7   : > { %v9230_v9 = vpop.f32.mrb[88].mxu0 }
0x10d8   : > { %v9276_v15 = vadd.f32 %v9230_v9, %v14892_v51  ;;  %v11829_v24 = vpop.f32.mrb[89].mxu0 }
0x10d9   : > { %v9233_v54 = vpop.f32.mrb[90].mxu0 }
0x10da   : > { %v9300_v44 = vadd.f32 %v15234_v26, %v9276_v15  ;;  %v9277_v50 = vadd.f32 %v9233_v54, %v14895_v63  ;;  %v11830_v59 = vpop.f32.mrb[91].mxu0 }
0x10db   : > { %v9381_v59 = vmul.f32 0.03125, %v9336_v18 }
0x10dc   : > { %v15290_v28 = vadd.f32 %v12322_v35, %v9300_v44  ;;  %v9301_v34 = vadd.f32 %v15234_v26, %v9277_v50  ;;  %v9345_v44 = vpop.xlane.xlu0 %9344  ;;  %v15331_v50 = vsub.f32 %v15239_v60, %v9379_v10  ;;  %v12328_v35 = vld [vmem:[#allocation2 + $0x70] sm:$0xff] }
0x10de   : > { %v15295_v57 = vadd.f32 %v12323_v58, %v9301_v34  ;;  %v9352_v51 = vsel %vm736_vm1, %v15290_v28, 0.0  ;;  %v12329_v58 = vld [vmem:[#allocation2 + $0x78] sm:$0xff] }
0x10df   : > { %9353 = vadd.xlane.f32.xlu1 %v9352_v51  ;;  %v9238_v30 = vpop.f32.mrb[92].mxu0 }
0x10e0   : > { %v9278_v6 = vadd.f32 %v9238_v30, %v14903_v52  ;;  %v11833_v49 = vpop.f32.mrb[93].mxu0  ;;  %v9355_v63 = vsel %vm736_vm1, %v15295_v57, 0.0  ;;  %v9348_v18 = vpop.xlane.xlu0 %9347 }
0x10e1   : > { %9356 = vadd.xlane.f32.xlu0 %v9355_v63  ;;  %v9241_v40 = vpop.f32.mrb[94].mxu0  ;;  %v9413_v63 = vmul.f32 %v15331_v50, %v15331_v50 }
0x10e2   : > { %v9302_v31 = vadd.f32 %v15234_v26, %v9278_v6  ;;  %v9279_v4 = vadd.f32 %v9241_v40, %v14906_v36  ;;  %v11834_v62 = vpop.f32.mrb[95].mxu0  ;;  %v9383_v6 = vmul.f32 0.03125, %v9342_v43  ;;  %v12330_v43 = vld [vmem:[#allocation2 + $0x80] sm:$0xff] }
0x10e4   : > { %v15304_v3 = vadd.f32 %v12324_v27, %v9302_v31  ;;  %v9303_v14 = vadd.f32 %v15234_v26, %v9279_v4  ;;  %v15348_v40 = vsub.f32 %v15263_v42, %v9383_v6  ;;  %v9385_v31 = vmul.f32 0.03125, %v9348_v18  ;;  %v9351_v10 = vpop.xlane.xlu0 %9350 }
0x10e5   : > { %v9430_v4 = vsel %vm736_vm1, %v9413_v63, 0.0 }
0x10e6   : > { %v15307_v2 = vadd.f32 %v12325_v55, %v9303_v14  ;;  %v9358_v52 = vsel %vm736_vm1, %v15304_v3, 0.0  ;;  %v15354_v27 = vsub.f32 %v15275_v1, %v9385_v31  ;;  %v9417_v55 = vmul.f32 %v15348_v40, %v15348_v40 }
0x10e7   : > { %9359 = vadd.xlane.f32.xlu1 %v9358_v52  ;;  %v9246_v16 = vpop.f32.mrb[96].mxu0 }
0x10e8   : > { %v9280_v45 = vadd.f32 %v9246_v16, %v14909_v32  ;;  %v11837_v19 = vpop.f32.mrb[97].mxu0  ;;  %v9361_v36 = vsel %vm736_vm1, %v15307_v2, 0.0  ;;  %v9442_v52 = vsel %vm736_vm1, %v9417_v55, 0.0  ;;  %v9419_v16 = vmul.f32 %v15354_v27, %v15354_v27 }
0x10e9   : > { %9362 = vadd.xlane.f32.xlu0 %v9361_v36  ;;  %v9249_v7 = vpop.f32.mrb[98].mxu0  ;;  %v9380_v19 = vmul.f32 0.03125, %v15293_v20  ;;  %v9384_v20 = vmul.f32 0.03125, %v9345_v44 }
0x10ea   : > { %v9304_v46 = vadd.f32 %v15234_v26, %v9280_v45  ;;  %v9281_v13 = vadd.f32 %v9249_v7, %v14912_v21  ;;  %v11838_v5 = vpop.f32.mrb[99].mxu0  ;;  %v9448_v45 = vsel %vm736_vm1, %v9419_v16, 0.0 }
0x10eb   : > { %v15366_v5 = vsub.f32 %v15242_v25, %v9380_v19 }
0x10ec   : > { %v15318_v0 = vadd.f32 %v12326_v37, %v9304_v46  ;;  %v9305_v12 = vadd.f32 %v15234_v26, %v9281_v13  ;;  %v9382_v37 = vmul.f32 0.03125, %v15311_v56  ;;  %v15380_v56 = vsub.f32 %v15266_v61, %v9384_v20 }
0x10ee   : > { %v15321_v32 = vadd.f32 %v12327_v33, %v9305_v12  ;;  %v9364_v48 = vsel %vm736_vm1, %v15318_v0, 0.0 }
0x10ef   : > { %9365 = vadd.xlane.f32.xlu1 %v9364_v48  ;;  %v9254_v41 = vpop.f32.mrb[100].mxu0  ;;  %v15373_v48 = vsub.f32 %v15254_v29, %v9382_v37 }
0x10f0   : > { %v9282_v38 = vadd.f32 %v9254_v41, %v14915_v47  ;;  %v11841_v21 = vpop.f32.mrb[101].mxu0  ;;  %v9367_v53 = vsel %vm736_vm1, %v15321_v32, 0.0  ;;  %v9414_v41 = vmul.f32 %v15366_v5, %v15366_v5 }
0x10f1   : > { %9368 = vadd.xlane.f32.xlu0 %v9367_v53  ;;  %v9257_v9 = vpop.f32.mrb[102].mxu0  ;;  %v9416_v21 = vmul.f32 %v15373_v48, %v15373_v48 }
0x10f2   : > { %v9306_v15 = vadd.f32 %v15234_v26, %v9282_v38  ;;  %v9283_v24 = vadd.f32 %v9257_v9, %v14918_v23  ;;  %v11842_v54 = vpop.f32.mrb[103].mxu0  ;;  %v15341_v23 = vsub.f32 %v15251_v17, %v9381_v59  ;;  %v9433_v38 = vsel %vm736_vm1, %v9414_v41, 0.0  ;;  %v11968_v59 = vld [vmem:[%s12497_s3] sm:$0xff]  }
0x10f3   : > { %v9439_v9 = vsel %vm736_vm1, %v9416_v21, 0.0  ;;  %11848 = vmatpush3.bf16.msra.mxu1 %v11968_v59 }
0x10f4   : > { %v15333_v34 = vadd.f32 %v12328_v35, %v9306_v15  ;;  %v9307_v47 = vadd.f32 %v15234_v26, %v9283_v24  ;;  %v9415_v62 = vmul.f32 %v15341_v23, %v15341_v23  ;;  %v9418_v15 = vmul.f32 %v15380_v56, %v15380_v56  ;;  %11849 = vmatprep.subr.bf16.mxu1 %v15725_v22  ;;  %v11969_v35 = vld [vmem:[%s12497_s3 + $0x8] sm:$0xff]  }
0x10f6   : > { %v15336_v51 = vadd.f32 %v12329_v58, %v9307_v47  ;;  %v9370_v30 = vsel %vm736_vm1, %v15333_v34, 0.0  ;;  %v9436_v14 = vsel %vm736_vm1, %v9415_v62, 0.0  ;;  %v9445_v24 = vsel %vm736_vm1, %v9418_v15, 0.0 }
0x10f7   : > { %9371 = vadd.xlane.f32.xlu1 %v9370_v30  ;;  %11850 = vmatpush3.bf16.msra.mxu1 %v11969_v35 }
0x10f8   : > { %v9373_v49 = vsel %vm736_vm1, %v15336_v51, 0.0 }
0x10f9   : > { %9374 = vadd.xlane.f32.xlu0 %v9373_v49 }
0x10fd   : > { %9431 = vadd.xlane.f32.xlu0 %v9430_v4 }
0x1101   : > { %9437 = vadd.xlane.f32.xlu0 %v9436_v14 }
0x1105   : > { %9443 = vadd.xlane.f32.xlu0 %v9442_v52 }
0x1109   : > { %9449 = vadd.xlane.f32.xlu0 %v9448_v45 }
0x1113   : > { %v9262_v36 = vpop.f32.mrb[104].mxu0 }
0x1114   : > { %v9284_v7 = vadd.f32 %v9262_v36, %v14960_v8  ;;  %v11845_v46 = vpop.f32.mrb[105].mxu0 }
0x1115   : > { %v9265_v13 = vpop.f32.mrb[106].mxu0 }
0x1116   : > { %v9308_v12 = vadd.f32 %v15234_v26, %v9284_v7  ;;  %v11846_v11 = vpop.f32.mrb[107].mxu0  ;;  %v9386_v26 = vmul.f32 0.03125, %v9351_v10 }
0x1118   : > { %v15370_v33 = vadd.f32 %v12330_v43, %v9308_v12  ;;  %v15386_v53 = vsub.f32 %v15278_v39, %v9386_v26 }
0x111a   : > { %v9376_v8 = vsel %vm736_vm1, %v15370_v33, 0.0  ;;  %v9420_v54 = vmul.f32 %v15386_v53, %v15386_v53 }
0x111b   : > { %9377 = vadd.xlane.f32.xlu1 %v9376_v8 }
0x111c   : > { %v9451_v44 = vsel %vm736_vm1, %v9420_v54, 0.0 }
0x111f   : > { %9434 = vadd.xlane.f32.xlu1 %v9433_v38 }
0x1123   : > { %9440 = vadd.xlane.f32.xlu1 %v9439_v9 }
0x1127   : > { %9446 = vadd.xlane.f32.xlu1 %v9445_v24 }
0x112b   : > { %9452 = vadd.xlane.f32.xlu1 %v9451_v44 }
0x116c   : > { %v9354_v47 = vpop.xlane.xlu1 %9353 }
0x116d   : > { %v9387_v58 = vmul.f32 0.03125, %v9354_v47 }
0x116e   : > { %v9357_v30 = vpop.xlane.xlu0 %9356 }
0x116f   : > { %v15399_v6 = vsub.f32 %v15290_v28, %v9387_v58  ;;  %v9388_v49 = vmul.f32 0.03125, %v9357_v30 }
0x1171   : > { %v15402_v63 = vsub.f32 %v15295_v57, %v9388_v49  ;;  %v9421_v18 = vmul.f32 %v15399_v6, %v15399_v6 }
0x1173   : > { %v9454_v31 = vsel %vm736_vm1, %v9421_v18, 0.0  ;;  %v9422_v4 = vmul.f32 %v15402_v63, %v15402_v63 }
0x1174   : > { %v9360_v62 = vpop.xlane.xlu1 %9359  ;;  %9455 = vadd.xlane.f32.xlu0 %v9454_v31 }
0x1175   : > { %v9389_v14 = vmul.f32 0.03125, %v9360_v62  ;;  %v9457_v55 = vsel %vm736_vm1, %v9422_v4, 0.0 }
0x1176   : > { %9458 = vadd.xlane.f32.xlu1 %v9457_v55  ;;  %v9363_v52 = vpop.xlane.xlu0 %9362 }
0x1177   : > { %v15411_v16 = vsub.f32 %v15304_v3, %v9389_v14  ;;  %v9390_v45 = vmul.f32 0.03125, %v9363_v52 }
0x1179   : > { %v15414_v19 = vsub.f32 %v15307_v2, %v9390_v45  ;;  %v9423_v36 = vmul.f32 %v15411_v16, %v15411_v16 }
0x117b   : > { %v9460_v7 = vsel %vm736_vm1, %v9423_v36, 0.0  ;;  %v9424_v46 = vmul.f32 %v15414_v19, %v15414_v19 }
0x117c   : > { %v9366_v13 = vpop.xlane.xlu1 %9365  ;;  %9461 = vadd.xlane.f32.xlu0 %v9460_v7 }
0x117d   : > { %v9391_v37 = vmul.f32 0.03125, %v9366_v13  ;;  %v9463_v12 = vsel %vm736_vm1, %v9424_v46, 0.0 }
0x117e   : > { %9464 = vadd.xlane.f32.xlu1 %v9463_v12  ;;  %v9369_v11 = vpop.xlane.xlu0 %9368 }
0x117f   : > { %v15423_v43 = vsub.f32 %v15318_v0, %v9391_v37  ;;  %v9392_v20 = vmul.f32 0.03125, %v9369_v11 }
0x1181   : > { %v15426_v8 = vsub.f32 %v15321_v32, %v9392_v20  ;;  %v9425_v41 = vmul.f32 %v15423_v43, %v15423_v43 }
0x1183   : > { %v9466_v10 = vsel %vm736_vm1, %v9425_v41, 0.0  ;;  %v9426_v26 = vmul.f32 %v15426_v8, %v15426_v8 }
0x1184   : > { %v9372_v38 = vpop.xlane.xlu1 %9371  ;;  %9467 = vadd.xlane.f32.xlu0 %v9466_v10 }
0x1185   : > { %v9393_v21 = vmul.f32 0.03125, %v9372_v38  ;;  %v9469_v9 = vsel %vm736_vm1, %v9426_v26, 0.0 }
0x1186   : > { %9470 = vadd.xlane.f32.xlu1 %v9469_v9  ;;  %v9375_v15 = vpop.xlane.xlu0 %9374 }
0x1187   : > { %v15435_v24 = vsub.f32 %v15333_v34, %v9393_v21  ;;  %v9394_v54 = vmul.f32 0.03125, %v9375_v15 }
0x1189   : > { %v15438_v44 = vsub.f32 %v15336_v51, %v9394_v54  ;;  %v9427_v59 = vmul.f32 %v15435_v24, %v15435_v24 }
0x118a   : > { %v9432_v30 = vpop.xlane.xlu0 %9431 }
0x118b   : > { %v9472_v35 = vsel %vm736_vm1, %v9427_v59, 0.0  ;;  %v9428_v47 = vmul.f32 %v15438_v44, %v15438_v44  ;;  %v9481_v49 = vmul.f32 0.03125, %v9432_v30 }
0x118c   : > { %9473 = vadd.xlane.f32.xlu0 %v9472_v35  ;;  %v15458_v35 = vld [vmem:[%s657_s14] ss:$0 sm:$0xff] }
0x118d   : > { %v9475_v58 = vsel %vm736_vm1, %v9428_v47, 0.0  ;;  %v9498_v18 = vadd.f32 1e-05, %v9481_v49 }
0x118e   : > { %9476 = vadd.xlane.f32.xlu1 %v9475_v58  ;;  %v9438_v31 = vpop.xlane.xlu0 %9437 }
0x118f   : > { %12280 = vrsqrt.f32 %v9498_v18  ;;  %v9483_v14 = vmul.f32 0.03125, %v9438_v31 }
0x1191   : > { %v9500_v7 = vadd.f32 1e-05, %v9483_v14 }
0x1192   : > { %v9444_v37 = vpop.xlane.xlu0 %9443 }
0x1193   : > { %v9485_v20 = vmul.f32 0.03125, %v9444_v37 }
0x1195   : > { %v9502_v21 = vadd.f32 1e-05, %v9485_v20 }
0x1196   : > { %v9450_v54 = vpop.xlane.xlu0 %9449 }
0x1197   : > { %v9487_v30 = vmul.f32 0.03125, %v9450_v54 }
0x1199   : > { %v12281_v26 = vpop.eup %12280 }
0x119a   : > { %v9532_v15 = vmul.f32 %v12281_v26, %v15331_v50  ;;  %v15467_v50 = vld [vmem:[%s660_s18] ss:$0 sm:$0xff] }
0x119c   : > { %v9555_v49 = vmul.f32 %v15458_v35, %v9532_v15 }
0x11a8   : > { %v9378_v4 = vpop.xlane.xlu1 %9377 }
0x11a9   : > { %v9395_v62 = vmul.f32 0.03125, %v9378_v4 }
0x11ab   : > { %v15447_v55 = vsub.f32 %v15370_v33, %v9395_v62 }
0x11ac   : > { %v9435_v52 = vpop.xlane.xlu1 %9434 }
0x11ad   : > { %v9482_v45 = vmul.f32 0.03125, %v9435_v52  ;;  %v9429_v36 = vmul.f32 %v15447_v55, %v15447_v55  ;;  %v9504_v52 = vadd.f32 1e-05, %v9487_v30  ;;  %v11970_v30 = vld [vmem:[%s12507_s27] sm:$0xff]  }
0x11ae   : > { %11888 = vmatpush3.bf16.msra.mxu0 %v11970_v30  ;;  %v11972_v30 = vld [vmem:[%s12507_s27 + $0x10] sm:$0xff]  }
0x11af   : > { %v9499_v46 = vadd.f32 1e-05, %v9482_v45  ;;  %v9478_v13 = vsel %vm736_vm1, %v9429_v36, 0.0  ;;  %v9578_v45 = vadd.f32 %v15467_v50, %v9555_v49  ;;  %11889 = vmatprep.subr.bf16.mxu0 %v15725_v22 }
0x11b0   : > { %v9441_v12 = vpop.xlane.xlu1 %9440  ;;  %9479 = vadd.xlane.f32.xlu0 %v9478_v13 }
0x11b1   : > { %12282 = vrsqrt.f32 %v9499_v46  ;;  %v9484_v11 = vmul.f32 0.03125, %v9441_v12 }
0x11b2   : > { %12284 = vrsqrt.f32 %v9500_v7 }
0x11b3   : > { %v9501_v41 = vadd.f32 1e-05, %v9484_v11 }
0x11b4   : > { %v9447_v10 = vpop.xlane.xlu1 %9446 }
0x11b5   : > { %12286 = vrsqrt.f32 %v9501_v41  ;;  %v9486_v38 = vmul.f32 0.03125, %v9447_v10 }
0x11b7   : > { %v9503_v9 = vadd.f32 1e-05, %v9486_v38 }
0x11b8   : > { %v9453_v59 = vpop.xlane.xlu1 %9452 }
0x11b9   : > { %12288 = vrsqrt.f32 %v9503_v9  ;;  %v9488_v47 = vmul.f32 0.03125, %v9453_v59 }
0x11ba   : > { %12290 = vrsqrt.f32 %v9502_v21 }
0x11bb   : > { %v12283_v58 = vpop.eup %12282  ;;  %v9505_v4 = vadd.f32 1e-05, %v9488_v47 }
0x11bc   : > { %v9533_v18 = vmul.f32 %v12283_v58, %v15366_v5  ;;  %v12285_v31 = vpop.eup %12284 }
0x11bd   : > { %v9534_v36 = vmul.f32 %v12285_v31, %v15341_v23  ;;  %12292 = vrsqrt.f32 %v9505_v4 }
0x11be   : > { %v9556_v62 = vmul.f32 %v15458_v35, %v9533_v18  ;;  %12294 = vrsqrt.f32 %v9504_v52  ;;  %v11971_v18 = vld [vmem:[%s12507_s27 + $0x8] sm:$0xff]  }
0x11bf   : > { %v12287_v14 = vpop.eup %12286  ;;  %v9557_v12 = vmul.f32 %v15458_v35, %v9534_v36  ;;  %11890 = vmatpush3.bf16.msra.mxu0 %v11971_v18 }
0x11c0   : > { %v9579_v7 = vadd.f32 %v15467_v50, %v9556_v62  ;;  %v9535_v5 = vmul.f32 %v12287_v14, %v15373_v48  ;;  %11891 = vmatprep.subr.bf16.mxu0 %v15725_v22 }
0x11c1   : > { %v9580_v48 = vadd.f32 %v15467_v50, %v9557_v12 }
0x11c2   : > { %v9595_v46 = vpack.c.bf16 %v9579_v7, %v9578_v45  ;;  %v9558_v13 = vmul.f32 %v15458_v35, %v9535_v5 }
0x11c3   : > { %v12289_v37 = vpop.eup %12288  ;;  %11892 = vmatpush3.bf16.msra.mxu0 %v11972_v30 }
0x11c4   : > { %11852 = vmatmul.mubr.msk.bf16.vlgmr.msra.gmra.mrb[104].mxu1 %vm736_vm1, %v9595_v46  ;;  %v12291_v11 = vpop.eup %12290  ;;  %v9581_v23 = vadd.f32 %v15467_v50, %v9558_v13  ;;  %v9537_v20 = vmul.f32 %v12289_v37, %v15380_v56  ;;  %11893 = vmatprep.subr.bf16.mxu0 %v15725_v22 }
0x11c5   : > { %11855 = vmatprep.mubr.msk.bf16.mxu1 %vm12346_vm2, %v15725_v22  ;;  %v9536_v41 = vmul.f32 %v12291_v11, %v15348_v40 }
0x11c6   : > { %v9596_v10 = vpack.c.bf16 %v9581_v23, %v9580_v48  ;;  %v9560_v26 = vmul.f32 %v15458_v35, %v9537_v20 }
0x11c7   : > { %v12293_v38 = vpop.eup %12292  ;;  %v9559_v21 = vmul.f32 %v15458_v35, %v9536_v41 }
0x11c8   : > { %v12295_v9 = vpop.eup %12294  ;;  %v9583_v56 = vadd.f32 %v15467_v50, %v9560_v26  ;;  %v9539_v15 = vmul.f32 %v12293_v38, %v15386_v53 }
0x11c9   : > { %v9582_v40 = vadd.f32 %v15467_v50, %v9559_v21  ;;  %v9538_v54 = vmul.f32 %v12295_v9, %v15354_v27 }
0x11ca   : > { %v9562_v47 = vmul.f32 %v15458_v35, %v9539_v15 }
0x11cb   : > { %v9597_v59 = vpack.c.bf16 %v9583_v56, %v9582_v40  ;;  %v9561_v58 = vmul.f32 %v15458_v35, %v9538_v54 }
0x11cc   : > { %11856 = vmatmul.mubr.msk.bf16.gmra.mrb[108].mxu1 %vm736_vm1, %v9596_v10  ;;  %v9585_v49 = vadd.f32 %v15467_v50, %v9562_v47 }
0x11cd   : > { %11859 = vmatprep.mubr.msk.bf16.mxu1 %vm12346_vm2, %v15725_v22  ;;  %v9584_v53 = vadd.f32 %v15467_v50, %v9561_v58 }
0x11cf   : > { %v9598_v27 = vpack.c.bf16 %v9585_v49, %v9584_v53 }
0x11d4   : > { %11860 = vmatmul.mubr.msk.bf16.gmra.mrb[112].mxu1 %vm736_vm1, %v9597_v59 }
0x11d5   : > { %11863 = vmatprep.mubr.msk.bf16.mxu1 %vm12346_vm2, %v15725_v22 }
0x11dc   : > { %11864 = vmatmul.mubr.msk.bf16.gmra.mrb[116].mxu1 %vm736_vm1, %v9598_v27 }
0x11dd   : > { %11867 = vmatprep.mubr.msk.bf16.mxu1 %vm12346_vm2, %v15725_v22 }
0x1201   : > { %v9456_v31 = vpop.xlane.xlu0 %9455 }
0x1202   : > { %v9489_v4 = vmul.f32 0.03125, %v9456_v31 }
0x1203   : > { %v9459_v62 = vpop.xlane.xlu1 %9458 }
0x1204   : > { %v9506_v14 = vadd.f32 1e-05, %v9489_v4  ;;  %v9490_v52 = vmul.f32 0.03125, %v9459_v62  ;;  %v11973_v62 = vld [vmem:[%s12507_s27 + $0x18] sm:$0xff]  }
0x1205   : > { %11894 = vmatpush3.bf16.msra.mxu0 %v11973_v62 }
0x1206   : > { %12296 = vrsqrt.f32 %v9506_v14  ;;  %v9507_v45 = vadd.f32 1e-05, %v9490_v52 }
0x1208   : > { %12298 = vrsqrt.f32 %v9507_v45 }
0x1209   : > { %v9462_v36 = vpop.xlane.xlu0 %9461 }
0x120a   : > { %v9491_v7 = vmul.f32 0.03125, %v9462_v36 }
0x120b   : > { %v9465_v5 = vpop.xlane.xlu1 %9464 }
0x120c   : > { %v9508_v46 = vadd.f32 1e-05, %v9491_v7  ;;  %v9492_v13 = vmul.f32 0.03125, %v9465_v5 }
0x120e   : > { %12300 = vrsqrt.f32 %v9508_v46  ;;  %v9509_v37 = vadd.f32 1e-05, %v9492_v13 }
0x1210   : > { %v12297_v12 = vpop.eup %12296  ;;  %12302 = vrsqrt.f32 %v9509_v37 }
0x1211   : > { %v9540_v11 = vmul.f32 %v12297_v12, %v15399_v6  ;;  %v9468_v23 = vpop.xlane.xlu0 %9467 }
0x1212   : > { %v12299_v20 = vpop.eup %12298  ;;  %v9493_v48 = vmul.f32 0.03125, %v9468_v23 }
0x1213   : > { %v9563_v41 = vmul.f32 %v15458_v35, %v9540_v11  ;;  %v9541_v10 = vmul.f32 %v12299_v20, %v15402_v63  ;;  %v9471_v26 = vpop.xlane.xlu1 %9470 }
0x1214   : > { %v9510_v38 = vadd.f32 1e-05, %v9493_v48  ;;  %v9494_v21 = vmul.f32 0.03125, %v9471_v26 }
0x1215   : > { %v9564_v9 = vmul.f32 %v15458_v35, %v9541_v10  ;;  %v9586_v15 = vadd.f32 %v15467_v50, %v9563_v41 }
0x1216   : > { %12304 = vrsqrt.f32 %v9510_v38  ;;  %v9511_v56 = vadd.f32 1e-05, %v9494_v21 }
0x1217   : > { %v9587_v40 = vadd.f32 %v15467_v50, %v9564_v9 }
0x1218   : > { %v12301_v6 = vpop.eup %12300  ;;  %12306 = vrsqrt.f32 %v9511_v56 }
0x1219   : > { %v9599_v54 = vpack.c.bf16 %v9587_v40, %v9586_v15  ;;  %v9542_v59 = vmul.f32 %v12301_v6, %v15411_v16  ;;  %v9474_v47 = vpop.xlane.xlu0 %9473 }
0x121a   : > { %v12303_v63 = vpop.eup %12302  ;;  %v9495_v58 = vmul.f32 0.03125, %v9474_v47 }
0x121b   : > { %v9565_v49 = vmul.f32 %v15458_v35, %v9542_v59  ;;  %v9543_v18 = vmul.f32 %v12303_v63, %v15414_v19  ;;  %v9477_v53 = vpop.xlane.xlu1 %9476  ;;  %11868 = vmatmul.mubr.msk.bf16.gmra.mrb[120].mxu1 %vm736_vm1, %v9599_v54  ;;  %v15554_v54 = vld [vmem:[%s668_s5] ss:$0 sm:$0xff] }
0x121c   : > { %v9512_v27 = vadd.f32 1e-05, %v9495_v58  ;;  %v9496_v31 = vmul.f32 0.03125, %v9477_v53  ;;  %11871 = vmatprep.mubr.msk.bf16.mxu1 %vm12346_vm2, %v15725_v22 }
0x121d   : > { %v9566_v16 = vmul.f32 %v15458_v35, %v9543_v18  ;;  %v9588_v14 = vadd.f32 %v15467_v50, %v9565_v49 }
0x121e   : > { %12308 = vrsqrt.f32 %v9512_v27  ;;  %v9513_v4 = vadd.f32 1e-05, %v9496_v31 }
0x121f   : > { %v9589_v19 = vadd.f32 %v15467_v50, %v9566_v16 }
0x1220   : > { %v12305_v52 = vpop.eup %12304  ;;  %12310 = vrsqrt.f32 %v9513_v4 }
0x1221   : > { %v9600_v45 = vpack.c.bf16 %v9589_v19, %v9588_v14  ;;  %v9544_v36 = vmul.f32 %v12305_v52, %v15423_v43 }
0x1222   : > { %v12307_v7 = vpop.eup %12306 }
0x1223   : > { %v9567_v5 = vmul.f32 %v15458_v35, %v9544_v36  ;;  %v9545_v46 = vmul.f32 %v12307_v7, %v15426_v8  ;;  %11872 = vmatmul.mubr.msk.bf16.gmra.mrb[124].mxu1 %vm736_vm1, %v9600_v45 }
0x1224   : > { %11875 = vmatprep.mubr.msk.bf16.mxu1 %vm12346_vm2, %v15725_v22 }
0x1225   : > { %v9568_v13 = vmul.f32 %v15458_v35, %v9545_v46  ;;  %v9590_v37 = vadd.f32 %v15467_v50, %v9567_v5 }
0x1227   : > { %v9591_v12 = vadd.f32 %v15467_v50, %v9568_v13 }
0x1228   : > { %v12309_v11 = vpop.eup %12308 }
0x1229   : > { %v9601_v23 = vpack.c.bf16 %v9591_v12, %v9590_v37  ;;  %v9546_v43 = vmul.f32 %v12309_v11, %v15435_v24 }
0x122a   : > { %v12311_v20 = vpop.eup %12310 }
0x122b   : > { %v9569_v48 = vmul.f32 %v15458_v35, %v9546_v43  ;;  %v9547_v8 = vmul.f32 %v12311_v20, %v15438_v44  ;;  %11876 = vmatmul.mubr.msk.bf16.gmra.mrb[128].mxu1 %vm736_vm1, %v9601_v23 }
0x122c   : > { %11879 = vmatprep.mubr.msk.bf16.mxu1 %vm12346_vm2, %v15725_v22 }
0x122d   : > { %v9570_v41 = vmul.f32 %v15458_v35, %v9547_v8  ;;  %v9592_v10 = vadd.f32 %v15467_v50, %v9569_v48 }
0x122f   : > { %v9593_v26 = vadd.f32 %v15467_v50, %v9570_v41 }
0x1231   : > { %v9602_v38 = vpack.c.bf16 %v9593_v26, %v9592_v10 }
0x1233   : > { %11880 = vmatmul.mubr.msk.bf16.gmra.mrb[132].mxu1 %vm736_vm1, %v9602_v38 }
0x1234   : > { %11883 = vmatprep.mubr.msk.bf16.mxu1 %vm12346_vm2, %v15725_v22 }
0x123d   : > { %v9480_v24 = vpop.xlane.xlu0 %9479 }
0x123e   : > { %v9497_v44 = vmul.f32 0.03125, %v9480_v24 }
0x1240   : > { %v9514_v21 = vadd.f32 1e-05, %v9497_v44 }
0x1242   : > { %12312 = vrsqrt.f32 %v9514_v21 }
0x124c   : > { %v12313_v9 = vpop.eup %12312 }
0x124d   : > { %v9548_v56 = vmul.f32 %v12313_v9, %v15447_v55 }
0x124f   : > { %v9571_v15 = vmul.f32 %v15458_v35, %v9548_v56 }
0x1251   : > { %v9594_v40 = vadd.f32 %v15467_v50, %v9571_v15 }
0x1253   : > { %v9603_v6 = vpack.c.bf16 %v9594_v40, %v9594_v40 }
0x1255   : > { %11884 = vmatmul.mubr.msk.bf16.gmra.mrb[136].mxu1 %vm736_vm1, %v9603_v6 }
0x1297   : > { %v9688_v59 = vpop.f32.mrb[104].mxu1 }
0x1298   : > { %v9689_v47 = vadd.f32 %v15554_v54, %v9688_v59  ;;  %v11853_v63 = vpop.f32.mrb[105].mxu1 }
0x1299   : > { %v9691_v58 = vpop.f32.mrb[106].mxu1 }
0x129a   : > { %v9692_v55 = vadd.f32 %v15554_v54, %v9691_v58  ;;  %v11854_v30 = vpop.f32.mrb[107].mxu1  ;;  %v9758_v35 = vmax.f32 %v9689_v47, 0.0 }
0x129c   : > { %v9759_v49 = vmax.f32 %v9692_v55, 0.0 }
0x129e   : > { %v9775_v50 = vpack.c.bf16 %v9759_v49, %v9758_v35 }
0x129f   : > { %v9696_v18 = vpop.f32.mrb[108].mxu1 }
0x12a0   : > { %v9697_v53 = vadd.f32 %v15554_v54, %v9696_v18  ;;  %v11857_v27 = vpop.f32.mrb[109].mxu1  ;;  %11896 = vmatmul.mubr.msk.bf16.vlgmr.msra.gmra.mrb[108].mxu0 %vm9823_vm6, %v9775_v50 }
0x12a1   : > { %v9699_v31 = vpop.f32.mrb[110].mxu1  ;;  %11899 = vmatprep.mubr.msk.bf16.mxu0 %vm12346_vm2, %v15725_v22 }
0x12a2   : > { %v9700_v16 = vadd.f32 %v15554_v54, %v9699_v31  ;;  %v11858_v4 = vpop.f32.mrb[111].mxu1  ;;  %v9760_v62 = vmax.f32 %v9697_v53, 0.0 }
0x12a4   : > { %v9761_v14 = vmax.f32 %v9700_v16, 0.0 }
0x12a6   : > { %v9776_v19 = vpack.c.bf16 %v9761_v14, %v9760_v62 }
0x12a7   : > { %v9704_v52 = vpop.f32.mrb[112].mxu1 }
0x12a8   : > { %v9705_v45 = vadd.f32 %v15554_v54, %v9704_v52  ;;  %v11861_v36 = vpop.f32.mrb[113].mxu1  ;;  %11900 = vmatmul.mubr.msk.bf16.gmra.mrb[112].mxu0 %vm9823_vm6, %v9776_v19 }
0x12a9   : > { %v9707_v7 = vpop.f32.mrb[114].mxu1  ;;  %11903 = vmatprep.mubr.msk.bf16.mxu0 %vm12346_vm2, %v15725_v22 }
0x12aa   : > { %v9708_v5 = vadd.f32 %v15554_v54, %v9707_v7  ;;  %v11862_v46 = vpop.f32.mrb[115].mxu1  ;;  %v9762_v13 = vmax.f32 %v9705_v45, 0.0 }
0x12ac   : > { %v9763_v37 = vmax.f32 %v9708_v5, 0.0 }
0x12ae   : > { %v9777_v12 = vpack.c.bf16 %v9763_v37, %v9762_v13 }
0x12af   : > { %v9712_v11 = vpop.f32.mrb[116].mxu1 }
0x12b0   : > { %v9713_v23 = vadd.f32 %v15554_v54, %v9712_v11  ;;  %v11865_v43 = vpop.f32.mrb[117].mxu1  ;;  %11904 = vmatmul.mubr.msk.bf16.gmra.mrb[116].mxu0 %vm9823_vm6, %v9777_v12 }
0x12b1   : > { %v9715_v20 = vpop.f32.mrb[118].mxu1  ;;  %11907 = vmatprep.mubr.msk.bf16.mxu0 %vm12346_vm2, %v15725_v22 }
0x12b2   : > { %v9716_v48 = vadd.f32 %v15554_v54, %v9715_v20  ;;  %v11866_v8 = vpop.f32.mrb[119].mxu1  ;;  %v9764_v41 = vmax.f32 %v9713_v23, 0.0 }
0x12b4   : > { %v9765_v10 = vmax.f32 %v9716_v48, 0.0 }
0x12b6   : > { %v9778_v26 = vpack.c.bf16 %v9765_v10, %v9764_v41  ;;  %v15603_v10 = vld [vmem:[%s676_s0] ss:$0 sm:$0xff] }
0x12b8   : > { %11908 = vmatmul.mubr.msk.bf16.gmra.mrb[120].mxu0 %vm9823_vm6, %v9778_v26 }
0x12b9   : > { %11911 = vmatprep.mubr.msk.bf16.mxu0 %vm12346_vm2, %v15725_v22 }
0x12ee   : > { %v9720_v38 = vpop.f32.mrb[120].mxu1 }
0x12ef   : > { %v9721_v24 = vadd.f32 %v15554_v54, %v9720_v38  ;;  %v11869_v44 = vpop.f32.mrb[121].mxu1 }
0x12f0   : > { %v9723_v21 = vpop.f32.mrb[122].mxu1 }
0x12f1   : > { %v9724_v9 = vadd.f32 %v15554_v54, %v9723_v21  ;;  %v11870_v56 = vpop.f32.mrb[123].mxu1  ;;  %v9766_v15 = vmax.f32 %v9721_v24, 0.0 }
0x12f3   : > { %v9767_v40 = vmax.f32 %v9724_v9, 0.0 }
0x12f5   : > { %v9779_v6 = vpack.c.bf16 %v9767_v40, %v9766_v15 }
0x12f6   : > { %v9728_v59 = vpop.f32.mrb[124].mxu1 }
0x12f7   : > { %v9729_v47 = vadd.f32 %v15554_v54, %v9728_v59  ;;  %v11873_v63 = vpop.f32.mrb[125].mxu1  ;;  %11912 = vmatmul.mubr.msk.bf16.gmra.mrb[124].mxu0 %vm9823_vm6, %v9779_v6 }
0x12f8   : > { %v9731_v58 = vpop.f32.mrb[126].mxu1  ;;  %11915 = vmatprep.mubr.msk.bf16.mxu0 %vm12346_vm2, %v15725_v22 }
0x12f9   : > { %v9732_v55 = vadd.f32 %v15554_v54, %v9731_v58  ;;  %v11874_v30 = vpop.f32.mrb[127].mxu1  ;;  %v9768_v35 = vmax.f32 %v9729_v47, 0.0 }
0x12fb   : > { %v9769_v49 = vmax.f32 %v9732_v55, 0.0 }
0x12fd   : > { %v9780_v50 = vpack.c.bf16 %v9769_v49, %v9768_v35 }
0x12fe   : > { %v9736_v18 = vpop.f32.mrb[128].mxu1 }
0x12ff   : > { %v9737_v53 = vadd.f32 %v15554_v54, %v9736_v18  ;;  %v11877_v27 = vpop.f32.mrb[129].mxu1  ;;  %11916 = vmatmul.mubr.msk.bf16.gmra.mrb[128].mxu0 %vm9823_vm6, %v9780_v50 }
0x1300   : > { %v9739_v31 = vpop.f32.mrb[130].mxu1  ;;  %11919 = vmatprep.mubr.msk.bf16.mxu0 %vm12346_vm2, %v15725_v22 }
0x1301   : > { %v9740_v16 = vadd.f32 %v15554_v54, %v9739_v31  ;;  %v11878_v4 = vpop.f32.mrb[131].mxu1  ;;  %v9770_v62 = vmax.f32 %v9737_v53, 0.0 }
0x1303   : > { %v9771_v14 = vmax.f32 %v9740_v16, 0.0 }
0x1305   : > { %v9781_v19 = vpack.c.bf16 %v9771_v14, %v9770_v62 }
0x1306   : > { %v9744_v52 = vpop.f32.mrb[132].mxu1 }
0x1307   : > { %v9745_v45 = vadd.f32 %v15554_v54, %v9744_v52  ;;  %v11881_v36 = vpop.f32.mrb[133].mxu1  ;;  %11920 = vmatmul.mubr.msk.bf16.gmra.mrb[132].mxu0 %vm9823_vm6, %v9781_v19 }
0x1308   : > { %v9747_v7 = vpop.f32.mrb[134].mxu1  ;;  %11923 = vmatprep.mubr.msk.bf16.mxu0 %vm12346_vm2, %v15725_v22 }
0x1309   : > { %v9748_v5 = vadd.f32 %v15554_v54, %v9747_v7  ;;  %v11882_v46 = vpop.f32.mrb[135].mxu1  ;;  %v9772_v13 = vmax.f32 %v9745_v45, 0.0 }
0x130b   : > { %v9773_v37 = vmax.f32 %v9748_v5, 0.0 }
0x130d   : > { %v9782_v12 = vpack.c.bf16 %v9773_v37, %v9772_v13 }
0x130f   : > { %11924 = vmatmul.mubr.msk.bf16.gmra.mrb[136].mxu0 %vm9823_vm6, %v9782_v12 }
0x1310   : > { %11927 = vmatprep.mubr.msk.bf16.mxu0 %vm12346_vm2, %v15725_v22 }
0x1328   : > { %v9752_v11 = vpop.f32.mrb[136].mxu1 }
0x1329   : > { %v9753_v23 = vadd.f32 %v15554_v54, %v9752_v11  ;;  %v11885_v43 = vpop.f32.mrb[137].mxu1 }
0x132a   : > { %v9755_v20 = vpop.f32.mrb[138].mxu1 }
0x132b   : > { %v9774_v48 = vmax.f32 %v9753_v23, 0.0  ;;  %v11886_v8 = vpop.f32.mrb[139].mxu1 }
0x132d   : > { %v9783_v41 = vpack.c.bf16 %v9774_v48, %v9774_v48 }
0x132f   : > { %11928 = vmatmul.mubr.msk.bf16.gmra.mrb[140].mxu0 %vm9823_vm6, %v9783_v41 }
0x1373   : > { %v9885_v26 = vpop.f32.mrb[108].mxu0 }
0x1374   : > { %v9886_v38 = vadd.f32 %v15603_v10, %v9885_v26  ;;  %v11897_v22 = vpop.f32.mrb[109].mxu0 }
0x1375   : > { %v9888_v24 = vpop.f32.mrb[110].mxu0 }
0x1376   : > { %v15607_v54 = vadd.f32 %v9886_v38, %v15239_v60  ;;  %v9889_v44 = vadd.f32 %v15603_v10, %v9888_v24  ;;  %v11898_v21 = vpop.f32.mrb[111].mxu0 }
0x1378   : > { %9972 = vst.msk [vmem:[#allocation2] sm:$0xff] %vm736_vm1, %v15607_v54  ;;  %v9956_v9 = vadd.f32 %v9889_v44, %v15242_v25 }
0x137a   : > { %9973 = vst.msk [vmem:[#allocation2 + $0x8] sm:$0xff] %vm736_vm1, %v9956_v9 }
0x137b   : > { %v9893_v56 = vpop.f32.mrb[112].mxu0 }
0x137c   : > { %v9894_v15 = vadd.f32 %v15603_v10, %v9893_v56  ;;  %v11901_v40 = vpop.f32.mrb[113].mxu0 }
0x137d   : > { %v9896_v6 = vpop.f32.mrb[114].mxu0 }
0x137e   : > { %v9957_v59 = vadd.f32 %v9894_v15, %v15251_v17  ;;  %v9897_v60 = vadd.f32 %v15603_v10, %v9896_v6  ;;  %v11902_v47 = vpop.f32.mrb[115].mxu0  ;;  %v10462_v6 = vld [vmem:[%s15748_s17] ss:$0 sm:$0xff] (!%p10461_p5) }
0x1380   : > { %9974 = vst.msk [vmem:[#allocation2 + $0x10] sm:$0xff] %vm736_vm1, %v9957_v59  ;;  %v9958_v63 = vadd.f32 %v9897_v60, %v15254_v29 }
0x1382   : > { %9975 = vst.msk [vmem:[#allocation2 + $0x18] sm:$0xff] %vm736_vm1, %v9958_v63 }
0x1383   : > { %v9901_v58 = vpop.f32.mrb[116].mxu0 }
0x1384   : > { %v9902_v25 = vadd.f32 %v15603_v10, %v9901_v58  ;;  %v11905_v55 = vpop.f32.mrb[117].mxu0 }
0x1385   : > { %v9904_v30 = vpop.f32.mrb[118].mxu0 }
0x1386   : > { %v9959_v35 = vadd.f32 %v9902_v25, %v15263_v42  ;;  %v9905_v49 = vadd.f32 %v15603_v10, %v9904_v30  ;;  %v11906_v50 = vpop.f32.mrb[119].mxu0 }
0x1388   : > { %9976 = vst.msk [vmem:[#allocation2 + $0x20] sm:$0xff] %vm736_vm1, %v9959_v35  ;;  %v9960_v17 = vadd.f32 %v9905_v49, %v15266_v61 }
0x138a   : > { %9977 = vst.msk [vmem:[#allocation2 + $0x28] sm:$0xff] %vm736_vm1, %v9960_v17 }
0x138b   : > { %v9909_v18 = vpop.f32.mrb[120].mxu0 }
0x138c   : > { %v9910_v29 = vadd.f32 %v15603_v10, %v9909_v18  ;;  %v11909_v53 = vpop.f32.mrb[121].mxu0 }
0x138d   : > { %v9912_v27 = vpop.f32.mrb[122].mxu0 }
0x138e   : > { %v9961_v31 = vadd.f32 %v9910_v29, %v15275_v1  ;;  %v9913_v16 = vadd.f32 %v15603_v10, %v9912_v27  ;;  %v11910_v4 = vpop.f32.mrb[123].mxu0 }
0x1390   : > { %9978 = vst.msk [vmem:[#allocation2 + $0x30] sm:$0xff] %vm736_vm1, %v9961_v31  ;;  %v9962_v42 = vadd.f32 %v9913_v16, %v15278_v39 }
0x1392   : > { %9979 = vst.msk [vmem:[#allocation2 + $0x38] sm:$0xff] %vm736_vm1, %v9962_v42 }
0x13ca   : > { %v9917_v62 = vpop.f32.mrb[124].mxu0 }
0x13cb   : > { %v9918_v61 = vadd.f32 %v15603_v10, %v9917_v62  ;;  %v11913_v14 = vpop.f32.mrb[125].mxu0 }
0x13cc   : > { %v9920_v19 = vpop.f32.mrb[126].mxu0 }
0x13cd   : > { %v9963_v52 = vadd.f32 %v9918_v61, %v15290_v28  ;;  %v9921_v45 = vadd.f32 %v15603_v10, %v9920_v19  ;;  %v11914_v36 = vpop.f32.mrb[127].mxu0 }
0x13cf   : > { %9980 = vst.msk [vmem:[#allocation2 + $0x40] sm:$0xff] %vm736_vm1, %v9963_v52  ;;  %v9964_v1 = vadd.f32 %v9921_v45, %v15295_v57 }
0x13d1   : > { %9981 = vst.msk [vmem:[#allocation2 + $0x48] sm:$0xff] %vm736_vm1, %v9964_v1 }
0x13d2   : > { %v9925_v7 = vpop.f32.mrb[128].mxu0 }
0x13d3   : > { %v9926_v39 = vadd.f32 %v15603_v10, %v9925_v7  ;;  %v11917_v5 = vpop.f32.mrb[129].mxu0 }
0x13d4   : > { %v9928_v46 = vpop.f32.mrb[130].mxu0 }
0x13d5   : > { %v9965_v13 = vadd.f32 %v9926_v39, %v15304_v3  ;;  %v9929_v37 = vadd.f32 %v15603_v10, %v9928_v46  ;;  %v11918_v12 = vpop.f32.mrb[131].mxu0 }
0x13d7   : > { %9982 = vst.msk [vmem:[#allocation2 + $0x50] sm:$0xff] %vm736_vm1, %v9965_v13  ;;  %v9966_v28 = vadd.f32 %v9929_v37, %v15307_v2 }
0x13d9   : > { %9983 = vst.msk [vmem:[#allocation2 + $0x58] sm:$0xff] %vm736_vm1, %v9966_v28 }
0x13da   : > { %v9933_v11 = vpop.f32.mrb[132].mxu0 }
0x13db   : > { %v9934_v57 = vadd.f32 %v15603_v10, %v9933_v11  ;;  %v11921_v23 = vpop.f32.mrb[133].mxu0 }
0x13dc   : > { %v9936_v43 = vpop.f32.mrb[134].mxu0 }
0x13dd   : > { %v9967_v20 = vadd.f32 %v9934_v57, %v15318_v0  ;;  %v9937_v48 = vadd.f32 %v15603_v10, %v9936_v43  ;;  %v11922_v8 = vpop.f32.mrb[135].mxu0 }
0x13df   : > { %9984 = vst.msk [vmem:[#allocation2 + $0x60] sm:$0xff] %vm736_vm1, %v9967_v20  ;;  %v9968_v3 = vadd.f32 %v9937_v48, %v15321_v32 }
0x13e1   : > { %9985 = vst.msk [vmem:[#allocation2 + $0x68] sm:$0xff] %vm736_vm1, %v9968_v3 }
0x13e2   : > { %v9941_v41 = vpop.f32.mrb[136].mxu0 }
0x13e3   : > { %v9942_v2 = vadd.f32 %v15603_v10, %v9941_v41  ;;  %v11925_v26 = vpop.f32.mrb[137].mxu0 }
0x13e4   : > { %v9944_v38 = vpop.f32.mrb[138].mxu0 }
0x13e5   : > { %v9969_v22 = vadd.f32 %v9942_v2, %v15333_v34  ;;  %v9945_v24 = vadd.f32 %v15603_v10, %v9944_v38  ;;  %v11926_v44 = vpop.f32.mrb[139].mxu0  ;;  %v12331_v34 = vld [vmem:[%s15747_s13] sm:$0xff] (!%p10461_p5)  }
0x13e7   : > { %9986 = vst.msk [vmem:[#allocation2 + $0x70] sm:$0xff] %vm736_vm1, %v9969_v22  ;;  %v9970_v0 = vadd.f32 %v9945_v24, %v15336_v51  ;;  %v12358_v51 = vmov (!%p10461_p5), 0.0  }
0x13e8   : > { %11931 = vmatprep.subr.bf16.mxu0 (!%p10461_p5), %v12358_v51  ;;  %11935 = vmatprep.mubr.msk.bf16.mxu0 (!%p10461_p5), %vm12359_vm7, %v12358_v51 }
0x13e9   : > { %9987 = vst.msk [vmem:[#allocation2 + $0x78] sm:$0xff] %vm736_vm1, %v9970_v0  ;;  %11932 = vmatpush3.bf16.msra.mxu0 (!%p10461_p5), %v12331_v34 }
0x13ea   : > { %11933 = vmatprep.subr.bf16.mxu0 (!%p10461_p5), %v12358_v51 }
0x1401   : > { %9992 = sbr.rel (%p10461_p5) target bundleno = 5654 (0x1616), region = 88 }
0x1402   : > { %v9949_v21 = vpop.f32.mrb[140].mxu0 }
0x1403   : > { %v9950_v32 = vadd.f32 %v15603_v10, %v9949_v21  ;;  %v11929_v9 = vpop.f32.mrb[141].mxu0  ;;  %v12332_v10 = vld [vmem:[%s15747_s13 + $0x8] sm:$0xff] (!%p10461_p5)  }
0x1404   : > { %v9952_v56 = vpop.f32.mrb[142].mxu0  ;;  %11934 = vmatpush3.bf16.msra.mxu0 (!%p10461_p5), %v12332_v10 }
0x1405   : > { %v9971_v15 = vadd.f32 %v9950_v32, %v15370_v33  ;;  %v11930_v40 = vpop.f32.mrb[143].mxu0  ;;  %v9993_v33 = vpack.c.bf16 (!%p10461_p5), %v15607_v54, %v15607_v54 }
0x1407   : > { %9988 = vst.msk [vmem:[#allocation2 + $0x80] sm:$0xff] %vm736_vm1, %v9971_v15  ;;  %11936 = vmatmul.mubr.msk.bf16.vlgmr.msra.gmra.mrb[0].mxu0 (!%p10461_p5), %vm736_vm1, %v9993_v33 }
0x14da   : > { %v10054_v59 = vpop.f32.mrb[0].mxu0 }
0x14db   : > { %v10055_v60 = vadd.f32 %v10462_v6, %v10054_v59  ;;  %v11937_v47 = vpop.f32.mrb[1].mxu0 }
0x14dc   : > { %v10057_v63 = vpop.f32.mrb[2].mxu0 }
0x14dd   : > { %10060 = vst [vmem:[%s15749_s20] sm:$0xff] %v10055_v60  ;;  %10061 = vmax.xlane.f32.xlu0 %v10055_v60  ;;  %v11938_v58 = vpop.f32.mrb[3].mxu0 }
0x156a   : > { %v10062_v25 = vpop.xlane.xlu0 %10061 }
0x156b   : > { %v10063_v55 = vsub.f32 %v10055_v60, %v10062_v25 }
0x156d   : > { %v10064_v54 = vmul.f32 1.442695, %v10063_v55 }
0x156f   : > { %12333 = vpow2.f32 %v10064_v54 }
0x1579   : > { %v12334_v30 = vpop.eup %12333 }
0x157a   : > { %10066 = vadd.xlane.f32.xlu0 %v12334_v30 }
0x1607   : > { %v10067_v35 = vpop.xlane.xlu0 %10066 }
0x1608   : > { %12335 = vrcp.f32 %v10067_v35 }
0x1612   : > { %v12336_v49 = vpop.eup %12335 }
0x1613   : > { %v10069_v50 = vmul.f32 %v12336_v49, %v12334_v30 }
0x1615   : > { %10070 = vst [vmem:[%s15750_s24] sm:$0xff] %v10069_v50 }
0x1616 PF: > { %s15751_s25 = sld [smem:[#allocation3_spill]] }
0x161c   : > { %s27_s21 = sadd.s32 1, %s15751_s25  }
0x161d   : > { %p24_p6 = scmp.ge.s32.totalorder %s27_s21, 4  }
0x161f   :  { %26 = sbr.rel (!%p24_p6) target bundleno = 8 (0x8), region = 158 }

</bundles_post_ra>
